<compile_context>
chip_gen: v7x
topology: tpu7x:2x2x1
jax: 0.10.0
libtpu: 0.0.40
codegen_flags: <defaults>
</compile_context>

<pallas_src>
import jax
import jax.numpy as jnp
from jax import lax
from jax.experimental import pallas as pl
from jax.experimental.pallas import tpu as pltpu


# --------------------------- Pallas kernel ----------------------------------

def _music_diffusion_kernel(x_ref, ts_ref, lab_ref,
                            wt_sinT_ref, wt_cosT_ref, btc_ref, iembT_ref,
                            w1t_ref,
                            w2t_ref, b2c_ref,
                            w3t_ref, b3c_ref,
                            out_ref,
                            h2_ref):
    # x_ref:       (B, C, HW)      f32   channels-first tokens (straight from NCHW reshape)
    # ts_ref:      (B,)            f32   SMEM  timestep scalars
    # lab_ref:     (B,)            i32   SMEM  instrument labels
    # wt_sinT_ref: (D, half)       f32   timestep-proj weight, sin half, transposed
    # wt_cosT_ref: (D, half)       f32   timestep-proj weight, cos half, transposed
    # btc_ref:     (D, 1)          f32   bt + b1 (layer-1 bias folded in)
    # iembT_ref:   (D, n_instr)    f32   instrument embedding, transposed
    # w1t_ref:     (D, C)          f32   layer-1 weight (transposed)
    # w2t_ref:     (D, D)          bf16  layer-2 weight (transposed)
    # b2c_ref:     (D, 1)          f32
    # w3t_ref:     (V, D)          bf16  layer-3 weight (transposed)
    # b3c_ref:     (V, 1)          f32
    # out_ref:     (B, V, HW)      f32
    # h2_ref:      (D, B*HW)       bf16  VMEM scratch (layer-2 activations)
    B, C, HW = x_ref.shape
    V = w3t_ref.shape[0]
    half = wt_sinT_ref.shape[1]
    n_instr = iembT_ref.shape[1]

    # Hoisted loop-invariants (JAX does not CSE broadcast_in_dim).
    lane_j = lax.broadcasted_iota(jnp.int32, (1, half), 1).astype(jnp.float32)
    freqs = jnp.exp(lane_j * (-jnp.log(10000.0) / half))              # (1, half)
    instr_iota = lax.broadcasted_iota(jnp.int32, (1, n_instr), 1)     # (1, n_instr)
    w1t = w1t_ref[...]                                                # (D, C) f32

    for b in range(B):                                    # B=2, statically unrolled
        # ---- conditioning: sinusoidal(t) @ wt  + instrument embedding + biases ----
        t = ts_ref[b]                                     # f32 scalar from SMEM
        args = t * freqs                                  # (1, half)
        cond = (jnp.sum(wt_sinT_ref[...] * jnp.sin(args), axis=1, keepdims=True)
                + jnp.sum(wt_cosT_ref[...] * jnp.cos(args), axis=1, keepdims=True))   # (D,1)
        onehot = (instr_iota == lab_ref[b]).astype(jnp.float32)                        # (1,n_instr)
        cond = (cond + btc_ref[...]
                + jnp.sum(iembT_ref[...] * onehot, axis=1, keepdims=True))             # (D,1)

        # ---- layer 1: K = C = 4 contraction as broadcast FMAs on the VPU ----
        x_b = x_ref[b]                                    # (C, HW) f32
        h = cond + w1t[:, 0:1] * x_b[0:1, :]              # (D, HW) f32
        for c in range(1, C):
            h = h + w1t[:, c:c + 1] * x_b[c:c + 1, :]
        # NOTE: jax.nn.gelu is the tanh approximation; PyTorch nn.GELU default is exact erf.
        h = jax.nn.gelu(h)

        # ---- layer 2: MXU, bf16 operands, f32 accumulate; (128,256) tile = 32 vregs ----
        h2 = jnp.dot(w2t_ref[...], h.astype(jnp.bfloat16),
                     preferred_element_type=jnp.float32)  # (D, HW) f32
        h2 = jax.nn.gelu(h2 + b2c_ref[...])
        h2_ref[:, b * HW:(b + 1) * HW] = h2.astype(jnp.bfloat16)

    # ---- layer 3: chunked epilogue (V split into 128-row tiles, token axis per batch) ----
    VC = min(128, V)
    for b in range(B):
        h2_b = h2_ref[:, b * HW:(b + 1) * HW]             # (D, HW) bf16 from VMEM scratch
        for v0 in range(0, V, VC):
            logits = jnp.dot(w3t_ref[v0:v0 + VC, :], h2_b,
                             preferred_element_type=jnp.float32)       # (VC, HW) f32 = 32 vregs
            out_ref[b, v0:v0 + VC, :] = (logits + b3c_ref[v0:v0 + VC, :]).astype(out_ref.dtype)


def music_diffusion_logits(x_cf, timestep, instr_labels, kp):
    """x_cf: (B, C, HW) f32 channels-first tokens. Returns logits (B, V, HW) f32."""
    B, C, HW = x_cf.shape
    D = kp["w2t"].shape[0]
    V = kp["w3t"].shape[0]
    half = kp["wt_sinT"].shape[1]
    n_instr = kp["iembT"].shape[1]

    smem_spec = pl.BlockSpec(memory_space=pltpu.MemorySpace.SMEM)
    in_specs = [
        pl.BlockSpec((B, C, HW), lambda i: (0, 0, 0)),    # x (channels-first)
        smem_spec,                                        # timestep  (B,) f32 -> SMEM
        smem_spec,                                        # labels    (B,) i32 -> SMEM
        pl.BlockSpec((D, half), lambda i: (0, 0)),        # wt_sin^T
        pl.BlockSpec((D, half), lambda i: (0, 0)),        # wt_cos^T
        pl.BlockSpec((D, 1), lambda i: (0, 0)),           # bt + b1
        pl.BlockSpec((D, n_instr), lambda i: (0, 0)),     # instr_emb^T
        pl.BlockSpec((D, C), lambda i: (0, 0)),           # w1^T
        pl.BlockSpec((D, D), lambda i: (0, 0)),           # w2^T (bf16)
        pl.BlockSpec((D, 1), lambda i: (0, 0)),           # b2
        pl.BlockSpec((V, D), lambda i: (0, 0)),           # w3^T (bf16)
        pl.BlockSpec((V, 1), lambda i: (0, 0)),           # b3
    ]
    out_spec = pl.BlockSpec((B, V, HW), lambda i: (0, 0, 0))

    return pl.pallas_call(
        _music_diffusion_kernel,
        out_shape=jax.ShapeDtypeStruct((B, V, HW), jnp.float32),
        grid_spec=pltpu.PrefetchScalarGridSpec(
            num_scalar_prefetch=0,
            grid=(1,),                                    # single step: whole problem per call
            in_specs=in_specs,
            out_specs=out_spec,
            scratch_shapes=[pltpu.VMEM((D, B * HW), jnp.bfloat16)],
        ),
        compiler_params=pltpu.CompilerParams(
            dimension_semantics=("arbitrary",)),
    )(x_cf, timestep, instr_labels,
      kp["wt_sinT"], kp["wt_cosT"], kp["btc"], kp["iembT"],
      kp["w1t"], kp["w2t"], kp["b2c"], kp["w3t"], kp["b3c"])


# --------------------------- Parameters (glue) --------------------------------

def init_params(key, *, C, D, V, n_instr, t_dim):
    ks = jax.random.split(key, 6)

    def dense(k, fan_in, fan_out):
        return (jax.random.normal(k, (fan_in, fan_out), jnp.float32)
                / jnp.sqrt(jnp.float32(fan_in)))

    return {
        "w1": dense(ks[0], C, D),   "b1": jnp.zeros((D,), jnp.float32),
        "w2": dense(ks[1], D, D),   "b2": jnp.zeros((D,), jnp.float32),
        "w3": dense(ks[2], D, V),   "b3": jnp.zeros((V,), jnp.float32),
        "wt": dense(ks[3], t_dim, D), "bt": jnp.zeros((D,), jnp.float32),
        "instr_emb": 0.02 * jax.random.normal(ks[4], (n_instr, D), jnp.float32),
    }


def prepare_kernel_params(params):
    """One-time re-layout into kernel-ready form (hoisted out of the forward hot path)."""
    wt = params["wt"]
    half = wt.shape[0] // 2
    return {
        "w1t": params["w1"].T,                              # (D, C)       f32
        "w2t": params["w2"].T.astype(jnp.bfloat16),         # (D, D)       bf16
        "b2c": params["b2"][:, None],                       # (D, 1)       f32
        "w3t": params["w3"].T.astype(jnp.bfloat16),         # (V, D)       bf16
        "b3c": params["b3"][:, None],                       # (V, 1)       f32
        "wt_sinT": wt[:half].T,                             # (D, half)    f32
        "wt_cosT": wt[half:].T,                             # (D, half)    f32
        "btc": (params["bt"] + params["b1"])[:, None],      # (D, 1)       f32 (b1 folded)
        "iembT": params["instr_emb"].T,                     # (D, n_instr) f32
    }


@jax.jit
def music_diffusion_forward(kparams, image_nchw, timestep, instr_labels):
    """MusicDiffusion.forward: delegates to the (synthetic) diffusion model.

    image_nchw: (B, C, H, W) f32, timestep: (B,) f32, instr_labels: (B,) i32
    returns logits (B, V, H, W) f32 (NCHW, like the PyTorch model feeding CE loss).
    """
    B, C, H, W = image_nchw.shape
    V = kparams["w3t"].shape[0]
    x_cf = image_nchw.reshape(B, C, H * W)                  # NCHW -> (B, C, HW): pure reshape
    logits = music_diffusion_logits(x_cf,
                                    timestep.astype(jnp.float32),
                                    instr_labels.astype(jnp.int32),
                                    kparams)                # (B, V, HW)
    return logits.reshape(B, V, H, W)                       # NCHW, no transpose


# --------------------------------- main --------------------------------------

if __name__ == "__main__":
    B, C, H, W = 2, 4, 16, 16       # latent "image" from the autoencoder
    D, V = 128, 256                 # hidden width, token vocabulary
    N_INSTR, T_DIM = 4, 64

    key = jax.random.PRNGKey(0)
    k_p, k_x, k_t, k_i = jax.random.split(key, 4)

    params = init_params(k_p, C=C, D=D, V=V, n_instr=N_INSTR, t_dim=T_DIM)
    kparams = prepare_kernel_params(params)     # one-time layout/casting, outside forward

    image = jax.random.normal(k_x, (B, C, H, W), jnp.float32)
    timestep = 1.0 - jax.random.uniform(k_t, (B,), jnp.float32)
    instr_labels = jax.random.randint(k_i, (B,), 0, N_INSTR)

    pred = music_diffusion_forward(kparams, image, timestep, instr_labels)
    pred = jax.block_until_ready(pred)

    assert pred.shape == (B, V, H, W), pred.shape
    assert bool(jnp.all(jnp.isfinite(pred)))

    # TODO(synk): autoencoder.encode / add_noise / loss weighting of training_step are not part
    # of forward() and depend on injected submodules; only the forward hot path is kernelized.
    print("KERNEL_OK")
</pallas_src>

<mosaic_0001>
module attributes {stable_mosaic.version = 11 : i64} {
  func.func @_music_diffusion_kernel(%arg0: i32, %arg1: memref<2x4x256xf32, #tpu.memory_space<vmem>>, %arg2: memref<2xf32, #tpu.memory_space<smem>>, %arg3: memref<2xi32, #tpu.memory_space<smem>>, %arg4: memref<128x32xf32, #tpu.memory_space<vmem>>, %arg5: memref<128x32xf32, #tpu.memory_space<vmem>>, %arg6: memref<128x1xf32, #tpu.memory_space<vmem>>, %arg7: memref<128x4xf32, #tpu.memory_space<vmem>>, %arg8: memref<128x4xf32, #tpu.memory_space<vmem>>, %arg9: memref<128x128xbf16, #tpu.memory_space<vmem>>, %arg10: memref<128x1xf32, #tpu.memory_space<vmem>>, %arg11: memref<256x128xbf16, #tpu.memory_space<vmem>>, %arg12: memref<256x1xf32, #tpu.memory_space<vmem>>, %arg13: memref<2x256x256xf32, #tpu.memory_space<vmem>>, %arg14: memref<128x512xbf16, #tpu.memory_space<vmem>>) attributes {dimension_semantics = [#tpu.dimension_semantics<arbitrary>], iteration_bounds = array<i64: 1>, scalar_prefetch = 0 : i64, scratch_operands = 1 : i64, tpu.core_type = #tpu.core_type<tc>, window_params = [{pipeline_mode = #tpu.pipeline_mode<synchronous>, transform_indices = @transform_0, window_bounds = array<i64: 2, 4, 256>}, {transform_indices = @transform_1, window_bounds = array<i64: 2>}, {transform_indices = @transform_2, window_bounds = array<i64: 2>}, {pipeline_mode = #tpu.pipeline_mode<synchronous>, transform_indices = @transform_3, window_bounds = array<i64: 128, 32>}, {pipeline_mode = #tpu.pipeline_mode<synchronous>, transform_indices = @transform_4, window_bounds = array<i64: 128, 32>}, {pipeline_mode = #tpu.pipeline_mode<synchronous>, transform_indices = @transform_5, window_bounds = array<i64: 128, 1>}, {pipeline_mode = #tpu.pipeline_mode<synchronous>, transform_indices = @transform_6, window_bounds = array<i64: 128, 4>}, {pipeline_mode = #tpu.pipeline_mode<synchronous>, transform_indices = @transform_7, window_bounds = array<i64: 128, 4>}, {pipeline_mode = #tpu.pipeline_mode<synchronous>, transform_indices = @transform_8, window_bounds = array<i64: 128, 128>}, {pipeline_mode = #tpu.pipeline_mode<synchronous>, transform_indices = @transform_9, window_bounds = array<i64: 128, 1>}, {pipeline_mode = #tpu.pipeline_mode<synchronous>, transform_indices = @transform_10, window_bounds = array<i64: 256, 128>}, {pipeline_mode = #tpu.pipeline_mode<synchronous>, transform_indices = @transform_11, window_bounds = array<i64: 256, 1>}, {pipeline_mode = #tpu.pipeline_mode<synchronous>, transform_indices = @transform_12, window_bounds = array<i64: 2, 256, 256>}]} {
    %0 = tpu.iota {dimensions = array<i32: 1>} : vector<1x32xi32>
    %1 = arith.sitofp %0 : vector<1x32xi32> to vector<1x32xf32>
    %cst = arith.constant 1.000000e+04 : f32
    %2 = math.log %cst : f32
    %cst_0 = arith.constant 0.000000e+00 : f32
    %3 = arith.subf %cst_0, %2 : f32
    %cst_1 = arith.constant 3.200000e+01 : f32
    %4 = arith.divf %3, %cst_1 : f32
    %5 = vector.broadcast %4 : f32 to vector<1x32xf32>
    %6 = arith.mulf %1, %5 : vector<1x32xf32>
    %7 = math.exp %6 : vector<1x32xf32>
    %8 = tpu.iota {dimensions = array<i32: 1>} : vector<1x4xi32>
    %c0 = arith.constant 0 : index
    %c0_2 = arith.constant 0 : index
    %9 = vector.load %arg8[%c0, %c0_2] : memref<128x4xf32, #tpu.memory_space<vmem>>, vector<128x4xf32>
    %c0_3 = arith.constant 0 : index
    %10 = memref.load %arg2[%c0_3] : memref<2xf32, #tpu.memory_space<smem>>
    %11 = vector.broadcast %10 : f32 to vector<1x32xf32>
    %12 = arith.mulf %11, %7 : vector<1x32xf32>
    %c0_4 = arith.constant 0 : index
    %c0_5 = arith.constant 0 : index
    %13 = vector.load %arg4[%c0_4, %c0_5] : memref<128x32xf32, #tpu.memory_space<vmem>>, vector<128x32xf32>
    %14 = math.sin %12 : vector<1x32xf32>
    %15 = vector.broadcast %14 : vector<1x32xf32> to vector<128x32xf32>
    %16 = arith.mulf %13, %15 : vector<128x32xf32>
    %cst_6 = arith.constant dense<0.000000e+00> : vector<128xf32>
    %17 = vector.multi_reduction <add>, %16, %cst_6 [1] : vector<128x32xf32> to vector<128xf32>
    %18 = vector.shape_cast %17 : vector<128xf32> to vector<128x1xf32>
    %c0_7 = arith.constant 0 : index
    %c0_8 = arith.constant 0 : index
    %19 = vector.load %arg5[%c0_7, %c0_8] : memref<128x32xf32, #tpu.memory_space<vmem>>, vector<128x32xf32>
    %20 = math.cos %12 : vector<1x32xf32>
    %21 = vector.broadcast %20 : vector<1x32xf32> to vector<128x32xf32>
    %22 = arith.mulf %19, %21 : vector<128x32xf32>
    %cst_9 = arith.constant dense<0.000000e+00> : vector<128xf32>
    %23 = vector.multi_reduction <add>, %22, %cst_9 [1] : vector<128x32xf32> to vector<128xf32>
    %24 = vector.shape_cast %23 : vector<128xf32> to vector<128x1xf32>
    %25 = arith.addf %18, %24 : vector<128x1xf32>
    %c0_10 = arith.constant 0 : index
    %26 = memref.load %arg3[%c0_10] : memref<2xi32, #tpu.memory_space<smem>>
    %27 = vector.broadcast %26 : i32 to vector<1x4xi32>
    %28 = arith.cmpi eq, %8, %27 : vector<1x4xi32>
    %29 = arith.extui %28 : vector<1x4xi1> to vector<1x4xi32>
    %30 = arith.sitofp %29 : vector<1x4xi32> to vector<1x4xf32>
    %c0_11 = arith.constant 0 : index
    %c0_12 = arith.constant 0 : index
    %31 = vector.load %arg6[%c0_11, %c0_12] : memref<128x1xf32, #tpu.memory_space<vmem>>, vector<128x1xf32>
    %32 = arith.addf %25, %31 : vector<128x1xf32>
    %c0_13 = arith.constant 0 : index
    %c0_14 = arith.constant 0 : index
    %33 = vector.load %arg7[%c0_13, %c0_14] : memref<128x4xf32, #tpu.memory_space<vmem>>, vector<128x4xf32>
    %34 = vector.broadcast %30 : vector<1x4xf32> to vector<128x4xf32>
    %35 = arith.mulf %33, %34 : vector<128x4xf32>
    %cst_15 = arith.constant dense<0.000000e+00> : vector<128xf32>
    %36 = vector.multi_reduction <add>, %35, %cst_15 [1] : vector<128x4xf32> to vector<128xf32>
    %37 = vector.shape_cast %36 : vector<128xf32> to vector<128x1xf32>
    %38 = arith.addf %32, %37 : vector<128x1xf32>
    %c0_16 = arith.constant 0 : index
    %c0_17 = arith.constant 0 : index
    %c0_18 = arith.constant 0 : index
    %39 = vector.load %arg1[%c0_16, %c0_17, %c0_18] : memref<2x4x256xf32, #tpu.memory_space<vmem>>, vector<1x4x256xf32>
    %40 = vector.shape_cast %39 : vector<1x4x256xf32> to vector<4x256xf32>
    %41 = vector.extract_strided_slice %9 {offsets = [0, 0], sizes = [128, 1], strides = [1, 1]} : vector<128x4xf32> to vector<128x1xf32>
    %42 = vector.extract_strided_slice %40 {offsets = [0, 0], sizes = [1, 256], strides = [1, 1]} : vector<4x256xf32> to vector<1x256xf32>
    %43 = vector.broadcast %41 : vector<128x1xf32> to vector<128x256xf32>
    %44 = vector.broadcast %42 : vector<1x256xf32> to vector<128x256xf32>
    %45 = arith.mulf %43, %44 : vector<128x256xf32>
    %46 = vector.broadcast %38 : vector<128x1xf32> to vector<128x256xf32>
    %47 = arith.addf %46, %45 : vector<128x256xf32>
    %48 = vector.extract_strided_slice %9 {offsets = [0, 1], sizes = [128, 1], strides = [1, 1]} : vector<128x4xf32> to vector<128x1xf32>
    %49 = vector.extract_strided_slice %40 {offsets = [1, 0], sizes = [1, 256], strides = [1, 1]} : vector<4x256xf32> to vector<1x256xf32>
    %50 = vector.broadcast %48 : vector<128x1xf32> to vector<128x256xf32>
    %51 = vector.broadcast %49 : vector<1x256xf32> to vector<128x256xf32>
    %52 = arith.mulf %50, %51 : vector<128x256xf32>
    %53 = arith.addf %47, %52 : vector<128x256xf32>
    %54 = vector.extract_strided_slice %9 {offsets = [0, 2], sizes = [128, 1], strides = [1, 1]} : vector<128x4xf32> to vector<128x1xf32>
    %55 = vector.extract_strided_slice %40 {offsets = [2, 0], sizes = [1, 256], strides = [1, 1]} : vector<4x256xf32> to vector<1x256xf32>
    %56 = vector.broadcast %54 : vector<128x1xf32> to vector<128x256xf32>
    %57 = vector.broadcast %55 : vector<1x256xf32> to vector<128x256xf32>
    %58 = arith.mulf %56, %57 : vector<128x256xf32>
    %59 = arith.addf %53, %58 : vector<128x256xf32>
    %60 = vector.extract_strided_slice %9 {offsets = [0, 3], sizes = [128, 1], strides = [1, 1]} : vector<128x4xf32> to vector<128x1xf32>
    %61 = vector.extract_strided_slice %40 {offsets = [3, 0], sizes = [1, 256], strides = [1, 1]} : vector<4x256xf32> to vector<1x256xf32>
    %62 = vector.broadcast %60 : vector<128x1xf32> to vector<128x256xf32>
    %63 = vector.broadcast %61 : vector<1x256xf32> to vector<128x256xf32>
    %64 = arith.mulf %62, %63 : vector<128x256xf32>
    %65 = arith.addf %59, %64 : vector<128x256xf32>
    %66 = arith.mulf %65, %65 : vector<128x256xf32>
    %67 = arith.mulf %65, %66 : vector<128x256xf32>
    %cst_19 = arith.constant 4.471500e-02 : f32
    %68 = vector.broadcast %cst_19 : f32 to vector<128x256xf32>
    %69 = arith.mulf %68, %67 : vector<128x256xf32>
    %70 = arith.addf %65, %69 : vector<128x256xf32>
    %cst_20 = arith.constant 0.797884583 : f32
    %71 = vector.broadcast %cst_20 : f32 to vector<128x256xf32>
    %72 = arith.mulf %71, %70 : vector<128x256xf32>
    %73 = math.tanh %72 : vector<128x256xf32>
    %cst_21 = arith.constant 1.000000e+00 : f32
    %74 = vector.broadcast %cst_21 : f32 to vector<128x256xf32>
    %75 = arith.addf %74, %73 : vector<128x256xf32>
    %cst_22 = arith.constant 5.000000e-01 : f32
    %76 = vector.broadcast %cst_22 : f32 to vector<128x256xf32>
    %77 = arith.mulf %76, %75 : vector<128x256xf32>
    %78 = arith.mulf %65, %77 : vector<128x256xf32>
    %c0_23 = arith.constant 0 : index
    %c0_24 = arith.constant 0 : index
    %79 = vector.load %arg9[%c0_23, %c0_24] : memref<128x128xbf16, #tpu.memory_space<vmem>>, vector<128x128xbf16>
    %80 = arith.truncf %78 : vector<128x256xf32> to vector<128x256xbf16>
    %cst_25 = arith.constant dense<0.000000e+00> : vector<128x256xf32>
    %81 = tpu.matmul %79, %80, %cst_25 {dimension_numbers = #tpu.dot_dimension_numbers<[1], [0], [0], [1], [0, 0, 1, 1], [], []>} : vector<128x128xbf16>, vector<128x256xbf16>, vector<128x256xf32> -> vector<128x256xf32>
    %c0_26 = arith.constant 0 : index
    %c0_27 = arith.constant 0 : index
    %82 = vector.load %arg10[%c0_26, %c0_27] : memref<128x1xf32, #tpu.memory_space<vmem>>, vector<128x1xf32>
    %83 = vector.broadcast %82 : vector<128x1xf32> to vector<128x256xf32>
    %84 = arith.addf %81, %83 : vector<128x256xf32>
    %85 = arith.mulf %84, %84 : vector<128x256xf32>
    %86 = arith.mulf %84, %85 : vector<128x256xf32>
    %cst_28 = arith.constant 4.471500e-02 : f32
    %87 = vector.broadcast %cst_28 : f32 to vector<128x256xf32>
    %88 = arith.mulf %87, %86 : vector<128x256xf32>
    %89 = arith.addf %84, %88 : vector<128x256xf32>
    %cst_29 = arith.constant 0.797884583 : f32
    %90 = vector.broadcast %cst_29 : f32 to vector<128x256xf32>
    %91 = arith.mulf %90, %89 : vector<128x256xf32>
    %92 = math.tanh %91 : vector<128x256xf32>
    %cst_30 = arith.constant 1.000000e+00 : f32
    %93 = vector.broadcast %cst_30 : f32 to vector<128x256xf32>
    %94 = arith.addf %93, %92 : vector<128x256xf32>
    %cst_31 = arith.constant 5.000000e-01 : f32
    %95 = vector.broadcast %cst_31 : f32 to vector<128x256xf32>
    %96 = arith.mulf %95, %94 : vector<128x256xf32>
    %97 = arith.mulf %84, %96 : vector<128x256xf32>
    %98 = arith.truncf %97 : vector<128x256xf32> to vector<128x256xbf16>
    %c0_32 = arith.constant 0 : index
    %c0_33 = arith.constant 0 : index
    %99 = vector.load %arg14[%c0_32, %c0_33] : memref<128x512xbf16, #tpu.memory_space<vmem>>, vector<128x256xbf16>
    tpu.vector_store %arg14[%c0_32, %c0_33], %98 {strides = array<i32>} : memref<128x512xbf16, #tpu.memory_space<vmem>>, vector<128x256xbf16>,
    %c1 = arith.constant 1 : index
    %100 = memref.load %arg2[%c1] : memref<2xf32, #tpu.memory_space<smem>>
    %101 = vector.broadcast %100 : f32 to vector<1x32xf32>
    %102 = arith.mulf %101, %7 : vector<1x32xf32>
    %c0_34 = arith.constant 0 : index
    %c0_35 = arith.constant 0 : index
    %103 = vector.load %arg4[%c0_34, %c0_35] : memref<128x32xf32, #tpu.memory_space<vmem>>, vector<128x32xf32>
    %104 = math.sin %102 : vector<1x32xf32>
    %105 = vector.broadcast %104 : vector<1x32xf32> to vector<128x32xf32>
    %106 = arith.mulf %103, %105 : vector<128x32xf32>
    %cst_36 = arith.constant dense<0.000000e+00> : vector<128xf32>
    %107 = vector.multi_reduction <add>, %106, %cst_36 [1] : vector<128x32xf32> to vector<128xf32>
    %108 = vector.shape_cast %107 : vector<128xf32> to vector<128x1xf32>
    %c0_37 = arith.constant 0 : index
    %c0_38 = arith.constant 0 : index
    %109 = vector.load %arg5[%c0_37, %c0_38] : memref<128x32xf32, #tpu.memory_space<vmem>>, vector<128x32xf32>
    %110 = math.cos %102 : vector<1x32xf32>
    %111 = vector.broadcast %110 : vector<1x32xf32> to vector<128x32xf32>
    %112 = arith.mulf %109, %111 : vector<128x32xf32>
    %cst_39 = arith.constant dense<0.000000e+00> : vector<128xf32>
    %113 = vector.multi_reduction <add>, %112, %cst_39 [1] : vector<128x32xf32> to vector<128xf32>
    %114 = vector.shape_cast %113 : vector<128xf32> to vector<128x1xf32>
    %115 = arith.addf %108, %114 : vector<128x1xf32>
    %c1_40 = arith.constant 1 : index
    %116 = memref.load %arg3[%c1_40] : memref<2xi32, #tpu.memory_space<smem>>
    %117 = vector.broadcast %116 : i32 to vector<1x4xi32>
    %118 = arith.cmpi eq, %8, %117 : vector<1x4xi32>
    %119 = arith.extui %118 : vector<1x4xi1> to vector<1x4xi32>
    %120 = arith.sitofp %119 : vector<1x4xi32> to vector<1x4xf32>
    %c0_41 = arith.constant 0 : index
    %c0_42 = arith.constant 0 : index
    %121 = vector.load %arg6[%c0_41, %c0_42] : memref<128x1xf32, #tpu.memory_space<vmem>>, vector<128x1xf32>
    %122 = arith.addf %115, %121 : vector<128x1xf32>
    %c0_43 = arith.constant 0 : index
    %c0_44 = arith.constant 0 : index
    %123 = vector.load %arg7[%c0_43, %c0_44] : memref<128x4xf32, #tpu.memory_space<vmem>>, vector<128x4xf32>
    %124 = vector.broadcast %120 : vector<1x4xf32> to vector<128x4xf32>
    %125 = arith.mulf %123, %124 : vector<128x4xf32>
    %cst_45 = arith.constant dense<0.000000e+00> : vector<128xf32>
    %126 = vector.multi_reduction <add>, %125, %cst_45 [1] : vector<128x4xf32> to vector<128xf32>
    %127 = vector.shape_cast %126 : vector<128xf32> to vector<128x1xf32>
    %128 = arith.addf %122, %127 : vector<128x1xf32>
    %c1_46 = arith.constant 1 : index
    %c0_47 = arith.constant 0 : index
    %c0_48 = arith.constant 0 : index
    %129 = vector.load %arg1[%c1_46, %c0_47, %c0_48] : memref<2x4x256xf32, #tpu.memory_space<vmem>>, vector<1x4x256xf32>
    %130 = vector.shape_cast %129 : vector<1x4x256xf32> to vector<4x256xf32>
    %131 = vector.extract_strided_slice %9 {offsets = [0, 0], sizes = [128, 1], strides = [1, 1]} : vector<128x4xf32> to vector<128x1xf32>
    %132 = vector.extract_strided_slice %130 {offsets = [0, 0], sizes = [1, 256], strides = [1, 1]} : vector<4x256xf32> to vector<1x256xf32>
    %133 = vector.broadcast %131 : vector<128x1xf32> to vector<128x256xf32>
    %134 = vector.broadcast %132 : vector<1x256xf32> to vector<128x256xf32>
    %135 = arith.mulf %133, %134 : vector<128x256xf32>
    %136 = vector.broadcast %128 : vector<128x1xf32> to vector<128x256xf32>
    %137 = arith.addf %136, %135 : vector<128x256xf32>
    %138 = vector.extract_strided_slice %9 {offsets = [0, 1], sizes = [128, 1], strides = [1, 1]} : vector<128x4xf32> to vector<128x1xf32>
    %139 = vector.extract_strided_slice %130 {offsets = [1, 0], sizes = [1, 256], strides = [1, 1]} : vector<4x256xf32> to vector<1x256xf32>
    %140 = vector.broadcast %138 : vector<128x1xf32> to vector<128x256xf32>
    %141 = vector.broadcast %139 : vector<1x256xf32> to vector<128x256xf32>
    %142 = arith.mulf %140, %141 : vector<128x256xf32>
    %143 = arith.addf %137, %142 : vector<128x256xf32>
    %144 = vector.extract_strided_slice %9 {offsets = [0, 2], sizes = [128, 1], strides = [1, 1]} : vector<128x4xf32> to vector<128x1xf32>
    %145 = vector.extract_strided_slice %130 {offsets = [2, 0], sizes = [1, 256], strides = [1, 1]} : vector<4x256xf32> to vector<1x256xf32>
    %146 = vector.broadcast %144 : vector<128x1xf32> to vector<128x256xf32>
    %147 = vector.broadcast %145 : vector<1x256xf32> to vector<128x256xf32>
    %148 = arith.mulf %146, %147 : vector<128x256xf32>
    %149 = arith.addf %143, %148 : vector<128x256xf32>
    %150 = vector.extract_strided_slice %9 {offsets = [0, 3], sizes = [128, 1], strides = [1, 1]} : vector<128x4xf32> to vector<128x1xf32>
    %151 = vector.extract_strided_slice %130 {offsets = [3, 0], sizes = [1, 256], strides = [1, 1]} : vector<4x256xf32> to vector<1x256xf32>
    %152 = vector.broadcast %150 : vector<128x1xf32> to vector<128x256xf32>
    %153 = vector.broadcast %151 : vector<1x256xf32> to vector<128x256xf32>
    %154 = arith.mulf %152, %153 : vector<128x256xf32>
    %155 = arith.addf %149, %154 : vector<128x256xf32>
    %156 = arith.mulf %155, %155 : vector<128x256xf32>
    %157 = arith.mulf %155, %156 : vector<128x256xf32>
    %cst_49 = arith.constant 4.471500e-02 : f32
    %158 = vector.broadcast %cst_49 : f32 to vector<128x256xf32>
    %159 = arith.mulf %158, %157 : vector<128x256xf32>
    %160 = arith.addf %155, %159 : vector<128x256xf32>
    %cst_50 = arith.constant 0.797884583 : f32
    %161 = vector.broadcast %cst_50 : f32 to vector<128x256xf32>
    %162 = arith.mulf %161, %160 : vector<128x256xf32>
    %163 = math.tanh %162 : vector<128x256xf32>
    %cst_51 = arith.constant 1.000000e+00 : f32
    %164 = vector.broadcast %cst_51 : f32 to vector<128x256xf32>
    %165 = arith.addf %164, %163 : vector<128x256xf32>
    %cst_52 = arith.constant 5.000000e-01 : f32
    %166 = vector.broadcast %cst_52 : f32 to vector<128x256xf32>
    %167 = arith.mulf %166, %165 : vector<128x256xf32>
    %168 = arith.mulf %155, %167 : vector<128x256xf32>
    %c0_53 = arith.constant 0 : index
    %c0_54 = arith.constant 0 : index
    %169 = vector.load %arg9[%c0_53, %c0_54] : memref<128x128xbf16, #tpu.memory_space<vmem>>, vector<128x128xbf16>
    %170 = arith.truncf %168 : vector<128x256xf32> to vector<128x256xbf16>
    %cst_55 = arith.constant dense<0.000000e+00> : vector<128x256xf32>
    %171 = tpu.matmul %169, %170, %cst_55 {dimension_numbers = #tpu.dot_dimension_numbers<[1], [0], [0], [1], [0, 0, 1, 1], [], []>} : vector<128x128xbf16>, vector<128x256xbf16>, vector<128x256xf32> -> vector<128x256xf32>
    %c0_56 = arith.constant 0 : index
    %c0_57 = arith.constant 0 : index
    %172 = vector.load %arg10[%c0_56, %c0_57] : memref<128x1xf32, #tpu.memory_space<vmem>>, vector<128x1xf32>
    %173 = vector.broadcast %172 : vector<128x1xf32> to vector<128x256xf32>
    %174 = arith.addf %171, %173 : vector<128x256xf32>
    %175 = arith.mulf %174, %174 : vector<128x256xf32>
    %176 = arith.mulf %174, %175 : vector<128x256xf32>
    %cst_58 = arith.constant 4.471500e-02 : f32
    %177 = vector.broadcast %cst_58 : f32 to vector<128x256xf32>
    %178 = arith.mulf %177, %176 : vector<128x256xf32>
    %179 = arith.addf %174, %178 : vector<128x256xf32>
    %cst_59 = arith.constant 0.797884583 : f32
    %180 = vector.broadcast %cst_59 : f32 to vector<128x256xf32>
    %181 = arith.mulf %180, %179 : vector<128x256xf32>
    %182 = math.tanh %181 : vector<128x256xf32>
    %cst_60 = arith.constant 1.000000e+00 : f32
    %183 = vector.broadcast %cst_60 : f32 to vector<128x256xf32>
    %184 = arith.addf %183, %182 : vector<128x256xf32>
    %cst_61 = arith.constant 5.000000e-01 : f32
    %185 = vector.broadcast %cst_61 : f32 to vector<128x256xf32>
    %186 = arith.mulf %185, %184 : vector<128x256xf32>
    %187 = arith.mulf %174, %186 : vector<128x256xf32>
    %188 = arith.truncf %187 : vector<128x256xf32> to vector<128x256xbf16>
    %c0_62 = arith.constant 0 : index
    %c256 = arith.constant 256 : index
    %189 = vector.load %arg14[%c0_62, %c256] : memref<128x512xbf16, #tpu.memory_space<vmem>>, vector<128x256xbf16>
    tpu.vector_store %arg14[%c0_62, %c256], %188 {strides = array<i32>} : memref<128x512xbf16, #tpu.memory_space<vmem>>, vector<128x256xbf16>,
    %c0_63 = arith.constant 0 : index
    %c0_64 = arith.constant 0 : index
    %190 = vector.load %arg14[%c0_63, %c0_64] : memref<128x512xbf16, #tpu.memory_space<vmem>>, vector<128x256xbf16>
    %c0_65 = arith.constant 0 : index
    %c0_66 = arith.constant 0 : index
    %191 = vector.load %arg11[%c0_65, %c0_66] : memref<256x128xbf16, #tpu.memory_space<vmem>>, vector<128x128xbf16>
    %cst_67 = arith.constant dense<0.000000e+00> : vector<128x256xf32>
    %192 = tpu.matmul %191, %190, %cst_67 {dimension_numbers = #tpu.dot_dimension_numbers<[1], [0], [0], [1], [0, 0, 1, 1], [], []>} : vector<128x128xbf16>, vector<128x256xbf16>, vector<128x256xf32> -> vector<128x256xf32>
    %c0_68 = arith.constant 0 : index
    %c0_69 = arith.constant 0 : index
    %193 = vector.load %arg12[%c0_68, %c0_69] : memref<256x1xf32, #tpu.memory_space<vmem>>, vector<128x1xf32>
    %194 = vector.broadcast %193 : vector<128x1xf32> to vector<128x256xf32>
    %195 = arith.addf %192, %194 : vector<128x256xf32>
    %c0_70 = arith.constant 0 : index
    %c0_71 = arith.constant 0 : index
    %c0_72 = arith.constant 0 : index
    %196 = vector.load %arg13[%c0_70, %c0_71, %c0_72] : memref<2x256x256xf32, #tpu.memory_space<vmem>>, vector<1x128x256xf32>
    %197 = vector.shape_cast %196 : vector<1x128x256xf32> to vector<128x256xf32>
    %198 = vector.shape_cast %195 : vector<128x256xf32> to vector<1x128x256xf32>
    tpu.vector_store %arg13[%c0_70, %c0_71, %c0_72], %198 {strides = array<i32>} : memref<2x256x256xf32, #tpu.memory_space<vmem>>, vector<1x128x256xf32>,
    %c128 = arith.constant 128 : index
    %c0_73 = arith.constant 0 : index
    %199 = vector.load %arg11[%c128, %c0_73] : memref<256x128xbf16, #tpu.memory_space<vmem>>, vector<128x128xbf16>
    %cst_74 = arith.constant dense<0.000000e+00> : vector<128x256xf32>
    %200 = tpu.matmul %199, %190, %cst_74 {dimension_numbers = #tpu.dot_dimension_numbers<[1], [0], [0], [1], [0, 0, 1, 1], [], []>} : vector<128x128xbf16>, vector<128x256xbf16>, vector<128x256xf32> -> vector<128x256xf32>
    %c128_75 = arith.constant 128 : index
    %c0_76 = arith.constant 0 : index
    %201 = vector.load %arg12[%c128_75, %c0_76] : memref<256x1xf32, #tpu.memory_space<vmem>>, vector<128x1xf32>
    %202 = vector.broadcast %201 : vector<128x1xf32> to vector<128x256xf32>
    %203 = arith.addf %200, %202 : vector<128x256xf32>
    %c0_77 = arith.constant 0 : index
    %c128_78 = arith.constant 128 : index
    %c0_79 = arith.constant 0 : index
    %204 = vector.load %arg13[%c0_77, %c128_78, %c0_79] : memref<2x256x256xf32, #tpu.memory_space<vmem>>, vector<1x128x256xf32>
    %205 = vector.shape_cast %204 : vector<1x128x256xf32> to vector<128x256xf32>
    %206 = vector.shape_cast %203 : vector<128x256xf32> to vector<1x128x256xf32>
    tpu.vector_store %arg13[%c0_77, %c128_78, %c0_79], %206 {strides = array<i32>} : memref<2x256x256xf32, #tpu.memory_space<vmem>>, vector<1x128x256xf32>,
    %c0_80 = arith.constant 0 : index
    %c256_81 = arith.constant 256 : index
    %207 = vector.load %arg14[%c0_80, %c256_81] : memref<128x512xbf16, #tpu.memory_space<vmem>>, vector<128x256xbf16>
    %c0_82 = arith.constant 0 : index
    %c0_83 = arith.constant 0 : index
    %208 = vector.load %arg11[%c0_82, %c0_83] : memref<256x128xbf16, #tpu.memory_space<vmem>>, vector<128x128xbf16>
    %cst_84 = arith.constant dense<0.000000e+00> : vector<128x256xf32>
    %209 = tpu.matmul %208, %207, %cst_84 {dimension_numbers = #tpu.dot_dimension_numbers<[1], [0], [0], [1], [0, 0, 1, 1], [], []>} : vector<128x128xbf16>, vector<128x256xbf16>, vector<128x256xf32> -> vector<128x256xf32>
    %c0_85 = arith.constant 0 : index
    %c0_86 = arith.constant 0 : index
    %210 = vector.load %arg12[%c0_85, %c0_86] : memref<256x1xf32, #tpu.memory_space<vmem>>, vector<128x1xf32>
    %211 = vector.broadcast %210 : vector<128x1xf32> to vector<128x256xf32>
    %212 = arith.addf %209, %211 : vector<128x256xf32>
    %c1_87 = arith.constant 1 : index
    %c0_88 = arith.constant 0 : index
    %c0_89 = arith.constant 0 : index
    %213 = vector.load %arg13[%c1_87, %c0_88, %c0_89] : memref<2x256x256xf32, #tpu.memory_space<vmem>>, vector<1x128x256xf32>
    %214 = vector.shape_cast %213 : vector<1x128x256xf32> to vector<128x256xf32>
    %215 = vector.shape_cast %212 : vector<128x256xf32> to vector<1x128x256xf32>
    tpu.vector_store %arg13[%c1_87, %c0_88, %c0_89], %215 {strides = array<i32>} : memref<2x256x256xf32, #tpu.memory_space<vmem>>, vector<1x128x256xf32>,
    %c128_90 = arith.constant 128 : index
    %c0_91 = arith.constant 0 : index
    %216 = vector.load %arg11[%c128_90, %c0_91] : memref<256x128xbf16, #tpu.memory_space<vmem>>, vector<128x128xbf16>
    %cst_92 = arith.constant dense<0.000000e+00> : vector<128x256xf32>
    %217 = tpu.matmul %216, %207, %cst_92 {dimension_numbers = #tpu.dot_dimension_numbers<[1], [0], [0], [1], [0, 0, 1, 1], [], []>} : vector<128x128xbf16>, vector<128x256xbf16>, vector<128x256xf32> -> vector<128x256xf32>
    %c128_93 = arith.constant 128 : index
    %c0_94 = arith.constant 0 : index
    %218 = vector.load %arg12[%c128_93, %c0_94] : memref<256x1xf32, #tpu.memory_space<vmem>>, vector<128x1xf32>
    %219 = vector.broadcast %218 : vector<128x1xf32> to vector<128x256xf32>
    %220 = arith.addf %217, %219 : vector<128x256xf32>
    %c1_95 = arith.constant 1 : index
    %c128_96 = arith.constant 128 : index
    %c0_97 = arith.constant 0 : index
    %221 = vector.load %arg13[%c1_95, %c128_96, %c0_97] : memref<2x256x256xf32, #tpu.memory_space<vmem>>, vector<1x128x256xf32>
    %222 = vector.shape_cast %221 : vector<1x128x256xf32> to vector<128x256xf32>
    %223 = vector.shape_cast %220 : vector<128x256xf32> to vector<1x128x256xf32>
    tpu.vector_store %arg13[%c1_95, %c128_96, %c0_97], %223 {strides = array<i32>} : memref<2x256x256xf32, #tpu.memory_space<vmem>>, vector<1x128x256xf32>,
    return
  }
  func.func @transform_0(%arg0: i32) -> (i32, i32, i32) {
    %c0_i32 = arith.constant 0 : i32
    %c0_i32_0 = arith.constant 0 : i32
    %c0_i32_1 = arith.constant 0 : i32
    %c0_i32_2 = arith.constant 0 : i32
    return %c0_i32, %c0_i32_0, %c0_i32_1 : i32, i32, i32
  }
  func.func @transform_1(%arg0: i32) -> i32 {
    %c0_i32 = arith.constant 0 : i32
    %c0_i32_0 = arith.constant 0 : i32
    return %c0_i32 : i32
  }
  func.func @transform_2(%arg0: i32) -> i32 {
    %c0_i32 = arith.constant 0 : i32
    %c0_i32_0 = arith.constant 0 : i32
    return %c0_i32 : i32
  }
  func.func @transform_3(%arg0: i32) -> (i32, i32) {
    %c0_i32 = arith.constant 0 : i32
    %c0_i32_0 = arith.constant 0 : i32
    %c0_i32_1 = arith.constant 0 : i32
    return %c0_i32, %c0_i32_0 : i32, i32
  }
  func.func @transform_4(%arg0: i32) -> (i32, i32) {
    %c0_i32 = arith.constant 0 : i32
    %c0_i32_0 = arith.constant 0 : i32
    %c0_i32_1 = arith.constant 0 : i32
    return %c0_i32, %c0_i32_0 : i32, i32
  }
  func.func @transform_5(%arg0: i32) -> (i32, i32) {
    %c0_i32 = arith.constant 0 : i32
    %c0_i32_0 = arith.constant 0 : i32
    %c0_i32_1 = arith.constant 0 : i32
    return %c0_i32, %c0_i32_0 : i32, i32
  }
  func.func @transform_6(%arg0: i32) -> (i32, i32) {
    %c0_i32 = arith.constant 0 : i32
    %c0_i32_0 = arith.constant 0 : i32
    %c0_i32_1 = arith.constant 0 : i32
    return %c0_i32, %c0_i32_0 : i32, i32
  }
  func.func @transform_7(%arg0: i32) -> (i32, i32) {
    %c0_i32 = arith.constant 0 : i32
    %c0_i32_0 = arith.constant 0 : i32
    %c0_i32_1 = arith.constant 0 : i32
    return %c0_i32, %c0_i32_0 : i32, i32
  }
  func.func @transform_8(%arg0: i32) -> (i32, i32) {
    %c0_i32 = arith.constant 0 : i32
    %c0_i32_0 = arith.constant 0 : i32
    %c0_i32_1 = arith.constant 0 : i32
    return %c0_i32, %c0_i32_0 : i32, i32
  }
  func.func @transform_9(%arg0: i32) -> (i32, i32) {
    %c0_i32 = arith.constant 0 : i32
    %c0_i32_0 = arith.constant 0 : i32
    %c0_i32_1 = arith.constant 0 : i32
    return %c0_i32, %c0_i32_0 : i32, i32
  }
  func.func @transform_10(%arg0: i32) -> (i32, i32) {
    %c0_i32 = arith.constant 0 : i32
    %c0_i32_0 = arith.constant 0 : i32
    %c0_i32_1 = arith.constant 0 : i32
    return %c0_i32, %c0_i32_0 : i32, i32
  }
  func.func @transform_11(%arg0: i32) -> (i32, i32) {
    %c0_i32 = arith.constant 0 : i32
    %c0_i32_0 = arith.constant 0 : i32
    %c0_i32_1 = arith.constant 0 : i32
    return %c0_i32, %c0_i32_0 : i32, i32
  }
  func.func @transform_12(%arg0: i32) -> (i32, i32, i32) {
    %c0_i32 = arith.constant 0 : i32
    %c0_i32_0 = arith.constant 0 : i32
    %c0_i32_1 = arith.constant 0 : i32
    %c0_i32_2 = arith.constant 0 : i32
    return %c0_i32, %c0_i32_0, %c0_i32_1 : i32, i32, i32
  }
}

</mosaic_0001>

<bundles_post_ra>
// kernel: music_diffusion_forward.1
= control target key start
LH: loop header
LB: loop body
LE: loop exit
PB: predicated region body
PF: predicated region fallthrough
CT: control target
= control target key end

     0   :  { %17 = vsyncpa [#allocation4], 0  ;;  %s10688_s0 = inlined_call_operand.vmem [shape: f32[2,4,256], index: 0, kind: input, shape index: {}]   ;;  %s10689_s1 = inlined_call_operand.vmem [shape: f32[2], index: 1, kind: input, shape index: {}]   ;;  %s10690_s2 = inlined_call_operand.vmem [shape: s32[2], index: 2, kind: input, shape index: {}]   ;;  %s10691_s3 = inlined_call_operand.vmem [shape: f32[128,32], index: 3, kind: input, shape index: {}]   ;;  %s10692_s4 = inlined_call_operand.vmem [shape: f32[128,32], index: 4, kind: input, shape index: {}]   ;;  %s10693_s5 = inlined_call_operand.vmem [shape: f32[128,1], index: 5, kind: input, shape index: {}]   ;;  %s10694_s6 = inlined_call_operand.vmem [shape: f32[128,4], index: 6, kind: input, shape index: {}]   ;;  %s10695_s7 = inlined_call_operand.vmem [shape: f32[128,4], index: 7, kind: input, shape index: {}]   ;;  %s10696_s8 = inlined_call_operand.vmem [shape: bf16[128,128], index: 8, kind: input, shape index: {}]   ;;  %s10697_s9 = inlined_call_operand.vmem [shape: f32[128,1], index: 9, kind: input, shape index: {}]   ;;  %s10698_s10 = inlined_call_operand.vmem [shape: bf16[256,128], index: 10, kind: input, shape index: {}]   ;;  %s10699_s11 = inlined_call_operand.vmem [shape: f32[256,1], index: 11, kind: input, shape index: {}]   ;;  %s10700_s12 = inlined_call_operand.vmem [shape: f32[2,256,256], index: 12, kind: output, shape index: {}]  }
   0x1   :  { %s27_s23 = sshll.u32 %s10689_s1, 4  ;;  %s28_s23 = int_to_ptr.vmem [resolvable:$true] %s27_s23 }
   0x2   :  { %18 = vsyncpa [#allocation6], 0  ;;  %s37_s26 = sshll.u32 %s10690_s2, 4  ;;  %s5777_s27 = scalar_lea.vmem %s28_s23, 16  ;;  %s38_s26 = int_to_ptr.vmem [resolvable:$true] %s37_s26 }
   0x3   :  { %p5778_p0 = scmp.ne.s32.totalorder %s28_s23, %s5777_s27  ;;  %p5782_p1 = scmp.lt.s32.totalorder %s28_s23, %s28_s23 }
   0x4   :  { %p5783_p2 = scmp.lt.s32.totalorder %s5777_s27, %s5777_s27 }
   0x6   :  { %p5784_p3 = por %p5783_p2, %p5782_p1 }
   0x8   :  { %p5785_p4 = pnand %p5784_p3, %p5778_p0 }
   0xa   :  { %5788 = shalt.err (!%p5785_p4)
}
   0xb   :  { %s5805_s28 = smov [#allocation3]   ;;  %s5789_s29 = scalar_lea.vmem %s38_s26, 16 }
   0xc   :  { %30 = dma.vmem_to_smem %s28_s23, 16, %s5805_s28, [#allocation4]  }
   0xd   :  { %p5790_p5 = scmp.ne.s32.totalorder %s38_s26, %s5789_s29  ;;  %p5794_p6 = scmp.lt.s32.totalorder %s38_s26, %s38_s26 }
   0xe   :  { %p5795_p7 = scmp.lt.s32.totalorder %s5789_s29, %s5789_s29 }
  0x10   :  { %p5796_p8 = por %p5795_p7, %p5794_p6 }
  0x12   :  { %p5797_p9 = pnand %p5796_p8, %p5790_p5 }
  0x14   :  { %5800 = shalt.err (!%p5797_p9)
}
  0x15   :  { %s5806_s1 = smov [#allocation5]  }
  0x16   :  { %40 = dma.vmem_to_smem %s38_s26, 16, %s5806_s1, [#allocation6]  }
  0x17   :  { %5801 = dma.done.wait [#allocation4], 16  }
  0x18   :  { %5802 = vsyncadd [#allocation4], 4294967280 }
  0x19   :  { %5803 = dma.done.wait [#allocation6], 16  }
  0x1a   :  { %5804 = vsyncadd [#allocation6], 4294967280 }
  0x1b   :  { %65 = sfence }
  0x1c   :  { %v67_v0 = vlaneseq  ;;  %s476_s2 = sld [smem:[#allocation5]]  ;;  %v514_v3 = vld [vmem:[%s10694_s6 + $0x8] sm:$0xff]  ;;  %v513_v6 = vld [vmem:[%s10694_s6] sm:$0xff]  ;;  %v516_v7 = vld [vmem:[%s10694_s6 + $0x18] sm:$0xff]  ;;  %v5807_v9 = vmov 0.0   ;;  %vm545_vm1 = vcmask 31744  }
  0x1d   :  { %v515_v8 = vld [vmem:[%s10694_s6 + $0x10] sm:$0xff]  ;;  %v518_v16 = vld [vmem:[%s10694_s6 + $0x28] sm:$0xff]  ;;  %v517_v17 = vld [vmem:[%s10694_s6 + $0x20] sm:$0xff]  ;;  %s5919_s24 = sld [smem:[#allocation3]]  ;;  %s5921_s25 = sld [smem:[#allocation3 + $0x1]] }
  0x1e   :  { %v5890_v1 = vand.u32 127, %v67_v0  ;;  %v520_v24 = vld [vmem:[%s10694_s6 + $0x38] sm:$0xff]  ;;  %v519_v25 = vld [vmem:[%s10694_s6 + $0x30] sm:$0xff]  ;;  %v522_v30 = vld [vmem:[%s10694_s6 + $0x48] sm:$0xff]  ;;  %s6016_s26 = sld [smem:[#allocation5 + $0x1]] }
  0x1f   :  { %v521_v31 = vld [vmem:[%s10694_s6 + $0x40] sm:$0xff]  ;;  %v524_v32 = vld [vmem:[%s10694_s6 + $0x58] sm:$0xff]  ;;  %v523_v35 = vld [vmem:[%s10694_s6 + $0x50] sm:$0xff] }
  0x20   :  { %v69_v2 = vcvt.s32.f32 %v5890_v1  ;;  %v526_v36 = vld [vmem:[%s10694_s6 + $0x68] sm:$0xff]  ;;  %v525_v49 = vld [vmem:[%s10694_s6 + $0x60] sm:$0xff]  ;;  %v528_v50 = vld [vmem:[%s10694_s6 + $0x78] sm:$0xff] }
  0x21   :  { %v527_v55 = vld [vmem:[%s10694_s6 + $0x70] sm:$0xff] }
  0x22   :  { %v477_v4 = vstv %s476_s2  ;;  %v70_v5 = vmul.f32 -0.28782314, %v69_v2 }
  0x23   :  { %vm478_vm0 = vcmp.eq.s32.totalorder %v5890_v1, %v477_v4  ;;  %v90_v33 = vstv %s5919_s24  ;;  %v2190_v34 = vstv %s5921_s25 }
  0x24   :  { %v5907_v10 = vsel %vm478_vm0, 1.0, %v5807_v9  ;;  %v71_v11 = vmul.f32 1.442695, %v70_v5 }
  0x25   :  { %v530_v12 = vmul.f32 %v5907_v10, %v514_v3  ;;  %v529_v13 = vmul.f32 %v5907_v10, %v513_v6  ;;  %v532_v14 = vmul.f32 %v5907_v10, %v516_v7  ;;  %v531_v15 = vmul.f32 %v5907_v10, %v515_v8 }
  0x26   :  { %5502 = vpow2.f32 %v71_v11  ;;  %v534_v20 = vmul.f32 %v5907_v10, %v518_v16  ;;  %v533_v21 = vmul.f32 %v5907_v10, %v517_v17  ;;  %v536_v28 = vmul.f32 %v5907_v10, %v520_v24 }
  0x27   :  { %v549_v18 = vsel %vm545_vm1, %v530_v12, 0.0  ;;  %v546_v19 = vsel %vm545_vm1, %v529_v13, 0.0  ;;  %v555_v22 = vsel %vm545_vm1, %v532_v14, 0.0  ;;  %v552_v23 = vsel %vm545_vm1, %v531_v15, 0.0 }
  0x28   :  { %550 = vadd.xlane.f32.xlu1 %v549_v18  ;;  %547 = vadd.xlane.f32.xlu0 %v546_v19  ;;  %v561_v26 = vsel %vm545_vm1, %v534_v20, 0.0  ;;  %v558_v27 = vsel %vm545_vm1, %v533_v21, 0.0  ;;  %v535_v29 = vmul.f32 %v5907_v10, %v519_v25  ;;  %v567_v38 = vsel %vm545_vm1, %v536_v28, 0.0 }
  0x29   :  { %v538_v40 = vmul.f32 %v5907_v10, %v522_v30  ;;  %v537_v41 = vmul.f32 %v5907_v10, %v521_v31  ;;  %v540_v44 = vmul.f32 %v5907_v10, %v524_v32  ;;  %v539_v47 = vmul.f32 %v5907_v10, %v523_v35 }
  0x2a   :  { %v564_v39 = vsel %vm545_vm1, %v535_v29, 0.0  ;;  %v542_v48 = vmul.f32 %v5907_v10, %v526_v36  ;;  %v541_v61 = vmul.f32 %v5907_v10, %v525_v49  ;;  %v544_v62 = vmul.f32 %v5907_v10, %v528_v50 }
  0x2b   :  { %v573_v53 = vsel %vm545_vm1, %v538_v40, 0.0  ;;  %v570_v54 = vsel %vm545_vm1, %v537_v41, 0.0  ;;  %v579_v60 = vsel %vm545_vm1, %v540_v44, 0.0  ;;  %v576_v2 = vsel %vm545_vm1, %v539_v47, 0.0 }
  0x2c   :  { %556 = vadd.xlane.f32.xlu1 %v555_v22  ;;  %553 = vadd.xlane.f32.xlu0 %v552_v23  ;;  %v585_v3 = vsel %vm545_vm1, %v542_v48, 0.0  ;;  %v543_v4 = vmul.f32 %v5907_v10, %v527_v55  ;;  %v582_v12 = vsel %vm545_vm1, %v541_v61, 0.0  ;;  %v591_v13 = vsel %vm545_vm1, %v544_v62, 0.0 }
  0x2d   :  { %v5808_v22 = vmov 683565275   ;;  %v5809_v24 = vmov 2475754826   ;;  %v5811_v28 = vmov 2102212464  }
  0x2e   :  { %v588_v14 = vsel %vm545_vm1, %v543_v4, 0.0  ;;  %v5812_v30 = vmov 920167782  }
  0x30   :  { %v5503_v37 = vpop.eup %5502  ;;  %562 = vadd.xlane.f32.xlu1 %v561_v26  ;;  %559 = vadd.xlane.f32.xlu0 %v558_v27  ;;  %v5810_v26 = vmov 2131351028  }
  0x31   :  { %v5960_v42 = vmul.f32 %v5503_v37, %v90_v33  ;;  %v5962_v43 = vmul.f32 %v5503_v37, %v2190_v34 }
  0x33   :  { %v108_v45 = vand.u32 2147483647, %v5960_v42  ;;  %v111_v46 = vand.u32 2139095040, %v5960_v42  ;;  %v2208_v51 = vand.u32 2147483647, %v5962_v43  ;;  %v2211_v52 = vand.u32 2139095040, %v5962_v43 }
  0x34   :  { %568 = vadd.xlane.f32.xlu1 %v567_v38  ;;  %565 = vadd.xlane.f32.xlu0 %v564_v39  ;;  %v5813_v38 = vmov 1326507024  }
  0x35   :  { %v112_v56 = vshrl.u32 %v111_v46, 23  ;;  %v115_v57 = vand.u32 8388607, %v108_v45  ;;  %v2212_v58 = vshrl.u32 %v2211_v52, 23  ;;  %v2215_v59 = vand.u32 8388607, %v2208_v51 }
  0x37   :  { %v5275_v63 = vadd.s32 4294967169, %v112_v56  ;;  %v5293_v5 = vadd.s32 4294967169, %v2212_v58  ;;  %v116_v6 = vor.u32 8388608, %v115_v57  ;;  %v2216_v8 = vor.u32 8388608, %v2215_v59 }
  0x38   :  { %574 = vadd.xlane.f32.xlu1 %v573_v53  ;;  %571 = vadd.xlane.f32.xlu0 %v570_v54 }
  0x39   :  { %v118_v7 = vadd.s32 1, %v5275_v63  ;;  %v2218_v11 = vadd.s32 1, %v5293_v5  ;;  %v5995_v18 = vshll.u32 %v116_v6, 8  ;;  %v5999_v20 = vshll.u32 %v2216_v8, 8 }
  0x3b   :  { %vm119_vm2 = vcmp.gt.s32.totalorder %v118_v7, 0  ;;  %vm2219_vm3 = vcmp.gt.s32.totalorder %v2218_v11, 0 }
  0x3c   :  { %580 = vadd.xlane.f32.xlu1 %v579_v60  ;;  %577 = vadd.xlane.f32.xlu0 %v576_v2  ;;  %v120_v15 = vsel %vm119_vm2, %v118_v7, 0  ;;  %v2220_v10 = vsel %vm2219_vm3, %v2218_v11, 0  ;;  %vm110_vm2 = vcmp.lt.s32.totalorder %v5960_v42, 0  ;;  %vm109_vm3 = vcmp.le.f32.partialorder %v108_v45, 0.7853982 }
  0x3d   :  { %v121_v16 = vshrl.u32 %v120_v15, 5  ;;  %v122_v17 = vand.u32 31, %v120_v15  ;;  %v5997_v19 = vand.u32 31, %v2220_v10  ;;  %v6001_v32 = vshrl.u32 %v2220_v10, 5 }
  0x3f   :  { %v123_v21 = vsub.s32 32, %v122_v17  ;;  %v125_v23 = vshll.u32 %v5808_v22, %v122_v17  ;;  %v128_v25 = vshll.u32 %v5809_v24, %v122_v17  ;;  %v131_v27 = vshll.u32 %v5810_v26, %v122_v17 }
  0x40   :  { %586 = vadd.xlane.f32.xlu1 %v585_v3  ;;  %583 = vadd.xlane.f32.xlu0 %v582_v12  ;;  %v134_v29 = vshll.u32 %v5811_v28, %v122_v17  ;;  %v137_v31 = vshll.u32 %v5812_v30, %v122_v17  ;;  %vm140_vm4 = vcmp.lt.s32.totalorder %v121_v16, 1  ;;  %vm141_vm5 = vcmp.lt.s32.totalorder %v121_v16, 2 }
  0x41   :  { %v124_v33 = vshrl.u32 %v5808_v22, %v123_v21  ;;  %v126_v34 = vshrl.u32 %v5809_v24, %v123_v21  ;;  %v129_v35 = vshrl.u32 %v5810_v26, %v123_v21  ;;  %v132_v36 = vshrl.u32 %v5811_v28, %v123_v21 }
  0x42   :  { %v135_v37 = vshrl.u32 %v5812_v30, %v123_v21  ;;  %v138_v39 = vshrl.u32 %v5813_v38, %v123_v21  ;;  %vm143_vm6 = vcmp.lt.s32.totalorder %v121_v16, 4  ;;  %v2223_v46 = vsub.s32 32, %v5997_v19 }
  0x43   :  { %v127_v40 = vor.u32 %v126_v34, %v125_v23  ;;  %v130_v41 = vor.u32 %v129_v35, %v128_v25  ;;  %v133_v44 = vor.u32 %v132_v36, %v131_v27  ;;  %vm142_vm7 = vcmp.lt.s32.totalorder %v121_v16, 3 }
  0x44   :  { %592 = vadd.xlane.f32.xlu1 %v591_v13  ;;  %589 = vadd.xlane.f32.xlu0 %v588_v14  ;;  %v136_v47 = vor.u32 %v135_v37, %v134_v29  ;;  %v139_v48 = vor.u32 %v138_v39, %v137_v31  ;;  %vm2240_vm8 = vcmp.lt.s32.totalorder %v6001_v32, 1  ;;  %v2225_v57 = vshll.u32 %v5808_v22, %v5997_v19 }
  0x45   :  { %v144_v49 = vsel %vm140_vm4, %v124_v33, %v127_v40  ;;  %v145_v50 = vsel %vm143_vm6, %v133_v44, 2102212464  ;;  %v148_v52 = vsel %vm140_vm4, %v127_v40, %v130_v41  ;;  %v152_v53 = vsel %vm140_vm4, %v130_v41, %v133_v44 }
  0x46   :  { %v146_v54 = vsel %vm142_vm7, %v130_v41, %v145_v50  ;;  %v149_v55 = vsel %vm143_vm6, %v136_v47, 920167782  ;;  %v153_v56 = vsel %vm143_vm6, %v139_v48, 1326507024  ;;  %v2224_v60 = vshrl.u32 %v5808_v22, %v2223_v46 }
  0x47   :  { %v150_v58 = vsel %vm142_vm7, %v133_v44, %v149_v55  ;;  %v154_v59 = vsel %vm142_vm7, %v136_v47, %v153_v56  ;;  %v2226_v61 = vshrl.u32 %v5809_v24, %v2223_v46  ;;  %v147_v62 = vsel %vm141_vm5, %v144_v49, %v146_v54 }
  0x48   :  { %v151_v63 = vsel %vm141_vm5, %v148_v52, %v150_v58  ;;  %v155_v2 = vsel %vm141_vm5, %v152_v53, %v154_v59  ;;  %v2228_v3 = vshll.u32 %v5809_v24, %v5997_v19  ;;  %v2229_v11 = vshrl.u32 %v5810_v26, %v2223_v46 }
  0x49   :  { %v6019_v4 = vmul.u32.u64.low %v5995_v18, %v155_v2  ;;  %v6020_v5 = vmul.u32.u64.high %v5995_v18, %v155_v2, %v6019_v4  ;;  %v6023_v6 = vmul.u32.u64.low %v5995_v18, %v151_v63  ;;  %v6024_v7 = vmul.u32.u64.high %v5995_v18, %v151_v63, %v6023_v6 }
  0x4a   :  { %v2227_v8 = vor.u32 %v2226_v61, %v2225_v57  ;;  %v2231_v12 = vshll.u32 %v5810_v26, %v5997_v19  ;;  %v2232_v13 = vshrl.u32 %v5811_v28, %v2223_v46  ;;  %v2234_v14 = vshll.u32 %v5811_v28, %v5997_v19 }
  0x4b   :  { %v2235_v15 = vshrl.u32 %v5812_v30, %v2223_v46  ;;  %v2237_v16 = vshll.u32 %v5812_v30, %v5997_v19  ;;  %v2238_v17 = vshrl.u32 %v5813_v38, %v2223_v46  ;;  %v163_v10 = vmul.u32 %v5995_v18, %v147_v62 }
  0x4c   :  { %v2230_v21 = vor.u32 %v2229_v11, %v2228_v3  ;;  %v2233_v22 = vor.u32 %v2232_v13, %v2231_v12  ;;  %vm2241_vm9 = vcmp.lt.s32.totalorder %v6001_v32, 2  ;;  %vm165_vm10 = vc.u32 %v6020_v5, %v6023_v6 }
  0x4d   :  { %v166_v23 = vadd.s32 1, %v6024_v7  ;;  %v2236_v24 = vor.u32 %v2235_v15, %v2234_v14  ;;  %vm2242_vm11 = vcmp.lt.s32.totalorder %v6001_v32, 3  ;;  %v2239_v25 = vor.u32 %v2238_v17, %v2237_v16 }
  0x4e   :  { %vm2243_vm12 = vcmp.lt.s32.totalorder %v6001_v32, 4  ;;  %v2244_v19 = vsel %vm2240_vm8, %v2224_v60, %v2227_v8  ;;  %v2248_v18 = vsel %vm2240_vm8, %v2227_v8, %v2230_v21  ;;  %v2252_v29 = vsel %vm2240_vm8, %v2230_v21, %v2233_v22 }
  0x4f   :  { %v167_v26 = vsel %vm165_vm10, %v166_v23, %v6024_v7  ;;  %v2245_v27 = vsel %vm2243_vm12, %v2233_v22, 2102212464  ;;  %v2249_v28 = vsel %vm2243_vm12, %v2236_v24, 920167782  ;;  %v2253_v34 = vsel %vm2243_vm12, %v2239_v25, 1326507024 }
  0x50   :  { %v168_v30 = vadd.s32 %v167_v26, %v163_v10  ;;  %v2246_v31 = vsel %vm2242_vm11, %v2230_v21, %v2245_v27  ;;  %v2250_v33 = vsel %vm2242_vm11, %v2233_v22, %v2249_v28  ;;  %v2254_v37 = vsel %vm2242_vm11, %v2236_v24, %v2253_v34 }
  0x51   :  { %v2247_v35 = vsel %vm2241_vm9, %v2244_v19, %v2246_v31  ;;  %v2251_v36 = vsel %vm2241_vm9, %v2248_v18, %v2250_v33  ;;  %v2255_v39 = vsel %vm2241_vm9, %v2252_v29, %v2254_v37  ;;  %v2576_v47 = vstv %s6016_s26 }
  0x52   :  { %v169_v38 = vadd.s32 536870912, %v168_v30  ;;  %v6049_v40 = vmul.u32.u64.low %v5999_v20, %v2251_v36  ;;  %v6050_v41 = vmul.u32.u64.high %v5999_v20, %v2251_v36, %v6049_v40  ;;  %vm2577_vm13 = vcmp.eq.s32.totalorder %v5890_v1, %v2576_v47 }
  0x53   :  { %v6053_v44 = vmul.u32.u64.low %v5999_v20, %v2255_v39  ;;  %v6054_v46 = vmul.u32.u64.high %v5999_v20, %v2255_v39, %v6053_v44  ;;  %v2263_v49 = vmul.u32 %v5999_v20, %v2247_v35  ;;  %v6060_v50 = vsel %vm2577_vm13, 1.0, %v5807_v9 }
  0x54   :  { %v170_v48 = vshrl.u32 %v169_v38, 30  ;;  %v2266_v32 = vadd.s32 1, %v6050_v41  ;;  %v164_v62 = vadd.s32 %v6023_v6, %v6020_v5  ;;  %vm2210_vm5 = vcmp.lt.s32.totalorder %v5962_v43, 0 }
  0x55   :  { %v2264_v53 = vadd.s32 %v6049_v40, %v6054_v46  ;;  %vm2265_vm14 = vc.u32 %v6054_v46, %v6049_v40  ;;  %vm200_vm8 = vweird.f32 %v5960_v42  ;;  %vm6093_vm9 = vcmp.le.f32.partialorder %v2208_v51, 0.7853982  ;;  %v6115_v51 = vld [vmem:[%s10691_s3 + $0x8] sm:$0xff] }
  0x56   :  { %v171_v52 = vshll.u32 %v170_v48, 30  ;;  %v2267_v55 = vsel %vm2265_vm14, %v2266_v32, %v6050_v41  ;;  %v194_v22 = vsub.s32 4, %v170_v48  ;;  %vm228_vm10 = vcmask 261120  }
  0x57   :  { %v2268_v56 = vadd.s32 %v2267_v55, %v2263_v49  ;;  %v6110_v55 = vld [vmem:[%s10691_s3 + $0x18] sm:$0xff] }
  0x58   :  { %v172_v54 = vsub.s32 %v168_v30, %v171_v52  ;;  %v195_v27 = vsel %vm110_vm2, %v194_v22, %v170_v48  ;;  %v6085_v48 = vld [vmem:[%s10691_s3 + $0x10] sm:$0xff]  ;;  %v6179_v22 = vld [vmem:[%s10691_s3 + $0x40] sm:$0xff] }
  0x59   :  { %v2269_v58 = vadd.s32 536870912, %v2268_v56  ;;  %v197_v33 = vsel %vm109_vm3, 0, %v195_v27  ;;  %v6190_v27 = vld [vmem:[%s10691_s3 + $0x58] sm:$0xff] }
  0x5a   :  { %v174_v57 = vsub.s32 0, %v172_v54  ;;  %v201_v37 = vadd.s32 3, %v197_v33 }
  0x5b   :  { %v6066_v1 = vshrl.u32 %v2269_v58, 30 }
  0x5c   :  { %v5276_v59 = vmin.u32 %v174_v57, %v172_v54  ;;  %v202_v39 = vand.u32 3, %v201_v37  ;;  %v6206_v37 = vld [vmem:[%s10691_s3 + $0x68] sm:$0xff] }
  0x5d   :  { %v2271_v9 = vshll.u32 %v6066_v1, 30  ;;  %v2294_v47 = vsub.s32 4, %v6066_v1 }
  0x5e   :  { %v176_v20 = vclz %v5276_v59  ;;  %vm207_vm4 = vcmp.eq.s32.totalorder %v202_v39, 2  ;;  %vm204_vm6 = vcmp.eq.s32.totalorder %v202_v39, 0  ;;  %vm203_vm7 = vcmp.lt.s32.totalorder %v202_v39, 2 }
  0x5f   :  { %v2272_v61 = vsub.s32 %v2268_v56, %v2271_v9  ;;  %v2295_v58 = vsel %vm2210_vm5, %v2294_v47, %v6066_v1  ;;  %v6138_v1 = vld [vmem:[%s10691_s3 + $0x28] sm:$0xff] }
  0x60   :  { %v5277_v60 = vadd.s32 4294967294, %v176_v20 }
  0x61   :  { %v2274_v2 = vsub.s32 0, %v2272_v61 }
  0x62   :  { %vm5278_vm15 = vcmp.lt.s32.totalorder %v5277_v60, 0 }
  0x63   :  { %v179_v63 = vsel %vm5278_vm15, 0, %v5277_v60  ;;  %v5294_v8 = vmin.u32 %v2274_v2, %v2272_v61 }
  0x64   :  { %v180_v3 = vsub.s32 32, %v179_v63  ;;  %v181_v4 = vshll.u32 %v172_v54, %v179_v63  ;;  %v184_v7 = vsub.s32 4294967266, %v179_v63  ;;  %v6105_v54 = vld [vmem:[%s10691_s3] sm:$0xff] }
  0x65   :  { %v2276_v13 = vclz %v5294_v8 }
  0x66   :  { %v182_v11 = vshrl.u32 %v164_v62, %v180_v3  ;;  %v185_v12 = vadd.s32 127, %v184_v7  ;;  %v6143_v62 = vld [vmem:[%s10691_s3 + $0x20] sm:$0xff]  ;;  %v2297_v3 = vsel %vm6093_vm9, 0, %v2295_v58 }
  0x67   :  { %v5295_v16 = vadd.s32 4294967294, %v2276_v13  ;;  %v6163_v13 = vld [vmem:[%s10691_s3 + $0x30] sm:$0xff] }
  0x68   :  { %v183_v14 = vor.u32 %v182_v11, %v181_v4  ;;  %v186_v15 = vshll.u32 %v185_v12, 23  ;;  %v6158_v12 = vld [vmem:[%s10691_s3 + $0x38] sm:$0xff] }
  0x69   :  { %vm5296_vm0 = vcmp.lt.s32.totalorder %v5295_v16, 0 }
  0x6a   :  { %v187_v17 = vor.u32 4788187, %v186_v15  ;;  %v190_v10 = vcvt.s32.f32 %v183_v14  ;;  %v2279_v23 = vsel %vm5296_vm0, 0, %v5295_v16  ;;  %v2301_v14 = vadd.s32 3, %v2297_v3 }
  0x6b   :  { %v2280_v5 = vsub.s32 32, %v2279_v23  ;;  %v2281_v6 = vshll.u32 %v2272_v61, %v2279_v23  ;;  %v2284_v24 = vsub.s32 4294967266, %v2279_v23  ;;  %v386_v23 = vand.u32 3, %v197_v33 }
  0x6c   :  { %v188_v21 = vand.u32 2147483647, %v187_v17 }
  0x6d   :  { %v2282_v19 = vshrl.u32 %v2264_v53, %v2280_v5  ;;  %v2285_v18 = vadd.s32 127, %v2284_v24  ;;  %v2302_v5 = vand.u32 3, %v2301_v14  ;;  %vm388_vm11 = vcmp.eq.s32.totalorder %v386_v23, 0 }
  0x6e   :  { %v191_v25 = vmul.f32 %v190_v10, %v188_v21  ;;  %v6174_v21 = vld [vmem:[%s10691_s3 + $0x48] sm:$0xff]  ;;  %vm391_vm12 = vcmp.eq.s32.totalorder %v386_v23, 2 }
  0x6f   :  { %v2283_v28 = vor.u32 %v2282_v19, %v2281_v6  ;;  %v2286_v29 = vshll.u32 %v2285_v18, 23  ;;  %v2485_v6 = vand.u32 3, %v2297_v3  ;;  %vm2303_vm13 = vcmp.lt.s32.totalorder %v2302_v5, 2  ;;  %v6252_v3 = vld [vmem:[%s10692_s4 + $0x8] sm:$0xff] }
  0x70   :  { %v192_v26 = vxor.u32 2147483648, %v191_v25 }
  0x71   :  { %v2287_v34 = vor.u32 4788187, %v2286_v29  ;;  %v2290_v35 = vcvt.s32.f32 %v2283_v28  ;;  %v6195_v28 = vld [vmem:[%s10691_s3 + $0x50] sm:$0xff]  ;;  %vm2486_vm14 = vcmp.lt.s32.totalorder %v2485_v6, 2  ;;  %vm2487_vm15 = vcmp.eq.s32.totalorder %v2485_v6, 0 }
  0x72   :  { %v193_v30 = vsel %vm110_vm2, %v192_v26, %v191_v25  ;;  %vm2490_vm0 = vcmp.eq.s32.totalorder %v2485_v6, 2  ;;  %vm2304_vm2 = vcmp.eq.s32.totalorder %v2302_v5, 0  ;;  %v6293_v6 = vld [vmem:[%s10692_s4 + $0x20] sm:$0xff] }
  0x73   :  { %v196_v31 = vsel %vm109_vm3, %v5960_v42, %v193_v30  ;;  %v2288_v36 = vand.u32 2147483647, %v2287_v34  ;;  %vm2307_vm3 = vcmp.eq.s32.totalorder %v2302_v5, 2  ;;  %v6272_v42 = vld [vmem:[%s10692_s4 + $0x18] sm:$0xff]  ;;  %v6288_v5 = vld [vmem:[%s10692_s4 + $0x28] sm:$0xff] }
  0x74   :  { %5504 = vcosq.f32 %v196_v31 }
  0x75   :  { %5506 = vsinq.f32 %v196_v31  ;;  %v2291_v38 = vmul.f32 %v2290_v35, %v2288_v36 }
  0x77   :  { %v2292_v40 = vxor.u32 2147483648, %v2291_v38 }
  0x79   :  { %v2293_v32 = vsel %vm2210_vm5, %v2292_v40, %v2291_v38  ;;  %v6211_v38 = vld [vmem:[%s10691_s3 + $0x60] sm:$0xff]  ;;  %vm2300_vm5 = vweird.f32 %v5962_v43 }
  0x7a   :  { %v2296_v59 = vsel %vm6093_vm9, %v5962_v43, %v2293_v32  ;;  %v10706_v32 = vmov 2  }
  0x7b   :  { %5508 = vcosq.f32 %v2296_v59  ;;  %5429 = vset.pattern.permute.xlu1 %v10706_v32 }
  0x7c   :  { %5510 = vsinq.f32 %v2296_v59 }
  0x7e   :  { %v6074_v41 = vpop.eup %5504 }
  0x7f   :  { %v6077_v45 = vpop.eup %5506  ;;  %v208_v44 = vxor.u32 2147483648, %v6074_v41 }
  0x80   :  { %v205_v46 = vxor.u32 2147483648, %v6077_v45 }
  0x81   :  { %v209_v49 = vsel %vm207_vm4, %v208_v44, %v6077_v45  ;;  %v393_v39 = vsel %vm391_vm12, %v208_v44, %v6077_v45  ;;  %vm387_vm4 = vcmp.lt.s32.totalorder %v386_v23, 2  ;;  %v106_v45 = vld [vmem:[%s10691_s3 + $0x70] sm:$0xff] }
  0x82   :  { %v206_v53 = vsel %vm204_vm6, %v6074_v41, %v205_v46 }
  0x83   :  { %v210_v56 = vsel %vm203_vm7, %v206_v53, %v209_v49  ;;  %v390_v53 = vsel %vm388_vm11, %v6074_v41, %v205_v46  ;;  %v6239_v41 = vld [vmem:[%s10691_s3 + $0x78] sm:$0xff] }
  0x84   :  { %v6119_v57 = vsel %vm200_vm8, nan, %v210_v56  ;;  %v394_v46 = vsel %vm387_vm4, %v390_v53, %v393_v39  ;;  %v6341_v53 = vld [vmem:[%s10692_s4 + $0x50] sm:$0xff] }
  0x85   :  { %v214_v20 = vmul.f32 %v6119_v57, %v6085_v48  ;;  %v212_v9 = vmul.f32 %v6119_v57, %v6105_v54  ;;  %v215_v60 = vmul.f32 %v6119_v57, %v6110_v55  ;;  %v213_v61 = vmul.f32 %v6119_v57, %v6115_v51  ;;  %v5509_v24 = vpop.eup %5508 }
  0x86   :  { %v217_v8 = vmul.f32 %v6119_v57, %v6138_v1  ;;  %v216_v11 = vmul.f32 %v6119_v57, %v6143_v62  ;;  %v219_v17 = vmul.f32 %v6119_v57, %v6158_v12  ;;  %v218_v10 = vmul.f32 %v6119_v57, %v6163_v13  ;;  %v5511_v29 = vpop.eup %5510 }
  0x87   :  { %v235_v63 = vsel %vm228_vm10, %v214_v20, 0.0  ;;  %v229_v2 = vsel %vm228_vm10, %v212_v9, 0.0  ;;  %v238_v4 = vsel %vm228_vm10, %v215_v60, 0.0  ;;  %v232_v7 = vsel %vm228_vm10, %v213_v61, 0.0 }
  0x88   :  { %236 = vadd.xlane.f32.xlu1 %v235_v63  ;;  %230 = vadd.xlane.f32.xlu0 %v229_v2  ;;  %v244_v15 = vsel %vm228_vm10, %v217_v8, 0.0  ;;  %v241_v16 = vsel %vm228_vm10, %v216_v11, 0.0  ;;  %v250_v25 = vsel %vm228_vm10, %v219_v17, 0.0  ;;  %v247_v19 = vsel %vm228_vm10, %v218_v10, 0.0 }
  0x89   :  { %v221_v18 = vmul.f32 %v6119_v57, %v6174_v21  ;;  %v220_v26 = vmul.f32 %v6119_v57, %v6179_v22  ;;  %v223_v30 = vmul.f32 %v6119_v57, %v6190_v27  ;;  %v222_v31 = vmul.f32 %v6119_v57, %v6195_v28 }
  0x8a   :  { %v2305_v35 = vxor.u32 2147483648, %v5511_v29  ;;  %v2308_v36 = vxor.u32 2147483648, %v5509_v24  ;;  %v225_v20 = vmul.f32 %v6119_v57, %v6206_v37  ;;  %v224_v9 = vmul.f32 %v6119_v57, %v6211_v38 }
  0x8b   :  { %v256_v33 = vsel %vm228_vm10, %v221_v18, 0.0  ;;  %v253_v34 = vsel %vm228_vm10, %v220_v26, 0.0  ;;  %v262_v58 = vsel %vm228_vm10, %v223_v30, 0.0  ;;  %v259_v59 = vsel %vm228_vm10, %v222_v31, 0.0  ;;  %v6304_v26 = vld [vmem:[%s10692_s4 + $0x38] sm:$0xff] }
  0x8c   :  { %239 = vadd.xlane.f32.xlu1 %v238_v4  ;;  %233 = vadd.xlane.f32.xlu0 %v232_v7  ;;  %v2306_v40 = vsel %vm2304_vm2, %v5509_v24, %v2305_v35  ;;  %v2309_v47 = vsel %vm2307_vm3, %v2308_v36, %v5511_v29  ;;  %v2489_v49 = vsel %vm2487_vm15, %v5509_v24, %v2305_v35  ;;  %v268_v60 = vsel %vm228_vm10, %v225_v20, 0.0  ;;  %v6261_v7 = vld [vmem:[%s10692_s4] sm:$0xff]  ;;  %v6320_v35 = vld [vmem:[%s10692_s4 + $0x48] sm:$0xff] }
  0x8d   :  { %v2492_v52 = vsel %vm2490_vm0, %v2308_v36, %v5511_v29  ;;  %v6225_v56 = vsel %vm2303_vm13, %v2306_v40, %v2309_v47  ;;  %v265_v61 = vsel %vm228_vm10, %v224_v9, 0.0  ;;  %v227_v63 = vmul.f32 %v6119_v57, %v6239_v41  ;;  %v6309_v29 = vld [vmem:[%s10692_s4 + $0x30] sm:$0xff]  ;;  %v6325_v36 = vld [vmem:[%s10692_s4 + $0x40] sm:$0xff] }
  0x8e   :  { %v6228_v44 = vsel %vm2486_vm14, %v2489_v49, %v2492_v52  ;;  %v226_v2 = vmul.f32 %v6119_v57, %v106_v45  ;;  %v6256_v4 = vsel %vm200_vm8, nan, %v394_v46  ;;  %v6336_v52 = vld [vmem:[%s10692_s4 + $0x58] sm:$0xff]  ;;  %v6355_v46 = vld [vmem:[%s10692_s4 + $0x68] sm:$0xff] }
  0x8f   :  { %v274_v8 = vsel %vm228_vm10, %v227_v63, 0.0  ;;  %v397_v11 = vmul.f32 %v6256_v4, %v6252_v3  ;;  %v396_v14 = vmul.f32 %v6256_v4, %v6261_v7  ;;  %v399_v10 = vmul.f32 %v6256_v4, %v6272_v42 }
  0x90   :  { %245 = vadd.xlane.f32.xlu1 %v244_v15  ;;  %242 = vadd.xlane.f32.xlu0 %v241_v16  ;;  %v271_v57 = vsel %vm228_vm10, %v226_v2, 0.0  ;;  %v6277_v15 = vld [vmem:[%s10692_s4 + $0x10] sm:$0xff]  ;;  %v400_v18 = vmul.f32 %v6256_v4, %v6293_v6  ;;  %v403_v30 = vmul.f32 %v6256_v4, %v6304_v26  ;;  %v405_v47 = vmul.f32 %v6256_v4, %v6320_v35 }
  0x91   :  { %v415_v16 = vsel %vm228_vm10, %v397_v11, 0.0  ;;  %v412_v17 = vsel %vm228_vm10, %v396_v14, 0.0  ;;  %v398_v23 = vmul.f32 %v6256_v4, %v6277_v15  ;;  %v421_v24 = vsel %vm228_vm10, %v399_v10, 0.0  ;;  %v6374_v11 = vld [vmem:[%s10692_s4 + $0x70] sm:$0xff] }
  0x92   :  { %v433_v39 = vsel %vm228_vm10, %v403_v30, 0.0  ;;  %v404_v49 = vmul.f32 %v6256_v4, %v6325_v36  ;;  %v407_v9 = vmul.f32 %v6256_v4, %v6336_v52  ;;  %v406_v45 = vmul.f32 %v6256_v4, %v6341_v53 }
  0x93   :  { %v409_v2 = vmul.f32 %v6256_v4, %v6355_v46  ;;  %v410_v10 = vmul.f32 %v6256_v4, %v6374_v11 }
  0x94   :  { %251 = vadd.xlane.f32.xlu1 %v250_v25  ;;  %248 = vadd.xlane.f32.xlu0 %v247_v19  ;;  %v418_v25 = vsel %vm228_vm10, %v398_v23, 0.0  ;;  %v401_v19 = vmul.f32 %v6256_v4, %v6288_v5  ;;  %v436_v20 = vsel %vm228_vm10, %v404_v49, 0.0  ;;  %v442_v63 = vsel %vm228_vm10, %v406_v45, 0.0 }
  0x95   :  { %v451_v14 = vsel %vm228_vm10, %v409_v2, 0.0  ;;  %v6383_v23 = vsel %vm2300_vm5, nan, %v6225_v56  ;;  %v454_v43 = vsel %vm228_vm10, %v410_v10, 0.0  ;;  %v5771_v10 = vld [vmem:[%s10694_s6 + $0x18] sm:$0xff] }
  0x96   :  { %v427_v31 = vsel %vm228_vm10, %v401_v19, 0.0  ;;  %v2312_v19 = vmul.f32 %v6383_v23, %v6105_v54  ;;  %v2314_v30 = vmul.f32 %v6383_v23, %v6085_v48 }
  0x98   :  { %257 = vadd.xlane.f32.xlu1 %v256_v33  ;;  %254 = vadd.xlane.f32.xlu0 %v253_v34  ;;  %v424_v33 = vsel %vm228_vm10, %v400_v18, 0.0  ;;  %v402_v34 = vmul.f32 %v6256_v4, %v6309_v29  ;;  %v6392_v18 = vsel %vm2300_vm5, nan, %v6228_v44 }
  0x99   :  { %v2497_v44 = vmul.f32 %v6392_v18, %v6277_v15  ;;  %v2498_v49 = vmul.f32 %v6392_v18, %v6272_v42 }
  0x9a   :  { %v430_v40 = vsel %vm228_vm10, %v402_v34, 0.0 }
  0x9b   :  { %v2517_v34 = vsel %vm228_vm10, %v2497_v44, 0.0 }
  0x9c   :  { %263 = vadd.xlane.f32.xlu1 %v262_v58  ;;  %260 = vadd.xlane.f32.xlu0 %v259_v59  ;;  %v10702_v58 = vmov 0   ;;  %v439_v59 = vsel %vm228_vm10, %v405_v47, 0.0  ;;  %v2316_v47 = vmul.f32 %v6383_v23, %v6143_v62 }
  0x9d   :  { %5436 = vset.pattern.permute.xlu0 %v10702_v58  ;;  %1788 = vmatprep.mubr.bf16.mxu0 %v10702_v58 }
  0x9e   :  { %3615 = vmatprep.mubr.bf16.mxu1 %v10702_v58 }
  0xa0   :  { %269 = vadd.xlane.f32.xlu1 %v268_v60  ;;  %266 = vadd.xlane.f32.xlu0 %v265_v61  ;;  %v6360_v60 = vld [vmem:[%s10692_s4 + $0x60] sm:$0xff]  ;;  %v445_v61 = vsel %vm228_vm10, %v407_v9, 0.0  ;;  %v5769_v9 = vld [vmem:[%s10694_s6 + $0x8] sm:$0xff] }
  0xa1   :  { %v2629_v45 = vmul.f32 %v5769_v9, %v6060_v50 }
  0xa3   :  { %v2647_v42 = vsel %vm545_vm1, %v2629_v45, 0.0 }
  0xa4   :  { %275 = vadd.xlane.f32.xlu1 %v274_v8  ;;  %272 = vadd.xlane.f32.xlu0 %v271_v57  ;;  %v408_v8 = vmul.f32 %v6256_v4, %v6360_v60  ;;  %v292_v57 = vld [vmem:[%s10692_s4 + $0x78] sm:$0xff] }
  0xa8   :  { %416 = vadd.xlane.f32.xlu1 %v415_v16  ;;  %413 = vadd.xlane.f32.xlu0 %v412_v17  ;;  %v448_v16 = vsel %vm228_vm10, %v408_v8, 0.0  ;;  %v411_v17 = vmul.f32 %v6256_v4, %v292_v57  ;;  %v2328_v4 = vsel %vm228_vm10, %v2312_v19, 0.0  ;;  %v2318_v57 = vmul.f32 %v6383_v23, %v6163_v13 }
  0xac   :  { %422 = vadd.xlane.f32.xlu1 %v421_v24  ;;  %419 = vadd.xlane.f32.xlu0 %v418_v25  ;;  %v457_v24 = vsel %vm228_vm10, %v411_v17, 0.0  ;;  %v2313_v25 = vmul.f32 %v6383_v23, %v6115_v51  ;;  %v2334_v51 = vsel %vm228_vm10, %v2314_v30, 0.0 }
  0xae   :  { %v2331_v56 = vsel %vm228_vm10, %v2313_v25, 0.0 }
  0xb0   :  { %428 = vadd.xlane.f32.xlu1 %v427_v31  ;;  %425 = vadd.xlane.f32.xlu0 %v424_v33  ;;  %v2495_v31 = vmul.f32 %v6392_v18, %v6261_v7  ;;  %v2496_v33 = vmul.f32 %v6392_v18, %v6252_v3  ;;  %v5768_v7 = vld [vmem:[%s10694_s6] sm:$0xff] }
  0xb2   :  { %v2511_v54 = vsel %vm228_vm10, %v2495_v31, 0.0  ;;  %v2514_v48 = vsel %vm228_vm10, %v2496_v33, 0.0  ;;  %v2320_v31 = vmul.f32 %v6383_v23, %v6179_v22  ;;  %v5773_v22 = vld [vmem:[%s10694_s6 + $0x28] sm:$0xff] }
  0xb4   :  { %434 = vadd.xlane.f32.xlu1 %v433_v39  ;;  %431 = vadd.xlane.f32.xlu0 %v430_v40  ;;  %v2628_v39 = vmul.f32 %v5768_v7, %v6060_v50  ;;  %v2315_v40 = vmul.f32 %v6383_v23, %v6110_v55  ;;  %v2499_v55 = vmul.f32 %v6392_v18, %v6293_v6 }
  0xb5   :  { %v2317_v6 = vmul.f32 %v6383_v23, %v6138_v1  ;;  %v2501_v1 = vmul.f32 %v6392_v18, %v6309_v29  ;;  %v2319_v29 = vmul.f32 %v6383_v23, %v6158_v12  ;;  %v6458_v19 = vpop.xlane.xlu1 %550  ;;  %v2352_v12 = vsel %vm228_vm10, %v2320_v31, 0.0 }
  0xb6   :  { %v2644_v15 = vsel %vm545_vm1, %v2628_v39, 0.0  ;;  %v2337_v3 = vsel %vm228_vm10, %v2315_v40, 0.0  ;;  %v2523_v62 = vsel %vm228_vm10, %v2499_v55, 0.0  ;;  %v2504_v39 = vmul.f32 %v6392_v18, %v6320_v35 }
  0xb7   :  { %v2343_v8 = vsel %vm228_vm10, %v2317_v6, 0.0  ;;  %v2529_v13 = vsel %vm228_vm10, %v2501_v1, 0.0  ;;  %v2349_v30 = vsel %vm228_vm10, %v2319_v29, 0.0  ;;  %v2321_v40 = vmul.f32 %v6383_v23, %v6174_v21  ;;  %v2619_v21 = vld [vmem:[%s10694_s6 + $0x38] sm:$0xff] }
  0xb8   :  { %440 = vadd.xlane.f32.xlu1 %v439_v59  ;;  %437 = vadd.xlane.f32.xlu0 %v436_v20  ;;  %v2340_v59 = vsel %vm228_vm10, %v2316_v47, 0.0  ;;  %v2520_v20 = vsel %vm228_vm10, %v2498_v49, 0.0  ;;  %v5774_v49 = vld [vmem:[%s10694_s6 + $0x30] sm:$0xff]  ;;  %v2323_v35 = vmul.f32 %v6383_v23, %v6190_v27  ;;  %v2506_v6 = vmul.f32 %v6392_v18, %v6336_v52 }
  0xb9   :  { %v2355_v47 = vsel %vm228_vm10, %v2321_v40, 0.0  ;;  %v2627_v40 = vld [vmem:[%s10694_s6 + $0x78] sm:$0xff] }
  0xba   :  { %v2361_v45 = vsel %vm228_vm10, %v2323_v35, 0.0 }
  0xbc   :  { %446 = vadd.xlane.f32.xlu1 %v445_v61  ;;  %443 = vadd.xlane.f32.xlu0 %v442_v63  ;;  %v5770_v61 = vld [vmem:[%s10694_s6 + $0x10] sm:$0xff] }
  0xbd   :  { %v2630_v63 = vmul.f32 %v5770_v61, %v6060_v50 }
  0xbf   :  { %v2650_v2 = vsel %vm545_vm1, %v2630_v63, 0.0  ;;  %v2322_v63 = vmul.f32 %v6383_v23, %v6195_v28  ;;  %v2544_v28 = vsel %vm228_vm10, %v2506_v6, 0.0 }
  0xc0   :  { %452 = vadd.xlane.f32.xlu1 %v451_v14  ;;  %449 = vadd.xlane.f32.xlu0 %v448_v16  ;;  %v2500_v14 = vmul.f32 %v6392_v18, %v6288_v5  ;;  %v2346_v16 = vsel %vm228_vm10, %v2318_v57, 0.0  ;;  %v2621_v57 = vld [vmem:[%s10694_s6 + $0x48] sm:$0xff] }
  0xc2   :  { %v2526_v17 = vsel %vm228_vm10, %v2500_v14, 0.0  ;;  %v2358_v14 = vsel %vm228_vm10, %v2322_v63, 0.0 }
  0xc4   :  { %458 = vadd.xlane.f32.xlu1 %v457_v24  ;;  %455 = vadd.xlane.f32.xlu0 %v454_v43  ;;  %v2631_v24 = vmul.f32 %v5771_v10, %v6060_v50  ;;  %v5772_v43 = vld [vmem:[%s10694_s6 + $0x20] sm:$0xff] }
  0xc5   :  { %v2632_v25 = vmul.f32 %v5772_v43, %v6060_v50 }
  0xc6   :  { %v2653_v5 = vsel %vm545_vm1, %v2631_v24, 0.0 }
  0xc8   :  { %2332 = vadd.xlane.f32.xlu1 %v2331_v56  ;;  %2329 = vadd.xlane.f32.xlu0 %v2328_v4  ;;  %v6460_v56 = vpop.xlane.xlu0 %547  ;;  %v2656_v4 = vsel %vm545_vm1, %v2632_v25, 0.0 }
  0xcc   :  { %2335 = vadd.xlane.f32.xlu1 %v2334_v51  ;;  %2512 = vadd.xlane.f32.xlu0 %v2511_v54  ;;  %v2502_v51 = vmul.f32 %v6392_v18, %v6304_v26  ;;  %v6468_v54 = vpop.xlane.xlu1 %556  ;;  %v6470_v44 = vpop.xlane.xlu0 %553 }
  0xce   :  { %v2532_v33 = vsel %vm228_vm10, %v2502_v51, 0.0 }
  0xd0   :  { %2518 = vadd.xlane.f32.xlu1 %v2517_v34  ;;  %2515 = vadd.xlane.f32.xlu0 %v2514_v48  ;;  %v2503_v34 = vmul.f32 %v6392_v18, %v6325_v36  ;;  %v2633_v48 = vmul.f32 %v5773_v22, %v6060_v50  ;;  %v6488_v36 = vpop.xlane.xlu0 %559  ;;  %v2624_v22 = vld [vmem:[%s10694_s6 + $0x60] sm:$0xff] }
  0xd1   :  { %10828 = vst [vmem:[#allocation9_spill] sm:$0xff] %v6488_v36  ;;  %v10872_v36 = vmov 0  }
  0xd2   :  { %v2535_v26 = vsel %vm228_vm10, %v2503_v34, 0.0  ;;  %v2659_v7 = vsel %vm545_vm1, %v2633_v48, 0.0  ;;  %v2509_v34 = vmul.f32 %v6392_v18, %v6374_v11  ;;  %v6578_v11 = vld [vmem:[%s10695_s7] sm:$0xff] }
  0xd4   :  { %2645 = vadd.xlane.f32.xlu1 %v2644_v15  ;;  %2338 = vadd.xlane.f32.xlu0 %v2337_v3  ;;  %v6486_v15 = vpop.xlane.xlu1 %562  ;;  %v2538_v3 = vsel %vm228_vm10, %v2504_v39, 0.0  ;;  %v6503_v55 = vpop.xlane.xlu0 %565  ;;  %v6573_v39 = vld [vmem:[%s10688_s0 + $0x8] sm:$0xff] }
  0xd5   :  { %10829 = vst [vmem:[#allocation10_spill] sm:$0xff] %v6503_v55 }
  0xd8   :  { %2341 = vadd.xlane.f32.xlu1 %v2340_v59  ;;  %2521 = vadd.xlane.f32.xlu0 %v2520_v20  ;;  %v2634_v59 = vmul.f32 %v5774_v49, %v6060_v50  ;;  %v6501_v20 = vpop.xlane.xlu1 %568 }
  0xda   :  { %v2662_v9 = vsel %vm545_vm1, %v2634_v59, 0.0 }
  0xdc   :  { %2524 = vadd.xlane.f32.xlu1 %v2523_v62  ;;  %2648 = vadd.xlane.f32.xlu0 %v2647_v42  ;;  %v2635_v62 = vmul.f32 %v6060_v50, %v2619_v21  ;;  %v2505_v42 = vmul.f32 %v6392_v18, %v6341_v53  ;;  %v2620_v53 = vld [vmem:[%s10694_s6 + $0x40] sm:$0xff] }
  0xdd   :  { %v2636_v52 = vmul.f32 %v6060_v50, %v2620_v53  ;;  %v6615_v53 = vld [vmem:[%s10695_s7 + $0x20] sm:$0xff] }
  0xde   :  { %v2665_v27 = vsel %vm545_vm1, %v2635_v62, 0.0  ;;  %v2541_v61 = vsel %vm228_vm10, %v2505_v42, 0.0 }
  0xdf   :  { %v2668_v10 = vsel %vm545_vm1, %v2636_v52, 0.0 }
  0xe0   :  { %2651 = vadd.xlane.f32.xlu1 %v2650_v2  ;;  %2344 = vadd.xlane.f32.xlu0 %v2343_v8  ;;  %v6516_v2 = vpop.xlane.xlu1 %574  ;;  %v6518_v8 = vpop.xlane.xlu0 %571 }
  0xe1   :  { %10830 = vst [vmem:[#allocation11_spill] sm:$0xff] %v6518_v8  ;;  %v10870_v8 = vmov 3  }
  0xe4   :  { %2347 = vadd.xlane.f32.xlu1 %v2346_v16  ;;  %2527 = vadd.xlane.f32.xlu0 %v2526_v17  ;;  %v2637_v16 = vmul.f32 %v6060_v50, %v2621_v57  ;;  %v6530_v17 = vpop.xlane.xlu1 %580  ;;  %v6532_v1 = vpop.xlane.xlu0 %577 }
  0xe5   :  { %10831 = vst [vmem:[#allocation12_spill] sm:$0xff] %v6530_v17  ;;  %10832 = vst [vmem:[#allocation13_spill] sm:$0xff] %v6532_v1  ;;  %v10867_v17 = vmov 1   ;;  %v6837_v1 = vld [vmem:[%s10695_s7 + $0x70] sm:$0xff] }
  0xe6   :  { %v2671_v24 = vsel %vm545_vm1, %v2637_v16, 0.0 }
  0xe8   :  { %2530 = vadd.xlane.f32.xlu1 %v2529_v13  ;;  %2654 = vadd.xlane.f32.xlu0 %v2653_v5  ;;  %v2325_v13 = vmul.f32 %v6383_v23, %v6206_v37  ;;  %v2623_v5 = vld [vmem:[%s10694_s6 + $0x58] sm:$0xff]  ;;  %v6542_v25 = vpop.xlane.xlu1 %586  ;;  %v6544_v29 = vpop.xlane.xlu0 %583  ;;  %v2327_v37 = vmul.f32 %v6383_v23, %v6239_v41 }
  0xe9   :  { %10833 = vst [vmem:[#allocation14_spill] sm:$0xff] %v6544_v29 }
  0xea   :  { %v2367_v43 = vsel %vm228_vm10, %v2325_v13, 0.0  ;;  %v10704_v13 = vmov 3  }
  0xec   :  { %2657 = vadd.xlane.f32.xlu1 %v2656_v4  ;;  %2350 = vadd.xlane.f32.xlu0 %v2349_v30  ;;  %v2639_v4 = vmul.f32 %v6060_v50, %v2623_v5  ;;  %v6550_v31 = vpop.xlane.xlu1 %592  ;;  %v6552_v51 = vpop.xlane.xlu0 %589 }
  0xed   :  { %10834 = vst [vmem:[#allocation15_spill] sm:$0xff] %v6550_v31  ;;  %10835 = vst [vmem:[#allocation16_spill] sm:$0xff] %v6552_v51  ;;  %v2324_v51 = vmul.f32 %v6383_v23, %v6211_v38  ;;  %v2507_v38 = vmul.f32 %v6392_v18, %v6360_v60  ;;  %v2508_v60 = vmul.f32 %v6392_v18, %v6355_v46 }
  0xee   :  { %v2677_v30 = vsel %vm545_vm1, %v2639_v4, 0.0 }
  0xef   :  { %v2550_v46 = vsel %vm228_vm10, %v2508_v60, 0.0 }
  0xf0   :  { %2353 = vadd.xlane.f32.xlu1 %v2352_v12  ;;  %2533 = vadd.xlane.f32.xlu0 %v2532_v33  ;;  %v6555_v12 = vshrl.u32 %v67_v0, 7  ;;  %v2373_v33 = vsel %vm228_vm10, %v2327_v37, 0.0  ;;  %v2553_v0 = vsel %vm228_vm10, %v2509_v34, 0.0  ;;  %v6645_v37 = vld [vmem:[%s10695_s7 + $0x48] sm:$0xff] }
  0xf2   :  { %v10701_v41 = vsub.s32 6, %v6555_v12 }
  0xf4   :  { %2536 = vadd.xlane.f32.xlu1 %v2535_v26  ;;  %2660 = vadd.xlane.f32.xlu0 %v2659_v7  ;;  %v2640_v7 = vmul.f32 %v6060_v50, %v2624_v22  ;;  %v6653_v22 = vld [vmem:[%s10695_s7 + $0x58] sm:$0xff] }
  0xf5   :  { %10843 = vst [vmem:[#allocation24_spill] sm:$0xff] %v6653_v22 }
  0xf6   :  { %v2680_v21 = vsel %vm545_vm1, %v2640_v7, 0.0 }
  0xf8   :  { %2539 = vadd.xlane.f32.xlu1 %v2538_v3  ;;  %2356 = vadd.xlane.f32.xlu0 %v2355_v47  ;;  %v6584_v3 = vsub.s32 2, %v6555_v12  ;;  %v2962_v47 = vrot.slane %v6573_v39, %v10701_v41  ;;  %v88_v41 = vld [vmem:[%s10695_s7 + $0x78] sm:$0xff] }
  0xfa   :  { %v6590_v49 = vrot.slane %v2962_v47, %v6584_v3 }
  0xfc   :  { %2663 = vadd.xlane.f32.xlu1 %v2662_v9  ;;  %2362 = vadd.xlane.f32.xlu0 %v2361_v45  ;;  %10836 = vst [vmem:[#allocation17_spill] sm:$0xff] %v6590_v49  ;;  %v2643_v9 = vmul.f32 %v6060_v50, %v2627_v40  ;;  %v6598_v45 = vld [vmem:[%s10695_s7 + $0x8] sm:$0xff] }
  0xfd   :  { %v6661_v40 = vld [vmem:[%s10695_s7 + $0x68] sm:$0xff] }
  0xfe   :  { %10844 = vst [vmem:[#allocation25_spill] sm:$0xff] %v6661_v40 }
 0x100   :  { %2666 = vadd.xlane.f32.xlu1 %v2665_v27  ;;  %2542 = vadd.xlane.f32.xlu0 %v2541_v61  ;;  %v2689_v27 = vsel %vm545_vm1, %v2643_v9, 0.0  ;;  %v6607_v61 = vld [vmem:[%s10695_s7 + $0x18] sm:$0xff] }
 0x104   :  { %2359 = vadd.xlane.f32.xlu1 %v2358_v14  ;;  %2545 = vadd.xlane.f32.xlu0 %v2544_v28  ;;  %v6623_v28 = vld [vmem:[%s10695_s7 + $0x28] sm:$0xff] }
 0x108   :  { %2669 = vadd.xlane.f32.xlu1 %v2668_v10  ;;  %2672 = vadd.xlane.f32.xlu0 %v2671_v24 }
 0x10c   :  { %2368 = vadd.xlane.f32.xlu0 %v2367_v43 }
 0x110   :  { %2678 = vadd.xlane.f32.xlu0 %v2677_v30 }
 0x114   :  { %2374 = vadd.xlane.f32.xlu0 %v2373_v33 }
 0x115   :  { %v6564_v48 = vpop.xlane.xlu1 %236  ;;  %v6566_v26 = vpop.xlane.xlu0 %230 }
 0x118   :  { %2554 = vadd.xlane.f32.xlu0 %v2553_v0 }
 0x119   :  { %1001 = vperm.xlu1 %5429, %v6578_v11   ;;  %v240_v59 = vpop.xlane.xlu1 %239  ;;  %v234_v35 = vpop.xlane.xlu0 %233 }
 0x11c   :  { %2681 = vadd.xlane.f32.xlu0 %v2680_v21  ;;  %v6666_v21 = vld [vmem:[%s10693_s5 + $0x8] sm:$0xff] }
 0x11d   :  { %1005 = vperm.xlu1 %5429, %v6598_v45   ;;  %v246_v62 = vpop.xlane.xlu1 %245  ;;  %v6601_v42 = vpop.xlane.xlu0 %242  ;;  %10845 = vst [vmem:[#allocation26_spill] sm:$0xff] %v6666_v21 }
 0x120   :  { %2690 = vadd.xlane.f32.xlu0 %v2689_v27 }
 0x121   :  { %1013 = vperm.xlu1 %5429, %v6607_v61   ;;  %v252_v63 = vpop.xlane.xlu1 %251  ;;  %v6610_v6 = vpop.xlane.xlu0 %248 }
 0x125   :  { %1017 = vperm.xlu1 %5429, %v6615_v53   ;;  %v258_v57 = vpop.xlane.xlu1 %257  ;;  %v6618_v14 = vpop.xlane.xlu0 %254 }
 0x126   :  { %10837 = vst [vmem:[#allocation18_spill] sm:$0xff] %v6618_v14 }
 0x129   :  { %1021 = vperm.xlu1 %5429, %v6623_v28   ;;  %v6626_v52 = vpop.xlane.xlu1 %263  ;;  %v6628_v16 = vpop.xlane.xlu0 %260 }
 0x12a   :  { %10838 = vst [vmem:[#allocation19_spill] sm:$0xff] %v6626_v52  ;;  %10839 = vst [vmem:[#allocation20_spill] sm:$0xff] %v6628_v16  ;;  %v6853_v16 = vld [vmem:[%s10693_s5] sm:$0xff] }
 0x12d   :  { %v6630_v10 = vpop.xlane.xlu1 %269  ;;  %v6632_v24 = vpop.xlane.xlu0 %266  ;;  %5430 = vset.pattern.permute.xlu1 %v10704_v13 }
 0x12e   :  { %10840 = vst [vmem:[#allocation21_spill] sm:$0xff] %v6632_v24 }
 0x131   :  { %v6635_v5 = vpop.xlane.xlu1 %275  ;;  %v6637_v43 = vpop.xlane.xlu0 %272 }
 0x132   :  { %10841 = vst [vmem:[#allocation22_spill] sm:$0xff] %v6635_v5  ;;  %10842 = vst [vmem:[#allocation23_spill] sm:$0xff] %v6637_v43  ;;  %v6813_v5 = vld [vmem:[%s10695_s7 + $0x38] sm:$0xff] }
 0x135   :  { %v417_v4 = vpop.xlane.xlu1 %416  ;;  %v6639_v30 = vpop.xlane.xlu0 %413 }
 0x136   :  { %613 = vperm.xlu0 %5436, %v6578_v11   ;;  %v461_v47 = vadd.f32 %v417_v4, %v234_v35  ;;  %v6678_v35 = vld [vmem:[%s10693_s5 + $0x18] sm:$0xff] }
 0x138   :  { %v498_v58 = vadd.f32 %v6666_v21, %v461_v47 }
 0x139   :  { %v423_v33 = vpop.xlane.xlu1 %422  ;;  %v6647_v34 = vpop.xlane.xlu0 %419 }
 0x13a   :  { %658 = vperm.xlu0 %5436, %v6645_v37   ;;  %v463_v13 = vadd.f32 %v423_v33, %v240_v59  ;;  %v595_v31 = vadd.f32 %v6458_v19, %v498_v58  ;;  %v6689_v59 = vld [vmem:[%s10693_s5 + $0x28] sm:$0xff] }
 0x13c   :  { %v500_v29 = vadd.f32 %v6678_v35, %v463_v13  ;;  %v6703_v13 = vld [vmem:[%s10693_s5 + $0x38] sm:$0xff] }
 0x13d   :  { %v429_v0 = vpop.xlane.xlu1 %428  ;;  %v6655_v7 = vpop.xlane.xlu0 %425 }
 0x13e   :  { %668 = vperm.xlu0 %5436, %v6653_v22   ;;  %v465_v43 = vadd.f32 %v429_v0, %v246_v62  ;;  %v597_v58 = vadd.f32 %v6468_v54, %v500_v29  ;;  %v2622_v54 = vld [vmem:[%s10694_s6 + $0x50] sm:$0xff] }
 0x140   :  { %v502_v19 = vadd.f32 %v6689_v59, %v465_v43  ;;  %v6718_v43 = vld [vmem:[%s10693_s5 + $0x48] sm:$0xff] }
 0x141   :  { %v435_v9 = vpop.xlane.xlu1 %434  ;;  %v6668_v27 = vpop.xlane.xlu0 %431 }
 0x142   :  { %10846 = vst [vmem:[#allocation27_spill] sm:$0xff] %v6668_v27  ;;  %678 = vperm.xlu0 %5436, %v6661_v40   ;;  %v467_v62 = vadd.f32 %v435_v9, %v252_v63  ;;  %v599_v29 = vadd.f32 %v6486_v15, %v502_v19 }
 0x145   :  { %v441_v4 = vpop.xlane.xlu1 %440  ;;  %v6680_v32 = vpop.xlane.xlu0 %437 }
 0x146   :  { %10847 = vst [vmem:[#allocation28_spill] sm:$0xff] %v6680_v32  ;;  %688 = vperm.xlu0 %5436, %v88_v41   ;;  %v2364_v41 = vsel %vm228_vm10, %v2324_v51, 0.0  ;;  %v504_v51 = vadd.f32 %v6703_v13, %v467_v62  ;;  %v469_v63 = vadd.f32 %v441_v4, %v258_v57  ;;  %v6732_v4 = vld [vmem:[%s10693_s5 + $0x68] sm:$0xff] }
 0x148   :  { %v601_v15 = vadd.f32 %v6501_v20, %v504_v51 }
 0x149   :  { %v6691_v33 = vpop.xlane.xlu1 %446  ;;  %v6693_v47 = vpop.xlane.xlu0 %443 }
 0x14a   :  { %10848 = vst [vmem:[#allocation29_spill] sm:$0xff] %v6691_v33  ;;  %10849 = vst [vmem:[#allocation30_spill] sm:$0xff] %v6693_v47  ;;  %749 = vperm.xlu0 %5436, %v595_v31   ;;  %v2547_v31 = vsel %vm228_vm10, %v2507_v38, 0.0  ;;  %v2638_v38 = vmul.f32 %v6060_v50, %v2622_v54 }
 0x14d   :  { %2365 = vadd.xlane.f32.xlu1 %v2364_v41  ;;  %v453_v0 = vpop.xlane.xlu1 %452  ;;  %v6705_v21 = vpop.xlane.xlu0 %449 }
 0x14e   :  { %10850 = vst [vmem:[#allocation31_spill] sm:$0xff] %v6705_v21  ;;  %759 = vperm.xlu0 %5436, %v597_v58   ;;  %v506_v58 = vadd.f32 %v6718_v43, %v469_v63  ;;  %v473_v57 = vadd.f32 %v453_v0, %v6630_v10  ;;  %v6753_v63 = vld [vmem:[%s10695_s7 + $0x10] sm:$0xff] }
 0x150   :  { %v603_v60 = vadd.f32 %v6516_v2, %v506_v58  ;;  %v510_v20 = vadd.f32 %v6732_v4, %v473_v57  ;;  %v10709_v58 = vsub.s32 7, %v6555_v12  ;;  %v6769_v57 = vsub.s32 3, %v6555_v12 }
 0x151   :  { %2548 = vadd.xlane.f32.xlu1 %v2547_v31  ;;  %v6720_v9 = vpop.xlane.xlu1 %458  ;;  %v6722_v41 = vpop.xlane.xlu0 %455  ;;  %v2674_v31 = vsel %vm545_vm1, %v2638_v38, 0.0 }
 0x152   :  { %10851 = vst [vmem:[#allocation32_spill] sm:$0xff] %v6720_v9  ;;  %10852 = vst [vmem:[#allocation33_spill] sm:$0xff] %v6722_v41  ;;  %769 = vperm.xlu0 %5436, %v599_v29   ;;  %v607_v0 = vadd.f32 %v6542_v25, %v510_v20  ;;  %v6764_v25 = vld [vmem:[%s10695_s7 + $0x30] sm:$0xff]  ;;  %v6804_v9 = vsub.s32 1, %v6555_v12 }
 0x155   :  { %2551 = vadd.xlane.f32.xlu1 %v2550_v46  ;;  %v6734_v19 = vpop.xlane.xlu1 %2332  ;;  %v6736_v62 = vpop.xlane.xlu0 %2329  ;;  %v10857_v46 = vmov 2  }
 0x156   :  { %10853 = vst [vmem:[#allocation34_spill] sm:$0xff] %v6734_v19  ;;  %779 = vperm.xlu0 %5436, %v601_v15  }
 0x159   :  { %2675 = vadd.xlane.f32.xlu1 %v2674_v31  ;;  %v6741_v54 = vpop.xlane.xlu1 %2335  ;;  %v6743_v10 = vpop.xlane.xlu0 %2512  ;;  %v3044_v31 = vrot.slane %v6573_v39, %v10709_v58 }
 0x15a   :  { %10854 = vst [vmem:[#allocation35_spill] sm:$0xff] %v6741_v54  ;;  %789 = vperm.xlu0 %5436, %v603_v60   ;;  %v6777_v60 = vld [vmem:[%s10695_s7 + $0x50] sm:$0xff]  ;;  %v10712_v54 = vsub.s32 5, %v6555_v12  ;;  %v2559_v47 = vadd.f32 %v6743_v10, %v6736_v62 }
 0x15c   :  { %v2596_v55 = vadd.f32 %v2559_v47, %v6853_v16 }
 0x15d   :  { %v6746_v29 = vpop.xlane.xlu1 %2518  ;;  %v6748_v51 = vpop.xlane.xlu0 %2515 }
 0x15e   :  { %10855 = vst [vmem:[#allocation36_spill] sm:$0xff] %v6746_v29  ;;  %10856 = vst [vmem:[#allocation37_spill] sm:$0xff] %v6748_v51  ;;  %809 = vperm.xlu0 %5436, %v607_v0   ;;  %v6784_v51 = vrot.slane %v3044_v31, %v6769_v57 }
 0x160   :  { %10860 = vst [vmem:[#allocation40_spill] sm:$0xff] %v6784_v51 }
 0x161   :  { %v6755_v2 = vpop.xlane.xlu0 %2338  ;;  %v6758_v38 = vpop.xlane.xlu1 %2645 }
 0x162   :  { %5441 = vset.pattern.permute.xlu0 %v10857_v46  ;;  %v2692_v10 = vadd.f32 %v6758_v38, %v2596_v55  ;;  %v2391_v55 = vld [vmem:[%s10692_s4 + $0x78] sm:$0xff] }
 0x163   :  { %1009 = vperm.xlu0 %5441, %v6753_v63  }
 0x165   :  { %v2522_v15 = vpop.xlane.xlu0 %2521  ;;  %v6779_v20 = vpop.xlane.xlu1 %2341 }
 0x166   :  { %10858 = vst [vmem:[#allocation38_spill] sm:$0xff] %v6779_v20  ;;  %v10710_v20 = vmov 1  }
 0x167   :  { %1025 = vperm.xlu0 %5441, %v6764_v25  }
 0x169   :  { %v6781_v0 = vpop.xlane.xlu0 %2648  ;;  %v6789_v58 = vpop.xlane.xlu1 %2524 }
 0x16a   :  { %10859 = vst [vmem:[#allocation39_spill] sm:$0xff] %v6781_v0  ;;  %1147 = vperm.xlu1 %5430, %v6578_v11   ;;  %10861 = vst [vmem:[#allocation41_spill] sm:$0xff] %v6789_v58 }
 0x16b   :  { %1041 = vperm.xlu0 %5441, %v6777_v60  }
 0x16d   :  { %v2345_v19 = vpop.xlane.xlu0 %2344  ;;  %v6795_v31 = vpop.xlane.xlu1 %2651 }
 0x16e   :  { %1151 = vperm.xlu1 %5430, %v6598_v45   ;;  %10862 = vst [vmem:[#allocation42_spill] sm:$0xff] %v6795_v31 }
 0x16f   :  { %1053 = vperm.xlu0 %5441, %v6661_v40  }
 0x171   :  { %v2528_v29 = vpop.xlane.xlu0 %2527  ;;  %v6801_v41 = vpop.xlane.xlu1 %2347 }
 0x172   :  { %1155 = vperm.xlu1 %5430, %v6753_v63   ;;  %10863 = vst [vmem:[#allocation43_spill] sm:$0xff] %v6801_v41 }
 0x173   :  { %5445 = vset.pattern.permute.xlu0 %v10710_v20  ;;  %v2880_v20 = vrot.slane %v6573_v39, %v10712_v54  ;;  %v6825_v54 = vld [vmem:[%s10695_s7 + $0x40] sm:$0xff] }
 0x174   :  { %859 = vperm.xlu0 %5445, %v6598_v45  }
 0x175   :  { %v2655_v0 = vpop.xlane.xlu0 %2654  ;;  %v6816_v21 = vrot.slane %v2880_v20, %v6804_v9  ;;  %v6820_v41 = vpop.xlane.xlu1 %2530 }
 0x176   :  { %1159 = vperm.xlu1 %5430, %v6607_v61   ;;  %10865 = vst [vmem:[#allocation45_spill] sm:$0xff] %v6820_v41 }
 0x177   :  { %10864 = vst [vmem:[#allocation44_spill] sm:$0xff] %v6816_v21 }
 0x178   :  { %863 = vperm.xlu0 %5445, %v6753_v63  }
 0x179   :  { %v2351_v58 = vpop.xlane.xlu0 %2350  ;;  %v6830_v22 = vpop.xlane.xlu1 %2657 }
 0x17a   :  { %1163 = vperm.xlu1 %5430, %v6615_v53   ;;  %10866 = vst [vmem:[#allocation46_spill] sm:$0xff] %v6830_v22 }
 0x17c   :  { %875 = vperm.xlu0 %5445, %v6623_v28  }
 0x17d   :  { %v2534_v31 = vpop.xlane.xlu0 %2533  ;;  %v6840_v33 = vpop.xlane.xlu1 %2353 }
 0x17e   :  { %1167 = vperm.xlu1 %5430, %v6623_v28   ;;  %10868 = vst [vmem:[#allocation47_spill] sm:$0xff] %v6840_v33  ;;  %v2566_v27 = vadd.f32 %v2534_v31, %v2351_v58 }
 0x180   :  { %883 = vperm.xlu0 %5445, %v6813_v5  }
 0x181   :  { %v2661_v24 = vpop.xlane.xlu0 %2660 }
 0x182   :  { %5431 = vset.pattern.permute.xlu1 %v10857_v46 }
 0x183   :  { %1029 = vperm.xlu1 %5431, %v6813_v5  }
 0x184   :  { %887 = vperm.xlu0 %5445, %v6825_v54  }
 0x185   :  { %v2357_v20 = vpop.xlane.xlu0 %2356 }
 0x187   :  { %5432 = vset.pattern.permute.xlu1 %v10867_v17  ;;  %v6846_v17 = vpop.xlane.xlu1 %2536 }
 0x188   :  { %895 = vperm.xlu0 %5445, %v6777_v60   ;;  %10871 = vst [vmem:[#allocation49_spill] sm:$0xff] %v6846_v17  ;;  %v2564_v17 = vadd.f32 %v2528_v29, %v2345_v19 }
 0x189   :  { %v2363_v41 = vpop.xlane.xlu0 %2362 }
 0x18a   :  { %v2601_v47 = vadd.f32 %v2564_v17, %v6689_v59  ;;  %v2510_v17 = vmul.f32 %v6392_v18, %v2391_v55  ;;  %v6889_v18 = vld [vmem:[%s10693_s5 + $0x58] sm:$0xff] }
 0x18b   :  { %v2540_v32 = vpop.xlane.xlu1 %2539 }
 0x18c   :  { %911 = vperm.xlu0 %5445, %v6837_v1  }
 0x18d   :  { %v6842_v52 = vpop.xlane.xlu0 %2542 }
 0x18e   :  { %10869 = vst [vmem:[#allocation48_spill] sm:$0xff] %v6842_v52  ;;  %v2562_v52 = vadd.f32 %v2522_v15, %v6755_v2 }
 0x18f   :  { %v6868_v15 = vpop.xlane.xlu1 %2663 }
 0x190   :  { %5447 = vset.pattern.permute.xlu0 %v10870_v8  ;;  %v2599_v62 = vadd.f32 %v2562_v52, %v6678_v35  ;;  %v2697_v52 = vadd.f32 %v2661_v24, %v2601_v47  ;;  %v2603_v35 = vadd.f32 %v2566_v27, %v6703_v13  ;;  %v2556_v24 = vsel %vm228_vm10, %v2510_v17, 0.0 }
 0x191   :  { %1187 = vperm.xlu0 %5447, %v6777_v60   ;;  %v2546_v22 = vpop.xlane.xlu0 %2545 }
 0x192   :  { %v2695_v2 = vadd.f32 %v2655_v0, %v2599_v62  ;;  %v2570_v58 = vadd.f32 %v2546_v22, %v2363_v41 }
 0x193   :  { %v2667_v59 = vpop.xlane.xlu1 %2666 }
 0x194   :  { %v2699_v31 = vadd.f32 %v2667_v59, %v2603_v35 }
 0x195   :  { %1199 = vperm.xlu0 %5447, %v6661_v40   ;;  %v2673_v33 = vpop.xlane.xlu0 %2672  ;;  %v2206_v40 = vld [vmem:[%s10691_s3 + $0x70] sm:$0xff] }
 0x196   :  { %v2326_v19 = vmul.f32 %v6383_v23, %v2206_v40  ;;  %v2625_v23 = vld [vmem:[%s10694_s6 + $0x68] sm:$0xff]  ;;  %v2568_v40 = vadd.f32 %v2540_v32, %v2357_v20 }
 0x197   :  { %v2641_v27 = vmul.f32 %v6060_v50, %v2625_v23  ;;  %v6913_v55 = vpop.xlane.xlu1 %2359 }
 0x198   :  { %v2370_v38 = vsel %vm228_vm10, %v2326_v19, 0.0  ;;  %v2605_v62 = vadd.f32 %v2568_v40, %v6718_v43 }
 0x199   :  { %1203 = vperm.xlu0 %5447, %v6837_v1   ;;  %v6859_v14 = vpop.xlane.xlu0 %2368  ;;  %v2683_v22 = vsel %vm545_vm1, %v2641_v27, 0.0 }
 0x19a   :  { %v2701_v32 = vadd.f32 %v2673_v33, %v2605_v62 }
 0x19b   :  { %v6919_v35 = vpop.xlane.xlu1 %2669 }
 0x19d   :  { %5452 = vset.pattern.permute.xlu0 %v10872_v36  ;;  %v2679_v51 = vpop.xlane.xlu0 %2678 }
 0x19e   :  { %2763 = vperm.xlu0 %5452, %v2692_v10   ;;  %v2607_v10 = vadd.f32 %v2570_v58, %v6889_v18 }
 0x1a0   :  { %v2703_v41 = vadd.f32 %v2679_v51, %v2607_v10 }
 0x1a1   :  { %v6871_v29 = vpop.xlane.xlu0 %2374 }
 0x1a2   :  { %2778 = vperm.xlu0 %5452, %v2695_v2  }
 0x1a5   :  { %v6879_v0 = vpop.xlane.xlu0 %2554 }
 0x1a6   :  { %10873 = vst [vmem:[#allocation50_spill] sm:$0xff] %v6879_v0  ;;  %2788 = vperm.xlu0 %5452, %v2697_v52  }
 0x1a7   :  { %2371 = vadd.xlane.f32.xlu1 %v2370_v38  ;;  %v6925_v38 = vpop.permute.xlu1 %1001 }
 0x1a9   :  { %v6891_v13 = vpop.xlane.xlu0 %2681 }
 0x1aa   :  { %10874 = vst [vmem:[#allocation51_spill] sm:$0xff] %v6891_v13  ;;  %2798 = vperm.xlu0 %5452, %v2699_v31  }
 0x1ab   :  { %2557 = vadd.xlane.f32.xlu1 %v2556_v24  ;;  %v6931_v59 = vpop.permute.xlu1 %1005 }
 0x1ad   :  { %v6896_v20 = vpop.xlane.xlu0 %2690 }
 0x1ae   :  { %2808 = vperm.xlu0 %5452, %v2701_v32  }
 0x1af   :  { %2684 = vadd.xlane.f32.xlu1 %v2683_v22  ;;  %v6937_v40 = vpop.permute.xlu1 %1013 }
 0x1b2   :  { %2818 = vperm.xlu0 %5452, %v2703_v41  }
 0x1b3   :  { %v6944_v24 = vpop.permute.xlu1 %1017 }
 0x1b5   :  { %v6898_v2 = vpop.permute.xlu0 %613 }
 0x1b6   :  { %10875 = vst [vmem:[#allocation52_spill] sm:$0xff] %v6898_v2 }
 0x1b7   :  { %v6948_v62 = vpop.permute.xlu1 %1021 }
 0x1b9   :  { %v6900_v47 = vpop.permute.xlu0 %658 }
 0x1bd   :  { %v6902_v19 = vpop.permute.xlu0 %668 }
 0x1be   :  { %10876 = vst [vmem:[#allocation53_spill] sm:$0xff] %v6902_v19 }
 0x1c0   :  { %855 = vperm.xlu1 %5432, %v6578_v11  }
 0x1c1   :  { %v6905_v43 = vpop.permute.xlu0 %678 }
 0x1c4   :  { %867 = vperm.xlu1 %5432, %v6607_v61  }
 0x1c5   :  { %v6908_v33 = vpop.permute.xlu0 %688 }
 0x1c6   :  { %10877 = vst [vmem:[#allocation54_spill] sm:$0xff] %v6908_v33 }
 0x1c8   :  { %871 = vperm.xlu1 %5432, %v6615_v53  }
 0x1c9   :  { %v6911_v51 = vpop.permute.xlu0 %749 }
 0x1ca   :  { %10878 = vst [vmem:[#allocation55_spill] sm:$0xff] %v6911_v51 }
 0x1cc   :  { %879 = vperm.xlu1 %5432, %v6764_v25  }
 0x1cd   :  { %v6916_v52 = vpop.permute.xlu0 %759 }
 0x1ce   :  { %10879 = vst [vmem:[#allocation56_spill] sm:$0xff] %v6916_v52 }
 0x1d0   :  { %891 = vperm.xlu1 %5432, %v6645_v37  }
 0x1d1   :  { %v6921_v11 = vpop.permute.xlu0 %769 }
 0x1d2   :  { %10880 = vst [vmem:[#allocation57_spill] sm:$0xff] %v6921_v11 }
 0x1d4   :  { %5433 = vset.pattern.permute.xlu1 %v10870_v8 }
 0x1d5   :  { %1171 = vperm.xlu1 %5433, %v6764_v25   ;;  %v6927_v17 = vpop.permute.xlu0 %779 }
 0x1d6   :  { %10881 = vst [vmem:[#allocation58_spill] sm:$0xff] %v6927_v17  ;;  %v2626_v17 = vld [vmem:[%s10694_s6 + $0x70] sm:$0xff] }
 0x1d7   :  { %v2642_v11 = vmul.f32 %v6060_v50, %v2626_v17 }
 0x1d9   :  { %1175 = vperm.xlu1 %5433, %v6813_v5   ;;  %v6934_v23 = vpop.permute.xlu0 %789  ;;  %v2686_v33 = vsel %vm545_vm1, %v2642_v11, 0.0 }
 0x1da   :  { %v6950_v10 = vpop.xlane.xlu1 %2365 }
 0x1dd   :  { %5434 = vset.pattern.permute.xlu1 %v10857_v46  ;;  %v6939_v58 = vpop.permute.xlu0 %809 }
 0x1de   :  { %1033 = vperm.xlu1 %5434, %v6825_v54   ;;  %v6954_v22 = vpop.xlane.xlu1 %2548 }
 0x1e2   :  { %1037 = vperm.xlu1 %5434, %v6645_v37   ;;  %v6942_v31 = vpop.permute.xlu0 %1009  ;;  %v2552_v52 = vpop.xlane.xlu1 %2551 }
 0x1e3   :  { %10882 = vst [vmem:[#allocation59_spill] sm:$0xff] %v6942_v31 }
 0x1e6   :  { %5435 = vset.pattern.permute.xlu1 %v10872_v36  ;;  %v6946_v27 = vpop.permute.xlu0 %1025  ;;  %v6965_v19 = vpop.xlane.xlu1 %2675 }
 0x1e7   :  { %10883 = vst [vmem:[#allocation60_spill] sm:$0xff] %v6946_v27  ;;  %10887 = vst [vmem:[#allocation64_spill] sm:$0xff] %v6965_v19 }
 0x1ea   :  { %v6952_v32 = vpop.permute.xlu0 %1041 }
 0x1eb   :  { %10884 = vst [vmem:[#allocation61_spill] sm:$0xff] %v6952_v32  ;;  %v6969_v32 = vpop.permute.xlu1 %1147 }
 0x1ec   :  { %10889 = vst [vmem:[#allocation66_spill] sm:$0xff] %v6969_v32 }
 0x1ee   :  { %v6956_v41 = vpop.permute.xlu0 %1053 }
 0x1ef   :  { %10885 = vst [vmem:[#allocation62_spill] sm:$0xff] %v6956_v41  ;;  %v6973_v41 = vpop.permute.xlu1 %1151 }
 0x1f0   :  { %10891 = vst [vmem:[#allocation68_spill] sm:$0xff] %v6973_v41  ;;  %v10944_v41 = vld [vmem:[#allocation23_spill] sm:$0xff] }
 0x1f3   :  { %v6962_v51 = vpop.permute.xlu0 %859  ;;  %v6978_v50 = vpop.permute.xlu1 %1155 }
 0x1f4   :  { %10886 = vst [vmem:[#allocation63_spill] sm:$0xff] %v6962_v51  ;;  %10893 = vst [vmem:[#allocation70_spill] sm:$0xff] %v6978_v50 }
 0x1f7   :  { %v6967_v0 = vpop.permute.xlu0 %863  ;;  %v6983_v11 = vpop.permute.xlu1 %1159 }
 0x1f8   :  { %10888 = vst [vmem:[#allocation65_spill] sm:$0xff] %v6967_v0  ;;  %10895 = vst [vmem:[#allocation72_spill] sm:$0xff] %v6983_v11 }
 0x1fb   :  { %v6971_v27 = vpop.permute.xlu0 %875  ;;  %v6989_v0 = vpop.permute.xlu1 %1163 }
 0x1fc   :  { %10890 = vst [vmem:[#allocation67_spill] sm:$0xff] %v6971_v27  ;;  %10897 = vst [vmem:[#allocation74_spill] sm:$0xff] %v6989_v0 }
 0x1ff   :  { %v6975_v31 = vpop.permute.xlu0 %883 }
 0x200   :  { %10892 = vst [vmem:[#allocation69_spill] sm:$0xff] %v6975_v31 }
 0x203   :  { %v6980_v17 = vpop.permute.xlu0 %887 }
 0x204   :  { %10894 = vst [vmem:[#allocation71_spill] sm:$0xff] %v6980_v17  ;;  %v2572_v17 = vadd.f32 %v2552_v52, %v6859_v14 }
 0x206   :  { %2687 = vadd.xlane.f32.xlu1 %v2686_v33  ;;  %v2609_v52 = vadd.f32 %v2572_v17, %v6732_v4 }
 0x207   :  { %v6985_v33 = vpop.permute.xlu0 %895 }
 0x208   :  { %10896 = vst [vmem:[#allocation73_spill] sm:$0xff] %v6985_v33 }
 0x20b   :  { %v6991_v27 = vpop.permute.xlu0 %911 }
 0x20c   :  { %10898 = vst [vmem:[#allocation75_spill] sm:$0xff] %v6991_v27 }
 0x210   :  { %v6996_v31 = vpop.permute.xlu0 %1187 }
 0x211   :  { %10900 = vst [vmem:[#allocation77_spill] sm:$0xff] %v6996_v31 }
 0x214   :  { %v7002_v33 = vpop.permute.xlu0 %1199 }
 0x215   :  { %10902 = vst [vmem:[#allocation79_spill] sm:$0xff] %v7002_v33 }
 0x217   :  { %618 = vperm.xlu1 %5435, %v6598_v45   ;;  %v6994_v45 = vpop.permute.xlu1 %1167 }
 0x218   :  { %10899 = vst [vmem:[#allocation76_spill] sm:$0xff] %v6994_v45  ;;  %v7019_v33 = vpop.permute.xlu0 %1203 }
 0x219   :  { %10904 = vst [vmem:[#allocation81_spill] sm:$0xff] %v7019_v33  ;;  %v7046_v33 = vld [vmem:[%s10693_s5 + $0x78] sm:$0xff] }
 0x21b   :  { %623 = vperm.xlu1 %5435, %v6753_v63   ;;  %v7000_v63 = vpop.permute.xlu1 %1029 }
 0x21c   :  { %10901 = vst [vmem:[#allocation78_spill] sm:$0xff] %v7000_v63 }
 0x21f   :  { %628 = vperm.xlu1 %5435, %v6607_v61   ;;  %v7005_v61 = vsub.s32 0, %v6555_v12 }
 0x223   :  { %633 = vperm.xlu1 %5435, %v6615_v53   ;;  %v10736_v53 = vsub.s32 4, %v6555_v12 }
 0x227   :  { %638 = vperm.xlu1 %5435, %v6623_v28   ;;  %v2714_v28 = vrot.slane %v6573_v39, %v7005_v61 }
 0x229   :  { %v7023_v31 = vrot.slane %v2714_v28, %v7005_v61  ;;  %v462_v28 = vadd.f32 %v6647_v34, %v6564_v48  ;;  %v2764_v34 = vpop.permute.xlu0 %2763 }
 0x22b   :  { %643 = vperm.xlu1 %5435, %v6764_v25   ;;  %v460_v25 = vadd.f32 %v6639_v30, %v6566_v26  ;;  %10905 = vst [vmem:[#allocation82_spill] sm:$0xff] %v7023_v31 }
 0x22d   :  { %v497_v30 = vadd.f32 %v6853_v16, %v460_v25  ;;  %v2729_v16 = vmul.f32 %v7023_v31, %v6898_v2 }
 0x22f   :  { %648 = vperm.xlu1 %5435, %v6813_v5   ;;  %v2718_v5 = vrot.slane %v6573_v39, %v10736_v53  ;;  %v2876_v53 = vrot.slane %v6573_v39, %v6804_v9 }
 0x231   :  { %v7033_v26 = vrot.slane %v2718_v5, %v7005_v61  ;;  %v7055_v5 = vld [vmem:[%s10693_s5 + $0x10] sm:$0xff]  ;;  %v7058_v4 = vrot.slane %v2876_v53, %v6804_v9  ;;  %v464_v53 = vadd.f32 %v6655_v7, %v6601_v42 }
 0x232   :  { %v499_v0 = vadd.f32 %v7055_v5, %v462_v28  ;;  %v7087_v28 = vld [vmem:[%s10693_s5 + $0x20] sm:$0xff] }
 0x233   :  { %653 = vperm.xlu1 %5435, %v6825_v54   ;;  %10907 = vst [vmem:[#allocation84_spill] sm:$0xff] %v7033_v26  ;;  %10908 = vst [vmem:[#allocation85_spill] sm:$0xff] %v7058_v4  ;;  %v2730_v48 = vmul.f32 %v7033_v26, %v6898_v2  ;;  %v2841_v2 = vadd.f32 %v2764_v34, %v2729_v16  ;;  %v7096_v16 = vld [vmem:[%s10697_s9 + $0x8] sm:$0xff] }
 0x234   :  { %v7011_v27 = vpop.xlane.xlu1 %2371  ;;  %v596_v7 = vadd.f32 %v6470_v44, %v499_v0 }
 0x235   :  { %10903 = vst [vmem:[#allocation80_spill] sm:$0xff] %v7011_v27  ;;  %v7028_v27 = vld [vmem:[%s10695_s7 + $0x60] sm:$0xff] }
 0x236   :  { %10906 = vst [vmem:[#allocation83_spill] sm:$0xff] %v7028_v27 }
 0x237   :  { %663 = vperm.xlu1 %5435, %v6777_v60   ;;  %v2958_v60 = vrot.slane %v6573_v39, %v6584_v3 }
 0x238   :  { %v2558_v63 = vpop.xlane.xlu1 %2557 }
 0x239   :  { %v2574_v14 = vadd.f32 %v2558_v63, %v6871_v29  ;;  %v3040_v29 = vrot.slane %v6573_v39, %v6769_v57  ;;  %v594_v39 = vadd.f32 %v6460_v56, %v497_v30  ;;  %v7065_v45 = vrot.slane %v2958_v60, %v6584_v3 }
 0x23b   :  { %673 = vperm.xlu1 %5435, %v7028_v27   ;;  %v2611_v17 = vadd.f32 %v2574_v14, %v7046_v33  ;;  %10909 = vst [vmem:[#allocation86_spill] sm:$0xff] %v7065_v45  ;;  %v7072_v11 = vrot.slane %v3040_v29, %v6769_v57  ;;  %v2842_v14 = vadd.f32 %v2764_v34, %v2730_v48  ;;  %v10914_v34 = vld [vmem:[#allocation40_spill] sm:$0xff] }
 0x23c   :  { %v2685_v63 = vpop.xlane.xlu1 %2684  ;;  %v2973_v60 = vmul.f32 %v7065_v45, %v6925_v38 }
 0x23d   :  { %v2705_v25 = vadd.f32 %v2685_v63, %v2609_v52  ;;  %10910 = vst [vmem:[#allocation87_spill] sm:$0xff] %v7072_v11  ;;  %v2707_v56 = vadd.f32 %v6896_v20, %v2611_v17  ;;  %v2974_v20 = vmul.f32 %v6590_v49, %v6925_v38  ;;  %v10913_v63 = vld [vmem:[#allocation27_spill] sm:$0xff]  ;;  %v3055_v0 = vmul.f32 %v7072_v11, %v6969_v32 }
 0x23e   :  { %v466_v44 = vadd.f32 %v10913_v63, %v6610_v6  ;;  %v3056_v17 = vmul.f32 %v10914_v34, %v6969_v32  ;;  %v7118_v6 = vld [vmem:[%s10697_s9 + $0x18] sm:$0xff]  ;;  %v7132_v63 = vld [vmem:[%s10693_s5 + $0x40] sm:$0xff]  ;;  %v10942_v34 = vld [vmem:[#allocation22_spill] sm:$0xff] }
 0x23f   :  { %683 = vperm.xlu1 %5435, %v6837_v1   ;;  %2828 = vperm.xlu0 %5452, %v2705_v25   ;;  %v10945_v32 = vld [vmem:[#allocation33_spill] sm:$0xff] }
 0x240   :  { %v7074_v51 = vpop.permute.xlu1 %855 }
 0x241   :  { %10911 = vst [vmem:[#allocation88_spill] sm:$0xff] %v7074_v51  ;;  %v2891_v30 = vmul.f32 %v7058_v4, %v7074_v51  ;;  %v2892_v1 = vmul.f32 %v6816_v21, %v7074_v51 }
 0x243   :  { %v2923_v52 = vadd.f32 %v2891_v30, %v2841_v2  ;;  %v2924_v42 = vadd.f32 %v2892_v1, %v2842_v14  ;;  %744 = vperm.xlu1 %5435, %v594_v39   ;;  %2838 = vperm.xlu0 %5452, %v2707_v56   ;;  %v501_v2 = vadd.f32 %v7087_v28, %v464_v53  ;;  %v7111_v53 = vld [vmem:[%s10693_s5 + $0x30] sm:$0xff]  ;;  %v10916_v30 = vld [vmem:[#allocation9_spill] sm:$0xff] }
 0x244   :  { %v7091_v29 = vpop.permute.xlu1 %867 }
 0x245   :  { %10912 = vst [vmem:[#allocation89_spill] sm:$0xff] %v7091_v29  ;;  %v3005_v48 = vadd.f32 %v2973_v60, %v2923_v52  ;;  %v3006_v25 = vadd.f32 %v2974_v20, %v2924_v42  ;;  %v598_v1 = vadd.f32 %v10916_v30, %v501_v2  ;;  %v503_v60 = vadd.f32 %v7111_v53, %v466_v44  ;;  %v10917_v52 = vld [vmem:[#allocation18_spill] sm:$0xff]  ;;  %v10918_v42 = vld [vmem:[#allocation28_spill] sm:$0xff]  ;;  %v7126_v20 = vpop.permute.xlu0 %2778  ;;  %v10927_v29 = vld [vmem:[#allocation29_spill] sm:$0xff] }
 0x246   :  { %10919 = vst [vmem:[#allocation9_spill] sm:$0xff] %v7126_v20  ;;  %v7139_v2 = vld [vmem:[%s10697_s9 + $0x28] sm:$0xff]  ;;  %v10925_v20 = vld [vmem:[#allocation11_spill] sm:$0xff] }
 0x247   :  { %754 = vperm.xlu1 %5435, %v596_v7   ;;  %1635 = vperm.xlu0 %5452, %v7096_v16   ;;  %v7106_v39 = vadd.f32 %v3055_v0, %v3005_v48  ;;  %v7120_v56 = vadd.f32 %v3056_v17, %v3006_v25  ;;  %v468_v7 = vadd.f32 %v10918_v42, %v10917_v52  ;;  %v10921_v44 = vld [vmem:[#allocation10_spill] sm:$0xff]  ;;  %v10922_v25 = vld [vmem:[#allocation20_spill] sm:$0xff]  ;;  %v7149_v52 = vld [vmem:[%s10693_s5 + $0x50] sm:$0xff] }
 0x248   :  { %v7113_v14 = vpop.permute.xlu1 %871  ;;  %v600_v48 = vadd.f32 %v10921_v44, %v503_v60  ;;  %v10923_v30 = vld [vmem:[#allocation30_spill] sm:$0xff] }
 0x249   :  { %10915 = vst [vmem:[#allocation27_spill] sm:$0xff] %v7113_v14  ;;  %v505_v17 = vadd.f32 %v7132_v63, %v468_v7  ;;  %v10926_v14 = vld [vmem:[#allocation19_spill] sm:$0xff]  ;;  %v7157_v44 = vpop.permute.xlu0 %2788 }
 0x24a   :  { %v471_v60 = vadd.f32 %v10927_v29, %v10926_v14  ;;  %10928 = vst [vmem:[#allocation10_spill] sm:$0xff] %v7157_v44  ;;  %v7172_v29 = vld [vmem:[%s10697_s9 + $0x48] sm:$0xff] }
 0x24b   :  { %764 = vperm.xlu1 %5435, %v598_v1   ;;  %1645 = vperm.xlu0 %5452, %v7118_v6   ;;  %v470_v1 = vadd.f32 %v10923_v30, %v10922_v25  ;;  %10931 = vst [vmem:[#allocation30_spill] sm:$0xff] %v7172_v29 }
 0x24c   :  { %v7134_v0 = vpop.permute.xlu1 %879  ;;  %v508_v30 = vadd.f32 %v6889_v18, %v471_v60  ;;  %v7183_v18 = vld [vmem:[%s10697_s9 + $0x58] sm:$0xff]  ;;  %v2747_v60 = vmul.f32 %v7023_v31, %v6900_v47  ;;  %v10941_v31 = vld [vmem:[#allocation31_spill] sm:$0xff] }
 0x24d   :  { %10920 = vst [vmem:[#allocation18_spill] sm:$0xff] %v7134_v0  ;;  %v602_v0 = vadd.f32 %v10925_v20, %v505_v17  ;;  %v507_v7 = vadd.f32 %v7149_v52, %v470_v1  ;;  %v10930_v20 = vld [vmem:[#allocation13_spill] sm:$0xff]  ;;  %v7174_v14 = vpop.permute.xlu0 %2798  ;;  %10935 = vst [vmem:[#allocation29_spill] sm:$0xff] %v7183_v18 }
 0x24e   :  { %10932 = vst [vmem:[#allocation11_spill] sm:$0xff] %v7174_v14 }
 0x24f   :  { %774 = vperm.xlu1 %5435, %v600_v48   ;;  %1655 = vperm.xlu0 %5452, %v7139_v2   ;;  %v7162_v48 = vld [vmem:[%s10697_s9 + $0x38] sm:$0xff]  ;;  %v604_v17 = vadd.f32 %v10930_v20, %v507_v7  ;;  %v2748_v7 = vmul.f32 %v7033_v26, %v6900_v47  ;;  %v10940_v26 = vld [vmem:[#allocation21_spill] sm:$0xff] }
 0x250   :  { %v7151_v42 = vpop.permute.xlu1 %891  ;;  %v472_v50 = vadd.f32 %v10941_v31, %v10940_v26 }
 0x251   :  { %10924 = vst [vmem:[#allocation28_spill] sm:$0xff] %v7151_v42  ;;  %v2809_v20 = vpop.permute.xlu0 %2808  ;;  %v2910_v14 = vmul.f32 %v6816_v21, %v7151_v42 }
 0x252   :  { %v2860_v51 = vadd.f32 %v2809_v20, %v2748_v7 }
 0x253   :  { %784 = vperm.xlu1 %5435, %v602_v0   ;;  %1665 = vperm.xlu0 %5452, %v7162_v48   ;;  %v10934_v0 = vld [vmem:[#allocation12_spill] sm:$0xff] }
 0x254   :  { %v7165_v25 = vpop.permute.xlu1 %1171  ;;  %v605_v44 = vadd.f32 %v10934_v0, %v508_v30  ;;  %v7195_v30 = vld [vmem:[%s10697_s9 + $0x68] sm:$0xff]  ;;  %v2909_v0 = vmul.f32 %v7058_v4, %v7151_v42  ;;  %v474_v4 = vadd.f32 %v10945_v32, %v10944_v41  ;;  %v7228_v32 = vld [vmem:[%s10693_s5 + $0x70] sm:$0xff]  ;;  %v7233_v41 = vld [vmem:[%s10693_s5 + $0x60] sm:$0xff] }
 0x255   :  { %10929 = vst [vmem:[#allocation20_spill] sm:$0xff] %v7165_v25  ;;  %10937 = vst [vmem:[#allocation12_spill] sm:$0xff] %v7195_v30  ;;  %v2859_v25 = vadd.f32 %v2809_v20, %v2747_v60  ;;  %v7219_v60 = vld [vmem:[%s10697_s9 + $0x78] sm:$0xff]  ;;  %v2942_v20 = vadd.f32 %v2910_v14, %v2860_v51  ;;  %v509_v51 = vadd.f32 %v7233_v41, %v472_v50  ;;  %v10951_v14 = vsub.s32 6, %v6555_v12 }
 0x256   :  { %10947 = vst [vmem:[#allocation21_spill] sm:$0xff] %v7219_v60  ;;  %10948 = vst [vmem:[#allocation31_spill] sm:$0xff] %v7228_v32 }
 0x257   :  { %794 = vperm.xlu1 %5435, %v604_v17   ;;  %1675 = vperm.xlu0 %5452, %v7172_v29   ;;  %v2941_v7 = vadd.f32 %v2909_v0, %v2859_v25 }
 0x258   :  { %v7177_v1 = vpop.permute.xlu1 %1175 }
 0x259   :  { %10933 = vst [vmem:[#allocation19_spill] sm:$0xff] %v7177_v1  ;;  %v10938_v1 = vmov 1  }
 0x25b   :  { %799 = vperm.xlu1 %5435, %v605_v44   ;;  %1685 = vperm.xlu0 %5452, %v7183_v18   ;;  %v610_v44 = vld [vmem:[%s10688_s0] sm:$0xff]  ;;  %v10943_v18 = vld [vmem:[#allocation32_spill] sm:$0xff] }
 0x25c   :  { %v475_v11 = vadd.f32 %v10943_v18, %v10942_v34  ;;  %v1067_v27 = vrot.slane %v610_v44, %v6584_v3  ;;  %v1071_v18 = vrot.slane %v610_v44, %v10951_v14  ;;  %v10957_v14 = vsub.s32 4, %v6555_v12 }
 0x25d   :  { %v7190_v17 = vpop.permute.xlu1 %1033 }
 0x25e   :  { %10936 = vst [vmem:[#allocation13_spill] sm:$0xff] %v7190_v17  ;;  %v10939_v17 = vld [vmem:[#allocation24_spill] sm:$0xff]  ;;  %v512_v0 = vadd.f32 %v7046_v33, %v475_v11  ;;  %v7247_v21 = vrot.slane %v1067_v27, %v6584_v3  ;;  %v10959_v11 = vld [vmem:[#allocation41_spill] sm:$0xff] }
 0x25f   :  { %5437 = vset.pattern.permute.xlu1 %v10938_v1  ;;  %1695 = vperm.xlu0 %5452, %v7195_v30   ;;  %v1213_v30 = vrot.slane %v610_v44, %v6769_v57 }
 0x260   :  { %899 = vperm.xlu1 %5437, %v10939_v17   ;;  %10952 = vst [vmem:[#allocation23_spill] sm:$0xff] %v7247_v21 }
 0x261   :  { %v7214_v42 = vpop.permute.xlu1 %1037 }
 0x262   :  { %10946 = vst [vmem:[#allocation24_spill] sm:$0xff] %v7214_v42  ;;  %v2991_v31 = vmul.f32 %v7065_v45, %v7214_v42  ;;  %v2992_v26 = vmul.f32 %v6590_v49, %v7214_v42  ;;  %v511_v42 = vadd.f32 %v7228_v32, %v474_v4  ;;  %v10960_v4 = vld [vmem:[#allocation43_spill] sm:$0xff]  ;;  %v10961_v32 = vld [vmem:[#allocation45_spill] sm:$0xff] }
 0x263   :  { %1705 = vperm.xlu0 %5452, %v7219_v60   ;;  %v699_v60 = vrot.slane %v610_v44, %v10957_v14  ;;  %v2565_v27 = vadd.f32 %v10961_v32, %v10960_v4  ;;  %v7269_v14 = vrot.slane %v1071_v18, %v6584_v3  ;;  %v10968_v32 = vld [vmem:[#allocation16_spill] sm:$0xff] }
 0x264   :  { %v7235_v34 = vadd.f32 %v2991_v31, %v2941_v7  ;;  %v7237_v25 = vadd.f32 %v2992_v26, %v2942_v20  ;;  %5438 = vset.pattern.permute.xlu1 %v10870_v8  ;;  %v10953_v7 = vld [vmem:[#allocation35_spill] sm:$0xff]  ;;  %v10954_v20 = vld [vmem:[#allocation36_spill] sm:$0xff]  ;;  %v10955_v26 = vld [vmem:[#allocation34_spill] sm:$0xff]  ;;  %v7276_v4 = vadd.f32 %v10968_v32, %v511_v42  ;;  %v7392_v32 = vmul.f32 %v7065_v45, %v6944_v24 }
 0x265   :  { %1179 = vperm.xlu1 %5438, %v6825_v54   ;;  %v2561_v31 = vadd.f32 %v10954_v20, %v10953_v7  ;;  %v10958_v8 = vld [vmem:[#allocation38_spill] sm:$0xff]  ;;  %v10962_v54 = vsub.s32 7, %v6555_v12  ;;  %v10964_v20 = vld [vmem:[#allocation47_spill] sm:$0xff]  ;;  %10966 = vst [vmem:[#allocation33_spill] sm:$0xff] %v7269_v14 }
 0x266   :  { %10949 = vst [vmem:[#allocation22_spill] sm:$0xff] %v7235_v34  ;;  %10950 = vst [vmem:[#allocation32_spill] sm:$0xff] %v7237_v25  ;;  %v10956_v25 = vld [vmem:[#allocation37_spill] sm:$0xff]  ;;  %v695_v34 = vrot.slane %v610_v44, %v7005_v61  ;;  %v2563_v33 = vadd.f32 %v10959_v11, %v10958_v8  ;;  %v10963_v7 = vld [vmem:[#allocation14_spill] sm:$0xff]  ;;  %v921_v8 = vrot.slane %v610_v44, %v6804_v9 }
 0x267   :  { %v2560_v50 = vadd.f32 %v10956_v25, %v10955_v26  ;;  %v1217_v19 = vrot.slane %v610_v44, %v10962_v54  ;;  %3462 = vperm.xlu0 %5452, %v7096_v16   ;;  %v606_v25 = vadd.f32 %v10963_v7, %v509_v51  ;;  %v10965_v26 = vld [vmem:[#allocation49_spill] sm:$0xff]  ;;  %v10967_v11 = vld [vmem:[#allocation15_spill] sm:$0xff]  ;;  %v10969_v54 = vld [vmem:[#allocation48_spill] sm:$0xff]  ;;  %v10970_v16 = vsub.s32 5, %v6555_v12 }
 0x268   :  { %v2567_v29 = vadd.f32 %v10965_v26, %v10964_v20  ;;  %v7273_v1 = vadd.f32 %v10967_v11, %v512_v0  ;;  %v2569_v13 = vadd.f32 %v10969_v54, %v6913_v55  ;;  %v10971_v7 = vld [vmem:[#allocation26_spill] sm:$0xff]  ;;  %v2598_v3 = vadd.f32 %v2561_v31, %v7055_v5  ;;  %10988 = vst [vmem:[#allocation48_spill] sm:$0xff] %v7392_v32 }
 0x269   :  { %v925_v51 = vrot.slane %v610_v44, %v10970_v16  ;;  %1183 = vperm.xlu1 %5438, %v6645_v37   ;;  %v2597_v20 = vadd.f32 %v2560_v50, %v10971_v7  ;;  %v7286_v18 = vrot.slane %v695_v34, %v7005_v61  ;;  %v7289_v0 = vrot.slane %v699_v60, %v7005_v61  ;;  %v10974_v37 = vld [vmem:[#allocation39_spill] sm:$0xff]  ;;  %v10976_v44 = vld [vmem:[#allocation42_spill] sm:$0xff] }
 0x26a   :  { %v2600_v42 = vadd.f32 %v2563_v33, %v7087_v28  ;;  %v2602_v26 = vadd.f32 %v2565_v27, %v7111_v53  ;;  %v7294_v55 = vrot.slane %v1213_v30, %v6769_v57  ;;  %v7297_v12 = vrot.slane %v1217_v19, %v6769_v57  ;;  %v10978_v53 = vld [vmem:[#allocation46_spill] sm:$0xff] }
 0x26b   :  { %3472 = vperm.xlu0 %5452, %v7118_v6   ;;  %v7301_v5 = vadd.f32 %v10974_v37, %v2597_v20  ;;  %v7304_v34 = vadd.f32 %v10976_v44, %v2598_v3  ;;  %v2604_v61 = vadd.f32 %v2567_v29, %v7132_v63  ;;  %v7308_v28 = vrot.slane %v921_v8, %v6804_v9  ;;  %v10998_v44 = vld [vmem:[#allocation59_spill] sm:$0xff] }
 0x26c   :  { %10972 = vst [vmem:[#allocation35_spill] sm:$0xff] %v7294_v55  ;;  %10973 = vst [vmem:[#allocation36_spill] sm:$0xff] %v7297_v12  ;;  %v7311_v60 = vadd.f32 %v10978_v53, %v2600_v42  ;;  %v7314_v30 = vadd.f32 %v6868_v15, %v2602_v26  ;;  %v2606_v57 = vadd.f32 %v2569_v13, %v7149_v52  ;;  %v10996_v26 = vld [vmem:[#allocation51_spill] sm:$0xff] }
 0x26d   :  { %10975 = vst [vmem:[#allocation34_spill] sm:$0xff] %v7301_v5  ;;  %10977 = vst [vmem:[#allocation37_spill] sm:$0xff] %v7304_v34  ;;  %v7318_v19 = vrot.slane %v925_v51, %v6804_v9  ;;  %5439 = vset.pattern.permute.xlu1 %v10857_v46  ;;  %v7322_v6 = vadd.f32 %v6919_v35, %v2604_v61  ;;  %v7326_v63 = vmul.f32 %v7247_v21, %v6925_v38 }
 0x26e   :  { %10979 = vst [vmem:[#allocation38_spill] sm:$0xff] %v7311_v60  ;;  %10980 = vst [vmem:[#allocation41_spill] sm:$0xff] %v7314_v30  ;;  %v7330_v29 = vmul.f32 %v7269_v14, %v6925_v38  ;;  %v2571_v15 = vadd.f32 %v6954_v22, %v6950_v10  ;;  %1045 = vperm.xlu1 %5439, %v10939_v17   ;;  %v7337_v9 = vmul.f32 %v7247_v21, %v6931_v59  ;;  %v11068_v30 = vld [vmem:[#allocation80_spill] sm:$0xff] }
 0x26f   :  { %10981 = vst [vmem:[#allocation43_spill] sm:$0xff] %v7322_v6  ;;  %10982 = vst [vmem:[#allocation45_spill] sm:$0xff] %v7326_v63  ;;  %v7341_v13 = vmul.f32 %v7269_v14, %v6931_v59  ;;  %v7345_v35 = vmul.f32 %v7065_v45, %v6931_v59  ;;  %3482 = vperm.xlu0 %5452, %v7139_v2   ;;  %v3120_v38 = vmul.f32 %v7120_v56, %v7120_v56 }
 0x270   :  { %10983 = vst [vmem:[#allocation14_spill] sm:$0xff] %v7330_v29  ;;  %v7352_v10 = vmul.f32 %v6590_v49, %v6931_v59  ;;  %v7356_v22 = vmul.f32 %v7247_v21, %v6937_v40  ;;  %v7360_v52 = vmul.f32 %v7269_v14, %v6937_v40  ;;  %v7364_v31 = vmul.f32 %v7065_v45, %v6937_v40 }
 0x271   :  { %10984 = vst [vmem:[#allocation47_spill] sm:$0xff] %v7345_v35  ;;  %v7368_v2 = vmul.f32 %v6590_v49, %v6937_v40  ;;  %v728_v59 = vmul.f32 %v7286_v18, %v6900_v47  ;;  %v729_v50 = vmul.f32 %v7289_v0, %v6900_v47  ;;  %v3119_v33 = vmul.f32 %v7106_v39, %v7106_v39  ;;  %v11024_v35 = vld [vmem:[#allocation29_spill] sm:$0xff] }
 0x272   :  { %10985 = vst [vmem:[#allocation49_spill] sm:$0xff] %v7352_v10  ;;  %v7378_v27 = vmul.f32 %v7247_v21, %v6944_v24  ;;  %v736_v8 = vmul.f32 %v7286_v18, %v6905_v43  ;;  %v737_v40 = vmul.f32 %v7289_v0, %v6905_v43  ;;  %v2608_v11 = vadd.f32 %v2571_v15, %v7233_v41  ;;  %v11004_v15 = vld [vmem:[#allocation30_spill] sm:$0xff] }
 0x273   :  { %5440 = vset.pattern.permute.xlu1 %v10872_v36  ;;  %v7388_v47 = vmul.f32 %v7269_v14, %v6944_v24  ;;  %3492 = vperm.xlu0 %5452, %v7162_v48   ;;  %v3152_v54 = vmul.f32 %v3120_v38, %v7120_v56  ;;  %v7398_v16 = vmul.f32 %v6590_v49, %v6944_v24 }
 0x274   :  { %10986 = vst [vmem:[#allocation15_spill] sm:$0xff] %v7378_v27  ;;  %804 = vperm.xlu1 %5440, %v606_v25   ;;  %v7402_v41 = vmul.f32 %v7247_v21, %v6948_v62  ;;  %v7406_v51 = vmul.f32 %v7269_v14, %v6948_v62  ;;  %v7410_v7 = vmul.f32 %v7065_v45, %v6948_v62  ;;  %v11043_v27 = vld [vmem:[#allocation74_spill] sm:$0xff] }
 0x275   :  { %10987 = vst [vmem:[#allocation16_spill] sm:$0xff] %v7388_v47  ;;  %10989 = vst [vmem:[#allocation26_spill] sm:$0xff] %v7398_v16  ;;  %v7414_v48 = vmul.f32 %v6590_v49, %v6948_v62  ;;  %v7417_v25 = vadd.f32 %v6934_v23, %v728_v59  ;;  %v7420_v24 = vadd.f32 %v6934_v23, %v729_v50  ;;  %v3184_v38 = vmul.f32 0.044715, %v3152_v54  ;;  %v11005_v59 = vld [vmem:[#allocation64_spill] sm:$0xff]  ;;  %v11016_v16 = vld [vmem:[#allocation61_spill] sm:$0xff] }
 0x276   :  { %10990 = vst [vmem:[#allocation39_spill] sm:$0xff] %v7402_v41  ;;  %10991 = vst [vmem:[#allocation42_spill] sm:$0xff] %v7406_v51  ;;  %v3151_v20 = vmul.f32 %v3119_v33, %v7106_v39  ;;  %v7424_v3 = vadd.f32 %v6939_v58, %v736_v8  ;;  %v7427_v42 = vadd.f32 %v6939_v58, %v737_v40  ;;  %v11003_v58 = vmov 1   ;;  %v11007_v33 = vld [vmem:[#allocation60_spill] sm:$0xff] }
 0x277   :  { %10992 = vst [vmem:[#allocation46_spill] sm:$0xff] %v7410_v7  ;;  %10993 = vst [vmem:[#allocation90_spill] sm:$0xff] %v7414_v48  ;;  %v7430_v37 = vadd.f32 %v10996_v26, %v2608_v11  ;;  %v7434_v62 = vmul.f32 %v7247_v21, %v10998_v44  ;;  %v7438_v61 = vmul.f32 %v7269_v14, %v10998_v44  ;;  %3502 = vperm.xlu0 %5452, %v11004_v15   ;;  %v11011_v26 = vld [vmem:[#allocation83_spill] sm:$0xff]  ;;  %v11123_v41 = vld [vmem:[#allocation20_spill] sm:$0xff] }
 0x278   :  { %10994 = vst [vmem:[#allocation91_spill] sm:$0xff] %v7424_v3  ;;  %10995 = vst [vmem:[#allocation92_spill] sm:$0xff] %v7427_v42  ;;  %v7442_v23 = vmul.f32 %v7065_v45, %v10998_v44  ;;  %v7446_v53 = vmul.f32 %v6590_v49, %v10998_v44  ;;  %5442 = vset.pattern.permute.xlu1 %v11003_v58  ;;  %v7451_v50 = vadd.f32 %v11005_v59, %v2606_v57  ;;  %v11013_v57 = vld [vmem:[#allocation66_spill] sm:$0xff]  ;;  %v11025_v42 = vld [vmem:[#allocation40_spill] sm:$0xff] }
 0x279   :  { %10997 = vst [vmem:[#allocation51_spill] sm:$0xff] %v7430_v37  ;;  %10999 = vst [vmem:[#allocation59_spill] sm:$0xff] %v7434_v62  ;;  %v7455_v8 = vmul.f32 %v7247_v21, %v11007_v33  ;;  %v7459_v40 = vmul.f32 %v7269_v14, %v11007_v33  ;;  %v7463_v11 = vmul.f32 %v7065_v45, %v11007_v33  ;;  %903 = vperm.xlu1 %5442, %v11011_v26   ;;  %v11047_v62 = vmov 3   ;;  %v11059_v37 = vld [vmem:[#allocation21_spill] sm:$0xff] }
 0x27a   :  { %11000 = vst [vmem:[#allocation93_spill] sm:$0xff] %v7438_v61  ;;  %11001 = vst [vmem:[#allocation94_spill] sm:$0xff] %v7442_v23  ;;  %v7468_v54 = vmul.f32 %v6590_v49, %v11007_v33  ;;  %v7472_v44 = vmul.f32 %v7294_v55, %v11013_v57  ;;  %v7476_v15 = vmul.f32 %v7297_v12, %v11013_v57  ;;  %v3183_v59 = vmul.f32 0.044715, %v3151_v20  ;;  %v11022_v23 = vld [vmem:[#allocation87_spill] sm:$0xff] }
 0x27b   :  { %11002 = vst [vmem:[#allocation95_spill] sm:$0xff] %v7446_v53  ;;  %11006 = vst [vmem:[#allocation30_spill] sm:$0xff] %v7451_v50  ;;  %v7480_v32 = vmul.f32 %v7247_v21, %v11016_v16  ;;  %v7488_v33 = vmul.f32 %v7065_v45, %v11016_v16  ;;  %v11021_v53 = vld [vmem:[#allocation68_spill] sm:$0xff]  ;;  %3512 = vperm.xlu0 %5452, %v11024_v35   ;;  %v7581_v61 = vmul.f32 %v11022_v23, %v11043_v27 }
 0x27c   :  { %11008 = vst [vmem:[#allocation64_spill] sm:$0xff] %v7455_v8  ;;  %11009 = vst [vmem:[#allocation60_spill] sm:$0xff] %v7459_v40  ;;  %v7496_v57 = vmul.f32 %v7294_v55, %v11021_v53  ;;  %v7500_v20 = vmul.f32 %v7297_v12, %v11021_v53  ;;  %v7504_v10 = vmul.f32 %v11022_v23, %v11021_v53  ;;  %v11039_v40 = vld [vmem:[#allocation72_spill] sm:$0xff] }
 0x27d   :  { %11010 = vst [vmem:[#allocation96_spill] sm:$0xff] %v7463_v11  ;;  %11012 = vst [vmem:[#allocation83_spill] sm:$0xff] %v7468_v54  ;;  %v7484_v11 = vmul.f32 %v7269_v14, %v11016_v16  ;;  %v7492_v54 = vmul.f32 %v6590_v49, %v11016_v16  ;;  %v7510_v16 = vmul.f32 %v11025_v42, %v11021_v53  ;;  %v11033_v53 = vld [vmem:[#allocation70_spill] sm:$0xff] }
 0x27e   :  { %11014 = vst [vmem:[#allocation66_spill] sm:$0xff] %v7472_v44  ;;  %11015 = vst [vmem:[#allocation97_spill] sm:$0xff] %v7476_v15  ;;  %v7556_v8 = vmul.f32 %v7294_v55, %v11039_v40  ;;  %v7569_v47 = vmul.f32 %v11025_v42, %v11039_v40  ;;  %v11050_v15 = vld [vmem:[#allocation85_spill] sm:$0xff]  ;;  %v11051_v44 = vld [vmem:[#allocation44_spill] sm:$0xff] }
 0x27f   :  { %11017 = vst [vmem:[#allocation61_spill] sm:$0xff] %v7480_v32  ;;  %11018 = vst [vmem:[#allocation98_spill] sm:$0xff] %v7484_v11 }
 0x280   :  { %11019 = vst [vmem:[#allocation99_spill] sm:$0xff] %v7488_v33  ;;  %11020 = vst [vmem:[#allocation100_spill] sm:$0xff] %v7492_v54  ;;  %v3216_v33 = vadd.f32 %v3184_v38, %v7120_v56  ;;  %v11027_v54 = vld [vmem:[#allocation62_spill] sm:$0xff]  ;;  %v7531_v38 = vmul.f32 %v7294_v55, %v11033_v53 }
 0x281   :  { %11023 = vst [vmem:[#allocation68_spill] sm:$0xff] %v7504_v10  ;;  %11026 = vst [vmem:[#allocation29_spill] sm:$0xff] %v7510_v16  ;;  %v7514_v3 = vmul.f32 %v7247_v21, %v11027_v54  ;;  %v7518_v11 = vmul.f32 %v7269_v14, %v11027_v54  ;;  %v7522_v32 = vmul.f32 %v7065_v45, %v11027_v54  ;;  %v11031_v10 = vld [vmem:[#allocation25_spill] sm:$0xff] }
 0x282   :  { %907 = vperm.xlu1 %5442, %v11031_v10   ;;  %v7527_v35 = vmul.f32 %v6590_v49, %v11027_v54  ;;  %11034 = vst [vmem:[#allocation70_spill] sm:$0xff] %v7531_v38  ;;  %v7535_v16 = vmul.f32 %v7297_v12, %v11033_v53  ;;  %v7544_v10 = vmul.f32 %v11025_v42, %v11033_v53  ;;  %v11038_v54 = vld [vmem:[#allocation63_spill] sm:$0xff]  ;;  %11042 = vst [vmem:[#allocation72_spill] sm:$0xff] %v7569_v47 }
 0x283   :  { %11028 = vst [vmem:[#allocation62_spill] sm:$0xff] %v7514_v3  ;;  %11029 = vst [vmem:[#allocation101_spill] sm:$0xff] %v7518_v11  ;;  %v3215_v11 = vadd.f32 %v3183_v59, %v7106_v39  ;;  %v7540_v3 = vmul.f32 %v11022_v23, %v11033_v53  ;;  %v7560_v59 = vmul.f32 %v7297_v12, %v11039_v40 }
 0x284   :  { %11030 = vst [vmem:[#allocation102_spill] sm:$0xff] %v7522_v32  ;;  %11032 = vst [vmem:[#allocation25_spill] sm:$0xff] %v7527_v35  ;;  %v7548_v35 = vmul.f32 %v7308_v28, %v11038_v54  ;;  %v7552_v32 = vmul.f32 %v7318_v19, %v11038_v54  ;;  %v7564_v53 = vmul.f32 %v11022_v23, %v11039_v40  ;;  %v11049_v40 = vld [vmem:[#allocation67_spill] sm:$0xff] }
 0x285   :  { %11035 = vst [vmem:[#allocation103_spill] sm:$0xff] %v7535_v16  ;;  %11036 = vst [vmem:[#allocation104_spill] sm:$0xff] %v7540_v3  ;;  %v3248_v3 = vmul.f32 0.7978846, %v3216_v33  ;;  %v7573_v16 = vmul.f32 %v7294_v55, %v11043_v27  ;;  %v7577_v38 = vmul.f32 %v7297_v12, %v11043_v27  ;;  %v7586_v33 = vmul.f32 %v11025_v42, %v11043_v27  ;;  %v11052_v27 = vld [vmem:[#allocation76_spill] sm:$0xff] }
 0x286   :  { %11037 = vst [vmem:[#allocation105_spill] sm:$0xff] %v7544_v10  ;;  %11040 = vst [vmem:[#allocation63_spill] sm:$0xff] %v7564_v53  ;;  %v11041_v10 = vld [vmem:[#allocation12_spill] sm:$0xff]  ;;  %5443 = vset.pattern.permute.xlu1 %v11047_v62  ;;  %v7603_v29 = vmul.f32 %v11051_v44, %v11049_v40  ;;  %v7611_v63 = vmul.f32 %v7297_v12, %v11052_v27  ;;  %v11057_v53 = vld [vmem:[#allocation69_spill] sm:$0xff] }
 0x287   :  { %3522 = vperm.xlu0 %5452, %v11041_v10   ;;  %11044 = vst [vmem:[#allocation12_spill] sm:$0xff] %v7573_v16  ;;  %11045 = vst [vmem:[#allocation74_spill] sm:$0xff] %v7577_v38  ;;  %v7590_v10 = vmul.f32 %v7308_v28, %v11049_v40  ;;  %v7594_v16 = vmul.f32 %v7318_v19, %v11049_v40  ;;  %1191 = vperm.xlu1 %5443, %v10939_v17   ;;  %v3247_v38 = vmul.f32 0.7978846, %v3215_v11 }
 0x288   :  { %11046 = vst [vmem:[#allocation106_spill] sm:$0xff] %v7581_v61  ;;  %11048 = vst [vmem:[#allocation107_spill] sm:$0xff] %v7586_v33  ;;  %v7599_v61 = vmul.f32 %v11050_v15, %v11049_v40  ;;  %v7607_v33 = vmul.f32 %v7294_v55, %v11052_v27  ;;  %v7615_v17 = vmul.f32 %v11022_v23, %v11052_v27  ;;  %5512 = vtanh.f32 %v3248_v3  ;;  %v7645_v3 = vld [vmem:[%s10699_s11 + $0x8] sm:$0xff] }
 0x289   :  { %11054 = vst [vmem:[#allocation85_spill] sm:$0xff] %v7611_v63  ;;  %v7619_v11 = vmul.f32 %v11025_v42, %v11052_v27  ;;  %v7623_v40 = vmul.f32 %v7308_v28, %v11057_v53  ;;  %v7628_v47 = vmul.f32 %v7318_v19, %v11057_v53  ;;  %v7632_v50 = vmul.f32 %v11050_v15, %v11057_v53  ;;  %v11063_v27 = vld [vmem:[#allocation78_spill] sm:$0xff] }
 0x28a   :  { %11053 = vst [vmem:[#allocation67_spill] sm:$0xff] %v7607_v33  ;;  %11055 = vst [vmem:[#allocation44_spill] sm:$0xff] %v7615_v17  ;;  %v7636_v17 = vmul.f32 %v11051_v44, %v11057_v53  ;;  %v7653_v6 = vmul.f32 %v7065_v45, %v11063_v27  ;;  %v11069_v53 = vld [vmem:[#allocation50_spill] sm:$0xff]  ;;  %5514 = vtanh.f32 %v3247_v38 }
 0x28b   :  { %11056 = vst [vmem:[#allocation76_spill] sm:$0xff] %v7619_v11  ;;  %11058 = vst [vmem:[#allocation69_spill] sm:$0xff] %v7623_v40  ;;  %3532 = vperm.xlu0 %5452, %v11059_v37   ;;  %v7640_v11 = vmul.f32 %v7247_v21, %v11063_v27  ;;  %v7649_v37 = vmul.f32 %v7269_v14, %v11063_v27  ;;  %v2573_v60 = vadd.f32 %v11069_v53, %v11068_v30  ;;  %v11079_v53 = vld [vmem:[#allocation79_spill] sm:$0xff] }
 0x28c   :  { %11060 = vst [vmem:[#allocation21_spill] sm:$0xff] %v7628_v47  ;;  %11061 = vst [vmem:[#allocation108_spill] sm:$0xff] %v7632_v50  ;;  %5444 = vset.pattern.permute.xlu1 %v10857_v46  ;;  %v11074_v47 = vld [vmem:[#allocation82_spill] sm:$0xff] }
 0x28d   :  { %11062 = vst [vmem:[#allocation109_spill] sm:$0xff] %v7636_v17  ;;  %11064 = vst [vmem:[#allocation78_spill] sm:$0xff] %v7640_v11  ;;  %v7660_v11 = vmul.f32 %v6590_v49, %v11063_v27  ;;  %v11071_v17 = vld [vmem:[#allocation77_spill] sm:$0xff]  ;;  %1049 = vperm.xlu1 %5444, %v11011_v26  }
 0x28e   :  { %11065 = vst [vmem:[#allocation110_spill] sm:$0xff] %v7645_v3  ;;  %11066 = vst [vmem:[#allocation111_spill] sm:$0xff] %v7649_v37  ;;  %v7664_v50 = vmul.f32 %v7294_v55, %v11071_v17  ;;  %v11073_v37 = vld [vmem:[#allocation53_spill] sm:$0xff]  ;;  %v7673_v30 = vmul.f32 %v7297_v12, %v11071_v17  ;;  %v7677_v38 = vmul.f32 %v11022_v23, %v11071_v17 }
 0x28f   :  { %11067 = vst [vmem:[#allocation112_spill] sm:$0xff] %v7653_v6  ;;  %11070 = vst [vmem:[#allocation80_spill] sm:$0xff] %v7660_v11  ;;  %v2751_v40 = vmul.f32 %v11074_v47, %v11073_v37  ;;  %v11075_v6 = vld [vmem:[#allocation84_spill] sm:$0xff]  ;;  %v7681_v27 = vmul.f32 %v11025_v42, %v11071_v17  ;;  %4071 = vperm.xlu0 %5452, %v7645_v3   ;;  %v7690_v11 = vmul.f32 %v7297_v12, %v11079_v53  ;;  %v11084_v17 = vld [vmem:[#allocation81_spill] sm:$0xff] }
 0x290   :  { %11072 = vst [vmem:[#allocation50_spill] sm:$0xff] %v7664_v50  ;;  %v2752_v33 = vmul.f32 %v11075_v6, %v11073_v37  ;;  %11076 = vst [vmem:[#allocation77_spill] sm:$0xff] %v7673_v30  ;;  %v7685_v50 = vmul.f32 %v7294_v55, %v11079_v53  ;;  %v7694_v30 = vmul.f32 %v11022_v23, %v11079_v53 }
 0x291   :  { %11077 = vst [vmem:[#allocation53_spill] sm:$0xff] %v7677_v38  ;;  %11078 = vst [vmem:[#allocation82_spill] sm:$0xff] %v7681_v27  ;;  %v7698_v38 = vmul.f32 %v11025_v42, %v11079_v53  ;;  %v7702_v27 = vmul.f32 %v7294_v55, %v11084_v17  ;;  %v7719_v53 = vmul.f32 %v11025_v42, %v11084_v17  ;;  %5446 = vset.pattern.permute.xlu1 %v10872_v36  ;;  %v11141_v36 = vld [vmem:[#allocation13_spill] sm:$0xff] }
 0x292   :  { %11080 = vst [vmem:[#allocation84_spill] sm:$0xff] %v7685_v50  ;;  %11081 = vst [vmem:[#allocation79_spill] sm:$0xff] %v7690_v11  ;;  %v7707_v50 = vld [vmem:[%s10699_s11 + $0x18] sm:$0xff]  ;;  %v7711_v11 = vmul.f32 %v7297_v12, %v11084_v17  ;;  %814 = vperm.xlu1 %5446, %v7276_v4   ;;  %v7758_v4 = vld [vmem:[%s10699_s11 + $0x28] sm:$0xff]  ;;  %v7798_v48 = vmul.f32 %v7289_v0, %v11073_v37 }
 0x293   :  { %11082 = vst [vmem:[#allocation113_spill] sm:$0xff] %v7694_v30  ;;  %11083 = vst [vmem:[#allocation114_spill] sm:$0xff] %v7698_v38  ;;  %v7715_v30 = vmul.f32 %v11022_v23, %v11084_v17  ;;  %v11090_v38 = vld [vmem:[#allocation31_spill] sm:$0xff]  ;;  %4081 = vperm.xlu0 %5452, %v7707_v50   ;;  %v11100_v17 = vld [vmem:[#allocation89_spill] sm:$0xff] }
 0x294   :  { %11085 = vst [vmem:[#allocation81_spill] sm:$0xff] %v7702_v27  ;;  %11086 = vst [vmem:[#allocation115_spill] sm:$0xff] %v7707_v50  ;;  %v7722_v3 = vadd.f32 %v2573_v60, %v11090_v38  ;;  %v2819_v27 = vpop.permute.xlu0 %2818  ;;  %v11095_v60 = vld [vmem:[#allocation54_spill] sm:$0xff] }
 0x295   :  { %11087 = vst [vmem:[#allocation116_spill] sm:$0xff] %v7711_v11  ;;  %11088 = vst [vmem:[#allocation117_spill] sm:$0xff] %v7715_v30  ;;  %v7725_v63 = vadd.f32 %v2819_v27, %v2751_v40  ;;  %v7727_v34 = vadd.f32 %v2819_v27, %v2752_v33  ;;  %v7731_v11 = vmul.f32 %v11074_v47, %v6905_v43  ;;  %v11098_v40 = vld [vmem:[#allocation88_spill] sm:$0xff] }
 0x296   :  { %11089 = vst [vmem:[#allocation118_spill] sm:$0xff] %v7719_v53  ;;  %v7735_v30 = vmul.f32 %v11075_v6, %v6905_v43  ;;  %v7741_v38 = vmul.f32 %v11074_v47, %v11095_v60  ;;  %v7745_v33 = vmul.f32 %v11075_v6, %v11095_v60  ;;  %v7749_v27 = vmul.f32 %v7308_v28, %v11098_v40 }
 0x297   :  { %11091 = vst [vmem:[#allocation31_spill] sm:$0xff] %v7725_v63  ;;  %11092 = vst [vmem:[#allocation119_spill] sm:$0xff] %v7727_v34  ;;  %v7753_v43 = vmul.f32 %v7308_v28, %v11100_v17  ;;  %v7762_v53 = vmul.f32 %v7318_v19, %v11098_v40  ;;  %v11103_v34 = vld [vmem:[#allocation52_spill] sm:$0xff]  ;;  %v7782_v40 = vmul.f32 %v11051_v44, %v11100_v17  ;;  %819 = vperm.xlu1 %5446, %v7273_v1   ;;  %v11115_v1 = vld [vmem:[#allocation65_spill] sm:$0xff] }
 0x298   :  { %11093 = vst [vmem:[#allocation120_spill] sm:$0xff] %v7731_v11  ;;  %11094 = vst [vmem:[#allocation121_spill] sm:$0xff] %v7735_v30  ;;  %v7766_v63 = vmul.f32 %v7286_v18, %v11103_v34  ;;  %v7770_v50 = vmul.f32 %v7289_v0, %v11103_v34  ;;  %v7794_v11 = vmul.f32 %v7286_v18, %v11073_v37  ;;  %4091 = vperm.xlu0 %5452, %v7758_v4   ;;  %v7817_v37 = vld [vmem:[%s10699_s11 + $0x38] sm:$0xff] }
 0x299   :  { %11096 = vst [vmem:[#allocation54_spill] sm:$0xff] %v7741_v38  ;;  %11097 = vst [vmem:[#allocation122_spill] sm:$0xff] %v7745_v33  ;;  %v7774_v33 = vmul.f32 %v7318_v19, %v11100_v17  ;;  %v7778_v38 = vmul.f32 %v11050_v15, %v11100_v17 }
 0x29a   :  { %11099 = vst [vmem:[#allocation88_spill] sm:$0xff] %v7749_v27  ;;  %11101 = vst [vmem:[#allocation89_spill] sm:$0xff] %v7758_v4  ;;  %v5513_v27 = vpop.eup %5512  ;;  %v7825_v4 = vmul.f32 %v7318_v19, %v11115_v1 }
 0x29b   :  { %11102 = vst [vmem:[#allocation123_spill] sm:$0xff] %v7762_v53  ;;  %11104 = vst [vmem:[#allocation52_spill] sm:$0xff] %v7766_v63  ;;  %v11106_v53 = vld [vmem:[#allocation28_spill] sm:$0xff]  ;;  %v5515_v17 = vpop.eup %5514  ;;  %v3312_v7 = vadd.f32 1.0, %v5513_v27  ;;  %5448 = vset.pattern.permute.xlu1 %v11003_v58 }
 0x29c   :  { %11105 = vst [vmem:[#allocation124_spill] sm:$0xff] %v7770_v50  ;;  %v954_v63 = vmul.f32 %v7308_v28, %v11106_v53  ;;  %v955_v34 = vmul.f32 %v7318_v19, %v11106_v53  ;;  %v11107_v50 = vld [vmem:[#allocation27_spill] sm:$0xff]  ;;  %11110 = vst [vmem:[#allocation125_spill] sm:$0xff] %v7798_v48  ;;  %v7821_v48 = vmul.f32 %v7308_v28, %v11115_v1  ;;  %v3311_v27 = vadd.f32 1.0, %v5515_v17  ;;  %v7870_v17 = vld [vmem:[%s10695_s7 + $0x78] sm:$0xff] }
 0x29d   :  { %v7790_v30 = vmul.f32 %v7308_v28, %v11107_v50  ;;  %11109 = vst [vmem:[#allocation27_spill] sm:$0xff] %v7794_v11  ;;  %v7804_v53 = vmul.f32 %v7318_v19, %v11107_v50  ;;  %v7812_v11 = vmul.f32 %v11051_v44, %v11107_v50  ;;  %11114 = vst [vmem:[#allocation129_spill] sm:$0xff] %v7817_v37  ;;  %4101 = vperm.xlu0 %5452, %v7817_v37  }
 0x29e   :  { %11116 = vst [vmem:[#allocation65_spill] sm:$0xff] %v7821_v48  ;;  %11117 = vst [vmem:[#allocation130_spill] sm:$0xff] %v7825_v4  ;;  %v987_v4 = vadd.f32 %v955_v34, %v7420_v24  ;;  %v11128_v24 = vld [vmem:[#allocation71_spill] sm:$0xff]  ;;  %915 = vperm.xlu1 %5448, %v7870_v17  }
 0x29f   :  { %11108 = vst [vmem:[#allocation28_spill] sm:$0xff] %v7790_v30  ;;  %11111 = vst [vmem:[#allocation126_spill] sm:$0xff] %v7804_v53  ;;  %v7808_v30 = vmul.f32 %v11050_v15, %v11107_v50  ;;  %v11118_v53 = vld [vmem:[#allocation18_spill] sm:$0xff]  ;;  %v986_v50 = vadd.f32 %v954_v63, %v7417_v25  ;;  %v7851_v63 = vmul.f32 %v7297_v12, %v11123_v41  ;;  %v2688_v25 = vpop.xlane.xlu1 %2687 }
 0x2a0   :  { %11113 = vst [vmem:[#allocation128_spill] sm:$0xff] %v7812_v11  ;;  %v7834_v11 = vmul.f32 %v7318_v19, %v11118_v53  ;;  %v7838_v51 = vmul.f32 %v11050_v15, %v11118_v53  ;;  %v7842_v48 = vmul.f32 %v11051_v44, %v11118_v53  ;;  %v7865_v34 = vmul.f32 %v7308_v28, %v11128_v24 }
 0x2a1   :  { %11112 = vst [vmem:[#allocation127_spill] sm:$0xff] %v7808_v30  ;;  %v7829_v30 = vmul.f32 %v7308_v28, %v11118_v53  ;;  %11125 = vst [vmem:[#allocation134_spill] sm:$0xff] %v7851_v63  ;;  %v7859_v53 = vmul.f32 %v11025_v42, %v11123_v41  ;;  %v7880_v58 = vmul.f32 %v7318_v19, %v11128_v24 }
 0x2a2   :  { %11120 = vst [vmem:[#allocation131_spill] sm:$0xff] %v7834_v11  ;;  %11121 = vst [vmem:[#allocation132_spill] sm:$0xff] %v7838_v51  ;;  %v7855_v11 = vmul.f32 %v11022_v23, %v11123_v41  ;;  %v11133_v51 = vld [vmem:[#allocation24_spill] sm:$0xff]  ;;  %5449 = vset.pattern.permute.xlu1 %v11047_v62 }
 0x2a3   :  { %11119 = vst [vmem:[#allocation18_spill] sm:$0xff] %v7829_v30  ;;  %11122 = vst [vmem:[#allocation133_spill] sm:$0xff] %v7842_v48  ;;  %v7847_v30 = vmul.f32 %v7294_v55, %v11123_v41  ;;  %v7876_v41 = vld [vmem:[%s10699_s11 + $0x48] sm:$0xff]  ;;  %v3344_v48 = vmul.f32 0.5, %v3312_v7  ;;  %v1101_v63 = vmul.f32 %v7269_v14, %v11133_v51  ;;  %1195 = vperm.xlu1 %5449, %v11011_v26  }
 0x2a4   :  { %11126 = vst [vmem:[#allocation135_spill] sm:$0xff] %v7855_v11  ;;  %11127 = vst [vmem:[#allocation136_spill] sm:$0xff] %v7859_v53  ;;  %v7884_v53 = vmul.f32 %v7286_v18, %v11095_v60  ;;  %v7888_v11 = vmul.f32 %v7289_v0, %v11095_v60  ;;  %4111 = vperm.xlu0 %5452, %v7876_v41  }
 0x2a5   :  { %11124 = vst [vmem:[#allocation20_spill] sm:$0xff] %v7847_v30  ;;  %11129 = vst [vmem:[#allocation71_spill] sm:$0xff] %v7865_v34  ;;  %v1100_v34 = vmul.f32 %v7247_v21, %v11133_v51  ;;  %v11134_v30 = vld [vmem:[#allocation73_spill] sm:$0xff]  ;;  %v619_v51 = vpop.permute.xlu1 %618 }
 0x2a6   :  { %11130 = vst [vmem:[#allocation137_spill] sm:$0xff] %v7880_v58  ;;  %11131 = vst [vmem:[#allocation138_spill] sm:$0xff] %v7884_v53  ;;  %v7896_v37 = vmul.f32 %v7308_v28, %v11134_v30  ;;  %v7900_v58 = vmul.f32 %v7318_v19, %v11134_v30  ;;  %v11137_v53 = vld [vmem:[#allocation19_spill] sm:$0xff]  ;;  %v7974_v26 = vmul.f32 %v11075_v6, %v619_v51 }
 0x2a7   :  { %11132 = vst [vmem:[#allocation139_spill] sm:$0xff] %v7888_v11  ;;  %v7904_v5 = vmul.f32 %v7294_v55, %v11137_v53  ;;  %v7908_v7 = vmul.f32 %v7297_v12, %v11137_v53  ;;  %v7912_v60 = vmul.f32 %v11022_v23, %v11137_v53  ;;  %v3343_v11 = vmul.f32 0.5, %v3311_v27  ;;  %5450 = vset.pattern.permute.xlu1 %v10857_v46 }
 0x2a8   :  { %11135 = vst [vmem:[#allocation24_spill] sm:$0xff] %v7896_v37  ;;  %11136 = vst [vmem:[#allocation73_spill] sm:$0xff] %v7900_v58  ;;  %v7916_v37 = vmul.f32 %v11025_v42, %v11137_v53  ;;  %v7920_v58 = vmul.f32 %v7247_v21, %v11141_v36  ;;  %v712_v55 = vmul.f32 %v7286_v18, %v619_v51 }
 0x2a9   :  { %11138 = vst [vmem:[#allocation19_spill] sm:$0xff] %v7904_v5  ;;  %11139 = vst [vmem:[#allocation140_spill] sm:$0xff] %v7912_v60  ;;  %v713_v5 = vmul.f32 %v7289_v0, %v619_v51  ;;  %v7927_v23 = vmul.f32 %v7269_v14, %v11141_v36  ;;  %v7931_v27 = vmul.f32 %v7065_v45, %v11141_v36  ;;  %v7941_v60 = vld [vmem:[%s10699_s11 + $0x58] sm:$0xff]  ;;  %v11145_v45 = vld [vmem:[#allocation55_spill] sm:$0xff] }
 0x2aa   :  { %11140 = vst [vmem:[#allocation141_spill] sm:$0xff] %v7916_v37  ;;  %v7935_v53 = vmul.f32 %v6590_v49, %v11141_v36  ;;  %v7944_v37 = vmul.f32 %v3344_v48, %v7120_v56  ;;  %v7946_v14 = vadd.f32 %v1100_v34, %v986_v50  ;;  %v7948_v21 = vadd.f32 %v1101_v63, %v987_v4  ;;  %v11146_v49 = vld [vmem:[#allocation75_spill] sm:$0xff] }
 0x2ab   :  { %11142 = vst [vmem:[#allocation13_spill] sm:$0xff] %v7931_v27  ;;  %v824_v27 = vadd.f32 %v11145_v45, %v712_v55  ;;  %v825_v42 = vadd.f32 %v11145_v45, %v713_v5  ;;  %v7954_v36 = vadd.f32 %v2688_v25, %v7722_v3  ;;  %v7958_v12 = vmul.f32 %v7308_v28, %v11146_v49  ;;  %v7979_v3 = vld [vmem:[%s10699_s11 + $0x68] sm:$0xff]  ;;  %v5776_v25 = vld [vmem:[%s10695_s7 + $0x70] sm:$0xff] }
 0x2ac   :  { %11143 = vst [vmem:[#allocation142_spill] sm:$0xff] %v7935_v53  ;;  %11144 = vst [vmem:[#allocation143_spill] sm:$0xff] %v7944_v37  ;;  %v624_v53 = vpop.permute.xlu1 %623  ;;  %v7962_v56 = vmul.f32 %v7318_v19, %v11146_v49  ;;  %v7965_v48 = vmul.f32 %v3343_v11, %v7106_v39  ;;  %4121 = vperm.xlu0 %5452, %v7941_v60   ;;  %v7971_v5 = vmul.f32 %v11074_v47, %v619_v51 }
 0x2ad   :  { %11147 = vst [vmem:[#allocation55_spill] sm:$0xff] %v7958_v12  ;;  %v970_v55 = vadd.f32 %v7548_v35, %v824_v27  ;;  %v971_v45 = vadd.f32 %v7552_v32, %v825_v42  ;;  %11151 = vst [vmem:[#allocation146_spill] sm:$0xff] %v7974_v26  ;;  %v7982_v39 = vmul.f32 %v7286_v18, %v624_v53  ;;  %1057 = vperm.xlu1 %5450, %v5776_v25   ;;  %v11187_v26 = vld [vmem:[#allocation78_spill] sm:$0xff]  ;;  %v11208_v12 = vld [vmem:[#allocation121_spill] sm:$0xff] }
 0x2ae   :  { %11148 = vst [vmem:[#allocation75_spill] sm:$0xff] %v7962_v56  ;;  %11149 = vst [vmem:[#allocation144_spill] sm:$0xff] %v7965_v48  ;;  %v7985_v35 = vmul.f32 %v7289_v0, %v624_v53  ;;  %v7989_v32 = vmul.f32 %v11050_v15, %v11038_v54  ;;  %v7993_v42 = vmul.f32 %v11051_v44, %v11038_v54  ;;  %v11162_v48 = vld [vmem:[#allocation56_spill] sm:$0xff] }
 0x2af   :  { %11150 = vst [vmem:[#allocation145_spill] sm:$0xff] %v7971_v5  ;;  %v1117_v11 = vadd.f32 %v7341_v13, %v971_v45  ;;  %v1116_v4 = vadd.f32 %v7337_v9, %v970_v55  ;;  %v7999_v50 = vmul.f32 %v11074_v47, %v624_v53  ;;  %v8002_v63 = vmul.f32 %v11075_v6, %v624_v53 }
 0x2b0   :  { %11152 = vst [vmem:[#allocation147_spill] sm:$0xff] %v7989_v32  ;;  %11153 = vst [vmem:[#allocation148_spill] sm:$0xff] %v7993_v42  ;;  %v629_v34 = vpop.permute.xlu1 %628  ;;  %v8009_v54 = vmul.f32 %v11050_v15, %v11115_v1  ;;  %v8013_v46 = vmul.f32 %v11051_v44, %v11115_v1  ;;  %v8017_v9 = vmul.f32 %v11050_v15, %v11128_v24  ;;  %4131 = vperm.xlu0 %5452, %v7979_v3   ;;  %v8031_v1 = vld [vmem:[%s10699_s11 + $0x78] sm:$0xff]  ;;  %v11186_v42 = vld [vmem:[#allocation38_spill] sm:$0xff] }
 0x2b1   :  { %11154 = vst [vmem:[#allocation149_spill] sm:$0xff] %v7999_v50  ;;  %11155 = vst [vmem:[#allocation150_spill] sm:$0xff] %v8002_v63  ;;  %v8021_v13 = vmul.f32 %v11051_v44, %v11128_v24  ;;  %v716_v51 = vmul.f32 %v7286_v18, %v629_v34  ;;  %v717_v27 = vmul.f32 %v7289_v0, %v629_v34  ;;  %1061 = vperm.xlu1 %5450, %v7870_v17  }
 0x2b2   :  { %11156 = vst [vmem:[#allocation151_spill] sm:$0xff] %v8009_v54  ;;  %11157 = vst [vmem:[#allocation152_spill] sm:$0xff] %v8013_v46  ;;  %v2735_v53 = vmul.f32 %v11074_v47, %v629_v34  ;;  %v2736_v55 = vmul.f32 %v11075_v6, %v629_v34  ;;  %v8034_v45 = vadd.f32 %v7500_v20, %v1117_v11  ;;  %v11181_v54 = vld [vmem:[#allocation11_spill] sm:$0xff] }
 0x2b3   :  { %11158 = vst [vmem:[#allocation153_spill] sm:$0xff] %v8017_v9  ;;  %11159 = vst [vmem:[#allocation154_spill] sm:$0xff] %v8021_v13  ;;  %v8037_v24 = vadd.f32 %v7496_v57, %v1116_v4  ;;  %v8041_v25 = vmul.f32 %v11050_v15, %v11134_v30  ;;  %v8045_v34 = vmul.f32 %v11051_v44, %v11134_v30  ;;  %v11163_v9 = vld [vmem:[#allocation9_spill] sm:$0xff] }
 0x2b4   :  { %v828_v37 = vadd.f32 %v11162_v48, %v716_v51  ;;  %v829_v13 = vadd.f32 %v11162_v48, %v717_v27  ;;  %v2847_v46 = vadd.f32 %v11163_v9, %v2735_v53  ;;  %v2848_v20 = vadd.f32 %v11163_v9, %v2736_v55  ;;  %v634_v57 = vpop.permute.xlu1 %633  ;;  %4141 = vperm.xlu0 %5452, %v8031_v1  }
 0x2b5   :  { %11160 = vst [vmem:[#allocation155_spill] sm:$0xff] %v8041_v25  ;;  %11161 = vst [vmem:[#allocation156_spill] sm:$0xff] %v8045_v34  ;;  %v1295_v11 = vmul.f32 %v8034_v45, %v8034_v45  ;;  %v1294_v4 = vmul.f32 %v8037_v24, %v8037_v24  ;;  %v8058_v30 = vmul.f32 %v11050_v15, %v11146_v49  ;;  %5451 = vset.pattern.permute.xlu1 %v11047_v62 }
 0x2b6   :  { %v8062_v48 = vmul.f32 %v11051_v44, %v11146_v49  ;;  %v974_v51 = vadd.f32 %v7753_v43, %v828_v37  ;;  %v975_v9 = vadd.f32 %v7774_v33, %v829_v13  ;;  %v2929_v27 = vadd.f32 %v7778_v38, %v2847_v46  ;;  %v8088_v37 = vld [vmem:[%s10699_s11 + $0x88] sm:$0xff]  ;;  %1207 = vperm.xlu1 %5451, %v7870_v17  }
 0x2b7   :  { %11164 = vst [vmem:[#allocation56_spill] sm:$0xff] %v8058_v30  ;;  %v2930_v53 = vadd.f32 %v7782_v40, %v2848_v20  ;;  %v8070_v55 = vmul.f32 %v7286_v18, %v634_v57  ;;  %v8073_v34 = vmul.f32 %v7289_v0, %v634_v57  ;;  %v1327_v30 = vmul.f32 %v1295_v11, %v8034_v45 }
 0x2b8   :  { %11165 = vst [vmem:[#allocation9_spill] sm:$0xff] %v8062_v48  ;;  %v1326_v49 = vmul.f32 %v1294_v4, %v8037_v24  ;;  %v1120_v43 = vadd.f32 %v7356_v22, %v974_v51  ;;  %v1121_v33 = vadd.f32 %v7360_v52, %v975_v9  ;;  %v8080_v38 = vadd.f32 %v7364_v31, %v2929_v27  ;;  %v639_v46 = vpop.permute.xlu1 %638  ;;  %v11168_v9 = vld [vmem:[#allocation57_spill] sm:$0xff] }
 0x2b9   :  { %v8083_v40 = vadd.f32 %v7368_v2, %v2930_v53  ;;  %v1359_v13 = vmul.f32 0.044715, %v1327_v30  ;;  %v8092_v22 = vmul.f32 %v11074_v47, %v634_v57  ;;  %v8095_v52 = vmul.f32 %v11075_v6, %v634_v57  ;;  %4376 = vperm.xlu0 %5452, %v8088_v37  }
 0x2ba   :  { %v1358_v20 = vmul.f32 0.044715, %v1326_v49  ;;  %v720_v31 = vmul.f32 %v7286_v18, %v639_v46  ;;  %v721_v2 = vmul.f32 %v7289_v0, %v639_v46  ;;  %v2739_v11 = vmul.f32 %v11074_v47, %v639_v46  ;;  %v11169_v49 = vld [vmem:[#allocation10_spill] sm:$0xff] }
 0x2bb   :  { %11166 = vst [vmem:[#allocation157_spill] sm:$0xff] %v8092_v22  ;;  %11167 = vst [vmem:[#allocation158_spill] sm:$0xff] %v8095_v52  ;;  %v2740_v4 = vmul.f32 %v11075_v6, %v639_v46  ;;  %v1391_v62 = vadd.f32 %v1359_v13, %v8034_v45  ;;  %v8106_v51 = vadd.f32 %v7560_v59, %v1121_v33  ;;  %v8118_v13 = vld [vmem:[%s10699_s11 + $0x98] sm:$0xff] }
 0x2bc   :  { %v1390_v30 = vadd.f32 %v1358_v20, %v8037_v24  ;;  %v8109_v57 = vadd.f32 %v7556_v8, %v1120_v43  ;;  %v832_v27 = vadd.f32 %v11168_v9, %v720_v31  ;;  %v833_v53 = vadd.f32 %v11168_v9, %v721_v2  ;;  %v8120_v20 = vpop.permute.xlu1 %643 }
 0x2bd   :  { %v2851_v46 = vadd.f32 %v11169_v49, %v2739_v11  ;;  %v2852_v17 = vadd.f32 %v11169_v49, %v2740_v4  ;;  %v1423_v59 = vmul.f32 0.7978846, %v1391_v62  ;;  %v1299_v8 = vmul.f32 %v8106_v51, %v8106_v51  ;;  %4386 = vperm.xlu0 %5452, %v8118_v13   ;;  %v11171_v62 = vld [vmem:[#allocation34_spill] sm:$0xff] }
 0x2be   :  { %v1422_v33 = vmul.f32 0.7978846, %v1390_v30  ;;  %v1298_v43 = vmul.f32 %v8109_v57, %v8109_v57  ;;  %v978_v31 = vadd.f32 %v7590_v10, %v832_v27  ;;  %v979_v2 = vadd.f32 %v7594_v16, %v833_v53  ;;  %v11174_v53 = vld [vmem:[#allocation46_spill] sm:$0xff]  ;;  %v2829_v56 = vpop.permute.xlu0 %2828 }
 0x2bf   :  { %v2933_v11 = vadd.f32 %v7599_v61, %v2851_v46  ;;  %v2934_v4 = vadd.f32 %v7603_v29, %v2852_v17  ;;  %v11170_v9 = vmov 0   ;;  %v8135_v30 = vmul.f32 %v7286_v18, %v8120_v20  ;;  %v11172_v61 = vld [vmem:[#allocation39_spill] sm:$0xff]  ;;  %v11173_v29 = vld [vmem:[#allocation42_spill] sm:$0xff] }
 0x2c0   :  { %5453 = vset.pattern.permute.xlu1 %v11170_v9  ;;  %v8139_v49 = vmul.f32 %v7289_v0, %v8120_v20  ;;  %5516 = vtanh.f32 %v1423_v59  ;;  %v1331_v16 = vmul.f32 %v1299_v8, %v8106_v51  ;;  %v1124_v10 = vadd.f32 %v11172_v61, %v978_v31  ;;  %v11175_v17 = vld [vmem:[#allocation90_spill] sm:$0xff]  ;;  %v649_v48 = vpop.permute.xlu1 %648 }
 0x2c1   :  { %2768 = vperm.xlu1 %5453, %v11171_v62   ;;  %v1125_v27 = vadd.f32 %v11173_v29, %v979_v2  ;;  %v8145_v46 = vadd.f32 %v11174_v53, %v2933_v11  ;;  %v8148_v62 = vadd.f32 %v11175_v17, %v2934_v4  ;;  %v8153_v9 = vld [vmem:[%s10699_s11 + $0xa8] sm:$0xff]  ;;  %5518 = vtanh.f32 %v1422_v33  ;;  %v11177_v29 = vld [vmem:[#allocation37_spill] sm:$0xff]  ;;  %v11179_v17 = vld [vmem:[#allocation67_spill] sm:$0xff] }
 0x2c2   :  { %v1363_v59 = vmul.f32 0.044715, %v1331_v16  ;;  %v1330_v8 = vmul.f32 %v1298_v43, %v8109_v57  ;;  %v8158_v31 = vmul.f32 %v11074_v47, %v8120_v20  ;;  %v724_v2 = vmul.f32 %v7286_v18, %v649_v48  ;;  %4396 = vperm.xlu0 %5452, %v8153_v9   ;;  %v11178_v43 = vld [vmem:[#allocation85_spill] sm:$0xff] }
 0x2c3   :  { %v725_v11 = vmul.f32 %v7289_v0, %v649_v48  ;;  %v2743_v4 = vmul.f32 %v11074_v47, %v649_v48  ;;  %v2744_v61 = vmul.f32 %v11075_v6, %v649_v48  ;;  %v8168_v53 = vadd.f32 %v11178_v43, %v1125_v27 }
 0x2c4   :  { %11176 = vst [vmem:[#allocation57_spill] sm:$0xff] %v8158_v31  ;;  %v1395_v33 = vadd.f32 %v1363_v59, %v8106_v51  ;;  %v1362_v16 = vmul.f32 0.044715, %v1330_v8  ;;  %v8171_v25 = vadd.f32 %v11179_v17, %v1124_v10  ;;  %v11180_v31 = vld [vmem:[#allocation58_spill] sm:$0xff]  ;;  %v654_v59 = vpop.permute.xlu1 %653  ;;  %v11185_v17 = vld [vmem:[#allocation109_spill] sm:$0xff] }
 0x2c5   :  { %2773 = vperm.xlu1 %5453, %v11177_v29   ;;  %v836_v52 = vadd.f32 %v11180_v31, %v724_v2  ;;  %v837_v22 = vadd.f32 %v11180_v31, %v725_v11  ;;  %v2855_v63 = vadd.f32 %v11181_v54, %v2743_v4  ;;  %v2856_v48 = vadd.f32 %v11181_v54, %v2744_v61  ;;  %v8180_v29 = vld [vmem:[%s10699_s11 + $0xb8] sm:$0xff]  ;;  %v11182_v31 = vld [vmem:[#allocation69_spill] sm:$0xff] }
 0x2c6   :  { %v1427_v8 = vmul.f32 0.7978846, %v1395_v33  ;;  %v1394_v27 = vadd.f32 %v1362_v16, %v8109_v57  ;;  %v1303_v10 = vmul.f32 %v8168_v53, %v8168_v53  ;;  %v1302_v2 = vmul.f32 %v8171_v25, %v8171_v25  ;;  %v11183_v4 = vld [vmem:[#allocation21_spill] sm:$0xff]  ;;  %v11184_v54 = vld [vmem:[#allocation108_spill] sm:$0xff]  ;;  %4406 = vperm.xlu0 %5452, %v8180_v29  }
 0x2c7   :  { %v982_v11 = vadd.f32 %v11182_v31, %v836_v52  ;;  %v983_v43 = vadd.f32 %v11183_v4, %v837_v22  ;;  %v2937_v61 = vadd.f32 %v11184_v54, %v2855_v63  ;;  %v2938_v50 = vadd.f32 %v11185_v17, %v2856_v48  ;;  %v11188_v31 = vld [vmem:[#allocation111_spill] sm:$0xff]  ;;  %v11189_v4 = vld [vmem:[#allocation112_spill] sm:$0xff] }
 0x2c8   :  { %v8194_v33 = vmul.f32 %v7286_v18, %v654_v59  ;;  %v8197_v16 = vmul.f32 %v7289_v0, %v654_v59  ;;  %5520 = vtanh.f32 %v1427_v8  ;;  %v1426_v32 = vmul.f32 0.7978846, %v1394_v27  ;;  %v11191_v48 = vld [vmem:[#allocation80_spill] sm:$0xff]  ;;  %v664_v5 = vpop.permute.xlu1 %663 }
 0x2c9   :  { %2783 = vperm.xlu1 %5453, %v11186_v42   ;;  %v1128_v52 = vadd.f32 %v11187_v26, %v982_v11  ;;  %v1129_v22 = vadd.f32 %v11188_v31, %v983_v43  ;;  %v8202_v63 = vadd.f32 %v11189_v4, %v2937_v61  ;;  %v8205_v54 = vadd.f32 %v11191_v48, %v2938_v50  ;;  %v8210_v42 = vld [vmem:[%s10699_s11 + $0xc8] sm:$0xff]  ;;  %v11196_v4 = vld [vmem:[#allocation19_spill] sm:$0xff] }
 0x2ca   :  { %11193 = vst [vmem:[#allocation39_spill] sm:$0xff] %v8210_v42  ;;  %v5517_v17 = vpop.eup %5516  ;;  %5522 = vtanh.f32 %v1426_v32  ;;  %v1335_v8 = vmul.f32 %v1303_v10, %v8168_v53  ;;  %v1334_v26 = vmul.f32 %v1302_v2, %v8171_v25  ;;  %v8216_v27 = vmul.f32 %v11075_v6, %v8120_v20  ;;  %4416 = vperm.xlu0 %5452, %v8210_v42   ;;  %v11195_v32 = vld [vmem:[#allocation41_spill] sm:$0xff] }
 0x2cb   :  { %11190 = vst [vmem:[#allocation10_spill] sm:$0xff] %v8202_v63  ;;  %11192 = vst [vmem:[#allocation34_spill] sm:$0xff] %v8205_v54  ;;  %v8219_v11 = vmul.f32 %v7286_v18, %v664_v5  ;;  %v8222_v50 = vmul.f32 %v7289_v0, %v664_v5  ;;  %v1487_v43 = vadd.f32 1.0, %v5517_v17  ;;  %v8225_v61 = vadd.f32 %v7908_v7, %v1129_v22  ;;  %v5519_v31 = vpop.eup %5518  ;;  %v8238_v17 = vld [vmem:[%s10699_s11 + $0xd8] sm:$0xff] }
 0x2cc   :  { %11194 = vst [vmem:[#allocation42_spill] sm:$0xff] %v8216_v27  ;;  %v1367_v10 = vmul.f32 0.044715, %v1335_v8  ;;  %v1366_v2 = vmul.f32 0.044715, %v1334_v26  ;;  %v8230_v20 = vadd.f32 %v11196_v4, %v1128_v52  ;;  %v8233_v48 = vmul.f32 %v11074_v47, %v654_v59  ;;  %11198 = vst [vmem:[#allocation90_spill] sm:$0xff] %v8238_v17  ;;  %v674_v8 = vpop.permute.xlu1 %673 }
 0x2cd   :  { %2793 = vperm.xlu1 %5453, %v11195_v32   ;;  %v1519_v7 = vmul.f32 0.5, %v1487_v43  ;;  %v1486_v22 = vadd.f32 1.0, %v5519_v31  ;;  %v1307_v27 = vmul.f32 %v8225_v61, %v8225_v61  ;;  %v8243_v32 = vmul.f32 %v11075_v6, %v654_v59 }
 0x2ce   :  { %11197 = vst [vmem:[#allocation46_spill] sm:$0xff] %v8233_v48  ;;  %v1399_v52 = vadd.f32 %v1367_v10, %v8168_v53  ;;  %v1398_v26 = vadd.f32 %v1366_v2, %v8171_v25  ;;  %v1306_v4 = vmul.f32 %v8230_v20, %v8230_v20  ;;  %v8250_v48 = vmul.f32 %v11074_v47, %v664_v5  ;;  %v11201_v10 = vld [vmem:[#allocation43_spill] sm:$0xff] }
 0x2cf   :  { %11199 = vst [vmem:[#allocation37_spill] sm:$0xff] %v8243_v32  ;;  %v8253_v43 = vmul.f32 %v1519_v7, %v8034_v45  ;;  %v1518_v31 = vmul.f32 0.5, %v1486_v22  ;;  %v8256_v63 = vmul.f32 %v7286_v18, %v674_v8  ;;  %v8259_v59 = vmul.f32 %v7289_v0, %v674_v8  ;;  %4426 = vperm.xlu0 %5452, %v8238_v17   ;;  %v8268_v45 = vld [vmem:[%s10699_s11 + $0xe8] sm:$0xff] }
 0x2d0   :  { %11200 = vst [vmem:[#allocation85_spill] sm:$0xff] %v8250_v48  ;;  %v1431_v2 = vmul.f32 0.7978846, %v1399_v52  ;;  %v1430_v32 = vmul.f32 0.7978846, %v1398_v26  ;;  %v1339_v54 = vmul.f32 %v1307_v27, %v8225_v61  ;;  %v1338_v48 = vmul.f32 %v1306_v4, %v8230_v20  ;;  %11202 = vst [vmem:[#allocation67_spill] sm:$0xff] %v8268_v45  ;;  %v684_v42 = vpop.permute.xlu1 %683 }
 0x2d1   :  { %2803 = vperm.xlu1 %5453, %v11201_v10   ;;  %v8271_v7 = vmul.f32 %v1518_v31, %v8037_v24  ;;  %v8274_v22 = vmul.f32 %v11075_v6, %v664_v5  ;;  %v8277_v10 = vmul.f32 %v11074_v47, %v674_v8  ;;  %v8280_v52 = vmul.f32 %v11075_v6, %v674_v8  ;;  %v11206_v26 = vld [vmem:[#allocation120_spill] sm:$0xff]  ;;  %v11211_v8 = vld [vmem:[#allocation30_spill] sm:$0xff] }
 0x2d2   :  { %v5521_v27 = vpop.eup %5520  ;;  %v8283_v4 = vadd.f32 %v2829_v56, %v11206_v26  ;;  %v8286_v17 = vadd.f32 %v2829_v56, %v11208_v12  ;;  %5524 = vtanh.f32 %v1431_v2  ;;  %v1371_v24 = vmul.f32 0.044715, %v1339_v54  ;;  %v2839_v56 = vpop.permute.xlu0 %2838  ;;  %v8303_v54 = vld [vmem:[%s10699_s11 + $0xf8] sm:$0xff] }
 0x2d3   :  { %11203 = vst [vmem:[#allocation58_spill] sm:$0xff] %v8274_v22  ;;  %11204 = vst [vmem:[#allocation11_spill] sm:$0xff] %v8277_v10  ;;  %v1491_v31 = vadd.f32 1.0, %v5521_v27  ;;  %5526 = vtanh.f32 %v1430_v32  ;;  %v1370_v5 = vmul.f32 0.044715, %v1338_v48  ;;  %v8289_v22 = vmul.f32 %v7286_v18, %v684_v42  ;;  %4436 = vperm.xlu0 %5452, %v8268_v45   ;;  %v11216_v27 = vld [vmem:[#allocation54_spill] sm:$0xff] }
 0x2d4   :  { %11205 = vst [vmem:[#allocation69_spill] sm:$0xff] %v8280_v52  ;;  %11207 = vst [vmem:[#allocation21_spill] sm:$0xff] %v8283_v4  ;;  %v5523_v10 = vpop.eup %5522  ;;  %v1403_v26 = vadd.f32 %v1371_v24, %v8225_v61  ;;  %v8295_v52 = vmul.f32 %v7289_v0, %v684_v42  ;;  %v8298_v12 = vmul.f32 %v11074_v47, %v684_v42  ;;  %v11218_v0 = vld [vmem:[#allocation122_spill] sm:$0xff]  ;;  %v745_v47 = vpop.permute.xlu1 %744  ;;  %v11222_v45 = vld [vmem:[#allocation52_spill] sm:$0xff] }
 0x2d5   :  { %11209 = vst [vmem:[#allocation108_spill] sm:$0xff] %v8286_v17  ;;  %11210 = vst [vmem:[#allocation109_spill] sm:$0xff] %v8289_v22  ;;  %2813 = vperm.xlu1 %5453, %v11211_v8   ;;  %v1523_v18 = vmul.f32 0.5, %v1491_v31  ;;  %v1490_v48 = vadd.f32 1.0, %v5523_v10  ;;  %v1402_v32 = vadd.f32 %v1370_v5, %v8230_v20  ;;  %v8307_v2 = vmul.f32 %v11075_v6, %v684_v42  ;;  %v11223_v10 = vld [vmem:[#allocation124_spill] sm:$0xff]  ;;  %v11224_v42 = vld [vmem:[#allocation51_spill] sm:$0xff] }
 0x2d6   :  { %11212 = vst [vmem:[#allocation38_spill] sm:$0xff] %v8295_v52  ;;  %11213 = vst [vmem:[#allocation78_spill] sm:$0xff] %v8298_v12  ;;  %v8310_v24 = vadd.f32 %v2839_v56, %v11216_v27  ;;  %v8313_v8 = vadd.f32 %v2839_v56, %v11218_v0  ;;  %v1435_v12 = vmul.f32 0.7978846, %v1403_v26  ;;  %v11220_v52 = vld [vmem:[#allocation72_spill] sm:$0xff]  ;;  %v822_v31 = vadd.f32 %v745_v47, %v11222_v45  ;;  %v11228_v0 = vld [vmem:[#allocation123_spill] sm:$0xff] }
 0x2d7   :  { %11214 = vst [vmem:[#allocation111_spill] sm:$0xff] %v8303_v54  ;;  %11215 = vst [vmem:[#allocation112_spill] sm:$0xff] %v8307_v2  ;;  %v8317_v22 = vadd.f32 %v11220_v52, %v8083_v40  ;;  %v823_v17 = vadd.f32 %v745_v47, %v11223_v10  ;;  %v8322_v5 = vmul.f32 %v1523_v18, %v8106_v51  ;;  %v1522_v6 = vmul.f32 0.5, %v1490_v48  ;;  %v11225_v40 = vld [vmem:[#allocation63_spill] sm:$0xff]  ;;  %v11227_v45 = vld [vmem:[#allocation88_spill] sm:$0xff] }
 0x2d8   :  { %11217 = vst [vmem:[#allocation80_spill] sm:$0xff] %v8310_v24  ;;  %11219 = vst [vmem:[#allocation41_spill] sm:$0xff] %v8313_v8  ;;  %4446 = vperm.xlu0 %5452, %v8303_v54   ;;  %5528 = vtanh.f32 %v1435_v12  ;;  %v1434_v56 = vmul.f32 0.7978846, %v1402_v32  ;;  %v8330_v52 = vadd.f32 %v11225_v40, %v8080_v38  ;;  %v968_v27 = vadd.f32 %v11227_v45, %v822_v31  ;;  %v11229_v18 = vld [vmem:[#allocation76_spill] sm:$0xff]  ;;  %v755_v12 = vpop.permute.xlu1 %754  ;;  %v11233_v31 = vld [vmem:[#allocation45_spill] sm:$0xff] }
 0x2d9   :  { %11221 = vst [vmem:[#allocation19_spill] sm:$0xff] %v8317_v22  ;;  %2823 = vperm.xlu1 %5453, %v11224_v42   ;;  %v3126_v26 = vmul.f32 %v8317_v22, %v8317_v22  ;;  %v969_v47 = vadd.f32 %v11228_v0, %v823_v17  ;;  %v8335_v51 = vmul.f32 %v1522_v6, %v8109_v57  ;;  %v11231_v38 = vld [vmem:[#allocation44_spill] sm:$0xff]  ;;  %v11234_v40 = vld [vmem:[#allocation14_spill] sm:$0xff]  ;;  %v11252_v54 = vld [vmem:[#allocation89_spill] sm:$0xff] }
 0x2da   :  { %11226 = vst [vmem:[#allocation43_spill] sm:$0xff] %v8330_v52  ;;  %v8339_v48 = vadd.f32 %v11229_v18, %v8148_v62  ;;  %5530 = vtanh.f32 %v1434_v56  ;;  %v3125_v10 = vmul.f32 %v8330_v52, %v8330_v52  ;;  %v8346_v42 = vadd.f32 %v11231_v38, %v8145_v46  ;;  %v11235_v0 = vld [vmem:[#allocation110_spill] sm:$0xff]  ;;  %v11240_v38 = vld [vmem:[#allocation65_spill] sm:$0xff]  ;;  %v11258_v4 = vld [vmem:[#allocation60_spill] sm:$0xff] }
 0x2db   :  { %v3158_v32 = vmul.f32 %v3126_v26, %v8317_v22  ;;  %v1114_v17 = vadd.f32 %v11233_v31, %v968_v27  ;;  %v1115_v57 = vadd.f32 %v11234_v40, %v969_v47  ;;  %v826_v6 = vadd.f32 %v755_v12, %v7982_v39  ;;  %v11238_v39 = vld [vmem:[#allocation66_spill] sm:$0xff] }
 0x2dc   :  { %11230 = vst [vmem:[#allocation120_spill] sm:$0xff] %v8339_v48  ;;  %11232 = vst [vmem:[#allocation121_spill] sm:$0xff] %v8346_v42  ;;  %v827_v62 = vadd.f32 %v755_v12, %v7985_v35  ;;  %v5525_v45 = vpop.eup %5524  ;;  %4697 = vperm.xlu0 %5452, %v11235_v0   ;;  %v3157_v26 = vmul.f32 %v3125_v10, %v8330_v52  ;;  %v8357_v46 = vmul.f32 %v8339_v48, %v8339_v48  ;;  %v11239_v35 = vld [vmem:[#allocation97_spill] sm:$0xff]  ;;  %v765_v40 = vpop.permute.xlu1 %764 }
 0x2dd   :  { %2833 = vperm.xlu1 %5453, %v7954_v36   ;;  %v3190_v56 = vmul.f32 0.044715, %v3158_v32  ;;  %v8361_v27 = vmul.f32 %v8346_v42, %v8346_v42  ;;  %v5527_v47 = vpop.eup %5526  ;;  %v8364_v18 = vadd.f32 %v11238_v39, %v1114_v17  ;;  %v8367_v12 = vadd.f32 %v11239_v35, %v1115_v57  ;;  %v11241_v32 = vld [vmem:[#allocation130_spill] sm:$0xff]  ;;  %v8374_v10 = vld [vmem:[%s10697_s9] sm:$0xff]  ;;  %v11243_v39 = vld [vmem:[#allocation59_spill] sm:$0xff] }
 0x2de   :  { %11236 = vst [vmem:[#allocation30_spill] sm:$0xff] %v8357_v46  ;;  %v972_v36 = vadd.f32 %v11240_v38, %v826_v6  ;;  %v973_v31 = vadd.f32 %v11241_v32, %v827_v62  ;;  %v1495_v0 = vadd.f32 1.0, %v5525_v45  ;;  %v1494_v2 = vadd.f32 1.0, %v5527_v47  ;;  %v11244_v35 = vld [vmem:[#allocation93_spill] sm:$0xff]  ;;  %v11245_v38 = vld [vmem:[#allocation115_spill] sm:$0xff]  ;;  %v11246_v32 = vld [vmem:[#allocation70_spill] sm:$0xff] }
 0x2df   :  { %11237 = vst [vmem:[#allocation54_spill] sm:$0xff] %v8361_v27  ;;  %v8377_v8 = vadd.f32 %v3190_v56, %v8317_v22  ;;  %v8379_v17 = vmul.f32 0.044715, %v3157_v26  ;;  %v830_v6 = vadd.f32 %v765_v40, %v8070_v55  ;;  %v831_v62 = vadd.f32 %v765_v40, %v8073_v34  ;;  %v11248_v55 = vld [vmem:[#allocation28_spill] sm:$0xff]  ;;  %v11249_v40 = vld [vmem:[#allocation126_spill] sm:$0xff] }
 0x2e0   :  { %v1118_v57 = vadd.f32 %v11243_v39, %v972_v36  ;;  %v1119_v24 = vadd.f32 %v11244_v35, %v973_v31  ;;  %4707 = vperm.xlu0 %5452, %v11245_v38   ;;  %v1293_v45 = vmul.f32 %v8367_v12, %v8367_v12  ;;  %v1292_v56 = vmul.f32 %v8364_v18, %v8364_v18  ;;  %v11247_v31 = vld [vmem:[#allocation103_spill] sm:$0xff]  ;;  %v775_v42 = vpop.permute.xlu1 %774 }
 0x2e1   :  { %11242 = vst [vmem:[#allocation122_spill] sm:$0xff] %v8379_v17  ;;  %1630 = vperm.xlu1 %5453, %v8374_v10   ;;  %v1527_v26 = vmul.f32 0.5, %v1495_v0  ;;  %v1526_v47 = vmul.f32 0.5, %v1494_v2  ;;  %v976_v34 = vadd.f32 %v11248_v55, %v830_v6  ;;  %v977_v35 = vadd.f32 %v11249_v40, %v831_v62  ;;  %v8402_v38 = vld [vmem:[%s10697_s9 + $0x10] sm:$0xff] }
 0x2e2   :  { %v8392_v36 = vadd.f32 %v11246_v32, %v1118_v57  ;;  %v8395_v39 = vadd.f32 %v11247_v31, %v1119_v24  ;;  %v8404_v27 = vpop.eup %5528  ;;  %v1325_v2 = vmul.f32 %v1293_v45, %v8367_v12  ;;  %v1324_v0 = vmul.f32 %v1292_v56, %v8364_v18  ;;  %v11250_v6 = vld [vmem:[#allocation15_spill] sm:$0xff]  ;;  %v11251_v32 = vld [vmem:[#allocation16_spill] sm:$0xff] }
 0x2e3   :  { %v8409_v57 = vmul.f32 %v1527_v26, %v8168_v53  ;;  %v8412_v24 = vmul.f32 %v1526_v47, %v8171_v25  ;;  %v1122_v62 = vadd.f32 %v11250_v6, %v976_v34  ;;  %v1123_v31 = vadd.f32 %v11251_v32, %v977_v35  ;;  %v11253_v26 = vld [vmem:[#allocation12_spill] sm:$0xff]  ;;  %v11256_v35 = vld [vmem:[#allocation131_spill] sm:$0xff] }
 0x2e4   :  { %v834_v55 = vadd.f32 %v775_v42, %v8135_v30  ;;  %v835_v40 = vadd.f32 %v775_v42, %v8139_v49  ;;  %v8418_v22 = vpop.eup %5530  ;;  %4717 = vperm.xlu0 %5452, %v11252_v54   ;;  %v1357_v45 = vmul.f32 0.044715, %v1325_v2  ;;  %v1356_v53 = vmul.f32 0.044715, %v1324_v0  ;;  %v11254_v30 = vld [vmem:[#allocation74_spill] sm:$0xff]  ;;  %v8437_v2 = vld [vmem:[%s10697_s9 + $0x20] sm:$0xff]  ;;  %v785_v0 = vpop.permute.xlu1 %784 }
 0x2e5   :  { %1640 = vperm.xlu1 %5453, %v8402_v38   ;;  %v1297_v25 = vmul.f32 %v8395_v39, %v8395_v39  ;;  %v1296_v56 = vmul.f32 %v8392_v36, %v8392_v36  ;;  %v8427_v47 = vadd.f32 %v11253_v26, %v1122_v62  ;;  %v8430_v34 = vadd.f32 %v11254_v30, %v1123_v31  ;;  %v11255_v49 = vld [vmem:[#allocation18_spill] sm:$0xff]  ;;  %v11257_v31 = vld [vmem:[#allocation64_spill] sm:$0xff] }
 0x2e6   :  { %v980_v42 = vadd.f32 %v11255_v49, %v834_v55  ;;  %v981_v54 = vadd.f32 %v11256_v35, %v835_v40  ;;  %v1389_v6 = vadd.f32 %v1357_v45, %v8367_v12  ;;  %v1388_v32 = vadd.f32 %v1356_v53, %v8364_v18  ;;  %v11259_v35 = vld [vmem:[#allocation129_spill] sm:$0xff] }
 0x2e7   :  { %v1329_v62 = vmul.f32 %v1297_v25, %v8395_v39  ;;  %v1328_v26 = vmul.f32 %v1296_v56, %v8392_v36  ;;  %v838_v40 = vadd.f32 %v785_v0, %v8194_v33  ;;  %v839_v49 = vadd.f32 %v785_v0, %v8197_v16  ;;  %v11260_v25 = vld [vmem:[#allocation20_spill] sm:$0xff]  ;;  %v8462_v0 = vld [vmem:[%s10697_s9 + $0x30] sm:$0xff] }
 0x2e8   :  { %v1126_v30 = vadd.f32 %v11257_v31, %v980_v42  ;;  %v1127_v55 = vadd.f32 %v11258_v4, %v981_v54  ;;  %4727 = vperm.xlu0 %5452, %v11259_v35   ;;  %v1421_v46 = vmul.f32 0.7978846, %v1389_v6  ;;  %v1420_v45 = vmul.f32 0.7978846, %v1388_v32  ;;  %v11261_v42 = vld [vmem:[#allocation134_spill] sm:$0xff]  ;;  %v11262_v4 = vld [vmem:[#allocation71_spill] sm:$0xff]  ;;  %v795_v6 = vpop.permute.xlu1 %794 }
 0x2e9   :  { %1650 = vperm.xlu1 %5453, %v8437_v2   ;;  %v1361_v48 = vmul.f32 0.044715, %v1329_v62  ;;  %v1301_v53 = vmul.f32 %v8430_v34, %v8430_v34  ;;  %v984_v33 = vadd.f32 %v11262_v4, %v838_v40  ;;  %v11263_v54 = vld [vmem:[#allocation137_spill] sm:$0xff]  ;;  %v1360_v62 = vmul.f32 0.044715, %v1328_v26 }
 0x2ea   :  { %v8452_v56 = vadd.f32 %v11260_v25, %v1126_v30  ;;  %v8455_v31 = vadd.f32 %v11261_v42, %v1127_v55  ;;  %v985_v16 = vadd.f32 %v11263_v54, %v839_v49  ;;  %5532 = vtanh.f32 %v1421_v46  ;;  %v11267_v54 = vld [vmem:[#allocation61_spill] sm:$0xff] }
 0x2eb   :  { %v1393_v32 = vadd.f32 %v1361_v48, %v8395_v39  ;;  %v1333_v30 = vmul.f32 %v1301_v53, %v8430_v34  ;;  %v8467_v35 = vadd.f32 %v7920_v58, %v984_v33  ;;  %v842_v40 = vadd.f32 %v795_v6, %v8219_v11  ;;  %v11264_v53 = vld [vmem:[#allocation24_spill] sm:$0xff]  ;;  %v11265_v58 = vld [vmem:[#allocation73_spill] sm:$0xff] }
 0x2ec   :  { %v8470_v55 = vadd.f32 %v7927_v23, %v985_v16  ;;  %v843_v49 = vadd.f32 %v795_v6, %v8222_v50  ;;  %4737 = vperm.xlu0 %5452, %v7876_v41   ;;  %5534 = vtanh.f32 %v1420_v45  ;;  %v1392_v48 = vadd.f32 %v1360_v62, %v8392_v36  ;;  %v8482_v23 = vld [vmem:[%s10697_s9 + $0x40] sm:$0xff]  ;;  %v800_v50 = vpop.permute.xlu1 %799  ;;  %v11268_v6 = vld [vmem:[#allocation98_spill] sm:$0xff]  ;;  %v11269_v62 = vld [vmem:[#allocation27_spill] sm:$0xff] }
 0x2ed   :  { %1660 = vperm.xlu1 %5453, %v8462_v0   ;;  %v1425_v46 = vmul.f32 0.7978846, %v1393_v32  ;;  %v1365_v26 = vmul.f32 0.044715, %v1333_v30  ;;  %v988_v25 = vadd.f32 %v11264_v53, %v842_v40  ;;  %11266 = vst [vmem:[#allocation72_spill] sm:$0xff] %v8482_v23  ;;  %v1300_v11 = vmul.f32 %v8427_v47, %v8427_v47  ;;  %v11270_v40 = vld [vmem:[#allocation125_spill] sm:$0xff] }
 0x2ee   :  { %v989_v42 = vadd.f32 %v11265_v58, %v843_v49  ;;  %v1305_v41 = vmul.f32 %v8455_v31, %v8455_v31  ;;  %v1424_v45 = vmul.f32 0.7978846, %v1392_v48  ;;  %v1499_v33 = vadd.f32 1.0, %v8404_v27 }
 0x2ef   :  { %5536 = vtanh.f32 %v1425_v46  ;;  %v1397_v4 = vadd.f32 %v1365_v26, %v8430_v34  ;;  %v1134_v16 = vadd.f32 %v11267_v54, %v988_v25  ;;  %v844_v30 = vadd.f32 %v800_v50, %v11269_v62  ;;  %v11271_v26 = vld [vmem:[#allocation50_spill] sm:$0xff]  ;;  %v11272_v25 = vld [vmem:[#allocation77_spill] sm:$0xff] }
 0x2f0   :  { %v1135_v32 = vadd.f32 %v11268_v6, %v989_v42  ;;  %v845_v49 = vadd.f32 %v800_v50, %v11270_v40  ;;  %4747 = vperm.xlu0 %5452, %v7941_v60   ;;  %5538 = vtanh.f32 %v1424_v45  ;;  %v1332_v46 = vmul.f32 %v1300_v11, %v8427_v47  ;;  %v8507_v42 = vld [vmem:[%s10697_s9 + $0x50] sm:$0xff]  ;;  %v900_v45 = vpop.permute.xlu1 %899 }
 0x2f1   :  { %1670 = vperm.xlu1 %5453, %v8482_v23   ;;  %v1429_v53 = vmul.f32 0.7978846, %v1397_v4  ;;  %v1337_v48 = vmul.f32 %v1305_v41, %v8455_v31  ;;  %v8499_v27 = vadd.f32 %v11271_v26, %v1134_v16  ;;  %11273 = vst [vmem:[#allocation52_spill] sm:$0xff] %v8507_v42  ;;  %v1531_v60 = vmul.f32 0.5, %v1499_v33  ;;  %v11274_v26 = vld [vmem:[#allocation31_spill] sm:$0xff] }
 0x2f2   :  { %v8502_v58 = vadd.f32 %v11272_v25, %v1135_v32  ;;  %v1304_v50 = vmul.f32 %v8452_v56, %v8452_v56  ;;  %v1364_v11 = vmul.f32 0.044715, %v1332_v46  ;;  %v1498_v41 = vadd.f32 1.0, %v8418_v22 }
 0x2f3   :  { %5540 = vtanh.f32 %v1429_v53  ;;  %v1369_v4 = vmul.f32 0.044715, %v1337_v48  ;;  %v958_v54 = vmul.f32 %v7308_v28, %v900_v45  ;;  %v959_v16 = vmul.f32 %v7318_v19, %v900_v45 }
 0x2f4   :  { %v2913_v6 = vmul.f32 %v11050_v15, %v900_v45  ;;  %v2914_v32 = vmul.f32 %v11051_v44, %v900_v45  ;;  %v5533_v62 = vpop.eup %5532  ;;  %4757 = vperm.xlu0 %5452, %v7979_v3   ;;  %v1396_v33 = vadd.f32 %v1364_v11, %v8427_v47  ;;  %v8521_v53 = vmul.f32 %v1531_v60, %v8225_v61  ;;  %v11275_v45 = vld [vmem:[#allocation119_spill] sm:$0xff]  ;;  %v8536_v3 = vld [vmem:[%s10697_s9 + $0x60] sm:$0xff] }
 0x2f5   :  { %1680 = vperm.xlu1 %5453, %v8507_v42   ;;  %v1401_v40 = vadd.f32 %v1369_v4, %v8455_v31  ;;  %v1530_v22 = vmul.f32 0.5, %v1498_v41  ;;  %v8523_v46 = vadd.f32 %v958_v54, %v844_v30  ;;  %v8525_v48 = vadd.f32 %v959_v16, %v845_v49  ;;  %11276 = vst [vmem:[#allocation124_spill] sm:$0xff] %v8536_v3  ;;  %v11282_v42 = vld [vmem:[#allocation40_spill] sm:$0xff] }
 0x2f6   :  { %v8528_v25 = vadd.f32 %v2913_v6, %v11274_v26  ;;  %v8531_v17 = vadd.f32 %v2914_v32, %v11275_v45  ;;  %v5535_v11 = vpop.eup %5534  ;;  %v1485_v4 = vadd.f32 1.0, %v5533_v62  ;;  %v1428_v61 = vmul.f32 0.7978846, %v1396_v33  ;;  %v1180_v32 = vpop.permute.xlu1 %1179  ;;  %v11280_v45 = vld [vmem:[#allocation87_spill] sm:$0xff] }
 0x2f7   :  { %v1433_v60 = vmul.f32 0.7978846, %v1401_v40  ;;  %v1336_v30 = vmul.f32 %v1304_v50, %v8452_v56  ;;  %v1484_v41 = vadd.f32 1.0, %v5535_v11  ;;  %v8540_v49 = vmul.f32 %v1530_v22, %v8230_v20  ;;  %v11278_v20 = vld [vmem:[#allocation35_spill] sm:$0xff]  ;;  %v11279_v22 = vld [vmem:[#allocation36_spill] sm:$0xff] }
 0x2f8   :  { %v1313_v54 = vmul.f32 %v8502_v58, %v8502_v58  ;;  %v8546_v16 = vmul.f32 %v8499_v27, %v8499_v27  ;;  %4767 = vperm.xlu0 %5452, %v8031_v1   ;;  %v1517_v62 = vmul.f32 0.5, %v1485_v4  ;;  %5542 = vtanh.f32 %v1428_v61  ;;  %v8564_v1 = vld [vmem:[%s10697_s9 + $0x70] sm:$0xff] }
 0x2f9   :  { %11277 = vst [vmem:[#allocation51_spill] sm:$0xff] %v8540_v49  ;;  %v5537_v6 = vpop.eup %5536  ;;  %1690 = vperm.xlu1 %5453, %v8536_v3   ;;  %v1368_v50 = vmul.f32 0.044715, %v1336_v30  ;;  %v8551_v33 = vmul.f32 0.7978846, %v8377_v8  ;;  %v1244_v40 = vmul.f32 %v11278_v20, %v1180_v32  ;;  %v1245_v26 = vmul.f32 %v11279_v22, %v1180_v32 }
 0x2fa   :  { %v8556_v11 = vmul.f32 %v11280_v45, %v1180_v32  ;;  %v8559_v49 = vmul.f32 %v11282_v42, %v1180_v32  ;;  %v5539_v4 = vpop.eup %5538  ;;  %v1549_v61 = vmul.f32 %v1517_v62, %v8367_v12  ;;  %v1516_v8 = vmul.f32 0.5, %v1484_v41  ;;  %v1184_v23 = vpop.permute.xlu1 %1183 }
 0x2fb   :  { %v1489_v30 = vadd.f32 1.0, %v5537_v6  ;;  %5544 = vtanh.f32 %v1433_v60  ;;  %v8568_v3 = vadd.f32 %v1244_v40, %v8467_v35  ;;  %v8571_v52 = vadd.f32 %v1245_v26, %v8470_v55 }
 0x2fc   :  { %11281 = vst [vmem:[#allocation63_spill] sm:$0xff] %v8556_v11  ;;  %11283 = vst [vmem:[#allocation88_spill] sm:$0xff] %v8559_v49  ;;  %v1488_v11 = vadd.f32 1.0, %v5539_v4  ;;  %v1400_v32 = vadd.f32 %v1368_v50, %v8452_v56  ;;  %5003 = vperm.xlu0 %5452, %v8088_v37   ;;  %v1597_v12 = vpack.c.bf16 %v8253_v43, %v1549_v61  ;;  %v11284_v4 = vld [vmem:[#allocation22_spill] sm:$0xff] }
 0x2fd   :  { %v5541_v49 = vpop.eup %5540  ;;  %1700 = vperm.xlu1 %5453, %v8564_v1   ;;  %v1548_v41 = vmul.f32 %v1516_v8, %v8364_v18  ;;  %v1521_v60 = vmul.f32 0.5, %v1489_v30  ;;  %v1345_v35 = vmul.f32 %v1313_v54, %v8502_v58  ;;  %v1246_v6 = vmul.f32 %v11278_v20, %v1184_v23  ;;  %v11286_v8 = vld [vmem:[#allocation32_spill] sm:$0xff] }
 0x2fe   :  { %v1247_v55 = vmul.f32 %v11279_v22, %v1184_v23  ;;  %v3073_v62 = vmul.f32 %v11280_v45, %v1184_v23  ;;  %v3074_v50 = vmul.f32 %v11282_v42, %v1184_v23  ;;  %1756 = vmatprep.subr.bf16.mxu0 %v1597_v12  ;;  %v1520_v26 = vmul.f32 0.5, %v1488_v11 }
 0x2ff   :  { %v1596_v37 = vpack.c.bf16 %v8271_v7, %v1548_v41  ;;  %v1553_v40 = vmul.f32 %v1521_v60, %v8395_v39  ;;  %v1493_v43 = vadd.f32 1.0, %v5541_v49  ;;  %v8586_v18 = vadd.f32 %v1246_v6, %v7946_v14  ;;  %v1046_v14 = vpop.permute.xlu1 %1045  ;;  %v11287_v41 = vld [vmem:[#allocation23_spill] sm:$0xff]  ;;  %v11288_v60 = vld [vmem:[#allocation33_spill] sm:$0xff]  ;;  %v11289_v6 = vld [vmem:[#allocation86_spill] sm:$0xff] }
 0x300   :  { %v8589_v54 = vadd.f32 %v1247_v55, %v7948_v21  ;;  %v8592_v61 = vadd.f32 %v3073_v62, %v11284_v4  ;;  %v8595_v30 = vadd.f32 %v3074_v50, %v11286_v8  ;;  %5013 = vperm.xlu0 %5452, %v8118_v13   ;;  %v1552_v39 = vmul.f32 %v1520_v26, %v8392_v36  ;;  %v11290_v55 = vld [vmem:[#allocation17_spill] sm:$0xff] }
 0x301   :  { %1757 = vmatpush1.bf16.msra.mxu0 %v1596_v37  ;;  %v1599_v7 = vpack.c.bf16 %v8322_v5, %v1553_v40  ;;  %v1525_v23 = vmul.f32 0.5, %v1493_v43  ;;  %v1432_v49 = vmul.f32 0.7978846, %v1400_v32  ;;  %3457 = vperm.xlu1 %5453, %v8374_v10   ;;  %v1309_v21 = vmul.f32 %v8571_v52, %v8571_v52 }
 0x302   :  { %11285 = vst [vmem:[#allocation123_spill] sm:$0xff] %v8592_v61  ;;  %v1311_v11 = vmul.f32 %v8589_v54, %v8589_v54  ;;  %v1308_v12 = vmul.f32 %v8568_v3, %v8568_v3  ;;  %v1310_v13 = vmul.f32 %v8586_v18, %v8586_v18  ;;  %v5543_v5 = vpop.eup %5542  ;;  %v1104_v36 = vmul.f32 %v11287_v41, %v1046_v14 }
 0x303   :  { %v1105_v32 = vmul.f32 %v11288_v60, %v1046_v14  ;;  %v2995_v10 = vmul.f32 %v11289_v6, %v1046_v14  ;;  %v2996_v62 = vmul.f32 %v11290_v55, %v1046_v14  ;;  %1758 = vmatprep.subr.bf16.mxu0 %v1599_v7  ;;  %v1598_v50 = vpack.c.bf16 %v8335_v51, %v1552_v39  ;;  %v805_v39 = vpop.permute.xlu1 %804 }
 0x304   :  { %v1557_v37 = vmul.f32 %v1525_v23, %v8430_v34  ;;  %v1492_v40 = vadd.f32 1.0, %v5543_v5  ;;  %5546 = vtanh.f32 %v1432_v49  ;;  %v8616_v43 = vadd.f32 %v1104_v36, %v8523_v46  ;;  %5023 = vperm.xlu0 %5452, %v8153_v9  }
 0x305   :  { %v5545_v26 = vpop.eup %5544  ;;  %v8619_v4 = vadd.f32 %v1105_v32, %v8525_v48  ;;  %v8622_v8 = vadd.f32 %v2995_v10, %v8528_v25  ;;  %v8625_v61 = vadd.f32 %v2996_v62, %v8531_v17  ;;  %1759 = vmatpush1.bf16.msra.mxu0 %v1598_v50  ;;  %3467 = vperm.xlu1 %5453, %v8402_v38   ;;  %v1377_v17 = vmul.f32 0.044715, %v1345_v35  ;;  %v11291_v62 = vld [vmem:[#allocation39_spill] sm:$0xff] }
 0x306   :  { %v1601_v51 = vpack.c.bf16 %v8409_v57, %v1557_v37  ;;  %v1524_v34 = vmul.f32 0.5, %v1492_v40  ;;  %v1497_v7 = vadd.f32 1.0, %v5545_v26  ;;  %v1341_v46 = vmul.f32 %v1309_v21, %v8571_v52 }
 0x307   :  { %v1343_v48 = vmul.f32 %v1311_v11, %v8589_v54  ;;  %v1340_v25 = vmul.f32 %v1308_v12, %v8568_v3  ;;  %v1342_v23 = vmul.f32 %v1310_v13, %v8586_v18  ;;  %v846_v9 = vadd.f32 %v805_v39, %v8256_v63  ;;  %v904_v10 = vpop.permute.xlu1 %903 }
 0x308   :  { %1760 = vmatprep.subr.bf16.mxu0 %v1601_v51  ;;  %v847_v49 = vadd.f32 %v805_v39, %v8259_v59  ;;  %v1556_v38 = vmul.f32 %v1524_v34, %v8427_v47  ;;  %v1529_v57 = vmul.f32 0.5, %v1497_v7  ;;  %5033 = vperm.xlu0 %5452, %v8180_v29   ;;  %v1373_v14 = vmul.f32 0.044715, %v1341_v46 }
 0x309   :  { %v1375_v21 = vmul.f32 0.044715, %v1343_v48  ;;  %v1372_v5 = vmul.f32 0.044715, %v1340_v25  ;;  %v1409_v11 = vadd.f32 %v1377_v17, %v8502_v58  ;;  %3477 = vperm.xlu1 %5453, %v8437_v2   ;;  %v1374_v13 = vmul.f32 0.044715, %v1342_v23 }
 0x30a   :  { %v1600_v12 = vpack.c.bf16 %v8412_v24, %v1556_v38  ;;  %v1561_v35 = vmul.f32 %v1529_v57, %v8455_v31  ;;  %v1344_v63 = vmul.f32 %v8546_v16, %v8499_v27  ;;  %v1405_v59 = vadd.f32 %v1373_v14, %v8571_v52  ;;  %v11292_v38 = vld [vmem:[#allocation90_spill] sm:$0xff]  ;;  %v11293_v57 = vld [vmem:[#allocation72_spill] sm:$0xff]  ;;  %v11294_v14 = vld [vmem:[#allocation43_spill] sm:$0xff] }
 0x30b   :  { %v1407_v47 = vadd.f32 %v1375_v21, %v8589_v54  ;;  %v1404_v29 = vadd.f32 %v1372_v5, %v8568_v3  ;;  %v1441_v36 = vmul.f32 0.7978846, %v1409_v11  ;;  %v1406_v24 = vadd.f32 %v1374_v13, %v8586_v18  ;;  %v908_v46 = vpop.permute.xlu1 %907  ;;  %v11295_v21 = vld [vmem:[#allocation122_spill] sm:$0xff]  ;;  %v11296_v11 = vld [vmem:[#allocation120_spill] sm:$0xff] }
 0x30c   :  { %1761 = vmatpush1.bf16.msra.mxu0 %v1600_v12  ;;  %v1603_v32 = vpack.c.bf16 %v8521_v53, %v1561_v35  ;;  %v1376_v2 = vmul.f32 0.044715, %v1344_v63  ;;  %5548 = vtanh.f32 %v8551_v33  ;;  %v960_v31 = vmul.f32 %v7308_v28, %v904_v10  ;;  %5043 = vperm.xlu0 %5452, %v11291_v62   ;;  %v11297_v12 = vld [vmem:[#allocation30_spill] sm:$0xff]  ;;  %v11298_v63 = vld [vmem:[#allocation91_spill] sm:$0xff] }
 0x30d   :  { %v961_v16 = vmul.f32 %v7318_v19, %v904_v10  ;;  %v1437_v50 = vmul.f32 0.7978846, %v1405_v59  ;;  %v1439_v37 = vmul.f32 0.7978846, %v1407_v47  ;;  %3487 = vperm.xlu1 %5453, %v8462_v0   ;;  %v1436_v26 = vmul.f32 0.7978846, %v1404_v29 }
 0x30e   :  { %v5547_v40 = vpop.eup %5546  ;;  %1762 = vmatprep.subr.bf16.mxu0 %v1603_v32  ;;  %v1438_v53 = vmul.f32 0.7978846, %v1406_v24  ;;  %5550 = vtanh.f32 %v1441_v36  ;;  %v1408_v51 = vadd.f32 %v1376_v2, %v8499_v27  ;;  %v8655_v7 = vadd.f32 %v960_v31, %v846_v9  ;;  %v11299_v47 = vld [vmem:[#allocation92_spill] sm:$0xff]  ;;  %v11300_v36 = vld [vmem:[#allocation21_spill] sm:$0xff] }
 0x30f   :  { %v1496_v34 = vadd.f32 1.0, %v5547_v40  ;;  %v8657_v33 = vadd.f32 %v961_v16, %v847_v49  ;;  %5552 = vtanh.f32 %v1437_v50  ;;  %v8660_v48 = vmul.f32 %v11050_v15, %v904_v10  ;;  %v11302_v16 = vld [vmem:[#allocation51_spill] sm:$0xff]  ;;  %v11303_v50 = vld [vmem:[#allocation62_spill] sm:$0xff]  ;;  %v11304_v40 = vld [vmem:[#allocation101_spill] sm:$0xff] }
 0x310   :  { %5554 = vtanh.f32 %v1439_v37  ;;  %v1440_v39 = vmul.f32 0.7978846, %v1408_v51  ;;  %v8663_v25 = vmul.f32 %v11051_v44, %v904_v10  ;;  %v962_v23 = vmul.f32 %v7308_v28, %v908_v46  ;;  %5053 = vperm.xlu0 %5452, %v11292_v38   ;;  %v11301_v10 = vld [vmem:[#allocation108_spill] sm:$0xff] }
 0x311   :  { %v1528_v0 = vmul.f32 0.5, %v1496_v34  ;;  %v963_v17 = vmul.f32 %v7318_v19, %v908_v46  ;;  %v2917_v9 = vmul.f32 %v11050_v15, %v908_v46  ;;  %v2918_v49 = vmul.f32 %v11051_v44, %v908_v46  ;;  %3497 = vperm.xlu1 %5453, %v11293_v57   ;;  %v11307_v34 = vld [vmem:[#allocation67_spill] sm:$0xff]  ;;  %v1192_v46 = vpop.permute.xlu1 %1191 }
 0x312   :  { %5556 = vtanh.f32 %v1436_v26  ;;  %v3221_v5 = vadd.f32 %v11295_v21, %v11294_v14  ;;  %v3162_v35 = vmul.f32 %v11297_v12, %v11296_v11  ;;  %v994_v59 = vadd.f32 %v962_v23, %v11298_v63  ;;  %v11308_v23 = vld [vmem:[#allocation25_spill] sm:$0xff]  ;;  %v11311_v21 = vld [vmem:[#allocation79_spill] sm:$0xff]  ;;  %v11312_v12 = vld [vmem:[#allocation84_spill] sm:$0xff] }
 0x313   :  { %v1560_v13 = vmul.f32 %v1528_v0, %v8452_v56  ;;  %v995_v29 = vadd.f32 %v963_v17, %v11299_v47  ;;  %v2949_v32 = vadd.f32 %v2917_v9, %v11300_v36  ;;  %v2950_v24 = vadd.f32 %v2918_v49, %v11301_v10  ;;  %v11305_v56 = vld [vmem:[#allocation102_spill] sm:$0xff]  ;;  %v11310_v49 = vld [vmem:[#allocation52_spill] sm:$0xff] }
 0x314   :  { %5558 = vtanh.f32 %v1438_v53  ;;  %v8680_v2 = vmul.f32 0.7978846, %v3221_v5  ;;  %v8682_v31 = vmul.f32 0.044715, %v3162_v35  ;;  %v1140_v37 = vadd.f32 %v11303_v50, %v994_v59  ;;  %5063 = vperm.xlu0 %5452, %v11307_v34  }
 0x315   :  { %v1602_v62 = vpack.c.bf16 %v11302_v16, %v1560_v13  ;;  %v1141_v26 = vadd.f32 %v11304_v40, %v995_v29  ;;  %v8688_v51 = vadd.f32 %v11305_v56, %v2949_v32  ;;  %v8692_v17 = vadd.f32 %v11308_v23, %v2950_v24  ;;  %3507 = vperm.xlu1 %5453, %v11310_v49   ;;  %v11315_v32 = vld [vmem:[#allocation111_spill] sm:$0xff] }
 0x316   :  { %v5549_v0 = vpop.eup %5548  ;;  %v1250_v53 = vmul.f32 %v11278_v20, %v1192_v46  ;;  %v1251_v9 = vmul.f32 %v11279_v22, %v1192_v46  ;;  %v3077_v38 = vmul.f32 %v11280_v45, %v1192_v46  ;;  %v3078_v57 = vmul.f32 %v11282_v42, %v1192_v46 }
 0x317   :  { %11306 = vst [vmem:[#allocation76_spill] sm:$0xff] %v8688_v51  ;;  %11309 = vst [vmem:[#allocation44_spill] sm:$0xff] %v8692_v17  ;;  %1763 = vmatpush1.bf16.msra.mxu0 %v1602_v62  ;;  %5560 = vtanh.f32 %v1440_v39  ;;  %v8700_v5 = vadd.f32 %v11311_v21, %v1141_v26  ;;  %v8703_v35 = vadd.f32 %v11312_v12, %v1140_v37  ;;  %v3318_v29 = vadd.f32 1.0, %v5549_v0  ;;  %v1050_v62 = vpop.permute.xlu1 %1049 }
 0x318   :  { %v5551_v13 = vpop.eup %5550  ;;  %v8706_v63 = vadd.f32 %v1250_v53, %v8616_v43  ;;  %v8709_v59 = vadd.f32 %v1251_v9, %v8619_v4  ;;  %v8712_v47 = vadd.f32 %v3077_v38, %v8622_v8  ;;  %v8715_v39 = vadd.f32 %v3078_v57, %v8625_v61  ;;  %5073 = vperm.xlu0 %5452, %v11315_v32   ;;  %v11316_v4 = vld [vmem:[#allocation124_spill] sm:$0xff] }
 0x319   :  { %v5553_v36 = vpop.eup %5552  ;;  %v1505_v10 = vadd.f32 1.0, %v5551_v13  ;;  %v1319_v24 = vmul.f32 %v8700_v5, %v8700_v5  ;;  %v1318_v43 = vmul.f32 %v8703_v35, %v8703_v35  ;;  %3517 = vperm.xlu1 %5453, %v11316_v4   ;;  %v3350_v37 = vmul.f32 0.5, %v3318_v29 }
 0x31a   :  { %11313 = vst [vmem:[#allocation45_spill] sm:$0xff] %v8712_v47  ;;  %11314 = vst [vmem:[#allocation14_spill] sm:$0xff] %v8715_v39  ;;  %v5555_v16 = vpop.eup %5554  ;;  %v1501_v8 = vadd.f32 1.0, %v5553_v36  ;;  %v1315_v50 = vmul.f32 %v8709_v59, %v8709_v59  ;;  %v1314_v61 = vmul.f32 %v8706_v63, %v8706_v63  ;;  %v1106_v40 = vmul.f32 %v11287_v41, %v1050_v62 }
 0x31b   :  { %v1107_v26 = vmul.f32 %v11288_v60, %v1050_v62  ;;  %v8730_v56 = vmul.f32 %v11289_v6, %v1050_v62  ;;  %v8733_v34 = vmul.f32 %v11290_v55, %v1050_v62  ;;  %v1503_v0 = vadd.f32 1.0, %v5555_v16 }
 0x31c   :  { %v5557_v46 = vpop.eup %5556  ;;  %v1533_v23 = vmul.f32 0.5, %v1501_v8  ;;  %v1347_v53 = vmul.f32 %v1315_v50, %v8709_v59  ;;  %v1537_v9 = vmul.f32 0.5, %v1505_v10  ;;  %v8737_v38 = vadd.f32 %v1106_v40, %v8655_v7  ;;  %v815_v10 = vpop.permute.xlu1 %814  ;;  %v11317_v8 = vld [vmem:[#allocation109_spill] sm:$0xff]  ;;  %v11318_v50 = vld [vmem:[#allocation38_spill] sm:$0xff] }
 0x31d   :  { %v8740_v49 = vadd.f32 %v1107_v26, %v8657_v33  ;;  %v1500_v57 = vadd.f32 1.0, %v5557_v46  ;;  %v1346_v21 = vmul.f32 %v1314_v61, %v8706_v63  ;;  %3527 = vperm.xlu1 %5453, %v8564_v1   ;;  %v1535_v13 = vmul.f32 0.5, %v1503_v0  ;;  %v8751_v33 = vld [vmem:[%s10699_s11] sm:$0xff] }
 0x31e   :  { %v5559_v12 = vpop.eup %5558  ;;  %v1565_v29 = vmul.f32 %v1533_v23, %v8571_v52  ;;  %v1379_v36 = vmul.f32 0.044715, %v1347_v53  ;;  %v8746_v32 = vmul.f32 %v1537_v9, %v8502_v58  ;;  %v1351_v62 = vmul.f32 %v1319_v24, %v8700_v5  ;;  %v11319_v53 = vld [vmem:[#allocation55_spill] sm:$0xff] }
 0x31f   :  { %v1502_v16 = vadd.f32 1.0, %v5559_v12  ;;  %v1532_v7 = vmul.f32 0.5, %v1500_v57  ;;  %v1378_v4 = vmul.f32 0.044715, %v1346_v21  ;;  %v850_v1 = vadd.f32 %v815_v10, %v11317_v8  ;;  %v11320_v57 = vld [vmem:[#allocation75_spill] sm:$0xff] }
 0x320   :  { %v851_v61 = vadd.f32 %v815_v10, %v11318_v50  ;;  %v1567_v52 = vmul.f32 %v1535_v13, %v8589_v54  ;;  %v1411_v58 = vadd.f32 %v1379_v36, %v8709_v59  ;;  %v1383_v23 = vmul.f32 0.044715, %v1351_v62  ;;  %v820_v13 = vpop.permute.xlu1 %819  ;;  %v11322_v62 = vld [vmem:[#allocation139_spill] sm:$0xff] }
 0x321   :  { %v5561_v40 = vpop.eup %5560  ;;  %v1534_v26 = vmul.f32 0.5, %v1502_v16  ;;  %v1564_v46 = vmul.f32 %v1532_v7, %v8568_v3  ;;  %v1410_v0 = vadd.f32 %v1378_v4, %v8706_v63  ;;  %v8761_v9 = vadd.f32 %v11319_v53, %v850_v1  ;;  %4066 = vperm.xlu1 %5453, %v8751_v33   ;;  %v8771_v3 = vld [vmem:[%s10699_s11 + $0x10] sm:$0xff]  ;;  %v11321_v7 = vld [vmem:[#allocation138_spill] sm:$0xff]  ;;  %v11328_v53 = vld [vmem:[#allocation141_spill] sm:$0xff] }
 0x322   :  { %v8764_v24 = vadd.f32 %v11320_v57, %v851_v61  ;;  %v1605_v21 = vpack.c.bf16 %v1567_v52, %v1565_v29  ;;  %v1443_v12 = vmul.f32 0.7978846, %v1411_v58  ;;  %v1504_v10 = vadd.f32 1.0, %v5561_v40  ;;  %v11323_v52 = vld [vmem:[#allocation19_spill] sm:$0xff] }
 0x323   :  { %v1566_v54 = vmul.f32 %v1534_v26, %v8586_v18  ;;  %v1442_v36 = vmul.f32 0.7978846, %v1410_v0  ;;  %v1415_v16 = vadd.f32 %v1383_v23, %v8700_v5  ;;  %v852_v4 = vadd.f32 %v820_v13, %v11321_v7  ;;  %v11326_v0 = vld [vmem:[#allocation54_spill] sm:$0xff] }
 0x324   :  { %1764 = vmatprep.subr.bf16.mxu0 %v1605_v21  ;;  %v853_v29 = vadd.f32 %v820_v13, %v11322_v62  ;;  %5562 = vtanh.f32 %v1443_v12  ;;  %v1350_v8 = vmul.f32 %v1318_v43, %v8703_v35  ;;  %v1536_v18 = vmul.f32 0.5, %v1504_v10  ;;  %v8787_v43 = vld [vmem:[%s10699_s11 + $0x20] sm:$0xff]  ;;  %v11329_v12 = vld [vmem:[#allocation10_spill] sm:$0xff] }
 0x325   :  { %v1604_v1 = vpack.c.bf16 %v1566_v54, %v1564_v46  ;;  %5564 = vtanh.f32 %v1442_v36  ;;  %v1447_v50 = vmul.f32 0.7978846, %v1415_v16  ;;  %4076 = vperm.xlu1 %5453, %v8771_v3   ;;  %v8779_v58 = vmul.f32 %v3350_v37, %v11323_v52  ;;  %v11325_v46 = vld [vmem:[#allocation121_spill] sm:$0xff]  ;;  %v11327_v37 = vld [vmem:[#allocation34_spill] sm:$0xff]  ;;  %v11330_v54 = vld [vmem:[#allocation140_spill] sm:$0xff] }
 0x326   :  { %v1382_v61 = vmul.f32 0.044715, %v1350_v8  ;;  %5566 = vtanh.f32 %v8680_v2  ;;  %v3226_v40 = vadd.f32 %v8682_v31, %v11296_v11  ;;  %v8790_v26 = vmul.f32 %v1536_v18, %v8499_v27  ;;  %v916_v2 = vpop.permute.xlu1 %915 }
 0x327   :  { %11324 = vst [vmem:[#allocation110_spill] sm:$0xff] %v8779_v58  ;;  %1765 = vmatpush1.bf16.msra.mxu0 %v1604_v1  ;;  %5568 = vtanh.f32 %v1447_v50  ;;  %v3161_v23 = vmul.f32 %v11326_v0, %v11325_v46  ;;  %v8796_v57 = vadd.f32 %v11328_v53, %v11327_v37  ;;  %v8801_v13 = vadd.f32 %v11330_v54, %v11329_v12 }
 0x328   :  { %v1414_v31 = vadd.f32 %v1382_v61, %v8703_v35  ;;  %v3258_v21 = vmul.f32 0.7978846, %v3226_v40  ;;  %v3138_v27 = vmul.f32 %v8595_v30, %v8595_v30  ;;  %v966_v36 = vmul.f32 %v7308_v28, %v916_v2  ;;  %v11331_v61 = vld [vmem:[#allocation80_spill] sm:$0xff] }
 0x329   :  { %v967_v10 = vmul.f32 %v7318_v19, %v916_v2  ;;  %v2921_v16 = vmul.f32 %v11050_v15, %v916_v2  ;;  %v2922_v7 = vmul.f32 %v11051_v44, %v916_v2  ;;  %4086 = vperm.xlu1 %5453, %v8787_v43   ;;  %v3193_v8 = vmul.f32 0.044715, %v3161_v23  ;;  %v11332_v19 = vld [vmem:[#allocation41_spill] sm:$0xff]  ;;  %v8825_v44 = vld [vmem:[%s10699_s11 + $0x30] sm:$0xff] }
 0x32a   :  { %v1446_v62 = vmul.f32 0.7978846, %v1414_v31  ;;  %5570 = vtanh.f32 %v3258_v21  ;;  %v3134_v1 = vmul.f32 %v8796_v57, %v8796_v57  ;;  %v8812_v18 = vadd.f32 %v966_v36, %v852_v4  ;;  %v11333_v23 = vld [vmem:[#allocation123_spill] sm:$0xff] }
 0x32b   :  { %v8814_v50 = vadd.f32 %v967_v10, %v853_v29  ;;  %v8817_v28 = vadd.f32 %v2921_v16, %v11331_v61  ;;  %v8820_v52 = vadd.f32 %v2922_v7, %v11332_v19  ;;  %v3225_v15 = vadd.f32 %v3193_v8, %v11325_v46  ;;  %v1196_v29 = vpop.permute.xlu1 %1195  ;;  %v8856_v10 = vld [vmem:[%s10699_s11 + $0x40] sm:$0xff] }
 0x32c   :  { %5572 = vtanh.f32 %v1446_v62  ;;  %v3166_v40 = vmul.f32 %v3134_v1, %v8796_v57  ;;  %v3133_v4 = vmul.f32 %v8801_v13, %v8801_v13  ;;  %v3170_v0 = vmul.f32 %v3138_v27, %v8595_v30  ;;  %11336 = vst [vmem:[#allocation65_spill] sm:$0xff] %v8856_v10 }
 0x32d   :  { %v8834_v37 = vmul.f32 %v11333_v23, %v11333_v23  ;;  %v8838_v53 = vmul.f32 %v8715_v39, %v8715_v39  ;;  %v8842_v2 = vmul.f32 %v8712_v47, %v8712_v47  ;;  %v1252_v21 = vmul.f32 %v11278_v20, %v1196_v29  ;;  %4096 = vperm.xlu1 %5453, %v8825_v44  }
 0x32e   :  { %v5563_v31 = vpop.eup %5562  ;;  %v1253_v12 = vmul.f32 %v11279_v22, %v1196_v29  ;;  %v8847_v54 = vmul.f32 %v11280_v45, %v1196_v29  ;;  %v8850_v27 = vmul.f32 %v11282_v42, %v1196_v29  ;;  %v3257_v7 = vmul.f32 0.7978846, %v3225_v15 }
 0x32f   :  { %11334 = vst [vmem:[#allocation66_spill] sm:$0xff] %v8838_v53  ;;  %11335 = vst [vmem:[#allocation97_spill] sm:$0xff] %v8842_v2  ;;  %v5565_v36 = vpop.eup %5564  ;;  %v1507_v16 = vadd.f32 1.0, %v5563_v31  ;;  %v3198_v62 = vmul.f32 0.044715, %v3166_v40  ;;  %v8859_v8 = vmul.f32 %v3133_v4, %v8801_v13  ;;  %v8862_v61 = vadd.f32 %v1252_v21, %v8737_v38  ;;  %v1058_v40 = vpop.permute.xlu1 %1057 }
 0x330   :  { %v5567_v1 = vpop.eup %5566  ;;  %v8865_v19 = vadd.f32 %v1253_v12, %v8740_v49  ;;  %v1506_v29 = vadd.f32 1.0, %v5565_v36  ;;  %v8867_v51 = vmul.f32 0.044715, %v3170_v0  ;;  %5574 = vtanh.f32 %v3257_v7  ;;  %v8882_v12 = vld [vmem:[%s10699_s11 + $0x50] sm:$0xff] }
 0x331   :  { %v5569_v17 = vpop.eup %5568  ;;  %v1539_v2 = vmul.f32 0.5, %v1507_v16  ;;  %v3317_v47 = vadd.f32 1.0, %v5567_v1  ;;  %v8870_v15 = vadd.f32 %v3198_v62, %v8796_v57  ;;  %4106 = vperm.xlu1 %5453, %v8856_v10   ;;  %v1316_v49 = vmul.f32 %v8862_v61, %v8862_v61 }
 0x332   :  { %v1538_v4 = vmul.f32 0.5, %v1506_v29  ;;  %v1317_v38 = vmul.f32 %v8865_v19, %v8865_v19  ;;  %v1511_v31 = vadd.f32 1.0, %v5569_v17  ;;  %v1110_v0 = vmul.f32 %v11287_v41, %v1058_v40 }
 0x333   :  { %v1111_v21 = vmul.f32 %v11288_v60, %v1058_v40  ;;  %v1571_v36 = vmul.f32 %v1539_v2, %v8709_v59  ;;  %v8886_v16 = vmul.f32 %v11289_v6, %v1058_v40  ;;  %v1348_v29 = vmul.f32 %v1316_v49, %v8862_v61  ;;  %v1062_v39 = vpop.permute.xlu1 %1061  ;;  %v11337_v49 = vld [vmem:[#allocation81_spill] sm:$0xff] }
 0x334   :  { %v8888_v7 = vpop.eup %5570  ;;  %v1570_v17 = vmul.f32 %v1538_v4, %v8706_v63  ;;  %v1349_v62 = vmul.f32 %v1317_v38, %v8865_v19  ;;  %v1543_v1 = vmul.f32 0.5, %v1511_v31  ;;  %v1142_v10 = vadd.f32 %v1110_v0, %v8761_v9 }
 0x335   :  { %v1143_v58 = vadd.f32 %v1111_v21, %v8764_v24  ;;  %v1607_v53 = vpack.c.bf16 %v1571_v36, %v8746_v32  ;;  %v8897_v59 = vmul.f32 %v11290_v55, %v1058_v40  ;;  %4116 = vperm.xlu1 %5453, %v8882_v12   ;;  %v1380_v31 = vmul.f32 0.044715, %v1348_v29  ;;  %v11338_v24 = vld [vmem:[#allocation116_spill] sm:$0xff] }
 0x336   :  { %v5573_v2 = vpop.eup %5572  ;;  %v1606_v63 = vpack.c.bf16 %v1570_v17, %v8790_v26  ;;  %v1381_v4 = vmul.f32 0.044715, %v1349_v62  ;;  %v8902_v38 = vmul.f32 %v1543_v1, %v8700_v5  ;;  %v8905_v9 = vadd.f32 %v11337_v49, %v1142_v10  ;;  %v8915_v26 = vld [vmem:[%s10699_s11 + $0x60] sm:$0xff] }
 0x337   :  { %v8908_v0 = vadd.f32 %v11338_v24, %v1143_v58  ;;  %v1112_v32 = vmul.f32 %v11287_v41, %v1062_v39  ;;  %v1113_v40 = vmul.f32 %v11288_v60, %v1062_v39  ;;  %1766 = vmatprep.subr.bf16.mxu0 %v1607_v53  ;;  %v3003_v5 = vmul.f32 %v11289_v6, %v1062_v39  ;;  %v1208_v1 = vpop.permute.xlu1 %1207 }
 0x338   :  { %v3004_v21 = vmul.f32 %v11290_v55, %v1062_v39  ;;  %1767 = vmatpush1.bf16.msra.mxu0 %v1606_v63  ;;  %v1413_v10 = vadd.f32 %v1381_v4, %v8865_v19  ;;  %v1412_v58 = vadd.f32 %v1380_v31, %v8862_v61  ;;  %v1510_v60 = vadd.f32 1.0, %v5573_v2 }
 0x339   :  { %v1144_v36 = vadd.f32 %v1112_v32, %v8812_v18  ;;  %v1145_v41 = vadd.f32 %v1113_v40, %v8814_v50  ;;  %v1321_v53 = vmul.f32 %v8908_v0, %v8908_v0  ;;  %v3035_v17 = vadd.f32 %v3003_v5, %v8817_v28  ;;  %4126 = vperm.xlu1 %5453, %v8915_v26   ;;  %v4062_v18 = vld [vmem:[%s10699_s11 + $0x70] sm:$0xff] }
 0x33a   :  { %v3036_v62 = vadd.f32 %v3004_v21, %v8820_v52  ;;  %v1445_v6 = vmul.f32 0.7978846, %v1413_v10  ;;  %v1444_v55 = vmul.f32 0.7978846, %v1412_v58  ;;  %v5575_v39 = vpop.eup %5574  ;;  %v1542_v29 = vmul.f32 0.5, %v1510_v60  ;;  %v11339_v60 = vld [vmem:[#allocation145_spill] sm:$0xff] }
 0x33b   :  { %v1353_v50 = vmul.f32 %v1321_v53, %v8908_v0  ;;  %v1320_v2 = vmul.f32 %v8905_v9, %v8905_v9  ;;  %v3349_v63 = vmul.f32 0.5, %v3317_v47  ;;  %v1258_v28 = vmul.f32 %v11278_v20, %v1208_v1 }
 0x33c   :  { %v1259_v52 = vmul.f32 %v11279_v22, %v1208_v1  ;;  %v3085_v4 = vmul.f32 %v11280_v45, %v1208_v1  ;;  %v3086_v31 = vmul.f32 %v11282_v42, %v1208_v1  ;;  %5576 = vtanh.f32 %v1445_v6  ;;  %v4353_v42 = vld [vmem:[%s10699_s11 + $0x80] sm:$0xff] }
 0x33d   :  { %v8939_v49 = vmul.f32 %v1542_v29, %v8703_v35  ;;  %v1385_v24 = vmul.f32 0.044715, %v1353_v50  ;;  %v1352_v32 = vmul.f32 %v1320_v2, %v8905_v9  ;;  %v8942_v40 = vadd.f32 %v1258_v28, %v1144_v36  ;;  %4136 = vperm.xlu1 %5453, %v4062_v18   ;;  %v11341_v50 = vld [vmem:[#allocation147_spill] sm:$0xff] }
 0x33e   :  { %v8944_v5 = vadd.f32 %v1259_v52, %v1145_v41  ;;  %v8946_v47 = vadd.f32 %v3085_v4, %v3035_v17  ;;  %v8948_v20 = vadd.f32 %v3086_v31, %v3036_v62  ;;  %5578 = vtanh.f32 %v1444_v55  ;;  %v11340_v17 = vld [vmem:[#allocation146_spill] sm:$0xff] }
 0x33f   :  { %v1417_v22 = vadd.f32 %v1385_v24, %v8908_v0  ;;  %v1384_v45 = vmul.f32 0.044715, %v1352_v32  ;;  %v8955_v35 = vmul.f32 %v3349_v63, %v11294_v14  ;;  %v1322_v58 = vmul.f32 %v8942_v40, %v8942_v40  ;;  %v11342_v63 = vld [vmem:[#allocation148_spill] sm:$0xff] }
 0x340   :  { %v2769_v21 = vpop.permute.xlu1 %2768  ;;  %v1323_v10 = vmul.f32 %v8944_v5, %v8944_v5  ;;  %v3322_v36 = vadd.f32 1.0, %v8888_v7  ;;  %v3321_v41 = vadd.f32 1.0, %v5575_v39  ;;  %v4355_v7 = vld [vmem:[%s10699_s11 + $0x90] sm:$0xff] }
 0x341   :  { %v2843_v53 = vadd.f32 %v2769_v21, %v11339_v60  ;;  %v2844_v62 = vadd.f32 %v2769_v21, %v11340_v17  ;;  %v1449_v6 = vmul.f32 0.7978846, %v1417_v22  ;;  %v1416_v55 = vadd.f32 %v1384_v45, %v8905_v9  ;;  %4371 = vperm.xlu1 %5453, %v4353_v42   ;;  %v11343_v42 = vld [vmem:[#allocation47_spill] sm:$0xff]  ;;  %v11344_v45 = vld [vmem:[#allocation49_spill] sm:$0xff] }
 0x342   :  { %v1355_v14 = vmul.f32 %v1323_v10, %v8944_v5  ;;  %v1354_v1 = vmul.f32 %v1322_v58, %v8942_v40  ;;  %v3354_v18 = vmul.f32 0.5, %v3322_v36  ;;  %v3353_v29 = vmul.f32 0.5, %v3321_v41  ;;  %v11345_v10 = vld [vmem:[#allocation149_spill] sm:$0xff]  ;;  %v11346_v36 = vld [vmem:[#allocation150_spill] sm:$0xff] }
 0x343   :  { %v2925_v2 = vadd.f32 %v11341_v50, %v2843_v53  ;;  %v2926_v28 = vadd.f32 %v11342_v63, %v2844_v62  ;;  %5580 = vtanh.f32 %v1449_v6  ;;  %v1448_v39 = vmul.f32 0.7978846, %v1416_v55  ;;  %v11347_v62 = vld [vmem:[#allocation68_spill] sm:$0xff]  ;;  %v11348_v6 = vld [vmem:[#allocation29_spill] sm:$0xff] }
 0x344   :  { %v2774_v52 = vpop.permute.xlu1 %2773  ;;  %v1387_v4 = vmul.f32 0.044715, %v1355_v14  ;;  %v1386_v31 = vmul.f32 0.044715, %v1354_v1  ;;  %v8973_v24 = vmul.f32 %v3354_v18, %v11296_v11  ;;  %v8976_v32 = vmul.f32 %v3353_v29, %v11325_v46  ;;  %v11349_v14 = vld [vmem:[#allocation151_spill] sm:$0xff]  ;;  %v11350_v18 = vld [vmem:[#allocation152_spill] sm:$0xff] }
 0x345   :  { %v3007_v22 = vadd.f32 %v11343_v42, %v2925_v2  ;;  %v3008_v21 = vadd.f32 %v11344_v45, %v2926_v28  ;;  %v2845_v58 = vadd.f32 %v2774_v52, %v11345_v10  ;;  %v2846_v41 = vadd.f32 %v2774_v52, %v11346_v36  ;;  %4381 = vperm.xlu1 %5453, %v4355_v7   ;;  %v4357_v50 = vld [vmem:[%s10699_s11 + $0xa0] sm:$0xff]  ;;  %v11354_v45 = vld [vmem:[#allocation158_spill] sm:$0xff] }
 0x346   :  { %v1419_v60 = vadd.f32 %v1387_v4, %v8944_v5  ;;  %v1418_v53 = vadd.f32 %v1386_v31, %v8942_v40  ;;  %5582 = vtanh.f32 %v1448_v39  ;;  %v3262_v11 = vmul.f32 0.7978846, %v8870_v15  ;;  %v5577_v17 = vpop.eup %5576  ;;  %v11351_v39 = vld [vmem:[#allocation94_spill] sm:$0xff]  ;;  %v11352_v4 = vld [vmem:[#allocation95_spill] sm:$0xff]  ;;  %v11353_v42 = vld [vmem:[#allocation157_spill] sm:$0xff] }
 0x347   :  { %v8986_v46 = vadd.f32 %v11347_v62, %v3007_v22  ;;  %v8989_v55 = vadd.f32 %v11348_v6, %v3008_v21  ;;  %v2927_v1 = vadd.f32 %v11349_v14, %v2845_v58  ;;  %v2928_v29 = vadd.f32 %v11350_v18, %v2846_v41  ;;  %v11355_v41 = vld [vmem:[#allocation104_spill] sm:$0xff] }
 0x348   :  { %v2784_v2 = vpop.permute.xlu1 %2783  ;;  %v1509_v63 = vadd.f32 1.0, %v5577_v17  ;;  %v1451_v28 = vmul.f32 0.7978846, %v1419_v60  ;;  %v1450_v7 = vmul.f32 0.7978846, %v1418_v53  ;;  %5584 = vtanh.f32 %v3262_v11  ;;  %v5579_v15 = vpop.eup %5578  ;;  %v11356_v53 = vld [vmem:[#allocation105_spill] sm:$0xff] }
 0x349   :  { %v3009_v52 = vadd.f32 %v11351_v39, %v2927_v1  ;;  %v3010_v31 = vadd.f32 %v11352_v4, %v2928_v29  ;;  %v2849_v22 = vadd.f32 %v2784_v2, %v11353_v42  ;;  %v2850_v21 = vadd.f32 %v2784_v2, %v11354_v45  ;;  %4391 = vperm.xlu1 %5453, %v4357_v50   ;;  %v11357_v17 = vld [vmem:[#allocation127_spill] sm:$0xff]  ;;  %v11358_v6 = vld [vmem:[#allocation128_spill] sm:$0xff]  ;;  %v11360_v39 = vld [vmem:[#allocation26_spill] sm:$0xff] }
 0x34a   :  { %v1541_v10 = vmul.f32 0.5, %v1509_v63  ;;  %v1508_v58 = vadd.f32 1.0, %v5579_v15  ;;  %5586 = vtanh.f32 %v1451_v28  ;;  %v3122_v36 = vmul.f32 %v8989_v55, %v8989_v55  ;;  %v4359_v1 = vld [vmem:[%s10699_s11 + $0xb0] sm:$0xff]  ;;  %v11359_v28 = vld [vmem:[#allocation48_spill] sm:$0xff]  ;;  %v11361_v4 = vld [vmem:[#allocation57_spill] sm:$0xff] }
 0x34b   :  { %v9003_v60 = vadd.f32 %v11355_v41, %v3009_v52  ;;  %v9006_v11 = vadd.f32 %v11356_v53, %v3010_v31  ;;  %v2931_v62 = vadd.f32 %v11357_v17, %v2849_v22  ;;  %v2932_v14 = vadd.f32 %v11358_v6, %v2850_v21  ;;  %v11362_v42 = vld [vmem:[#allocation42_spill] sm:$0xff]  ;;  %v11365_v53 = vld [vmem:[#allocation132_spill] sm:$0xff] }
 0x34c   :  { %v2794_v18 = vpop.permute.xlu1 %2793  ;;  %v1573_v29 = vmul.f32 %v1541_v10, %v8865_v19  ;;  %v1540_v50 = vmul.f32 0.5, %v1508_v58  ;;  %5588 = vtanh.f32 %v1450_v7  ;;  %v3154_v2 = vmul.f32 %v3122_v36, %v8989_v55  ;;  %v11363_v10 = vld [vmem:[#allocation106_spill] sm:$0xff]  ;;  %v11364_v58 = vld [vmem:[#allocation107_spill] sm:$0xff] }
 0x34d   :  { %v5581_v63 = vpop.eup %5580  ;;  %v3013_v15 = vadd.f32 %v11359_v28, %v2931_v62  ;;  %v3014_v52 = vadd.f32 %v11360_v39, %v2932_v14  ;;  %v2853_v31 = vadd.f32 %v2794_v18, %v11361_v4  ;;  %v2854_v22 = vadd.f32 %v2794_v18, %v11362_v42  ;;  %4401 = vperm.xlu1 %5453, %v4359_v1   ;;  %v11366_v62 = vld [vmem:[#allocation133_spill] sm:$0xff]  ;;  %v11368_v28 = vld [vmem:[#allocation83_spill] sm:$0xff]  ;;  %v11369_v39 = vld [vmem:[#allocation46_spill] sm:$0xff] }
 0x34e   :  { %v1609_v45 = vpack.c.bf16 %v8902_v38, %v1573_v29  ;;  %v1572_v21 = vmul.f32 %v1540_v50, %v8862_v61  ;;  %v1513_v41 = vadd.f32 1.0, %v5581_v63  ;;  %v3186_v19 = vmul.f32 0.044715, %v3154_v2  ;;  %v4361_v14 = vld [vmem:[%s10699_s11 + $0xc0] sm:$0xff]  ;;  %v11367_v2 = vld [vmem:[#allocation96_spill] sm:$0xff] }
 0x34f   :  { %v9022_v7 = vadd.f32 %v11363_v10, %v3013_v15  ;;  %v9025_v36 = vadd.f32 %v11364_v58, %v3014_v52  ;;  %v2935_v17 = vadd.f32 %v11365_v53, %v2853_v31  ;;  %v2936_v6 = vadd.f32 %v11366_v62, %v2854_v22  ;;  %v11370_v4 = vld [vmem:[#allocation37_spill] sm:$0xff]  ;;  %v11372_v10 = vld [vmem:[#allocation136_spill] sm:$0xff]  ;;  %v11374_v62 = vld [vmem:[#allocation154_spill] sm:$0xff] }
 0x350   :  { %v5583_v1 = vpop.eup %5582  ;;  %1768 = vmatprep.subr.bf16.mxu0 %v1609_v45  ;;  %v2804_v38 = vpop.permute.xlu1 %2803  ;;  %v1608_v61 = vpack.c.bf16 %v8939_v49, %v1572_v21  ;;  %v1545_v18 = vmul.f32 0.5, %v1513_v41  ;;  %v3218_v29 = vadd.f32 %v3186_v19, %v8989_v55  ;;  %v3121_v50 = vmul.f32 %v8986_v46, %v8986_v46  ;;  %v11371_v41 = vld [vmem:[#allocation135_spill] sm:$0xff]  ;;  %v11373_v53 = vld [vmem:[#allocation153_spill] sm:$0xff] }
 0x351   :  { %v3017_v63 = vadd.f32 %v11367_v2, %v2935_v17  ;;  %v3018_v15 = vadd.f32 %v11368_v28, %v2936_v6  ;;  %v2857_v52 = vadd.f32 %v2804_v38, %v11369_v39  ;;  %v2858_v31 = vadd.f32 %v2804_v38, %v11370_v4  ;;  %4411 = vperm.xlu1 %5453, %v4361_v14   ;;  %v9055_v14 = vld [vmem:[%s10699_s11 + $0xd0] sm:$0xff]  ;;  %v11377_v2 = vld [vmem:[#allocation142_spill] sm:$0xff]  ;;  %v11378_v28 = vld [vmem:[#allocation85_spill] sm:$0xff] }
 0x352   :  { %v9040_v42 = vpop.eup %5584  ;;  %1769 = vmatpush1.bf16.msra.mxu0 %v1608_v61  ;;  %v1577_v49 = vmul.f32 %v1545_v18, %v8908_v0  ;;  %v1512_v22 = vadd.f32 1.0, %v5583_v1  ;;  %v3250_v45 = vmul.f32 0.7978846, %v3218_v29  ;;  %v3153_v21 = vmul.f32 %v3121_v50, %v8986_v46  ;;  %11375 = vst [vmem:[#allocation130_spill] sm:$0xff] %v9055_v14  ;;  %v11376_v29 = vld [vmem:[#allocation13_spill] sm:$0xff]  ;;  %v11379_v39 = vld [vmem:[#allocation58_spill] sm:$0xff] }
 0x353   :  { %v9045_v19 = vadd.f32 %v11371_v41, %v3017_v63  ;;  %v9048_v58 = vadd.f32 %v11372_v10, %v3018_v15  ;;  %v2939_v17 = vadd.f32 %v11373_v53, %v2857_v52  ;;  %v2940_v6 = vadd.f32 %v11374_v62, %v2858_v31  ;;  %v11381_v53 = vld [vmem:[#allocation88_spill] sm:$0xff]  ;;  %v11382_v62 = vld [vmem:[#allocation155_spill] sm:$0xff] }
 0x354   :  { %v5587_v0 = vpop.eup %5586  ;;  %v2814_v1 = vpop.permute.xlu1 %2813  ;;  %v1544_v38 = vmul.f32 0.5, %v1512_v22  ;;  %5590 = vtanh.f32 %v3250_v45  ;;  %v3185_v61 = vmul.f32 0.044715, %v3153_v21  ;;  %v3124_v18 = vmul.f32 %v9006_v11, %v9006_v11  ;;  %v11380_v21 = vld [vmem:[#allocation63_spill] sm:$0xff] }
 0x355   :  { %v3021_v50 = vadd.f32 %v11376_v29, %v2939_v17  ;;  %v3022_v63 = vadd.f32 %v11377_v2, %v2940_v6  ;;  %v2861_v15 = vadd.f32 %v2814_v1, %v11378_v28  ;;  %v2862_v52 = vadd.f32 %v2814_v1, %v11379_v39  ;;  %4421 = vperm.xlu1 %5453, %v9055_v14   ;;  %v11383_v29 = vld [vmem:[#allocation156_spill] sm:$0xff]  ;;  %v11384_v28 = vld [vmem:[#allocation99_spill] sm:$0xff]  ;;  %v11387_v14 = vld [vmem:[#allocation69_spill] sm:$0xff] }
 0x356   :  { %v5589_v4 = vpop.eup %5588  ;;  %v1515_v31 = vadd.f32 1.0, %v5587_v0  ;;  %v1576_v41 = vmul.f32 %v1544_v38, %v8905_v9  ;;  %v3217_v22 = vadd.f32 %v3185_v61, %v8986_v46  ;;  %v3156_v45 = vmul.f32 %v3124_v18, %v9006_v11  ;;  %v9078_v0 = vld [vmem:[%s10699_s11 + $0xe0] sm:$0xff]  ;;  %v11385_v39 = vld [vmem:[#allocation100_spill] sm:$0xff] }
 0x357   :  { %v9068_v10 = vadd.f32 %v11380_v21, %v3021_v50  ;;  %v9071_v17 = vadd.f32 %v11381_v53, %v3022_v63  ;;  %v2943_v6 = vadd.f32 %v11382_v62, %v2861_v15  ;;  %v2944_v1 = vadd.f32 %v11383_v29, %v2862_v52  ;;  %v11386_v63 = vld [vmem:[#allocation11_spill] sm:$0xff] }
 0x358   :  { %v2824_v9 = vpop.permute.xlu1 %2823  ;;  %v1547_v38 = vmul.f32 0.5, %v1515_v31  ;;  %v1514_v61 = vadd.f32 1.0, %v5589_v4  ;;  %v3249_v2 = vmul.f32 0.7978846, %v3217_v22  ;;  %v3188_v18 = vmul.f32 0.044715, %v3156_v45 }
 0x359   :  { %v3025_v50 = vadd.f32 %v11384_v28, %v2943_v6  ;;  %v3026_v21 = vadd.f32 %v11385_v39, %v2944_v1  ;;  %v2865_v53 = vadd.f32 %v2824_v9, %v11386_v63  ;;  %v2866_v15 = vadd.f32 %v2824_v9, %v11387_v14  ;;  %4431 = vperm.xlu1 %5453, %v9078_v0   ;;  %v11388_v31 = vld [vmem:[#allocation53_spill] sm:$0xff]  ;;  %v11389_v22 = vld [vmem:[#allocation82_spill] sm:$0xff]  ;;  %v9098_v14 = vld [vmem:[%s10699_s11 + $0xf0] sm:$0xff] }
 0x35a   :  { %v1579_v52 = vmul.f32 %v1547_v38, %v8944_v5  ;;  %v1546_v62 = vmul.f32 0.5, %v1514_v61  ;;  %5592 = vtanh.f32 %v3249_v2  ;;  %v3220_v29 = vadd.f32 %v3188_v18, %v9006_v11 }
 0x35b   :  { %v9088_v4 = vadd.f32 %v11388_v31, %v3025_v50  ;;  %v9091_v45 = vadd.f32 %v11389_v22, %v3026_v21  ;;  %v2947_v6 = vadd.f32 %v8660_v48, %v2865_v53  ;;  %v2948_v1 = vadd.f32 %v8663_v25, %v2866_v15  ;;  %v11390_v48 = vld [vmem:[#allocation78_spill] sm:$0xff]  ;;  %v11391_v25 = vld [vmem:[#allocation112_spill] sm:$0xff] }
 0x35c   :  { %v2834_v5 = vpop.permute.xlu1 %2833  ;;  %v1611_v9 = vpack.c.bf16 %v1579_v52, %v1577_v49  ;;  %v1578_v38 = vmul.f32 %v1546_v62, %v8942_v40  ;;  %v3252_v61 = vmul.f32 0.7978846, %v3220_v29  ;;  %v3123_v2 = vmul.f32 %v9003_v60, %v9003_v60  ;;  %v11393_v52 = vld [vmem:[#allocation9_spill] sm:$0xff] }
 0x35d   :  { %v3029_v18 = vadd.f32 %v8730_v56, %v2947_v6  ;;  %v3030_v28 = vadd.f32 %v8733_v34, %v2948_v1  ;;  %v2869_v50 = vadd.f32 %v2834_v5, %v11390_v48  ;;  %v2870_v39 = vadd.f32 %v2834_v5, %v11391_v25  ;;  %4441 = vperm.xlu1 %5453, %v9098_v14   ;;  %v11392_v34 = vld [vmem:[#allocation56_spill] sm:$0xff]  ;;  %v11395_v48 = vld [vmem:[#allocation118_spill] sm:$0xff] }
 0x35e   :  { %v5591_v21 = vpop.eup %5590  ;;  %1770 = vmatprep.subr.bf16.mxu0 %v1611_v9  ;;  %v1610_v63 = vpack.c.bf16 %v1578_v38, %v1576_v41  ;;  %5594 = vtanh.f32 %v3252_v61  ;;  %v3155_v40 = vmul.f32 %v3123_v2, %v9003_v60  ;;  %v3128_v49 = vmul.f32 %v9025_v36, %v9025_v36  ;;  %v5454_v41 = vld [vmem:[%s10696_s8] sm:$0xff]  }
 0x35f   :  { %v9112_v53 = vadd.f32 %v8847_v54, %v3029_v18  ;;  %v9115_v56 = vadd.f32 %v8850_v27, %v3030_v28  ;;  %v2951_v15 = vadd.f32 %v11392_v34, %v2869_v50  ;;  %v2952_v62 = vadd.f32 %v11393_v52, %v2870_v39  ;;  %v11394_v18 = vld [vmem:[#allocation117_spill] sm:$0xff]  ;;  %v11397_v52 = vld [vmem:[#allocation143_spill] sm:$0xff] }
 0x360   :  { %1771 = vmatpush1.bf16.msra.mxu0 %v1610_v63  ;;  %v3314_v29 = vadd.f32 1.0, %v5591_v21  ;;  %v3187_v31 = vmul.f32 0.044715, %v3155_v40  ;;  %v3160_v22 = vmul.f32 %v3128_v49, %v9025_v36  ;;  %v3127_v54 = vmul.f32 %v9022_v7, %v9022_v7 }
 0x361   :  { %v3033_v6 = vadd.f32 %v8886_v16, %v2951_v15  ;;  %v3034_v27 = vadd.f32 %v8897_v59, %v2952_v62  ;;  %v3132_v1 = vmul.f32 %v9048_v58, %v9048_v58  ;;  %v3326_v5 = vadd.f32 1.0, %v9040_v42  ;;  %4692 = vperm.xlu1 %5453, %v8751_v33  }
 0x362   :  { %v3346_v9 = vmul.f32 0.5, %v3314_v29  ;;  %v3219_v38 = vadd.f32 %v3187_v31, %v9003_v60  ;;  %v3192_v61 = vmul.f32 0.044715, %v3160_v22  ;;  %v3159_v2 = vmul.f32 %v3127_v54, %v9022_v7  ;;  %v5455_v31 = vld [vmem:[%s10696_s8 + $0x8] sm:$0xff]  }
 0x363   :  { %v9134_v28 = vadd.f32 %v11394_v18, %v3033_v6  ;;  %v9137_v16 = vadd.f32 %v11395_v48, %v3034_v27  ;;  %1789 = vmatmul.mubr.bf16.vlgmr.msra.gmra.mrb[0].mxu0 %v5454_v41  ;;  %v3164_v59 = vmul.f32 %v3132_v1, %v9048_v58  ;;  %v3358_v50 = vmul.f32 0.5, %v3326_v5 }
 0x364   :  { %v5593_v25 = vpop.eup %5592  ;;  %v3378_v42 = vmul.f32 %v3346_v9, %v8989_v55  ;;  %v11396_v33 = vmov 0   ;;  %v3251_v39 = vmul.f32 0.7978846, %v3219_v38  ;;  %v3224_v21 = vadd.f32 %v3192_v61, %v9025_v36 }
 0x365   :  { %1798 = vmatprep.mubr.bf16.mxu0 %v11396_v33  ;;  %v3191_v63 = vmul.f32 0.044715, %v3159_v2  ;;  %v9145_v40 = vmul.f32 %v9134_v28, %v9134_v28  ;;  %v9149_v49 = vmul.f32 %v9137_v16, %v9137_v16  ;;  %v3313_v34 = vadd.f32 1.0, %v5593_v25  ;;  %4702 = vperm.xlu1 %5453, %v8771_v3  }
 0x366   :  { %v3196_v15 = vmul.f32 0.044715, %v3164_v59  ;;  %v3424_v55 = vpack.c.bf16 %v3378_v42, %v11397_v52  ;;  %5596 = vtanh.f32 %v3251_v39  ;;  %v3256_v62 = vmul.f32 0.7978846, %v3224_v21 }
 0x367   :  { %v3223_v41 = vadd.f32 %v3191_v63, %v9022_v7  ;;  %v3345_v29 = vmul.f32 0.5, %v3313_v34  ;;  %v9159_v54 = vmul.f32 %v3358_v50, %v8796_v57  ;;  %v3131_v6 = vmul.f32 %v9045_v19, %v9045_v19 }
 0x368   :  { %v3228_v22 = vadd.f32 %v3196_v15, %v9048_v58  ;;  %v5595_v3 = vpop.eup %5594  ;;  %3583 = vmatprep.subr.bf16.mxu1 %v3424_v55  ;;  %5598 = vtanh.f32 %v3256_v62  ;;  %v3197_v1 = vmul.f32 0.044715, %v8859_v8  ;;  %v3136_v5 = vmul.f32 %v9071_v17, %v9071_v17  ;;  %v11398_v8 = vld [vmem:[#allocation144_spill] sm:$0xff]  ;;  %v11399_v55 = vld [vmem:[#allocation14_spill] sm:$0xff] }
 0x369   :  { %v3255_v27 = vmul.f32 0.7978846, %v3223_v41  ;;  %v3377_v9 = vmul.f32 %v3345_v29, %v8986_v46  ;;  %v3316_v38 = vadd.f32 1.0, %v5595_v3  ;;  %v3163_v2 = vmul.f32 %v3131_v6, %v9045_v19  ;;  %4712 = vperm.xlu1 %5453, %v8787_v43   ;;  %v11400_v62 = vld [vmem:[#allocation66_spill] sm:$0xff] }
 0x36a   :  { %v3260_v61 = vmul.f32 0.7978846, %v3228_v22  ;;  %v3229_v57 = vadd.f32 %v3197_v1, %v8801_v13  ;;  %v3168_v18 = vmul.f32 %v3136_v5, %v9071_v17  ;;  %v3234_v48 = vadd.f32 %v8867_v51, %v8595_v30  ;;  %v11401_v29 = vld [vmem:[#allocation110_spill] sm:$0xff] }
 0x36b   :  { %5600 = vtanh.f32 %v3255_v27  ;;  %v3423_v59 = vpack.c.bf16 %v3377_v9, %v11398_v8  ;;  %1799 = vmatmul.mubr.bf16.gmra.mrb[4].mxu0 %v5455_v31  ;;  %v3348_v50 = vmul.f32 0.5, %v3316_v38  ;;  %v3195_v46 = vmul.f32 0.044715, %v3163_v2  ;;  %v5456_v31 = vld [vmem:[%s10696_s8 + $0x10] sm:$0xff]   ;;  %v11402_v2 = vld [vmem:[#allocation65_spill] sm:$0xff] }
 0x36c   :  { %5602 = vtanh.f32 %v3260_v61  ;;  %1808 = vmatprep.mubr.bf16.mxu0 %v11396_v33  ;;  %v3261_v25 = vmul.f32 0.7978846, %v3229_v57  ;;  %v3200_v42 = vmul.f32 0.044715, %v3168_v18  ;;  %v3266_v39 = vmul.f32 0.7978846, %v3234_v48 }
 0x36d   :  { %v3135_v43 = vmul.f32 %v9068_v10, %v9068_v10  ;;  %3584 = vmatpush1.bf16.msra.mxu1 %v3423_v59  ;;  %v3380_v21 = vmul.f32 %v3348_v50, %v9006_v11  ;;  %v3227_v63 = vadd.f32 %v3195_v46, %v9045_v19  ;;  %v3169_v51 = vmul.f32 %v8834_v37, %v11333_v23 }
 0x36e   :  { %v3140_v34 = vmul.f32 %v9091_v45, %v9091_v45  ;;  %4722 = vperm.xlu1 %5453, %v8825_v44   ;;  %5604 = vtanh.f32 %v3261_v25  ;;  %v3232_v15 = vadd.f32 %v3200_v42, %v9071_v17  ;;  %v3174_v41 = vmul.f32 %v11400_v62, %v11399_v55 }
 0x36f   :  { %v3167_v52 = vmul.f32 %v3135_v43, %v9068_v10  ;;  %v3426_v11 = vpack.c.bf16 %v11401_v29, %v3380_v21  ;;  %v3259_v37 = vmul.f32 0.7978846, %v3227_v63  ;;  %5606 = vtanh.f32 %v3266_v39  ;;  %v11403_v21 = vld [vmem:[#allocation45_spill] sm:$0xff] }
 0x370   :  { %v3201_v22 = vmul.f32 0.044715, %v3169_v51  ;;  %v5597_v6 = vpop.eup %5596  ;;  %v3264_v3 = vmul.f32 0.7978846, %v3232_v15  ;;  %v3172_v27 = vmul.f32 %v3140_v34, %v9091_v45  ;;  %v3206_v1 = vmul.f32 0.044715, %v3174_v41 }
 0x371   :  { %v3199_v44 = vmul.f32 0.044715, %v3167_v52  ;;  %3585 = vmatprep.subr.bf16.mxu1 %v3426_v11  ;;  %v3315_v5 = vadd.f32 1.0, %v5597_v6  ;;  %5608 = vtanh.f32 %v3259_v37  ;;  %v3139_v38 = vmul.f32 %v9088_v4, %v9088_v4  ;;  %v11404_v63 = vld [vmem:[#allocation97_spill] sm:$0xff]  ;;  %v5457_v6 = vld [vmem:[%s10696_s8 + $0x18] sm:$0xff]  }
 0x372   :  { %v3233_v9 = vadd.f32 %v3201_v22, %v11333_v23  ;;  %v5599_v61 = vpop.eup %5598  ;;  %4732 = vperm.xlu1 %5453, %v11402_v2   ;;  %5610 = vtanh.f32 %v3264_v3  ;;  %v3204_v18 = vmul.f32 0.044715, %v3172_v27  ;;  %v3238_v48 = vadd.f32 %v3206_v1, %v11399_v55 }
 0x373   :  { %v3231_v57 = vadd.f32 %v3199_v44, %v9068_v10  ;;  %v3347_v8 = vmul.f32 0.5, %v3315_v5  ;;  %v3320_v59 = vadd.f32 1.0, %v5599_v61  ;;  %1809 = vmatmul.mubr.bf16.gmra.mrb[8].mxu0 %v5456_v31  ;;  %v3171_v46 = vmul.f32 %v3139_v38, %v9088_v4 }
 0x374   :  { %v3265_v50 = vmul.f32 0.7978846, %v3233_v9  ;;  %1818 = vmatprep.mubr.bf16.mxu0 %v11396_v33  ;;  %v3236_v39 = vadd.f32 %v3204_v18, %v9091_v45  ;;  %v3270_v43 = vmul.f32 0.7978846, %v3238_v48  ;;  %v3173_v51 = vmul.f32 %v11404_v63, %v11403_v21  ;;  %v11406_v9 = vld [vmem:[#allocation114_spill] sm:$0xff] }
 0x375   :  { %v5601_v25 = vpop.eup %5600  ;;  %v3263_v42 = vmul.f32 0.7978846, %v3231_v57  ;;  %v3379_v15 = vmul.f32 %v3347_v8, %v9003_v60  ;;  %v3352_v52 = vmul.f32 0.5, %v3320_v59  ;;  %v3203_v11 = vmul.f32 0.044715, %v3171_v46 }
 0x376   :  { %v5603_v34 = vpop.eup %5602  ;;  %v3319_v62 = vadd.f32 1.0, %v5601_v25  ;;  %5612 = vtanh.f32 %v3265_v50  ;;  %4742 = vperm.xlu1 %5453, %v8882_v12   ;;  %v3268_v29 = vmul.f32 0.7978846, %v3236_v39  ;;  %v3205_v44 = vmul.f32 0.044715, %v3173_v51 }
 0x377   :  { %v3324_v41 = vadd.f32 1.0, %v5603_v34  ;;  %5614 = vtanh.f32 %v3263_v42  ;;  %v3425_v31 = vpack.c.bf16 %v8955_v35, %v3379_v15  ;;  %v3384_v37 = vmul.f32 %v3352_v52, %v9025_v36  ;;  %v11405_v36 = vld [vmem:[#allocation44_spill] sm:$0xff] }
 0x378   :  { %v3351_v22 = vmul.f32 0.5, %v3319_v62  ;;  %5616 = vtanh.f32 %v3270_v43  ;;  %v5605_v60 = vpop.eup %5604  ;;  %v3235_v27 = vadd.f32 %v3203_v11, %v9088_v4  ;;  %v9216_v38 = vadd.f32 %v11406_v9, %v11405_v36  ;;  %v11407_v62 = vld [vmem:[#allocation76_spill] sm:$0xff]  ;;  %v4980_v11 = vld [vmem:[%s10699_s11 + $0x80] sm:$0xff] }
 0x379   :  { %v3356_v3 = vmul.f32 0.5, %v3324_v41  ;;  %5618 = vtanh.f32 %v3268_v29  ;;  %v5607_v12 = vpop.eup %5606  ;;  %3586 = vmatpush1.bf16.msra.mxu1 %v3425_v31  ;;  %v3428_v1 = vpack.c.bf16 %v8973_v24, %v3384_v37  ;;  %v3325_v5 = vadd.f32 1.0, %v5605_v60  ;;  %v11408_v41 = vld [vmem:[#allocation113_spill] sm:$0xff] }
 0x37a   :  { %v3383_v35 = vmul.f32 %v3351_v22, %v9022_v7  ;;  %v3330_v2 = vadd.f32 1.0, %v5607_v12  ;;  %4752 = vperm.xlu1 %5453, %v8915_v26   ;;  %v3237_v57 = vadd.f32 %v3205_v44, %v11403_v21  ;;  %v3267_v18 = vmul.f32 0.7978846, %v3235_v27  ;;  %v4688_v7 = vld [vmem:[%s10699_s11 + $0x70] sm:$0xff] }
 0x37b   :  { %v3388_v61 = vmul.f32 %v3356_v3, %v9048_v58  ;;  %v5609_v48 = vpop.eup %5608  ;;  %3587 = vmatprep.subr.bf16.mxu1 %v3428_v1  ;;  %v3357_v24 = vmul.f32 0.5, %v3325_v5  ;;  %1819 = vmatmul.mubr.bf16.gmra.mrb[12].mxu0 %v5457_v6  ;;  %v3144_v59 = vmul.f32 %v9115_v56, %v9115_v56  ;;  %v3146_v58 = vmul.f32 %v9216_v38, %v9216_v38 }
 0x37c   :  { %v3427_v8 = vpack.c.bf16 %v8976_v32, %v3383_v35  ;;  %v5611_v26 = vpop.eup %5610  ;;  %v3323_v46 = vadd.f32 1.0, %v5609_v48  ;;  %v3362_v25 = vmul.f32 0.5, %v3330_v2  ;;  %v3269_v42 = vmul.f32 0.7978846, %v3237_v57  ;;  %1828 = vmatprep.mubr.bf16.mxu0 %v11396_v33 }
 0x37d   :  { %v3430_v50 = vpack.c.bf16 %v9159_v54, %v3388_v61  ;;  %v3389_v32 = vmul.f32 %v3357_v24, %v8801_v13  ;;  %v3328_v39 = vadd.f32 1.0, %v5611_v26  ;;  %5620 = vtanh.f32 %v3267_v18 }
 0x37e   :  { %3588 = vmatpush1.bf16.msra.mxu1 %v3427_v8  ;;  %v3176_v43 = vmul.f32 %v3144_v59, %v9115_v56  ;;  %v3355_v63 = vmul.f32 0.5, %v3323_v46  ;;  %v3394_v51 = vmul.f32 %v3362_v25, %v8595_v30  ;;  %5622 = vtanh.f32 %v3269_v42  ;;  %4762 = vperm.xlu1 %5453, %v4688_v7   ;;  %v5458_v30 = vld [vmem:[%s10696_s8 + $0x20] sm:$0xff]  }
 0x37f   :  { %3589 = vmatprep.subr.bf16.mxu1 %v3430_v50  ;;  %v3178_v54 = vmul.f32 %v3146_v58, %v9216_v38  ;;  %v3360_v15 = vmul.f32 0.5, %v3328_v39  ;;  %v9237_v29 = vadd.f32 %v11408_v41, %v11407_v62  ;;  %v3143_v13 = vmul.f32 %v9112_v53, %v9112_v53 }
 0x380   :  { %v5613_v34 = vpop.eup %5612  ;;  %v3208_v52 = vmul.f32 0.044715, %v3176_v43  ;;  %v3387_v37 = vmul.f32 %v3355_v63, %v9045_v19  ;;  %v3150_v60 = vmul.f32 %v8948_v20, %v8948_v20 }
 0x381   :  { %v5615_v31 = vpop.eup %5614  ;;  %v3329_v22 = vadd.f32 1.0, %v5613_v34  ;;  %v3210_v6 = vmul.f32 0.044715, %v3178_v54  ;;  %v3392_v44 = vmul.f32 %v3360_v15, %v9071_v17  ;;  %v3145_v1 = vmul.f32 %v9237_v29, %v9237_v29  ;;  %v4982_v17 = vld [vmem:[%s10699_s11 + $0x90] sm:$0xff] }
 0x382   :  { %v5617_v3 = vpop.eup %5616  ;;  %v3327_v27 = vadd.f32 1.0, %v5615_v31  ;;  %v3240_v12 = vadd.f32 %v3208_v52, %v9115_v56  ;;  %v3429_v5 = vpack.c.bf16 %v3389_v32, %v3387_v37  ;;  %4998 = vperm.xlu1 %5453, %v4980_v11   ;;  %v3175_v7 = vmul.f32 %v3143_v13, %v9112_v53 }
 0x383   :  { %v5619_v35 = vpop.eup %5618  ;;  %v3361_v36 = vmul.f32 0.5, %v3329_v22  ;;  %v3334_v9 = vadd.f32 1.0, %v5617_v3  ;;  %v3242_v19 = vadd.f32 %v3210_v6, %v9216_v38  ;;  %v3432_v61 = vpack.c.bf16 %v3394_v51, %v3392_v44  ;;  %1829 = vmatmul.mubr.bf16.gmra.mrb[16].mxu0 %v5458_v30 }
 0x384   :  { %v3359_v2 = vmul.f32 0.5, %v3327_v27  ;;  %v3332_v57 = vadd.f32 1.0, %v5619_v35  ;;  %v3272_v18 = vmul.f32 0.7978846, %v3240_v12  ;;  %3590 = vmatpush1.bf16.msra.mxu1 %v3429_v5  ;;  %1838 = vmatprep.mubr.bf16.mxu0 %v11396_v33  ;;  %v3177_v26 = vmul.f32 %v3145_v1, %v9237_v29 }
 0x385   :  { %v3393_v48 = vmul.f32 %v3361_v36, %v11333_v23  ;;  %v3366_v8 = vmul.f32 0.5, %v3334_v9  ;;  %v3274_v24 = vmul.f32 0.7978846, %v3242_v19  ;;  %3591 = vmatprep.subr.bf16.mxu1 %v3432_v61  ;;  %v3207_v46 = vmul.f32 0.044715, %v3175_v7 }
 0x386   :  { %v3391_v59 = vmul.f32 %v3359_v2, %v9068_v10  ;;  %v3364_v58 = vmul.f32 0.5, %v3332_v57  ;;  %5624 = vtanh.f32 %v3272_v18  ;;  %v3180_v23 = vmul.f32 %v9149_v49, %v9137_v16  ;;  %5008 = vperm.xlu1 %5453, %v4982_v17   ;;  %v4984_v10 = vld [vmem:[%s10699_s11 + $0xa0] sm:$0xff] }
 0x387   :  { %v3398_v50 = vmul.f32 %v3366_v8, %v11399_v55  ;;  %5626 = vtanh.f32 %v3274_v24  ;;  %v5621_v25 = vpop.eup %5620  ;;  %v3209_v39 = vmul.f32 0.044715, %v3177_v26  ;;  %v3182_v43 = vmul.f32 %v3150_v60, %v8948_v20  ;;  %v5460_v55 = vld [vmem:[%s10696_s8 + $0x28] sm:$0xff]   ;;  %v4986_v60 = vld [vmem:[%s10699_s11 + $0xb0] sm:$0xff] }
 0x388   :  { %v3431_v42 = vpack.c.bf16 %v3393_v48, %v3391_v59  ;;  %v3396_v32 = vmul.f32 %v3364_v58, %v9091_v45  ;;  %v5623_v63 = vpop.eup %5622  ;;  %v3331_v51 = vadd.f32 1.0, %v5621_v25  ;;  %v3239_v49 = vadd.f32 %v3207_v46, %v9112_v53  ;;  %v11409_v59 = vld [vmem:[#allocation130_spill] sm:$0xff]  ;;  %v5464_v46 = vld [vmem:[%s10696_s8 + $0x38] sm:$0xff]  }
 0x389   :  { %v3212_v54 = vmul.f32 0.044715, %v3180_v23  ;;  %v3149_v34 = vmul.f32 %v8946_v47, %v8946_v47  ;;  %v3333_v15 = vadd.f32 1.0, %v5623_v63  ;;  %v3241_v52 = vadd.f32 %v3209_v39, %v9237_v29 }
 0x38a   :  { %3592 = vmatpush1.bf16.msra.mxu1 %v3431_v42  ;;  %v3434_v45 = vpack.c.bf16 %v3398_v50, %v3396_v32  ;;  %v3214_v62 = vmul.f32 0.044715, %v3182_v43  ;;  %v3363_v41 = vmul.f32 0.5, %v3331_v51  ;;  %v3271_v13 = vmul.f32 0.7978846, %v3239_v49  ;;  %5018 = vperm.xlu1 %5453, %v4984_v10  }
 0x38b   :  { %v3244_v11 = vadd.f32 %v3212_v54, %v9137_v16  ;;  %v3179_v30 = vmul.f32 %v9145_v40, %v9134_v28  ;;  %v3365_v31 = vmul.f32 0.5, %v3333_v15  ;;  %v3273_v37 = vmul.f32 0.7978846, %v3241_v52  ;;  %1839 = vmatmul.mubr.bf16.gmra.mrb[20].mxu0 %v5460_v55 }
 0x38c   :  { %3593 = vmatprep.subr.bf16.mxu1 %v3434_v45  ;;  %v3246_v22 = vadd.f32 %v3214_v62, %v8948_v20  ;;  %v3181_v6 = vmul.f32 %v3149_v34, %v8946_v47  ;;  %v3395_v3 = vmul.f32 %v3363_v41, %v9088_v4  ;;  %5628 = vtanh.f32 %v3271_v13  ;;  %1848 = vmatprep.mubr.bf16.mxu0 %v11396_v33  ;;  %v4988_v4 = vld [vmem:[%s10699_s11 + $0xc0] sm:$0xff] }
 0x38d   :  { %v3276_v44 = vmul.f32 0.7978846, %v3244_v11  ;;  %v3211_v27 = vmul.f32 0.044715, %v3179_v30  ;;  %v3397_v40 = vmul.f32 %v3365_v31, %v11403_v21  ;;  %5630 = vtanh.f32 %v3273_v37  ;;  %v5462_v21 = vld [vmem:[%s10696_s8 + $0x30] sm:$0xff]   ;;  %v5467_v11 = vld [vmem:[%s10696_s8 + $0x28] sm:$0xff]   ;;  %v1631_v37 = vpop.permute.xlu1 %1630 }
 0x38e   :  { %v3278_v12 = vmul.f32 0.7978846, %v3246_v22  ;;  %v3213_v1 = vmul.f32 0.044715, %v3181_v6  ;;  %5028 = vperm.xlu1 %5453, %v4986_v60   ;;  %v5468_v30 = vld [vmem:[%s10696_s8 + $0x30] sm:$0xff]   ;;  %v5469_v31 = vld [vmem:[%s10696_s8 + $0x38] sm:$0xff]  }
 0x38f   :  { %5632 = vtanh.f32 %v3276_v44  ;;  %v3243_v35 = vadd.f32 %v3211_v27, %v9134_v28  ;;  %v3433_v36 = vpack.c.bf16 %v3397_v40, %v3395_v3  ;;  %v1636_v3 = vpop.permute.xlu0 %1635 }
 0x390   :  { %v5625_v5 = vpop.eup %5624  ;;  %5634 = vtanh.f32 %v3278_v12  ;;  %v3245_v9 = vadd.f32 %v3213_v1, %v8946_v47 }
 0x391   :  { %v5627_v19 = vpop.eup %5626  ;;  %v3336_v61 = vadd.f32 1.0, %v5625_v5  ;;  %v3275_v2 = vmul.f32 0.7978846, %v3243_v35  ;;  %3594 = vmatpush1.bf16.msra.mxu1 %v3433_v36 }
 0x392   :  { %v3338_v57 = vadd.f32 1.0, %v5627_v19  ;;  %v3277_v18 = vmul.f32 0.7978846, %v3245_v9  ;;  %5038 = vperm.xlu1 %5453, %v4988_v4  }
 0x393   :  { %v3368_v17 = vmul.f32 0.5, %v3336_v61  ;;  %5636 = vtanh.f32 %v3275_v2  ;;  %1849 = vmatmul.mubr.bf16.gmra.mrb[24].mxu0 %v5462_v21  ;;  %v1641_v2 = vpop.permute.xlu1 %1640 }
 0x394   :  { %v3370_v48 = vmul.f32 0.5, %v3338_v57  ;;  %5638 = vtanh.f32 %v3277_v18  ;;  %1858 = vmatprep.mubr.bf16.mxu0 %v11396_v33 }
 0x395   :  { %v3400_v8 = vmul.f32 %v3368_v17, %v9115_v56 }
 0x396   :  { %v3402_v24 = vmul.f32 %v3370_v48, %v9216_v38  ;;  %v5629_v7 = vpop.eup %5628  ;;  %5048 = vperm.xlu1 %5453, %v11409_v59   ;;  %v1646_v59 = vpop.permute.xlu0 %1645 }
 0x397   :  { %v5631_v58 = vpop.eup %5630  ;;  %v3335_v50 = vadd.f32 1.0, %v5629_v7 }
 0x398   :  { %v3436_v26 = vpack.c.bf16 %v3402_v24, %v3400_v8  ;;  %v3337_v25 = vadd.f32 1.0, %v5631_v58 }
 0x399   :  { %v5633_v23 = vpop.eup %5632  ;;  %v3367_v32 = vmul.f32 0.5, %v3335_v50 }
 0x39a   :  { %v5635_v42 = vpop.eup %5634  ;;  %3595 = vmatprep.subr.bf16.mxu1 %v3436_v26  ;;  %v3340_v56 = vadd.f32 1.0, %v5633_v23  ;;  %v3369_v39 = vmul.f32 0.5, %v3337_v25  ;;  %5058 = vperm.xlu1 %5453, %v9078_v0  }
 0x39b   :  { %v3342_v43 = vadd.f32 1.0, %v5635_v42  ;;  %v3399_v38 = vmul.f32 %v3367_v32, %v9112_v53  ;;  %1859 = vmatmul.mubr.bf16.gmra.mrb[28].mxu0 %v5464_v46 }
 0x39c   :  { %v3372_v10 = vmul.f32 0.5, %v3340_v56  ;;  %v3401_v63 = vmul.f32 %v3369_v39, %v9237_v29  ;;  %4224 = vmatprep.mubr.bf16.mxu0 %v11396_v33 }
 0x39d   :  { %v5637_v55 = vpop.eup %5636  ;;  %v3374_v51 = vmul.f32 0.5, %v3342_v43 }
 0x39e   :  { %v5639_v49 = vpop.eup %5638  ;;  %v3404_v54 = vmul.f32 %v3372_v10, %v9137_v16  ;;  %v3339_v34 = vadd.f32 1.0, %v5637_v55  ;;  %v3435_v45 = vpack.c.bf16 %v3401_v63, %v3399_v38  ;;  %5068 = vperm.xlu1 %5453, %v9098_v14   ;;  %v5459_v16 = vld [vmem:[%s10696_s8] sm:$0xff]   ;;  %v5465_v14 = vld [vmem:[%s10696_s8 + $0x18] sm:$0xff]  }
 0x39f   :  { %v3406_v15 = vmul.f32 %v3374_v51, %v8948_v20  ;;  %v3341_v52 = vadd.f32 1.0, %v5639_v49  ;;  %v5461_v20 = vld [vmem:[%s10696_s8 + $0x8] sm:$0xff]  }
 0x3a0   :  { %v3371_v0 = vmul.f32 0.5, %v3339_v34  ;;  %3596 = vmatpush1.bf16.msra.mxu1 %v3435_v45 }
 0x3a1   :  { %v3438_v53 = vpack.c.bf16 %v3406_v15, %v3404_v54  ;;  %v3373_v62 = vmul.f32 0.5, %v3341_v52  ;;  %v1651_v52 = vpop.permute.xlu1 %1650 }
 0x3a2   :  { %v3403_v41 = vmul.f32 %v3371_v0, %v9134_v28  ;;  %v5466_v28 = vld [vmem:[%s10696_s8 + $0x20] sm:$0xff]  }
 0x3a3   :  { %3597 = vmatprep.subr.bf16.mxu1 %v3438_v53  ;;  %v3405_v29 = vmul.f32 %v3373_v62, %v8946_v47  ;;  %v5463_v47 = vld [vmem:[%s10696_s8 + $0x10] sm:$0xff]  }
 0x3a5   :  { %v3437_v13 = vpack.c.bf16 %v3405_v29, %v3403_v41 }
 0x3a7   :  { %3598 = vmatpush1.bf16.msra.mxu1 %v3437_v13 }
 0x3aa   :  { %3616 = vmatmul.mubr.bf16.vlgmr.msra.gmra.mrb[0].mxu1 %v5459_v16 }
 0x3ab   :  { %3625 = vmatprep.mubr.bf16.mxu1 %v11396_v33 }
 0x3b2   :  { %3626 = vmatmul.mubr.bf16.gmra.mrb[4].mxu1 %v5461_v20  ;;  %v1656_v20 = vpop.permute.xlu0 %1655 }
 0x3b3   :  { %3635 = vmatprep.mubr.bf16.mxu1 %v11396_v33 }
 0x3ba   :  { %3636 = vmatmul.mubr.bf16.gmra.mrb[8].mxu1 %v5463_v47 }
 0x3bb   :  { %3645 = vmatprep.mubr.bf16.mxu1 %v11396_v33 }
 0x3c2   :  { %3646 = vmatmul.mubr.bf16.gmra.mrb[12].mxu1 %v5465_v14 }
 0x3c3   :  { %3655 = vmatprep.mubr.bf16.mxu1 %v11396_v33 }
 0x3ca   :  { %3656 = vmatmul.mubr.bf16.gmra.mrb[16].mxu1 %v5466_v28 }
 0x3cb   :  { %3665 = vmatprep.mubr.bf16.mxu1 %v11396_v33 }
 0x3d2   :  { %3666 = vmatmul.mubr.bf16.gmra.mrb[20].mxu1 %v5467_v11 }
 0x3d3   :  { %3675 = vmatprep.mubr.bf16.mxu1 %v11396_v33 }
 0x3da   :  { %3676 = vmatmul.mubr.bf16.gmra.mrb[24].mxu1 %v5468_v30 }
 0x3db   :  { %3685 = vmatprep.mubr.bf16.mxu1 %v11396_v33 }
 0x3e2   :  { %3686 = vmatmul.mubr.bf16.gmra.mrb[28].mxu1 %v5469_v31 }
 0x3e3   :  { %4529 = vmatprep.mubr.bf16.mxu1 %v11396_v33 }
 0x436   :  { %v1790_v22 = vpop.f32.mrb[0].mxu0 }
 0x437   :  { %v9345_v6 = vadd.f32 %v1790_v22, %v1631_v37  ;;  %v1792_v60 = vpop.f32.mrb[1].mxu0 }
 0x438   :  { %v9347_v44 = vadd.f32 %v1792_v60, %v1631_v37  ;;  %v1794_v27 = vpop.f32.mrb[2].mxu0 }
 0x439   :  { %v1869_v40 = vmul.f32 %v9345_v6, %v9345_v6  ;;  %v9351_v12 = vadd.f32 %v1794_v27, %v1636_v3  ;;  %v1796_v1 = vpop.f32.mrb[3].mxu0 }
 0x43a   :  { %v1870_v35 = vmul.f32 %v9347_v44, %v9347_v44  ;;  %v9355_v5 = vadd.f32 %v1796_v1, %v1636_v3 }
 0x43b   :  { %v1901_v36 = vmul.f32 %v1869_v40, %v9345_v6  ;;  %v1871_v9 = vmul.f32 %v9351_v12, %v9351_v12 }
 0x43c   :  { %v1902_v4 = vmul.f32 %v1870_v35, %v9347_v44  ;;  %v1872_v21 = vmul.f32 %v9355_v5, %v9355_v5 }
 0x43d   :  { %v1933_v19 = vmul.f32 0.044715, %v1901_v36  ;;  %v1903_v61 = vmul.f32 %v1871_v9, %v9351_v12 }
 0x43e   :  { %v1934_v57 = vmul.f32 0.044715, %v1902_v4  ;;  %v1904_v18 = vmul.f32 %v1872_v21, %v9355_v5  ;;  %v1800_v17 = vpop.f32.mrb[4].mxu0 }
 0x43f   :  { %v1965_v48 = vadd.f32 %v1933_v19, %v9345_v6  ;;  %v1935_v8 = vmul.f32 0.044715, %v1903_v61  ;;  %v9366_v24 = vadd.f32 %v1800_v17, %v1641_v2  ;;  %v1802_v7 = vpop.f32.mrb[5].mxu0  ;;  %v1661_v17 = vpop.permute.xlu1 %1660 }
 0x440   :  { %v1966_v58 = vadd.f32 %v1934_v57, %v9347_v44  ;;  %v1936_v26 = vmul.f32 0.044715, %v1904_v18  ;;  %v9369_v50 = vadd.f32 %v1802_v7, %v1641_v2  ;;  %v1804_v46 = vpop.f32.mrb[6].mxu0 }
 0x441   :  { %v1997_v23 = vmul.f32 0.7978846, %v1965_v48  ;;  %v1967_v25 = vadd.f32 %v1935_v8, %v9351_v12  ;;  %v1873_v42 = vmul.f32 %v9366_v24, %v9366_v24  ;;  %v9374_v32 = vadd.f32 %v1804_v46, %v1646_v59  ;;  %v1806_v56 = vpop.f32.mrb[7].mxu0 }
 0x442   :  { %v1998_v39 = vmul.f32 0.7978846, %v1966_v58  ;;  %v1968_v43 = vadd.f32 %v1936_v26, %v9355_v5  ;;  %v1874_v38 = vmul.f32 %v9369_v50, %v9369_v50  ;;  %v9379_v10 = vadd.f32 %v1806_v56, %v1646_v59 }
 0x443   :  { %5640 = vtanh.f32 %v1997_v23  ;;  %v1999_v55 = vmul.f32 0.7978846, %v1967_v25  ;;  %v1905_v63 = vmul.f32 %v1873_v42, %v9366_v24  ;;  %v1875_v51 = vmul.f32 %v9374_v32, %v9374_v32 }
 0x444   :  { %5642 = vtanh.f32 %v1998_v39  ;;  %v2000_v49 = vmul.f32 0.7978846, %v1968_v43  ;;  %v1906_v54 = vmul.f32 %v1874_v38, %v9369_v50  ;;  %v1876_v34 = vmul.f32 %v9379_v10, %v9379_v10 }
 0x445   :  { %5644 = vtanh.f32 %v1999_v55  ;;  %v1937_v45 = vmul.f32 0.044715, %v1905_v63  ;;  %v1907_v15 = vmul.f32 %v1875_v51, %v9374_v32 }
 0x446   :  { %v1938_v0 = vmul.f32 0.044715, %v1906_v54  ;;  %v1908_v53 = vmul.f32 %v1876_v34, %v9379_v10  ;;  %v1810_v62 = vpop.f32.mrb[8].mxu0  ;;  %5646 = vtanh.f32 %v2000_v49 }
 0x447   :  { %v1969_v41 = vadd.f32 %v1937_v45, %v9366_v24  ;;  %v1939_v29 = vmul.f32 0.044715, %v1907_v15  ;;  %v9390_v13 = vadd.f32 %v1810_v62, %v1651_v52  ;;  %v1812_v16 = vpop.f32.mrb[9].mxu0  ;;  %v1666_v62 = vpop.permute.xlu0 %1665 }
 0x448   :  { %v1970_v47 = vadd.f32 %v1938_v0, %v9369_v50  ;;  %v1940_v14 = vmul.f32 0.044715, %v1908_v53  ;;  %v9393_v28 = vadd.f32 %v1812_v16, %v1651_v52  ;;  %v1814_v11 = vpop.f32.mrb[10].mxu0 }
 0x449   :  { %v2001_v30 = vmul.f32 0.7978846, %v1969_v41  ;;  %v1971_v31 = vadd.f32 %v1939_v29, %v9374_v32  ;;  %v1877_v37 = vmul.f32 %v9390_v13, %v9390_v13  ;;  %v9398_v22 = vadd.f32 %v1814_v11, %v1656_v20  ;;  %v1816_v60 = vpop.f32.mrb[11].mxu0 }
 0x44a   :  { %v2002_v3 = vmul.f32 0.7978846, %v1970_v47  ;;  %v1972_v27 = vadd.f32 %v1940_v14, %v9379_v10  ;;  %v1878_v40 = vmul.f32 %v9393_v28, %v9393_v28  ;;  %v9403_v1 = vadd.f32 %v1816_v60, %v1656_v20  ;;  %v1671_v60 = vpop.permute.xlu1 %1670 }
 0x44b   :  { %5648 = vtanh.f32 %v2001_v30  ;;  %v2003_v35 = vmul.f32 0.7978846, %v1971_v31  ;;  %v1909_v36 = vmul.f32 %v1877_v37, %v9390_v13  ;;  %v1879_v9 = vmul.f32 %v9398_v22, %v9398_v22 }
 0x44c   :  { %5650 = vtanh.f32 %v2002_v3  ;;  %v2004_v4 = vmul.f32 0.7978846, %v1972_v27  ;;  %v1910_v21 = vmul.f32 %v1878_v40, %v9393_v28  ;;  %v1880_v19 = vmul.f32 %v9403_v1, %v9403_v1 }
 0x44d   :  { %v5641_v61 = vpop.eup %5640  ;;  %5652 = vtanh.f32 %v2003_v35  ;;  %v1941_v2 = vmul.f32 0.044715, %v1909_v36  ;;  %v1911_v57 = vmul.f32 %v1879_v9, %v9398_v22 }
 0x44e   :  { %v5643_v18 = vpop.eup %5642  ;;  %v2061_v48 = vadd.f32 1.0, %v5641_v61  ;;  %5654 = vtanh.f32 %v2004_v4  ;;  %v1942_v8 = vmul.f32 0.044715, %v1910_v21  ;;  %v1912_v7 = vmul.f32 %v1880_v19, %v9403_v1  ;;  %v1820_v59 = vpop.f32.mrb[12].mxu0 }
 0x44f   :  { %v5645_v58 = vpop.eup %5644  ;;  %v1973_v26 = vadd.f32 %v1941_v2, %v9390_v13  ;;  %v1943_v46 = vmul.f32 0.044715, %v1911_v57  ;;  %v9414_v23 = vadd.f32 %v1820_v59, %v1661_v17  ;;  %v1822_v25 = vpop.f32.mrb[13].mxu0  ;;  %v9416_v42 = vadd.f32 1.0, %v5643_v18 }
 0x450   :  { %v2093_v56 = vmul.f32 0.5, %v2061_v48  ;;  %v2063_v39 = vadd.f32 1.0, %v5645_v58  ;;  %v1974_v43 = vadd.f32 %v1942_v8, %v9393_v28  ;;  %v1944_v38 = vmul.f32 0.044715, %v1912_v7  ;;  %v1824_v55 = vpop.f32.mrb[14].mxu0  ;;  %v5647_v45 = vpop.eup %5646 }
 0x451   :  { %v2005_v63 = vmul.f32 0.7978846, %v1973_v26  ;;  %v1975_v51 = vadd.f32 %v1943_v46, %v9398_v22  ;;  %v1881_v49 = vmul.f32 %v9414_v23, %v9414_v23  ;;  %v9422_v54 = vadd.f32 %v1822_v25, %v1661_v17  ;;  %v1826_v34 = vpop.f32.mrb[15].mxu0 }
 0x452   :  { %v9425_v15 = vmul.f32 %v2093_v56, %v9345_v6  ;;  %v2095_v52 = vmul.f32 0.5, %v2063_v39  ;;  %v2006_v0 = vmul.f32 0.7978846, %v1974_v43  ;;  %v1976_v53 = vadd.f32 %v1944_v38, %v9403_v1  ;;  %v1676_v43 = vpop.permute.xlu0 %1675 }
 0x453   :  { %5656 = vtanh.f32 %v2005_v63  ;;  %v2007_v41 = vmul.f32 0.7978846, %v1975_v51  ;;  %v1913_v29 = vmul.f32 %v1881_v49, %v9414_v23  ;;  %v1882_v16 = vmul.f32 %v9422_v54, %v9422_v54 }
 0x454   :  { %v9432_v20 = vmul.f32 %v2095_v52, %v9351_v12  ;;  %5658 = vtanh.f32 %v2006_v0  ;;  %v2008_v47 = vmul.f32 0.7978846, %v1976_v53  ;;  %v9434_v14 = vadd.f32 %v1824_v55, %v1666_v62 }
 0x455   :  { %v5649_v6 = vpop.eup %5648  ;;  %5660 = vtanh.f32 %v2007_v41  ;;  %v1945_v11 = vmul.f32 0.044715, %v1913_v29  ;;  %v1914_v30 = vmul.f32 %v1882_v16, %v9422_v54  ;;  %v9437_v31 = vadd.f32 %v1826_v34, %v1666_v62 }
 0x456   :  { %v9439_v37 = vpop.eup %5650  ;;  %v2065_v3 = vadd.f32 1.0, %v5649_v6  ;;  %5662 = vtanh.f32 %v2008_v47  ;;  %v1883_v12 = vmul.f32 %v9434_v14, %v9434_v14  ;;  %v1830_v27 = vpop.f32.mrb[16].mxu0  ;;  %v2064_v40 = vadd.f32 1.0, %v5647_v45 }
 0x457   :  { %v5653_v35 = vpop.eup %5652  ;;  %v1977_v36 = vadd.f32 %v1945_v11, %v9414_v23  ;;  %v1946_v9 = vmul.f32 0.044715, %v1914_v30  ;;  %v1884_v4 = vmul.f32 %v9437_v31, %v9437_v31  ;;  %v9446_v21 = vadd.f32 %v1830_v27, %v1671_v60  ;;  %v1832_v19 = vpop.f32.mrb[17].mxu0 }
 0x458   :  { %v9448_v61 = vpop.eup %5654  ;;  %v2097_v2 = vmul.f32 0.5, %v2065_v3  ;;  %v2067_v57 = vadd.f32 1.0, %v5653_v35  ;;  %v1915_v18 = vmul.f32 %v1883_v12, %v9434_v14  ;;  %v9451_v17 = vadd.f32 %v1832_v19, %v1671_v60  ;;  %v1834_v48 = vpop.f32.mrb[18].mxu0 }
 0x459   :  { %v2009_v8 = vmul.f32 0.7978846, %v1977_v36  ;;  %v1978_v7 = vadd.f32 %v1946_v9, %v9422_v54  ;;  %v1916_v59 = vmul.f32 %v1884_v4, %v9437_v31  ;;  %v1885_v58 = vmul.f32 %v9446_v21, %v9446_v21  ;;  %v1836_v26 = vpop.f32.mrb[19].mxu0 }
 0x45a   :  { %v9458_v46 = vmul.f32 %v2097_v2, %v9366_v24  ;;  %v2099_v25 = vmul.f32 0.5, %v2067_v57  ;;  %v1947_v56 = vmul.f32 0.044715, %v1915_v18  ;;  %v1886_v39 = vmul.f32 %v9451_v17, %v9451_v17 }
 0x45b   :  { %5664 = vtanh.f32 %v2009_v8  ;;  %v2010_v38 = vmul.f32 0.7978846, %v1978_v7  ;;  %v1948_v55 = vmul.f32 0.044715, %v1916_v59  ;;  %v1917_v63 = vmul.f32 %v1885_v58, %v9446_v21 }
 0x45c   :  { %v9464_v51 = vmul.f32 %v2099_v25, %v9374_v32  ;;  %v1979_v49 = vadd.f32 %v1947_v56, %v9434_v14  ;;  %v1918_v34 = vmul.f32 %v1886_v39, %v9451_v17  ;;  %v9468_v24 = vadd.f32 %v1834_v48, %v1676_v43  ;;  %v1681_v25 = vpop.permute.xlu1 %1680 }
 0x45d   :  { %v5657_v45 = vpop.eup %5656  ;;  %5666 = vtanh.f32 %v2010_v38  ;;  %v1980_v52 = vadd.f32 %v1948_v55, %v9437_v31  ;;  %v1949_v0 = vmul.f32 0.044715, %v1917_v63  ;;  %v9471_v53 = vadd.f32 %v1836_v26, %v1676_v43  ;;  %v1686_v38 = vpop.permute.xlu0 %1685 }
 0x45e   :  { %v9473_v62 = vpop.eup %5658  ;;  %v2069_v41 = vadd.f32 1.0, %v5657_v45  ;;  %v2011_v29 = vmul.f32 0.7978846, %v1979_v49  ;;  %v1950_v16 = vmul.f32 0.044715, %v1918_v34  ;;  %v1887_v32 = vmul.f32 %v9468_v24, %v9468_v24  ;;  %v1840_v47 = vpop.f32.mrb[20].mxu0 }
 0x45f   :  { %v5661_v6 = vpop.eup %5660  ;;  %v2012_v11 = vmul.f32 0.7978846, %v1980_v52  ;;  %v1981_v30 = vadd.f32 %v1949_v0, %v9446_v21  ;;  %v1888_v60 = vmul.f32 %v9471_v53, %v9471_v53  ;;  %v2094_v3 = vmul.f32 0.5, %v9416_v42  ;;  %v1842_v12 = vpop.f32.mrb[21].mxu0 }
 0x460   :  { %v9481_v27 = vpop.eup %5662  ;;  %v2101_v35 = vmul.f32 0.5, %v2069_v41  ;;  %v2071_v36 = vadd.f32 1.0, %v5661_v6  ;;  %5668 = vtanh.f32 %v2011_v29  ;;  %v1982_v9 = vadd.f32 %v1950_v16, %v9451_v17  ;;  %v1844_v4 = vpop.f32.mrb[22].mxu0 }
 0x461   :  { %5670 = vtanh.f32 %v2012_v11  ;;  %v2013_v19 = vmul.f32 0.7978846, %v1981_v30  ;;  %v1919_v2 = vmul.f32 %v1887_v32, %v9468_v24  ;;  %v1920_v57 = vmul.f32 %v1888_v60, %v9471_v53  ;;  %v1846_v18 = vpop.f32.mrb[23].mxu0 }
 0x462   :  { %v9487_v48 = vmul.f32 %v2101_v35, %v9390_v13  ;;  %v2103_v42 = vmul.f32 0.5, %v2071_v36  ;;  %v2014_v8 = vmul.f32 0.7978846, %v1982_v9  ;;  %v2096_v7 = vmul.f32 0.5, %v2064_v40 }
 0x463   :  { %5672 = vtanh.f32 %v2013_v19  ;;  %v1951_v59 = vmul.f32 0.044715, %v1919_v2  ;;  %v1952_v58 = vmul.f32 0.044715, %v1920_v57  ;;  %v2126_v26 = vmul.f32 %v2094_v3, %v9347_v44 }
 0x464   :  { %v9491_v56 = vmul.f32 %v2103_v42, %v9398_v22  ;;  %5674 = vtanh.f32 %v2014_v8  ;;  %v2128_v39 = vmul.f32 %v2096_v7, %v9355_v5  ;;  %v2157_v43 = vpack.c.bf16 %v9432_v20, %v9425_v15 }
 0x465   :  { %v5665_v13 = vpop.eup %5664  ;;  %v1983_v55 = vadd.f32 %v1951_v59, %v9468_v24  ;;  %v1984_v40 = vadd.f32 %v1952_v58, %v9471_v53  ;;  %v9498_v63 = vadd.f32 %v1840_v47, %v1681_v25  ;;  %v9500_v49 = vadd.f32 %v1842_v12, %v1681_v25 }
 0x466   :  { %v2073_v44 = vadd.f32 1.0, %v5665_v13  ;;  %v2158_v34 = vpack.c.bf16 %v2128_v39, %v2126_v26  ;;  %v9502_v22 = vadd.f32 %v1844_v4, %v1686_v38  ;;  %v9504_v45 = vadd.f32 %v1846_v18, %v1686_v38  ;;  %v1850_v5 = vpop.f32.mrb[24].mxu0 }
 0x467   :  { %v9506_v52 = vpop.eup %5666  ;;  %v2015_v15 = vmul.f32 0.7978846, %v1983_v55  ;;  %v2016_v20 = vmul.f32 0.7978846, %v1984_v40  ;;  %v1889_v0 = vmul.f32 %v9498_v63, %v9498_v63  ;;  %v1890_v41 = vmul.f32 %v9500_v49, %v9500_v49  ;;  %v1852_v29 = vpop.f32.mrb[25].mxu0 }
 0x468   :  { %v2105_v16 = vmul.f32 0.5, %v2073_v44  ;;  %4192 = vmatprep.subr.bf16.mxu0 %v2158_v34  ;;  %4497 = vmatprep.subr.bf16.mxu1 %v2158_v34  ;;  %v1891_v32 = vmul.f32 %v9502_v22, %v9502_v22  ;;  %v1892_v47 = vmul.f32 %v9504_v45, %v9504_v45  ;;  %v2066_v6 = vadd.f32 1.0, %v9439_v37  ;;  %v1854_v11 = vpop.f32.mrb[26].mxu0 }
 0x469   :  { %5676 = vtanh.f32 %v2015_v15  ;;  %4193 = vmatpush1.bf16.msra.mxu0 %v2157_v43  ;;  %4498 = vmatpush1.bf16.msra.mxu1 %v2157_v43  ;;  %v1921_v30 = vmul.f32 %v1889_v0, %v9498_v63  ;;  %v1922_v60 = vmul.f32 %v1890_v41, %v9500_v49  ;;  %v2068_v3 = vadd.f32 1.0, %v9448_v61  ;;  %v1856_v12 = vpop.f32.mrb[27].mxu0  ;;  %v1691_v43 = vpop.permute.xlu1 %1690 }
 0x46a   :  { %v5669_v35 = vpop.eup %5668  ;;  %v9521_v36 = vmul.f32 %v2105_v16, %v9414_v23  ;;  %5678 = vtanh.f32 %v2016_v20  ;;  %v1923_v9 = vmul.f32 %v1891_v32, %v9502_v22  ;;  %v1924_v37 = vmul.f32 %v1892_v47, %v9504_v45 }
 0x46b   :  { %v9525_v4 = vpop.eup %5670  ;;  %v2075_v19 = vadd.f32 1.0, %v5669_v35  ;;  %v1953_v2 = vmul.f32 0.044715, %v1921_v30  ;;  %v1954_v57 = vmul.f32 0.044715, %v1922_v60  ;;  %v2098_v18 = vmul.f32 0.5, %v2066_v6 }
 0x46c   :  { %v1955_v42 = vmul.f32 0.044715, %v1923_v9  ;;  %v1956_v8 = vmul.f32 0.044715, %v1924_v37  ;;  %v2100_v7 = vmul.f32 0.5, %v2068_v3  ;;  %v2159_v61 = vpack.c.bf16 %v9464_v51, %v9458_v46 }
 0x46d   :  { %v5673_v59 = vpop.eup %5672  ;;  %v2107_v23 = vmul.f32 0.5, %v2075_v19  ;;  %v1985_v58 = vadd.f32 %v1953_v2, %v9498_v63  ;;  %v1986_v26 = vadd.f32 %v1954_v57, %v9500_v49  ;;  %v2130_v25 = vmul.f32 %v2098_v18, %v9369_v50  ;;  %v1696_v50 = vpop.permute.xlu0 %1695 }
 0x46e   :  { %v9532_v39 = vpop.eup %5674  ;;  %v2077_v13 = vadd.f32 1.0, %v5673_v59  ;;  %v1987_v38 = vadd.f32 %v1955_v42, %v9502_v22  ;;  %v1988_v55 = vadd.f32 %v1956_v8, %v9504_v45  ;;  %v2132_v40 = vmul.f32 %v2100_v7, %v9379_v10  ;;  %v1860_v44 = vpop.f32.mrb[28].mxu0 }
 0x46f   :  { %v9538_v46 = vmul.f32 %v2107_v23, %v9434_v14  ;;  %v2017_v51 = vmul.f32 0.7978846, %v1985_v58  ;;  %v2018_v34 = vmul.f32 0.7978846, %v1986_v26  ;;  %v9540_v15 = vadd.f32 %v1850_v5, %v1691_v43  ;;  %v1862_v20 = vpop.f32.mrb[29].mxu0  ;;  %v1701_v42 = vpop.permute.xlu1 %1700 }
 0x470   :  { %v2109_v0 = vmul.f32 0.5, %v2077_v13  ;;  %v2019_v41 = vmul.f32 0.7978846, %v1987_v38  ;;  %v2020_v16 = vmul.f32 0.7978846, %v1988_v55  ;;  %v2160_v32 = vpack.c.bf16 %v2132_v40, %v2130_v25  ;;  %v1864_v47 = vpop.f32.mrb[30].mxu0 }
 0x471   :  { %5680 = vtanh.f32 %v2017_v51  ;;  %v1893_v6 = vmul.f32 %v9540_v15, %v9540_v15  ;;  %v9544_v10 = vadd.f32 %v1852_v29, %v1691_v43  ;;  %v9546_v30 = vadd.f32 %v1854_v11, %v1696_v50  ;;  %v9548_v14 = vpop.f32.mrb[31].mxu0  ;;  %v1706_v25 = vpop.permute.xlu0 %1705 }
 0x472   :  { %v9551_v5 = vmul.f32 %v2109_v0, %v9446_v21  ;;  %5682 = vtanh.f32 %v2018_v34  ;;  %4194 = vmatprep.subr.bf16.mxu0 %v2160_v32  ;;  %4499 = vmatprep.subr.bf16.mxu1 %v2160_v32  ;;  %v9553_v60 = vadd.f32 %v1856_v12, %v1696_v50  ;;  %v2070_v3 = vadd.f32 1.0, %v9473_v62 }
 0x473   :  { %v5677_v35 = vpop.eup %5676  ;;  %5684 = vtanh.f32 %v2019_v41  ;;  %4195 = vmatpush1.bf16.msra.mxu0 %v2159_v61  ;;  %4500 = vmatpush1.bf16.msra.mxu1 %v2159_v61  ;;  %v1925_v29 = vmul.f32 %v1893_v6, %v9540_v15  ;;  %v1894_v11 = vmul.f32 %v9544_v10, %v9544_v10  ;;  %v1895_v21 = vmul.f32 %v9546_v30, %v9546_v30  ;;  %v3458_v32 = vpop.permute.xlu1 %3457 }
 0x474   :  { %v9561_v9 = vpop.eup %5678  ;;  %v2079_v37 = vadd.f32 1.0, %v5677_v35  ;;  %5686 = vtanh.f32 %v2020_v16  ;;  %v1896_v12 = vmul.f32 %v9553_v60, %v9553_v60  ;;  %v2072_v62 = vadd.f32 1.0, %v9481_v27 }
 0x475   :  { %v1957_v19 = vmul.f32 0.044715, %v1925_v29  ;;  %v1926_v2 = vmul.f32 %v1894_v11, %v9544_v10  ;;  %v1927_v57 = vmul.f32 %v1895_v21, %v9546_v30  ;;  %v2102_v18 = vmul.f32 0.5, %v2070_v3 }
 0x476   :  { %v2111_v8 = vmul.f32 0.5, %v2079_v37  ;;  %v1928_v7 = vmul.f32 %v1896_v12, %v9553_v60  ;;  %v2104_v61 = vmul.f32 0.5, %v2072_v62  ;;  %v2161_v59 = vpack.c.bf16 %v9491_v56, %v9487_v48 }
 0x477   :  { %v1989_v23 = vadd.f32 %v1957_v19, %v9540_v15  ;;  %v1958_v58 = vmul.f32 0.044715, %v1926_v2  ;;  %v1959_v26 = vmul.f32 0.044715, %v1927_v57  ;;  %v2134_v27 = vmul.f32 %v2102_v18, %v9393_v28  ;;  %v3463_v19 = vpop.permute.xlu0 %3462 }
 0x478   :  { %v9574_v43 = vmul.f32 %v2111_v8, %v9468_v24  ;;  %v1960_v13 = vmul.f32 0.044715, %v1928_v7  ;;  %v2136_v38 = vmul.f32 %v2104_v61, %v9403_v1  ;;  %v9577_v55 = vadd.f32 %v1860_v44, %v1701_v42 }
 0x479   :  { %v2021_v40 = vmul.f32 0.7978846, %v1989_v23  ;;  %v1990_v51 = vadd.f32 %v1958_v58, %v9544_v10  ;;  %v1991_v48 = vadd.f32 %v1959_v26, %v9546_v30  ;;  %v9581_v56 = vadd.f32 %v1862_v20, %v1701_v42 }
 0x47a   :  { %v1992_v34 = vadd.f32 %v1960_v13, %v9553_v60  ;;  %v2162_v50 = vpack.c.bf16 %v2136_v38, %v2134_v27  ;;  %v1897_v28 = vmul.f32 %v9577_v55, %v9577_v55  ;;  %v9586_v24 = vadd.f32 %v1864_v47, %v1706_v25 }
 0x47b   :  { %v5681_v0 = vpop.eup %5680  ;;  %5688 = vtanh.f32 %v2021_v40  ;;  %v2022_v1 = vmul.f32 0.7978846, %v1990_v51  ;;  %v2023_v44 = vmul.f32 0.7978846, %v1991_v48  ;;  %v1898_v41 = vmul.f32 %v9581_v56, %v9581_v56 }
 0x47c   :  { %v9590_v16 = vpop.eup %5682  ;;  %v2081_v6 = vadd.f32 1.0, %v5681_v0  ;;  %v2024_v3 = vmul.f32 0.7978846, %v1992_v34  ;;  %4196 = vmatprep.subr.bf16.mxu0 %v2162_v50  ;;  %4501 = vmatprep.subr.bf16.mxu1 %v2162_v50  ;;  %v1929_v35 = vmul.f32 %v1897_v28, %v9577_v55  ;;  %v1899_v47 = vmul.f32 %v9586_v24, %v9586_v24 }
 0x47d   :  { %v3617_v20 = vpop.f32.mrb[0].mxu1  ;;  %v5685_v29 = vpop.eup %5684  ;;  %5690 = vtanh.f32 %v2022_v1  ;;  %4197 = vmatpush1.bf16.msra.mxu0 %v2161_v59  ;;  %4502 = vmatpush1.bf16.msra.mxu1 %v2161_v59  ;;  %v1930_v37 = vmul.f32 %v1898_v41, %v9581_v56  ;;  %v9599_v12 = vadd.f32 %v9548_v14, %v1706_v25 }
 0x47e   :  { %v9595_v11 = vadd.f32 %v3617_v20, %v3458_v32  ;;  %v3619_v21 = vpop.f32.mrb[1].mxu1  ;;  %v9601_v62 = vpop.eup %5686  ;;  %v2113_v18 = vmul.f32 0.5, %v2081_v6  ;;  %v2083_v42 = vadd.f32 1.0, %v5685_v29  ;;  %5692 = vtanh.f32 %v2023_v44 }
 0x47f   :  { %v9603_v2 = vadd.f32 %v3619_v21, %v3458_v32  ;;  %v3621_v57 = vpop.f32.mrb[2].mxu1  ;;  %5694 = vtanh.f32 %v2024_v3  ;;  %v1961_v59 = vmul.f32 0.044715, %v1929_v35  ;;  %v1962_v38 = vmul.f32 0.044715, %v1930_v37  ;;  %v3468_v1 = vpop.permute.xlu1 %3467 }
 0x480   :  { %v3696_v8 = vmul.f32 %v9595_v11, %v9595_v11  ;;  %v9607_v7 = vadd.f32 %v3621_v57, %v3463_v19  ;;  %v3623_v61 = vpop.f32.mrb[3].mxu1  ;;  %v9612_v23 = vmul.f32 %v2113_v18, %v9498_v63  ;;  %v2115_v26 = vmul.f32 0.5, %v2083_v42  ;;  %v3473_v21 = vpop.permute.xlu0 %3472 }
 0x481   :  { %v3697_v14 = vmul.f32 %v9603_v2, %v9603_v2  ;;  %v9614_v58 = vadd.f32 %v3623_v61, %v3463_v19  ;;  %v1993_v13 = vadd.f32 %v1961_v59, %v9577_v55  ;;  %v1931_v63 = vmul.f32 %v1899_v47, %v9586_v24 }
 0x482   :  { %v3728_v27 = vmul.f32 %v3696_v8, %v9595_v11  ;;  %v3698_v25 = vmul.f32 %v9607_v7, %v9607_v7  ;;  %v9624_v48 = vmul.f32 %v2115_v26, %v9502_v22  ;;  %v1994_v0 = vadd.f32 %v1962_v38, %v9581_v56 }
 0x483   :  { %v3729_v40 = vmul.f32 %v3697_v14, %v9603_v2  ;;  %v3699_v51 = vmul.f32 %v9614_v58, %v9614_v58  ;;  %v2025_v28 = vmul.f32 0.7978846, %v1993_v13  ;;  %v9630_v20 = vmul.f32 0.044715, %v1931_v63 }
 0x484   :  { %v3760_v34 = vmul.f32 0.044715, %v3728_v27  ;;  %v3730_v50 = vmul.f32 %v3698_v25, %v9607_v7  ;;  %v9634_v6 = vmul.f32 %v9599_v12, %v9599_v12 }
 0x485   :  { %v3761_v44 = vmul.f32 0.044715, %v3729_v40  ;;  %v3731_v41 = vmul.f32 %v3699_v51, %v9614_v58  ;;  %v3627_v32 = vpop.f32.mrb[4].mxu1  ;;  %v5689_v22 = vpop.eup %5688  ;;  %5696 = vtanh.f32 %v2025_v28 }
 0x486   :  { %v3792_v3 = vadd.f32 %v3760_v34, %v9595_v11  ;;  %v3762_v35 = vmul.f32 0.044715, %v3730_v50  ;;  %v9637_v47 = vadd.f32 %v3627_v32, %v3468_v1  ;;  %v3629_v29 = vpop.f32.mrb[5].mxu1  ;;  %v2085_v42 = vadd.f32 1.0, %v5689_v22 }
 0x487   :  { %v3793_v37 = vadd.f32 %v3761_v44, %v9603_v2  ;;  %v3763_v19 = vmul.f32 0.044715, %v3731_v41  ;;  %v9640_v57 = vadd.f32 %v3629_v29, %v3468_v1  ;;  %v3631_v18 = vpop.f32.mrb[6].mxu1  ;;  %v9642_v8 = vpop.eup %5690 }
 0x488   :  { %v3824_v61 = vmul.f32 0.7978846, %v3792_v3  ;;  %v3794_v59 = vadd.f32 %v3762_v35, %v9607_v7  ;;  %v3700_v14 = vmul.f32 %v9637_v47, %v9637_v47  ;;  %v9647_v26 = vadd.f32 %v3631_v18, %v3473_v21  ;;  %v3633_v27 = vpop.f32.mrb[7].mxu1  ;;  %v5693_v25 = vpop.eup %5692 }
 0x489   :  { %11410 = vst [vmem:[#allocation59_spill] sm:$0xff] %v9640_v57  ;;  %v3825_v13 = vmul.f32 0.7978846, %v3793_v37  ;;  %v3795_v38 = vadd.f32 %v3763_v19, %v9614_v58  ;;  %v3701_v40 = vmul.f32 %v9640_v57, %v9640_v57  ;;  %v2117_v51 = vmul.f32 0.5, %v2085_v42  ;;  %v9652_v63 = vpop.eup %5694  ;;  %v3478_v35 = vpop.permute.xlu1 %3477 }
 0x48a   :  { %5698 = vtanh.f32 %v3824_v61  ;;  %v3826_v34 = vmul.f32 0.7978846, %v3794_v59  ;;  %v3732_v50 = vmul.f32 %v3700_v14, %v9637_v47  ;;  %v3702_v28 = vmul.f32 %v9647_v26, %v9647_v26 }
 0x48b   :  { %5700 = vtanh.f32 %v3825_v13  ;;  %v3827_v1 = vmul.f32 0.7978846, %v3795_v38  ;;  %v3733_v44 = vmul.f32 %v3701_v40, %v9640_v57  ;;  %v9659_v41 = vmul.f32 %v2117_v51, %v9540_v15 }
 0x48c   :  { %5702 = vtanh.f32 %v3826_v34  ;;  %v3764_v32 = vmul.f32 0.044715, %v3732_v50  ;;  %v3734_v22 = vmul.f32 %v3702_v28, %v9647_v26  ;;  %v9662_v3 = vadd.f32 %v3633_v27, %v3473_v21 }
 0x48d   :  { %5704 = vtanh.f32 %v3827_v1  ;;  %v3765_v29 = vmul.f32 0.044715, %v3733_v44  ;;  %v2087_v37 = vadd.f32 1.0, %v5693_v25  ;;  %v3637_v19 = vpop.f32.mrb[8].mxu1  ;;  %v2026_v18 = vmul.f32 0.7978846, %v1994_v0  ;;  %v3483_v25 = vpop.permute.xlu0 %3482 }
 0x48e   :  { %11411 = vst [vmem:[#allocation93_spill] sm:$0xff] %v9662_v3  ;;  %v3796_v42 = vadd.f32 %v3764_v32, %v9637_v47  ;;  %v3766_v61 = vmul.f32 0.044715, %v3734_v22  ;;  %v3703_v59 = vmul.f32 %v9662_v3, %v9662_v3  ;;  %v9667_v15 = vadd.f32 %v3637_v19, %v3478_v35  ;;  %v3639_v14 = vpop.f32.mrb[9].mxu1 }
 0x48f   :  { %v3797_v13 = vadd.f32 %v3765_v29, %v9640_v57  ;;  %v2119_v38 = vmul.f32 0.5, %v2087_v37  ;;  %v9670_v21 = vadd.f32 %v3639_v14, %v3478_v35  ;;  %v3641_v27 = vpop.f32.mrb[10].mxu1  ;;  %5706 = vtanh.f32 %v2026_v18  ;;  %v5697_v40 = vpop.eup %5696 }
 0x490   :  { %v3828_v51 = vmul.f32 0.7978846, %v3796_v42  ;;  %v3798_v0 = vadd.f32 %v3766_v61, %v9647_v26  ;;  %v3735_v34 = vmul.f32 %v3703_v59, %v9662_v3  ;;  %v3704_v50 = vmul.f32 %v9667_v15, %v9667_v15  ;;  %v3643_v28 = vpop.f32.mrb[11].mxu1 }
 0x491   :  { %11412 = vst [vmem:[#allocation115_spill] sm:$0xff] %v9670_v21  ;;  %v3829_v1 = vmul.f32 0.7978846, %v3797_v13  ;;  %v9677_v44 = vmul.f32 %v2119_v38, %v9546_v30  ;;  %v3705_v32 = vmul.f32 %v9670_v21, %v9670_v21  ;;  %v9681_v22 = vadd.f32 %v3641_v27, %v3483_v25 }
 0x492   :  { %5708 = vtanh.f32 %v3828_v51  ;;  %v3830_v35 = vmul.f32 0.7978846, %v3798_v0  ;;  %v3767_v29 = vmul.f32 0.044715, %v3735_v34  ;;  %v3736_v37 = vmul.f32 %v3704_v50, %v9667_v15 }
 0x493   :  { %5710 = vtanh.f32 %v3829_v1  ;;  %v3737_v19 = vmul.f32 %v3705_v32, %v9670_v21  ;;  %v3706_v18 = vmul.f32 %v9681_v22, %v9681_v22  ;;  %v2089_v42 = vadd.f32 1.0, %v5697_v40 }
 0x494   :  { %v5699_v61 = vpop.eup %5698  ;;  %5712 = vtanh.f32 %v3830_v35  ;;  %v3799_v30 = vadd.f32 %v3767_v29, %v9662_v3  ;;  %v3768_v59 = vmul.f32 0.044715, %v3736_v37  ;;  %v9688_v14 = vadd.f32 %v3643_v28, %v3483_v25 }
 0x495   :  { %v9690_v13 = vpop.eup %5700  ;;  %v3888_v38 = vadd.f32 1.0, %v5699_v61  ;;  %v3769_v27 = vmul.f32 0.044715, %v3737_v19  ;;  %v3738_v51 = vmul.f32 %v3706_v18, %v9681_v22  ;;  %v2121_v0 = vmul.f32 0.5, %v2089_v42  ;;  %v3647_v34 = vpop.f32.mrb[12].mxu1 }
 0x496   :  { %11413 = vst [vmem:[#allocation70_spill] sm:$0xff] %v9688_v14  ;;  %v5703_v50 = vpop.eup %5702  ;;  %v3831_v1 = vmul.f32 0.7978846, %v3799_v30  ;;  %v3800_v32 = vadd.f32 %v3768_v59, %v9667_v15  ;;  %v3707_v40 = vmul.f32 %v9688_v14, %v9688_v14  ;;  %v1995_v35 = vadd.f32 %v9630_v20, %v9586_v24  ;;  %v3649_v25 = vpop.f32.mrb[13].mxu1 }
 0x497   :  { %v9698_v28 = vpop.eup %5704  ;;  %v3920_v29 = vmul.f32 0.5, %v3888_v38  ;;  %v3890_v37 = vadd.f32 1.0, %v5703_v50  ;;  %v3801_v19 = vadd.f32 %v3769_v27, %v9670_v21  ;;  %v3770_v18 = vmul.f32 0.044715, %v3738_v51  ;;  %v3651_v42 = vpop.f32.mrb[14].mxu1 }
 0x498   :  { %5714 = vtanh.f32 %v3831_v1  ;;  %v3832_v61 = vmul.f32 0.7978846, %v3800_v32  ;;  %v9702_v30 = vmul.f32 %v2121_v0, %v9577_v55  ;;  %v3739_v59 = vmul.f32 %v3707_v40, %v9688_v14  ;;  %v3653_v3 = vpop.f32.mrb[15].mxu1 }
 0x499   :  { %v9705_v57 = vpop.eup %5706  ;;  %v9708_v20 = vmul.f32 %v3920_v29, %v9595_v11  ;;  %v3922_v33 = vmul.f32 0.5, %v3890_v37  ;;  %v3833_v38 = vmul.f32 0.7978846, %v3801_v19  ;;  %v3802_v50 = vadd.f32 %v3770_v18, %v9681_v22 }
 0x49a   :  { %5716 = vtanh.f32 %v3832_v61  ;;  %v3771_v27 = vmul.f32 0.044715, %v3739_v59  ;;  %v2027_v51 = vmul.f32 0.7978846, %v1995_v35  ;;  %v1932_v1 = vmul.f32 %v9634_v6, %v9599_v12  ;;  %v3488_v35 = vpop.permute.xlu1 %3487 }
 0x49b   :  { %v9714_v55 = vmul.f32 %v3922_v33, %v9607_v7  ;;  %5718 = vtanh.f32 %v3833_v38  ;;  %v3834_v0 = vmul.f32 0.7978846, %v3802_v50  ;;  %v2074_v32 = vadd.f32 1.0, %v9506_v52 }
 0x49c   :  { %v5709_v40 = vpop.eup %5708  ;;  %v3803_v11 = vadd.f32 %v3771_v27, %v9688_v14  ;;  %5720 = vtanh.f32 %v2027_v51  ;;  %v1964_v29 = vmul.f32 0.044715, %v1932_v1  ;;  %v2076_v37 = vadd.f32 1.0, %v9525_v4 }
 0x49d   :  { %v9719_v19 = vpop.eup %5710  ;;  %v3892_v18 = vadd.f32 1.0, %v5709_v40  ;;  %5722 = vtanh.f32 %v3834_v0  ;;  %v2106_v6 = vmul.f32 0.5, %v2074_v32  ;;  %v2163_v33 = vpack.c.bf16 %v9538_v46, %v9521_v36  ;;  %v3657_v7 = vpop.f32.mrb[16].mxu1 }
 0x49e   :  { %v5713_v61 = vpop.eup %5712  ;;  %v3835_v59 = vmul.f32 0.7978846, %v3803_v11  ;;  %v1996_v52 = vadd.f32 %v1964_v29, %v9599_v12  ;;  %v2108_v38 = vmul.f32 0.5, %v2076_v37  ;;  %v9724_v50 = vadd.f32 %v3647_v34, %v3488_v35  ;;  %v9726_v27 = vpop.f32.mrb[17].mxu1 }
 0x49f   :  { %v3924_v4 = vmul.f32 0.5, %v3892_v18  ;;  %v3894_v51 = vadd.f32 1.0, %v5713_v61  ;;  %v2138_v1 = vmul.f32 %v2106_v6, %v9422_v54  ;;  %v9729_v40 = vadd.f32 %v3649_v25, %v3488_v35  ;;  %v9731_v0 = vpop.f32.mrb[18].mxu1  ;;  %v3493_v32 = vpop.permute.xlu0 %3492 }
 0x4a0   :  { %5724 = vtanh.f32 %v3835_v59  ;;  %v2028_v36 = vmul.f32 0.7978846, %v1996_v52  ;;  %v2140_v46 = vmul.f32 %v2108_v38, %v9437_v31  ;;  %v3708_v11 = vmul.f32 %v9724_v50, %v9724_v50  ;;  %v9736_v34 = vpop.f32.mrb[19].mxu1 }
 0x4a1   :  { %v9739_v29 = vmul.f32 %v3924_v4, %v9637_v47  ;;  %v3926_v37 = vmul.f32 0.5, %v3894_v51  ;;  %v3709_v54 = vmul.f32 %v9729_v40, %v9729_v40  ;;  %v9743_v25 = vadd.f32 %v3651_v42, %v3493_v32 }
 0x4a2   :  { %v9745_v35 = vpop.eup %5714  ;;  %5726 = vtanh.f32 %v2028_v36  ;;  %v2164_v18 = vpack.c.bf16 %v2140_v46, %v2138_v1  ;;  %v3740_v31 = vmul.f32 %v3708_v11, %v9724_v50  ;;  %v9748_v6 = vadd.f32 %v3653_v3, %v3493_v32  ;;  %v3498_v1 = vpop.permute.xlu1 %3497 }
 0x4a3   :  { %v9751_v61 = vmul.f32 %v3926_v37, %v9647_v26  ;;  %v3741_v47 = vmul.f32 %v3709_v54, %v9729_v40  ;;  %v3710_v59 = vmul.f32 %v9743_v25, %v9743_v25  ;;  %v2078_v52 = vadd.f32 1.0, %v9532_v39 }
 0x4a4   :  { %v5717_v42 = vpop.eup %5716  ;;  %4198 = vmatprep.subr.bf16.mxu0 %v2164_v18  ;;  %4503 = vmatprep.subr.bf16.mxu1 %v2164_v18  ;;  %v3772_v38 = vmul.f32 0.044715, %v3740_v31  ;;  %v3711_v4 = vmul.f32 %v9748_v6, %v9748_v6  ;;  %v2080_v3 = vadd.f32 1.0, %v9561_v9  ;;  %v2165_v26 = vpack.c.bf16 %v9574_v43, %v9551_v5 }
 0x4a5   :  { %11414 = vst [vmem:[#allocation103_spill] sm:$0xff] %v9751_v61  ;;  %v9762_v51 = vpop.eup %5718  ;;  %v3896_v32 = vadd.f32 1.0, %v5717_v42  ;;  %4199 = vmatpush1.bf16.msra.mxu0 %v2163_v33  ;;  %4504 = vmatpush1.bf16.msra.mxu1 %v2163_v33  ;;  %v3773_v36 = vmul.f32 0.044715, %v3741_v47  ;;  %v3742_v39 = vmul.f32 %v3710_v59, %v9743_v25  ;;  %v2110_v46 = vmul.f32 0.5, %v2078_v52  ;;  %v3667_v11 = vpop.f32.mrb[20].mxu1 }
 0x4a6   :  { %11415 = vst [vmem:[#allocation28_spill] sm:$0xff] %v9762_v51  ;;  %v5721_v37 = vpop.eup %5720  ;;  %v3804_v54 = vadd.f32 %v3772_v38, %v9724_v50  ;;  %v3743_v18 = vmul.f32 %v3711_v4, %v9748_v6  ;;  %v2112_v9 = vmul.f32 0.5, %v2080_v3  ;;  %v9767_v31 = vadd.f32 %v3657_v7, %v3498_v1  ;;  %v3669_v5 = vpop.f32.mrb[21].mxu1 }
 0x4a7   :  { %v5723_v43 = vpop.eup %5722  ;;  %v3928_v14 = vmul.f32 0.5, %v3896_v32  ;;  %v2091_v21 = vadd.f32 1.0, %v5721_v37  ;;  %v3805_v42 = vadd.f32 %v3773_v36, %v9729_v40  ;;  %v3774_v33 = vmul.f32 0.044715, %v3742_v39  ;;  %v9770_v47 = vpop.f32.mrb[22].mxu1 }
 0x4a8   :  { %v3898_v59 = vadd.f32 1.0, %v5723_v43  ;;  %v3836_v52 = vmul.f32 0.7978846, %v3804_v54  ;;  %v3775_v51 = vmul.f32 0.044715, %v3743_v18  ;;  %v2142_v61 = vmul.f32 %v2110_v46, %v9451_v17  ;;  %v9773_v38 = vpop.f32.mrb[23].mxu1 }
 0x4a9   :  { %v9776_v4 = vmul.f32 %v3928_v14, %v9667_v15  ;;  %v2123_v7 = vmul.f32 0.5, %v2091_v21  ;;  %v3837_v3 = vmul.f32 0.7978846, %v3805_v42  ;;  %v3806_v32 = vadd.f32 %v3774_v33, %v9743_v25  ;;  %v3503_v14 = vpop.permute.xlu0 %3502 }
 0x4aa   :  { %v9779_v37 = vpop.eup %5724  ;;  %v3930_v36 = vmul.f32 0.5, %v3898_v59  ;;  %5728 = vtanh.f32 %v3836_v52  ;;  %v3807_v39 = vadd.f32 %v3775_v51, %v9748_v6  ;;  %v2144_v54 = vmul.f32 %v2112_v9, %v9471_v53  ;;  %v3508_v59 = vpop.permute.xlu1 %3507 }
 0x4ab   :  { %v9784_v18 = vmul.f32 %v2123_v7, %v9586_v24  ;;  %5730 = vtanh.f32 %v3837_v3  ;;  %v3838_v17 = vmul.f32 0.7978846, %v3806_v32  ;;  %v3712_v15 = vmul.f32 %v9767_v31, %v9767_v31 }
 0x4ac   :  { %v9788_v21 = vpop.eup %5726  ;;  %v9791_v46 = vmul.f32 %v3930_v36, %v9681_v22  ;;  %v3839_v43 = vmul.f32 0.7978846, %v3807_v39  ;;  %v2166_v42 = vpack.c.bf16 %v2144_v54, %v2142_v61  ;;  %v9794_v51 = vadd.f32 %v9726_v27, %v3498_v1 }
 0x4ad   :  { %5732 = vtanh.f32 %v3838_v17  ;;  %v3744_v53 = vmul.f32 %v3712_v15, %v9767_v31  ;;  %v9798_v24 = vadd.f32 %v9731_v0, %v3503_v14  ;;  %v9801_v9 = vadd.f32 %v9736_v34, %v3503_v14  ;;  %v9803_v33 = vpop.f32.mrb[24].mxu1 }
 0x4ae   :  { %5734 = vtanh.f32 %v3839_v43  ;;  %4200 = vmatprep.subr.bf16.mxu0 %v2166_v42  ;;  %4505 = vmatprep.subr.bf16.mxu1 %v2166_v42  ;;  %v3713_v22 = vmul.f32 %v9794_v51, %v9794_v51  ;;  %v2082_v27 = vadd.f32 1.0, %v9590_v16  ;;  %v2084_v61 = vadd.f32 1.0, %v9601_v62  ;;  %v9809_v1 = vpop.f32.mrb[25].mxu1 }
 0x4af   :  { %4201 = vmatpush1.bf16.msra.mxu0 %v2165_v26  ;;  %4506 = vmatpush1.bf16.msra.mxu1 %v2165_v26  ;;  %v3776_v0 = vmul.f32 0.044715, %v3744_v53  ;;  %v3714_v34 = vmul.f32 %v9798_v24, %v9798_v24  ;;  %v3715_v52 = vmul.f32 %v9801_v9, %v9801_v9  ;;  %v2167_v7 = vpack.c.bf16 %v9624_v48, %v9612_v23  ;;  %v9817_v3 = vpop.f32.mrb[26].mxu1 }
 0x4b0   :  { %v3745_v16 = vmul.f32 %v3713_v22, %v9794_v51  ;;  %v2114_v62 = vmul.f32 0.5, %v2082_v27  ;;  %v2116_v32 = vmul.f32 0.5, %v2084_v61  ;;  %v9820_v36 = vadd.f32 %v3667_v11, %v3508_v59  ;;  %v9822_v39 = vpop.f32.mrb[27].mxu1  ;;  %v3513_v11 = vpop.permute.xlu0 %3512 }
 0x4b1   :  { %v3808_v26 = vadd.f32 %v3776_v0, %v9767_v31  ;;  %v3746_v54 = vmul.f32 %v3714_v34, %v9798_v24  ;;  %v3747_v17 = vmul.f32 %v3715_v52, %v9801_v9  ;;  %v9827_v15 = vadd.f32 %v3669_v5, %v3508_v59 }
 0x4b2   :  { %v3777_v14 = vmul.f32 0.044715, %v3745_v16  ;;  %v2146_v23 = vmul.f32 %v2114_v62, %v9500_v49  ;;  %v2148_v48 = vmul.f32 %v2116_v32, %v9504_v45  ;;  %v3716_v43 = vmul.f32 %v9820_v36, %v9820_v36 }
 0x4b3   :  { %v3840_v42 = vmul.f32 0.7978846, %v3808_v26  ;;  %v3778_v53 = vmul.f32 0.044715, %v3746_v54  ;;  %v3779_v22 = vmul.f32 0.044715, %v3747_v17  ;;  %v3717_v27 = vmul.f32 %v9827_v15, %v9827_v15 }
 0x4b4   :  { %v5729_v61 = vpop.eup %5728  ;;  %v3809_v0 = vadd.f32 %v3777_v14, %v9794_v51  ;;  %v2168_v5 = vpack.c.bf16 %v2148_v48, %v2146_v23  ;;  %v3748_v59 = vmul.f32 %v3716_v43, %v9820_v36  ;;  %v9838_v49 = vadd.f32 %v9770_v47, %v3513_v11 }
 0x4b5   :  { %v9840_v45 = vpop.eup %5730  ;;  %v3900_v34 = vadd.f32 1.0, %v5729_v61  ;;  %5736 = vtanh.f32 %v3840_v42  ;;  %v3810_v52 = vadd.f32 %v3778_v53, %v9798_v24  ;;  %v3811_v16 = vadd.f32 %v3779_v22, %v9801_v9  ;;  %v9844_v62 = vpop.f32.mrb[28].mxu1 }
 0x4b6   :  { %v3841_v32 = vmul.f32 0.7978846, %v3809_v0  ;;  %4202 = vmatprep.subr.bf16.mxu0 %v2168_v5  ;;  %4507 = vmatprep.subr.bf16.mxu1 %v2168_v5  ;;  %v3780_v26 = vmul.f32 0.044715, %v3748_v59  ;;  %v3749_v54 = vmul.f32 %v3717_v27, %v9827_v15  ;;  %v3718_v47 = vmul.f32 %v9838_v49, %v9838_v49  ;;  %v9849_v17 = vpop.f32.mrb[29].mxu1 }
 0x4b7   :  { %v5733_v14 = vpop.eup %5732  ;;  %v3932_v23 = vmul.f32 0.5, %v3900_v34  ;;  %v3842_v48 = vmul.f32 0.7978846, %v3810_v52  ;;  %v3843_v43 = vmul.f32 0.7978846, %v3811_v16  ;;  %4203 = vmatpush1.bf16.msra.mxu0 %v2167_v7  ;;  %4508 = vmatpush1.bf16.msra.mxu1 %v2167_v7  ;;  %v9852_v42 = vadd.f32 %v9773_v38, %v3513_v11  ;;  %v9854_v53 = vpop.f32.mrb[30].mxu1 }
 0x4b8   :  { %v9856_v22 = vpop.eup %5734  ;;  %v3902_v61 = vadd.f32 1.0, %v5733_v14  ;;  %5738 = vtanh.f32 %v3841_v32  ;;  %v3812_v27 = vadd.f32 %v3780_v26, %v9820_v36  ;;  %v3781_v0 = vmul.f32 0.044715, %v3749_v54  ;;  %v9859_v5 = vpop.f32.mrb[31].mxu1 }
 0x4b9   :  { %v9862_v59 = vmul.f32 %v3932_v23, %v9724_v50  ;;  %5740 = vtanh.f32 %v3842_v48  ;;  %v3750_v7 = vmul.f32 %v3718_v47, %v9838_v49  ;;  %v3719_v38 = vmul.f32 %v9852_v42, %v9852_v42  ;;  %v3523_v23 = vpop.permute.xlu0 %3522  ;;  %v3518_v48 = vpop.permute.xlu1 %3517 }
 0x4ba   :  { %v3934_v11 = vmul.f32 0.5, %v3902_v61  ;;  %5742 = vtanh.f32 %v3843_v43  ;;  %v3844_v34 = vmul.f32 0.7978846, %v3812_v27  ;;  %v3813_v52 = vadd.f32 %v3781_v0, %v9827_v15 }
 0x4bb   :  { %v3782_v16 = vmul.f32 0.044715, %v3750_v7  ;;  %v3751_v32 = vmul.f32 %v3719_v38, %v9852_v42  ;;  %v2086_v26 = vadd.f32 1.0, %v9642_v8  ;;  %v2088_v54 = vadd.f32 1.0, %v9652_v63 }
 0x4bc   :  { %v9872_v50 = vmul.f32 %v3934_v11, %v9743_v25  ;;  %5744 = vtanh.f32 %v3844_v34  ;;  %v3845_v47 = vmul.f32 0.7978846, %v3813_v52  ;;  %v2169_v14 = vpack.c.bf16 %v9677_v44, %v9659_v41 }
 0x4bd   :  { %v3814_v43 = vadd.f32 %v3782_v16, %v9838_v49  ;;  %v3783_v61 = vmul.f32 0.044715, %v3751_v32  ;;  %v2118_v27 = vmul.f32 0.5, %v2086_v26  ;;  %v2120_v0 = vmul.f32 0.5, %v2088_v54 }
 0x4be   :  { %5746 = vtanh.f32 %v3845_v47  ;;  %v9878_v8 = vadd.f32 %v9803_v33, %v3518_v48  ;;  %v9881_v63 = vadd.f32 %v9809_v1, %v3518_v48  ;;  %v9884_v25 = vadd.f32 %v9817_v3, %v3523_v23 }
 0x4bf   :  { %v5737_v7 = vpop.eup %5736  ;;  %v3846_v38 = vmul.f32 0.7978846, %v3814_v43  ;;  %v3815_v41 = vadd.f32 %v3783_v61, %v9852_v42  ;;  %v2150_v44 = vmul.f32 %v2118_v27, %v9544_v10  ;;  %v2152_v11 = vmul.f32 %v2120_v0, %v9553_v60 }
 0x4c0   :  { %v3904_v34 = vadd.f32 1.0, %v5737_v7  ;;  %v3720_v52 = vmul.f32 %v9878_v8, %v9878_v8  ;;  %v3721_v33 = vmul.f32 %v9881_v63, %v9881_v63  ;;  %v3722_v1 = vmul.f32 %v9884_v25, %v9884_v25 }
 0x4c1   :  { %5748 = vtanh.f32 %v3846_v38  ;;  %v3847_v3 = vmul.f32 0.7978846, %v3815_v41  ;;  %v2170_v16 = vpack.c.bf16 %v2152_v11, %v2150_v44  ;;  %v9896_v32 = vadd.f32 %v9822_v39, %v3523_v23 }
 0x4c2   :  { %v9898_v26 = vpop.eup %5738  ;;  %v3936_v10 = vmul.f32 0.5, %v3904_v34  ;;  %v3752_v60 = vmul.f32 %v3720_v52, %v9878_v8  ;;  %v3753_v54 = vmul.f32 %v3721_v33, %v9881_v63  ;;  %v3754_v47 = vmul.f32 %v3722_v1, %v9884_v25 }
 0x4c3   :  { %v5741_v48 = vpop.eup %5740  ;;  %5750 = vtanh.f32 %v3847_v3  ;;  %4204 = vmatprep.subr.bf16.mxu0 %v2170_v16  ;;  %4509 = vmatprep.subr.bf16.mxu1 %v2170_v16  ;;  %v3723_v43 = vmul.f32 %v9896_v32, %v9896_v32  ;;  %v2090_v61 = vadd.f32 1.0, %v9705_v57  ;;  %v2092_v39 = vadd.f32 1.0, %v9788_v21 }
 0x4c4   :  { %v9907_v23 = vpop.eup %5742  ;;  %v9910_v27 = vmul.f32 %v3936_v10, %v9767_v31  ;;  %v3906_v0 = vadd.f32 1.0, %v5741_v48  ;;  %4205 = vmatpush1.bf16.msra.mxu0 %v2169_v14  ;;  %4510 = vmatpush1.bf16.msra.mxu1 %v2169_v14  ;;  %v3784_v7 = vmul.f32 0.044715, %v3752_v60  ;;  %v3785_v38 = vmul.f32 0.044715, %v3753_v54  ;;  %v3528_v60 = vpop.permute.xlu1 %3527 }
 0x4c5   :  { %v3786_v41 = vmul.f32 0.044715, %v3754_v47  ;;  %v3755_v44 = vmul.f32 %v3723_v43, %v9896_v32  ;;  %v2122_v11 = vmul.f32 0.5, %v2090_v61  ;;  %v2124_v34 = vmul.f32 0.5, %v2092_v39 }
 0x4c6   :  { %v5745_v52 = vpop.eup %5744  ;;  %v3938_v33 = vmul.f32 0.5, %v3906_v0  ;;  %v3816_v57 = vadd.f32 %v3784_v7, %v9878_v8  ;;  %v3817_v21 = vadd.f32 %v3785_v38, %v9881_v63  ;;  %v2171_v31 = vpack.c.bf16 %v9784_v18, %v9702_v30 }
 0x4c7   :  { %v3908_v1 = vadd.f32 1.0, %v5745_v52  ;;  %v3818_v3 = vadd.f32 %v3786_v41, %v9884_v25  ;;  %v3787_v14 = vmul.f32 0.044715, %v3755_v44  ;;  %v2154_v16 = vmul.f32 %v2122_v11, %v9581_v56  ;;  %v3533_v44 = vpop.permute.xlu0 %3532 }
 0x4c8   :  { %v9919_v10 = vpop.eup %5746  ;;  %v9922_v54 = vmul.f32 %v3938_v33, %v9798_v24  ;;  %v3848_v47 = vmul.f32 0.7978846, %v3816_v57  ;;  %v3849_v48 = vmul.f32 0.7978846, %v3817_v21  ;;  %v2156_v43 = vmul.f32 %v2124_v34, %v9599_v12 }
 0x4c9   :  { %v3940_v61 = vmul.f32 0.5, %v3908_v1  ;;  %v3850_v39 = vmul.f32 0.7978846, %v3818_v3  ;;  %v3819_v30 = vadd.f32 %v3787_v14, %v9896_v32  ;;  %v9927_v18 = vadd.f32 %v9844_v62, %v3528_v60 }
 0x4ca   :  { %5752 = vtanh.f32 %v3848_v47  ;;  %v2172_v0 = vpack.c.bf16 %v2156_v43, %v2154_v16  ;;  %v3889_v56 = vadd.f32 1.0, %v9690_v13  ;;  %v3891_v7 = vadd.f32 1.0, %v9698_v28  ;;  %v5470_v13 = vld [vmem:[%s10698_s10] sm:$0xff]  }
 0x4cb   :  { %v5749_v38 = vpop.eup %5748  ;;  %v9932_v24 = vmul.f32 %v3940_v61, %v9820_v36  ;;  %5754 = vtanh.f32 %v3849_v48  ;;  %v3851_v41 = vmul.f32 0.7978846, %v3819_v30  ;;  %v3724_v12 = vmul.f32 %v9927_v18, %v9927_v18  ;;  %v5471_v28 = vld [vmem:[%s10698_s10 + $0x40] sm:$0xff]   ;;  %v11418_v30 = vld [vmem:[#allocation28_spill] sm:$0xff] }
 0x4cc   :  { %v3910_v11 = vadd.f32 1.0, %v5749_v38  ;;  %5756 = vtanh.f32 %v3850_v39  ;;  %4206 = vmatprep.subr.bf16.mxu0 %v2172_v0  ;;  %4511 = vmatprep.subr.bf16.mxu1 %v2172_v0  ;;  %v3921_v62 = vmul.f32 0.5, %v3889_v56  ;;  %v3923_v34 = vmul.f32 0.5, %v3891_v7  ;;  %v11417_v39 = vld [vmem:[#allocation103_spill] sm:$0xff] }
 0x4cd   :  { %v9942_v36 = vpop.eup %5750  ;;  %5758 = vtanh.f32 %v3851_v41  ;;  %4207 = vmatpush1.bf16.msra.mxu0 %v2171_v31  ;;  %4512 = vmatpush1.bf16.msra.mxu1 %v2171_v31  ;;  %v3756_v52 = vmul.f32 %v3724_v12, %v9927_v18  ;;  %v9946_v33 = vadd.f32 %v9849_v17, %v3528_v60  ;;  %v9949_v57 = vadd.f32 %v9854_v53, %v3533_v44 }
 0x4ce   :  { %v3942_v21 = vmul.f32 0.5, %v3910_v11  ;;  %v3953_v1 = vmul.f32 %v3921_v62, %v9603_v2  ;;  %v3955_v3 = vmul.f32 %v3923_v34, %v9614_v58  ;;  %v9954_v14 = vadd.f32 %v9859_v5, %v3533_v44  ;;  %v11419_v11 = vld [vmem:[#allocation59_spill] sm:$0xff] }
 0x4cf   :  { %v3788_v16 = vmul.f32 0.044715, %v3756_v52  ;;  %v3725_v31 = vmul.f32 %v9946_v33, %v9946_v33  ;;  %v3726_v47 = vmul.f32 %v9949_v57, %v9949_v57  ;;  %v3984_v17 = vpack.c.bf16 %v9714_v55, %v9708_v20 }
 0x4d0   :  { %v9963_v53 = vmul.f32 %v3942_v21, %v9838_v49  ;;  %v3985_v60 = vpack.c.bf16 %v3955_v3, %v3953_v1  ;;  %4225 = vmatmul.mubr.bf16.vlgmr.msra.gmra.mrb[32].mxu0 %v5470_v13  ;;  %4530 = vmatmul.mubr.bf16.vlgmr.msra.gmra.mrb[32].mxu1 %v5471_v28  ;;  %v3727_v2 = vmul.f32 %v9954_v14, %v9954_v14  ;;  %v3893_v58 = vadd.f32 1.0, %v9719_v19  ;;  %v5473_v13 = vld [vmem:[%s10698_s10 + $0x48] sm:$0xff]   ;;  %v11420_v3 = vld [vmem:[#allocation93_spill] sm:$0xff] }
 0x4d1   :  { %v3820_v5 = vadd.f32 %v3788_v16, %v9927_v18  ;;  %v3757_v48 = vmul.f32 %v3725_v31, %v9946_v33  ;;  %v3758_v43 = vmul.f32 %v3726_v47, %v9949_v57  ;;  %v3895_v61 = vadd.f32 1.0, %v9745_v35 }
 0x4d2   :  { %v11416_v20 = vmov 0   ;;  %4818 = vmatprep.subr.bf16.mxu0 %v3985_v60  ;;  %5124 = vmatprep.subr.bf16.mxu1 %v3985_v60  ;;  %v3759_v55 = vmul.f32 %v3727_v2, %v9954_v14  ;;  %v3925_v49 = vmul.f32 0.5, %v3893_v58  ;;  %v3986_v19 = vpack.c.bf16 %v11417_v39, %v9739_v29  ;;  %v5472_v29 = vld [vmem:[%s10698_s10 + $0x8] sm:$0xff]  }
 0x4d3   :  { %4234 = vmatprep.mubr.bf16.mxu0 %v11416_v20  ;;  %4539 = vmatprep.mubr.bf16.mxu1 %v11416_v20  ;;  %v3897_v0 = vadd.f32 1.0, %v11418_v30  ;;  %v3852_v56 = vmul.f32 0.7978846, %v3820_v5  ;;  %v3789_v7 = vmul.f32 0.044715, %v3757_v48  ;;  %v9980_v35 = vpack.c.bf16 %v9791_v46, %v9776_v4 }
 0x4d4   :  { %v3790_v38 = vmul.f32 0.044715, %v3758_v43  ;;  %4819 = vmatpush1.bf16.msra.mxu0 %v3984_v17  ;;  %5125 = vmatpush1.bf16.msra.mxu1 %v3984_v17  ;;  %v5753_v41 = vpop.eup %5752  ;;  %v3791_v12 = vmul.f32 0.044715, %v3759_v55  ;;  %v3927_v44 = vmul.f32 0.5, %v3895_v61  ;;  %v3957_v62 = vmul.f32 %v3925_v49, %v11419_v11  ;;  %v11421_v43 = vld [vmem:[#allocation115_spill] sm:$0xff] }
 0x4d5   :  { %v3899_v34 = vadd.f32 1.0, %v9779_v37  ;;  %v5755_v28 = vpop.eup %5754  ;;  %v3912_v52 = vadd.f32 1.0, %v5753_v41  ;;  %5760 = vtanh.f32 %v3852_v56  ;;  %v3821_v4 = vadd.f32 %v3789_v7, %v9946_v33  ;;  %v11422_v55 = vld [vmem:[#allocation70_spill] sm:$0xff] }
 0x4d6   :  { %v3822_v46 = vadd.f32 %v3790_v38, %v9949_v57  ;;  %v5757_v21 = vpop.eup %5756  ;;  %v3823_v1 = vadd.f32 %v3791_v12, %v9954_v14  ;;  %v3959_v37 = vmul.f32 %v3927_v44, %v11420_v3  ;;  %v3929_v16 = vmul.f32 0.5, %v3897_v0 }
 0x4d7   :  { %v3931_v31 = vmul.f32 0.5, %v3899_v34  ;;  %v5759_v47 = vpop.eup %5758  ;;  %v3944_v17 = vmul.f32 0.5, %v3912_v52  ;;  %v3914_v60 = vadd.f32 1.0, %v5757_v21  ;;  %v3853_v2 = vmul.f32 0.7978846, %v3821_v4 }
 0x4d8   :  { %v3854_v58 = vmul.f32 0.7978846, %v3822_v46  ;;  %v3855_v5 = vmul.f32 0.7978846, %v3823_v1  ;;  %v3987_v48 = vpack.c.bf16 %v3959_v37, %v3957_v62  ;;  %v3961_v61 = vmul.f32 %v3929_v16, %v11421_v43  ;;  %4235 = vmatmul.mubr.bf16.gmra.mrb[36].mxu0 %v5472_v29  ;;  %4540 = vmatmul.mubr.bf16.gmra.mrb[36].mxu1 %v5473_v13 }
 0x4d9   :  { %v3963_v49 = vmul.f32 %v3931_v31, %v11422_v55  ;;  %v3976_v39 = vmul.f32 %v3944_v17, %v9878_v8  ;;  %v3946_v30 = vmul.f32 0.5, %v3914_v60  ;;  %5762 = vtanh.f32 %v3853_v2  ;;  %4244 = vmatprep.mubr.bf16.mxu0 %v11416_v20  ;;  %4549 = vmatprep.mubr.bf16.mxu1 %v11416_v20  ;;  %v5476_v31 = vld [vmem:[%s10698_s10 + $0x18] sm:$0xff]  }
 0x4da   :  { %v3901_v0 = vadd.f32 1.0, %v9840_v45  ;;  %5764 = vtanh.f32 %v3854_v58  ;;  %4820 = vmatprep.subr.bf16.mxu0 %v3987_v48  ;;  %5126 = vmatprep.subr.bf16.mxu1 %v3987_v48  ;;  %v3903_v7 = vadd.f32 1.0, %v9856_v22  ;;  %v3990_v38 = vpack.c.bf16 %v9872_v50, %v9862_v59  ;;  %v5474_v22 = vld [vmem:[%s10698_s10 + $0x10] sm:$0xff]  }
 0x4db   :  { %v3989_v56 = vpack.c.bf16 %v3963_v49, %v3961_v61  ;;  %v3978_v41 = vmul.f32 %v3946_v30, %v9884_v25  ;;  %5766 = vtanh.f32 %v3855_v5  ;;  %4821 = vmatpush1.bf16.msra.mxu0 %v3986_v19  ;;  %5127 = vmatpush1.bf16.msra.mxu1 %v3986_v19  ;;  %v3905_v45 = vadd.f32 1.0, %v9898_v26  ;;  %v5475_v59 = vld [vmem:[%s10698_s10 + $0x50] sm:$0xff]   ;;  %v5484_v30 = vld [vmem:[%s10698_s10 + $0x38] sm:$0xff]  }
 0x4dc   :  { %v3933_v8 = vmul.f32 0.5, %v3901_v0  ;;  %v3935_v12 = vmul.f32 0.5, %v3903_v7  ;;  %v3907_v44 = vadd.f32 1.0, %v9907_v23  ;;  %v3992_v50 = vpack.c.bf16 %v9922_v54, %v9910_v27  ;;  %v5482_v49 = vld [vmem:[%s10698_s10 + $0x30] sm:$0xff]   ;;  %v5485_v0 = vld [vmem:[%s10698_s10 + $0x78] sm:$0xff]   ;;  %v5487_v7 = vld [vmem:[%s10698_s10 + $0x40] sm:$0xff]  }
 0x4dd   :  { %4822 = vmatprep.subr.bf16.mxu0 %v3989_v56  ;;  %5128 = vmatprep.subr.bf16.mxu1 %v3989_v56  ;;  %v3909_v25 = vadd.f32 1.0, %v9919_v10  ;;  %v3937_v19 = vmul.f32 0.5, %v3905_v45  ;;  %v3911_v11 = vadd.f32 1.0, %v9942_v36  ;;  %v3994_v23 = vpack.c.bf16 %v9963_v53, %v9932_v24  ;;  %v5486_v56 = vld [vmem:[%s10698_s10] sm:$0xff]   ;;  %v5491_v45 = vld [vmem:[%s10698_s10 + $0x50] sm:$0xff]  }
 0x4de   :  { %v3965_v26 = vmul.f32 %v3933_v8, %v9729_v40  ;;  %v3967_v62 = vmul.f32 %v3935_v12, %v9748_v6  ;;  %v3939_v34 = vmul.f32 0.5, %v3907_v44  ;;  %v3913_v13 = vadd.f32 1.0, %v5755_v28  ;;  %v5490_v8 = vld [vmem:[%s10698_s10 + $0x10] sm:$0xff]   ;;  %v5492_v12 = vld [vmem:[%s10698_s10 + $0x18] sm:$0xff]  }
 0x4df   :  { %v3941_v29 = vmul.f32 0.5, %v3909_v25  ;;  %v5761_v52 = vpop.eup %5760  ;;  %4823 = vmatpush1.bf16.msra.mxu0 %v9980_v35  ;;  %5129 = vmatpush1.bf16.msra.mxu1 %v9980_v35  ;;  %v3943_v27 = vmul.f32 0.5, %v3911_v11  ;;  %v3915_v10 = vadd.f32 1.0, %v5759_v47  ;;  %v3996_v54 = vpack.c.bf16 %v3978_v41, %v3976_v39  ;;  %v5477_v47 = vld [vmem:[%s10698_s10 + $0x58] sm:$0xff]   ;;  %v5483_v39 = vld [vmem:[%s10698_s10 + $0x70] sm:$0xff]   ;;  %v5489_v41 = vld [vmem:[%s10698_s10 + $0x48] sm:$0xff]   ;;  %v4072_v11 = vpop.permute.xlu0 %4071 }
 0x4e0   :  { %v3916_v40 = vadd.f32 1.0, %v5761_v52  ;;  %v3991_v4 = vpack.c.bf16 %v3967_v62, %v3965_v26  ;;  %v3969_v36 = vmul.f32 %v3937_v19, %v9794_v51  ;;  %v3971_v46 = vmul.f32 %v3939_v34, %v9801_v9  ;;  %4245 = vmatmul.mubr.bf16.gmra.mrb[40].mxu0 %v5474_v22  ;;  %4550 = vmatmul.mubr.bf16.gmra.mrb[40].mxu1 %v5475_v59  ;;  %v5493_v44 = vld [vmem:[%s10698_s10 + $0x58] sm:$0xff]   ;;  %v5494_v22 = vld [vmem:[%s10698_s10 + $0x20] sm:$0xff]   ;;  %v5497_v25 = vld [vmem:[%s10698_s10 + $0x68] sm:$0xff]  }
 0x4e1   :  { %v3973_v6 = vmul.f32 %v3941_v29, %v9827_v15  ;;  %v3975_v24 = vmul.f32 %v3943_v27, %v9852_v42  ;;  %4254 = vmatprep.mubr.bf16.mxu0 %v11416_v20  ;;  %4559 = vmatprep.mubr.bf16.mxu1 %v11416_v20  ;;  %v3945_v53 = vmul.f32 0.5, %v3913_v13  ;;  %v3947_v35 = vmul.f32 0.5, %v3915_v10  ;;  %v5495_v59 = vld [vmem:[%s10698_s10 + $0x60] sm:$0xff]   ;;  %v5498_v26 = vld [vmem:[%s10698_s10 + $0x30] sm:$0xff]   ;;  %v5500_v62 = vld [vmem:[%s10698_s10 + $0x38] sm:$0xff]  }
 0x4e2   :  { %4824 = vmatprep.subr.bf16.mxu0 %v3991_v4  ;;  %5130 = vmatprep.subr.bf16.mxu1 %v3991_v4  ;;  %v3993_v28 = vpack.c.bf16 %v3971_v46, %v3969_v36  ;;  %v3948_v37 = vmul.f32 0.5, %v3916_v40  ;;  %v5499_v19 = vld [vmem:[%s10698_s10 + $0x70] sm:$0xff]   ;;  %v5501_v34 = vld [vmem:[%s10698_s10 + $0x78] sm:$0xff]  }
 0x4e3   :  { %v5763_v21 = vpop.eup %5762  ;;  %4825 = vmatpush1.bf16.msra.mxu0 %v3990_v38  ;;  %5131 = vmatpush1.bf16.msra.mxu1 %v3990_v38  ;;  %v3995_v51 = vpack.c.bf16 %v3975_v24, %v3973_v6  ;;  %v3977_v9 = vmul.f32 %v3945_v53, %v9881_v63  ;;  %v3979_v1 = vmul.f32 %v3947_v35, %v9896_v32  ;;  %v5488_v38 = vld [vmem:[%s10698_s10 + $0x8] sm:$0xff]   ;;  %v10136_v29 = vpop.permute.xlu0 %4081 }
 0x4e4   :  { %v5765_v15 = vpop.eup %5764  ;;  %4826 = vmatprep.subr.bf16.mxu0 %v3993_v28  ;;  %5132 = vmatprep.subr.bf16.mxu1 %v3993_v28  ;;  %v3917_v42 = vadd.f32 1.0, %v5763_v21  ;;  %v3980_v58 = vmul.f32 %v3948_v37, %v9927_v18  ;;  %v5478_v18 = vld [vmem:[%s10698_s10 + $0x20] sm:$0xff]  }
 0x4e5   :  { %v5767_v3 = vpop.eup %5766  ;;  %v3918_v16 = vadd.f32 1.0, %v5765_v15  ;;  %v3997_v17 = vpack.c.bf16 %v3979_v1, %v3977_v9 }
 0x4e6   :  { %v3919_v60 = vadd.f32 1.0, %v5767_v3  ;;  %v3949_v63 = vmul.f32 0.5, %v3917_v42 }
 0x4e7   :  { %v3950_v2 = vmul.f32 0.5, %v3918_v16  ;;  %4827 = vmatpush1.bf16.msra.mxu0 %v3992_v50  ;;  %5133 = vmatpush1.bf16.msra.mxu1 %v3992_v50  ;;  %v5496_v50 = vld [vmem:[%s10698_s10 + $0x28] sm:$0xff]   ;;  %v10140_v52 = vpop.permute.xlu0 %4091 }
 0x4e8   :  { %4828 = vmatprep.subr.bf16.mxu0 %v3995_v51  ;;  %5134 = vmatprep.subr.bf16.mxu1 %v3995_v51  ;;  %v3951_v32 = vmul.f32 0.5, %v3919_v60  ;;  %v3981_v48 = vmul.f32 %v3949_v63, %v9946_v33  ;;  %v5480_v33 = vld [vmem:[%s10698_s10 + $0x28] sm:$0xff]  }
 0x4e9   :  { %v3982_v5 = vmul.f32 %v3950_v2, %v9949_v57  ;;  %4255 = vmatmul.mubr.bf16.gmra.mrb[44].mxu0 %v5476_v31  ;;  %4560 = vmatmul.mubr.bf16.gmra.mrb[44].mxu1 %v5477_v47  ;;  %v5479_v57 = vld [vmem:[%s10698_s10 + $0x60] sm:$0xff]  }
 0x4ea   :  { %4264 = vmatprep.mubr.bf16.mxu0 %v11416_v20  ;;  %4569 = vmatprep.mubr.bf16.mxu1 %v11416_v20  ;;  %v3983_v43 = vmul.f32 %v3951_v32, %v9954_v14  ;;  %v5481_v14 = vld [vmem:[%s10698_s10 + $0x68] sm:$0xff]  }
 0x4eb   :  { %4829 = vmatpush1.bf16.msra.mxu0 %v3994_v23  ;;  %5135 = vmatpush1.bf16.msra.mxu1 %v3994_v23  ;;  %v3998_v61 = vpack.c.bf16 %v3982_v5, %v3980_v58  ;;  %v4067_v23 = vpop.permute.xlu1 %4066  ;;  %v10144_v10 = vpop.permute.xlu0 %4101 }
 0x4ec   :  { %4830 = vmatprep.subr.bf16.mxu0 %v3997_v17  ;;  %5136 = vmatprep.subr.bf16.mxu1 %v3997_v17  ;;  %v3999_v55 = vpack.c.bf16 %v3983_v43, %v3981_v48 }
 0x4ef   :  { %4831 = vmatpush1.bf16.msra.mxu0 %v3996_v54  ;;  %5137 = vmatpush1.bf16.msra.mxu1 %v3996_v54  ;;  %v10138_v13 = vpop.permute.xlu1 %4076  ;;  %v10148_v54 = vpop.permute.xlu0 %4111 }
 0x4f0   :  { %4832 = vmatprep.subr.bf16.mxu0 %v3999_v55  ;;  %5138 = vmatprep.subr.bf16.mxu1 %v3999_v55 }
 0x4f1   :  { %4265 = vmatmul.mubr.bf16.gmra.mrb[48].mxu0 %v5478_v18  ;;  %4570 = vmatmul.mubr.bf16.gmra.mrb[48].mxu1 %v5479_v57 }
 0x4f2   :  { %4274 = vmatprep.mubr.bf16.mxu0 %v11416_v20  ;;  %4579 = vmatprep.mubr.bf16.mxu1 %v11416_v20 }
 0x4f3   :  { %4833 = vmatpush1.bf16.msra.mxu0 %v3998_v61  ;;  %5139 = vmatpush1.bf16.msra.mxu1 %v3998_v61  ;;  %v10142_v27 = vpop.permute.xlu1 %4086  ;;  %v10152_v4 = vpop.permute.xlu0 %4121 }
 0x4f7   :  { %v10156_v46 = vpop.permute.xlu0 %4131 }
 0x4f9   :  { %4275 = vmatmul.mubr.bf16.gmra.mrb[52].mxu0 %v5480_v33  ;;  %4580 = vmatmul.mubr.bf16.gmra.mrb[52].mxu1 %v5481_v14 }
 0x4fa   :  { %4284 = vmatprep.mubr.bf16.mxu0 %v11416_v20  ;;  %4589 = vmatprep.mubr.bf16.mxu1 %v11416_v20 }
 0x4fb   :  { %v10160_v24 = vpop.permute.xlu0 %4141 }
 0x4ff   :  { %v4377_v35 = vpop.permute.xlu0 %4376 }
 0x501   :  { %4285 = vmatmul.mubr.bf16.gmra.mrb[56].mxu0 %v5482_v49  ;;  %4590 = vmatmul.mubr.bf16.gmra.mrb[56].mxu1 %v5483_v39 }
 0x502   :  { %4294 = vmatprep.mubr.bf16.mxu0 %v11416_v20  ;;  %4599 = vmatprep.mubr.bf16.mxu1 %v11416_v20 }
 0x503   :  { %v4387_v21 = vpop.permute.xlu0 %4386 }
 0x507   :  { %v10164_v9 = vpop.permute.xlu0 %4396 }
 0x509   :  { %4295 = vmatmul.mubr.bf16.gmra.mrb[60].mxu0 %v5484_v30  ;;  %4600 = vmatmul.mubr.bf16.gmra.mrb[60].mxu1 %v5485_v0 }
 0x50a   :  { %4850 = vmatprep.mubr.bf16.mxu0 %v11416_v20  ;;  %5156 = vmatprep.mubr.bf16.mxu1 %v11416_v20 }
 0x50b   :  { %v10168_v15 = vpop.permute.xlu0 %4406 }
 0x50f   :  { %v10172_v3 = vpop.permute.xlu0 %4416 }
 0x511   :  { %4851 = vmatmul.mubr.bf16.vlgmr.msra.gmra.mrb[64].mxu0 %v5486_v56  ;;  %5157 = vmatmul.mubr.bf16.vlgmr.msra.gmra.mrb[64].mxu1 %v5487_v7 }
 0x512   :  { %4860 = vmatprep.mubr.bf16.mxu0 %v11416_v20  ;;  %5166 = vmatprep.mubr.bf16.mxu1 %v11416_v20 }
 0x513   :  { %v10176_v16 = vpop.permute.xlu0 %4426 }
 0x517   :  { %v10180_v47 = vpop.permute.xlu0 %4436 }
 0x519   :  { %4861 = vmatmul.mubr.bf16.gmra.mrb[68].mxu0 %v5488_v38  ;;  %5167 = vmatmul.mubr.bf16.gmra.mrb[68].mxu1 %v5489_v41 }
 0x51a   :  { %4870 = vmatprep.mubr.bf16.mxu0 %v11416_v20  ;;  %5176 = vmatprep.mubr.bf16.mxu1 %v11416_v20 }
 0x51b   :  { %v10184_v60 = vpop.permute.xlu0 %4446 }
 0x51f   :  { %v10188_v2 = vpop.permute.xlu0 %4697 }
 0x521   :  { %4871 = vmatmul.mubr.bf16.gmra.mrb[72].mxu0 %v5490_v8  ;;  %5177 = vmatmul.mubr.bf16.gmra.mrb[72].mxu1 %v5491_v45 }
 0x522   :  { %4880 = vmatprep.mubr.bf16.mxu0 %v11416_v20  ;;  %5186 = vmatprep.mubr.bf16.mxu1 %v11416_v20 }
 0x523   :  { %v10216_v38 = vpop.permute.xlu0 %4707 }
 0x529   :  { %4881 = vmatmul.mubr.bf16.gmra.mrb[76].mxu0 %v5492_v12  ;;  %5187 = vmatmul.mubr.bf16.gmra.mrb[76].mxu1 %v5493_v44 }
 0x52a   :  { %4890 = vmatprep.mubr.bf16.mxu0 %v11416_v20  ;;  %5196 = vmatprep.mubr.bf16.mxu1 %v11416_v20 }
 0x531   :  { %4891 = vmatmul.mubr.bf16.gmra.mrb[80].mxu0 %v5494_v22  ;;  %5197 = vmatmul.mubr.bf16.gmra.mrb[80].mxu1 %v5495_v59 }
 0x532   :  { %4900 = vmatprep.mubr.bf16.mxu0 %v11416_v20  ;;  %5206 = vmatprep.mubr.bf16.mxu1 %v11416_v20 }
 0x539   :  { %4901 = vmatmul.mubr.bf16.gmra.mrb[84].mxu0 %v5496_v50  ;;  %5207 = vmatmul.mubr.bf16.gmra.mrb[84].mxu1 %v5497_v25 }
 0x53a   :  { %4910 = vmatprep.mubr.bf16.mxu0 %v11416_v20  ;;  %5216 = vmatprep.mubr.bf16.mxu1 %v11416_v20 }
 0x541   :  { %4911 = vmatmul.mubr.bf16.gmra.mrb[88].mxu0 %v5498_v26  ;;  %5217 = vmatmul.mubr.bf16.gmra.mrb[88].mxu1 %v5499_v19 }
 0x542   :  { %4920 = vmatprep.mubr.bf16.mxu0 %v11416_v20  ;;  %5226 = vmatprep.mubr.bf16.mxu1 %v11416_v20  ;;  %v10146_v20 = vpop.permute.xlu1 %4096 }
 0x546   :  { %v10150_v40 = vpop.permute.xlu1 %4106 }
 0x549   :  { %4921 = vmatmul.mubr.bf16.gmra.mrb[92].mxu0 %v5500_v62  ;;  %5227 = vmatmul.mubr.bf16.gmra.mrb[92].mxu1 %v5501_v34 }
 0x54a   :  { %v10154_v36 = vpop.permute.xlu1 %4116 }
 0x54e   :  { %v10158_v6 = vpop.permute.xlu1 %4126 }
 0x552   :  { %v10162_v53 = vpop.permute.xlu1 %4136 }
 0x556   :  { %v4372_v28 = vpop.permute.xlu1 %4371 }
 0x55a   :  { %v4382_v51 = vpop.permute.xlu1 %4381 }
 0x55e   :  { %v10166_v1 = vpop.permute.xlu1 %4391 }
 0x562   :  { %v10170_v42 = vpop.permute.xlu1 %4401 }
 0x566   :  { %v10174_v37 = vpop.permute.xlu1 %4411 }
 0x56a   :  { %v10178_v31 = vpop.permute.xlu1 %4421 }
 0x56e   :  { %v10182_v17 = vpop.permute.xlu1 %4431 }
 0x572   :  { %v10186_v63 = vpop.permute.xlu1 %4441 }
 0x576   :  { %v10190_v32 = vpop.permute.xlu1 %4692 }
 0x57a   :  { %v10218_v41 = vpop.permute.xlu1 %4702 }
 0x5a3   :  { %v4226_v58 = vpop.f32.mrb[32].mxu0  ;;  %v4531_v5 = vpop.f32.mrb[32].mxu1 }
 0x5a4   :  { %v4227_v48 = vadd.f32 %v4226_v58, %v4067_v23  ;;  %v4532_v43 = vadd.f32 %v4531_v5, %v4372_v28  ;;  %v4228_v61 = vpop.f32.mrb[33].mxu0  ;;  %v4533_v55 = vpop.f32.mrb[33].mxu1 }
 0x5a5   :  { %v4229_v18 = vadd.f32 %v4228_v61, %v4067_v23  ;;  %v4534_v57 = vadd.f32 %v4533_v55, %v4372_v28  ;;  %v4230_v33 = vpop.f32.mrb[34].mxu0  ;;  %v4535_v14 = vpop.f32.mrb[34].mxu1 }
 0x5a6   :  { %4305 = vst [vmem:[%s10700_s12] sm:$0xff] %v4227_v48  ;;  %4610 = vst [vmem:[%s10700_s12 + $0x100] sm:$0xff] %v4532_v43  ;;  %v4231_v49 = vadd.f32 %v4230_v33, %v4072_v11  ;;  %v4536_v39 = vadd.f32 %v4535_v14, %v4377_v35  ;;  %v4232_v30 = vpop.f32.mrb[35].mxu0  ;;  %v4537_v0 = vpop.f32.mrb[35].mxu1 }
 0x5a7   :  { %4306 = vst [vmem:[%s10700_s12 + $0x8] sm:$0xff] %v4229_v18  ;;  %4611 = vst [vmem:[%s10700_s12 + $0x108] sm:$0xff] %v4534_v57  ;;  %v4233_v56 = vadd.f32 %v4232_v30, %v4072_v11  ;;  %v4538_v7 = vadd.f32 %v4537_v0, %v4377_v35  ;;  %v10248_v28 = vpop.permute.xlu0 %4717 }
 0x5a8   :  { %4307 = vst [vmem:[%s10700_s12 + $0x10] sm:$0xff] %v4231_v49  ;;  %4612 = vst [vmem:[%s10700_s12 + $0x110] sm:$0xff] %v4536_v39 }
 0x5a9   :  { %4308 = vst [vmem:[%s10700_s12 + $0x18] sm:$0xff] %v4233_v56  ;;  %4613 = vst [vmem:[%s10700_s12 + $0x118] sm:$0xff] %v4538_v7 }
 0x5ab   :  { %v4236_v8 = vpop.f32.mrb[36].mxu0  ;;  %v4541_v45 = vpop.f32.mrb[36].mxu1 }
 0x5ac   :  { %v4237_v12 = vadd.f32 %v4236_v8, %v10138_v13  ;;  %v4542_v44 = vadd.f32 %v4541_v45, %v4382_v51  ;;  %v4238_v22 = vpop.f32.mrb[37].mxu0  ;;  %v4543_v59 = vpop.f32.mrb[37].mxu1 }
 0x5ad   :  { %v4239_v50 = vadd.f32 %v4238_v22, %v10138_v13  ;;  %v4544_v25 = vadd.f32 %v4543_v59, %v4382_v51  ;;  %v4240_v26 = vpop.f32.mrb[38].mxu0  ;;  %v4545_v19 = vpop.f32.mrb[38].mxu1 }
 0x5ae   :  { %4309 = vst [vmem:[%s10700_s12 + $0x20] sm:$0xff] %v4237_v12  ;;  %4614 = vst [vmem:[%s10700_s12 + $0x120] sm:$0xff] %v4542_v44  ;;  %v4241_v11 = vadd.f32 %v4240_v26, %v10136_v29  ;;  %v4546_v23 = vadd.f32 %v4545_v19, %v4387_v21  ;;  %v4242_v62 = vpop.f32.mrb[39].mxu0  ;;  %v4547_v34 = vpop.f32.mrb[39].mxu1 }
 0x5af   :  { %4310 = vst [vmem:[%s10700_s12 + $0x28] sm:$0xff] %v4239_v50  ;;  %4615 = vst [vmem:[%s10700_s12 + $0x128] sm:$0xff] %v4544_v25  ;;  %v4243_v13 = vadd.f32 %v4242_v62, %v10136_v29  ;;  %v4548_v35 = vadd.f32 %v4547_v34, %v4387_v21  ;;  %v10250_v29 = vpop.permute.xlu1 %4712  ;;  %v10284_v30 = vpop.permute.xlu0 %4727 }
 0x5b0   :  { %4311 = vst [vmem:[%s10700_s12 + $0x30] sm:$0xff] %v4241_v11  ;;  %4616 = vst [vmem:[%s10700_s12 + $0x130] sm:$0xff] %v4546_v23 }
 0x5b1   :  { %4312 = vst [vmem:[%s10700_s12 + $0x38] sm:$0xff] %v4243_v13  ;;  %4617 = vst [vmem:[%s10700_s12 + $0x138] sm:$0xff] %v4548_v35 }
 0x5b3   :  { %v4246_v21 = vpop.f32.mrb[40].mxu0  ;;  %v4551_v51 = vpop.f32.mrb[40].mxu1 }
 0x5b4   :  { %v4247_v58 = vadd.f32 %v4246_v21, %v10142_v27  ;;  %v4552_v5 = vadd.f32 %v4551_v51, %v10166_v1  ;;  %v4248_v48 = vpop.f32.mrb[41].mxu0  ;;  %v4553_v43 = vpop.f32.mrb[41].mxu1 }
 0x5b5   :  { %v4249_v61 = vadd.f32 %v4248_v48, %v10142_v27  ;;  %v4554_v55 = vadd.f32 %v4553_v43, %v10166_v1  ;;  %v4250_v18 = vpop.f32.mrb[42].mxu0  ;;  %v4555_v57 = vpop.f32.mrb[42].mxu1 }
 0x5b6   :  { %4313 = vst [vmem:[%s10700_s12 + $0x40] sm:$0xff] %v4247_v58  ;;  %4618 = vst [vmem:[%s10700_s12 + $0x140] sm:$0xff] %v4552_v5  ;;  %v4251_v33 = vadd.f32 %v4250_v18, %v10140_v52  ;;  %v4556_v14 = vadd.f32 %v4555_v57, %v10164_v9  ;;  %v4252_v49 = vpop.f32.mrb[43].mxu0  ;;  %v4557_v39 = vpop.f32.mrb[43].mxu1 }
 0x5b7   :  { %4314 = vst [vmem:[%s10700_s12 + $0x48] sm:$0xff] %v4249_v61  ;;  %4619 = vst [vmem:[%s10700_s12 + $0x148] sm:$0xff] %v4554_v55  ;;  %v4253_v27 = vadd.f32 %v4252_v49, %v10140_v52  ;;  %v4558_v1 = vadd.f32 %v4557_v39, %v10164_v9  ;;  %v10286_v52 = vpop.permute.xlu1 %4722  ;;  %v10320_v11 = vpop.permute.xlu0 %4737 }
 0x5b8   :  { %4315 = vst [vmem:[%s10700_s12 + $0x50] sm:$0xff] %v4251_v33  ;;  %4620 = vst [vmem:[%s10700_s12 + $0x150] sm:$0xff] %v4556_v14 }
 0x5b9   :  { %4316 = vst [vmem:[%s10700_s12 + $0x58] sm:$0xff] %v4253_v27  ;;  %4621 = vst [vmem:[%s10700_s12 + $0x158] sm:$0xff] %v4558_v1 }
 0x5bb   :  { %v10356_v18 = vpop.permute.xlu0 %4747 }
 0x5bc   :  { %v4256_v9 = vpop.f32.mrb[44].mxu0  ;;  %v4561_v0 = vpop.f32.mrb[44].mxu1 }
 0x5bd   :  { %v4257_v56 = vadd.f32 %v4256_v9, %v10146_v20  ;;  %v4562_v7 = vadd.f32 %v4561_v0, %v10170_v42  ;;  %v4258_v8 = vpop.f32.mrb[45].mxu0  ;;  %v4563_v45 = vpop.f32.mrb[45].mxu1 }
 0x5be   :  { %v4259_v12 = vadd.f32 %v4258_v8, %v10146_v20  ;;  %v4564_v44 = vadd.f32 %v4563_v45, %v10170_v42  ;;  %v4260_v22 = vpop.f32.mrb[46].mxu0  ;;  %v4565_v59 = vpop.f32.mrb[46].mxu1 }
 0x5bf   :  { %4317 = vst [vmem:[%s10700_s12 + $0x60] sm:$0xff] %v4257_v56  ;;  %4622 = vst [vmem:[%s10700_s12 + $0x160] sm:$0xff] %v4562_v7  ;;  %v4261_v50 = vadd.f32 %v4260_v22, %v10144_v10  ;;  %v4566_v25 = vadd.f32 %v4565_v59, %v10168_v15  ;;  %v4262_v26 = vpop.f32.mrb[47].mxu0  ;;  %v4567_v19 = vpop.f32.mrb[47].mxu1 }
 0x5c0   :  { %4318 = vst [vmem:[%s10700_s12 + $0x68] sm:$0xff] %v4259_v12  ;;  %4623 = vst [vmem:[%s10700_s12 + $0x168] sm:$0xff] %v4564_v44  ;;  %v4263_v20 = vadd.f32 %v4262_v26, %v10144_v10  ;;  %v4568_v42 = vadd.f32 %v4567_v19, %v10168_v15  ;;  %v10322_v10 = vpop.permute.xlu1 %4732  ;;  %v10392_v12 = vpop.permute.xlu0 %4757 }
 0x5c1   :  { %4319 = vst [vmem:[%s10700_s12 + $0x70] sm:$0xff] %v4261_v50  ;;  %4624 = vst [vmem:[%s10700_s12 + $0x170] sm:$0xff] %v4566_v25 }
 0x5c2   :  { %4320 = vst [vmem:[%s10700_s12 + $0x78] sm:$0xff] %v4263_v20  ;;  %4625 = vst [vmem:[%s10700_s12 + $0x178] sm:$0xff] %v4568_v42 }
 0x5c4   :  { %v4266_v15 = vpop.f32.mrb[48].mxu0  ;;  %v4571_v23 = vpop.f32.mrb[48].mxu1 }
 0x5c5   :  { %v4267_v62 = vadd.f32 %v4266_v15, %v10150_v40  ;;  %v4572_v34 = vadd.f32 %v4571_v23, %v10174_v37  ;;  %v4268_v13 = vpop.f32.mrb[49].mxu0  ;;  %v4573_v35 = vpop.f32.mrb[49].mxu1 }
 0x5c6   :  { %v4269_v21 = vadd.f32 %v4268_v13, %v10150_v40  ;;  %v4574_v51 = vadd.f32 %v4573_v35, %v10174_v37  ;;  %v4270_v58 = vpop.f32.mrb[50].mxu0  ;;  %v4575_v5 = vpop.f32.mrb[50].mxu1 }
 0x5c7   :  { %4321 = vst [vmem:[%s10700_s12 + $0x80] sm:$0xff] %v4267_v62  ;;  %4626 = vst [vmem:[%s10700_s12 + $0x180] sm:$0xff] %v4572_v34  ;;  %v4271_v48 = vadd.f32 %v4270_v58, %v10148_v54  ;;  %v4576_v43 = vadd.f32 %v4575_v5, %v10172_v3  ;;  %v4272_v61 = vpop.f32.mrb[51].mxu0  ;;  %v4577_v55 = vpop.f32.mrb[51].mxu1 }
 0x5c8   :  { %4322 = vst [vmem:[%s10700_s12 + $0x88] sm:$0xff] %v4269_v21  ;;  %4627 = vst [vmem:[%s10700_s12 + $0x188] sm:$0xff] %v4574_v51  ;;  %v4273_v40 = vadd.f32 %v4272_v61, %v10148_v54  ;;  %v4578_v37 = vadd.f32 %v4577_v55, %v10172_v3  ;;  %v10358_v54 = vpop.permute.xlu1 %4742  ;;  %v10428_v13 = vpop.permute.xlu0 %4767 }
 0x5c9   :  { %4323 = vst [vmem:[%s10700_s12 + $0x90] sm:$0xff] %v4271_v48  ;;  %4628 = vst [vmem:[%s10700_s12 + $0x190] sm:$0xff] %v4576_v43 }
 0x5ca   :  { %4324 = vst [vmem:[%s10700_s12 + $0x98] sm:$0xff] %v4273_v40  ;;  %4629 = vst [vmem:[%s10700_s12 + $0x198] sm:$0xff] %v4578_v37 }
 0x5cc   :  { %v4276_v3 = vpop.f32.mrb[52].mxu0  ;;  %v4581_v57 = vpop.f32.mrb[52].mxu1 }
 0x5cd   :  { %v4277_v33 = vadd.f32 %v4276_v3, %v10154_v36  ;;  %v4582_v14 = vadd.f32 %v4581_v57, %v10178_v31  ;;  %v4278_v49 = vpop.f32.mrb[53].mxu0  ;;  %v4583_v39 = vpop.f32.mrb[53].mxu1 }
 0x5ce   :  { %v4279_v27 = vadd.f32 %v4278_v49, %v10154_v36  ;;  %v4584_v1 = vadd.f32 %v4583_v39, %v10178_v31  ;;  %v4280_v9 = vpop.f32.mrb[54].mxu0  ;;  %v4585_v0 = vpop.f32.mrb[54].mxu1 }
 0x5cf   :  { %4325 = vst [vmem:[%s10700_s12 + $0xa0] sm:$0xff] %v4277_v33  ;;  %4630 = vst [vmem:[%s10700_s12 + $0x1a0] sm:$0xff] %v4582_v14  ;;  %v4281_v56 = vadd.f32 %v4280_v9, %v10152_v4  ;;  %v4586_v7 = vadd.f32 %v4585_v0, %v10176_v16  ;;  %v4282_v8 = vpop.f32.mrb[55].mxu0  ;;  %v4587_v45 = vpop.f32.mrb[55].mxu1 }
 0x5d0   :  { %4326 = vst [vmem:[%s10700_s12 + $0xa8] sm:$0xff] %v4279_v27  ;;  %4631 = vst [vmem:[%s10700_s12 + $0x1a8] sm:$0xff] %v4584_v1  ;;  %v4283_v36 = vadd.f32 %v4282_v8, %v10152_v4  ;;  %v4588_v31 = vadd.f32 %v4587_v45, %v10176_v16  ;;  %v10394_v4 = vpop.permute.xlu1 %4752  ;;  %v5004_v33 = vpop.permute.xlu0 %5003 }
 0x5d1   :  { %4327 = vst [vmem:[%s10700_s12 + $0xb0] sm:$0xff] %v4281_v56  ;;  %4632 = vst [vmem:[%s10700_s12 + $0x1b0] sm:$0xff] %v4586_v7 }
 0x5d2   :  { %4328 = vst [vmem:[%s10700_s12 + $0xb8] sm:$0xff] %v4283_v36  ;;  %4633 = vst [vmem:[%s10700_s12 + $0x1b8] sm:$0xff] %v4588_v31 }
 0x5d4   :  { %v4286_v16 = vpop.f32.mrb[56].mxu0  ;;  %v4591_v44 = vpop.f32.mrb[56].mxu1 }
 0x5d5   :  { %v4287_v22 = vadd.f32 %v4286_v16, %v10158_v6  ;;  %v4592_v59 = vadd.f32 %v4591_v44, %v10182_v17  ;;  %v4288_v50 = vpop.f32.mrb[57].mxu0  ;;  %v4593_v25 = vpop.f32.mrb[57].mxu1 }
 0x5d6   :  { %v4289_v26 = vadd.f32 %v4288_v50, %v10158_v6  ;;  %v4594_v19 = vadd.f32 %v4593_v25, %v10182_v17  ;;  %v4290_v20 = vpop.f32.mrb[58].mxu0  ;;  %v4595_v42 = vpop.f32.mrb[58].mxu1 }
 0x5d7   :  { %4329 = vst [vmem:[%s10700_s12 + $0xc0] sm:$0xff] %v4287_v22  ;;  %4634 = vst [vmem:[%s10700_s12 + $0x1c0] sm:$0xff] %v4592_v59  ;;  %v4291_v15 = vadd.f32 %v4290_v20, %v10156_v46  ;;  %v4596_v23 = vadd.f32 %v4595_v42, %v10180_v47  ;;  %v4292_v62 = vpop.f32.mrb[59].mxu0  ;;  %v4597_v34 = vpop.f32.mrb[59].mxu1 }
 0x5d8   :  { %4330 = vst [vmem:[%s10700_s12 + $0xc8] sm:$0xff] %v4289_v26  ;;  %4635 = vst [vmem:[%s10700_s12 + $0x1c8] sm:$0xff] %v4594_v19  ;;  %v4293_v6 = vadd.f32 %v4292_v62, %v10156_v46  ;;  %v4598_v17 = vadd.f32 %v4597_v34, %v10180_v47  ;;  %v10430_v46 = vpop.permute.xlu1 %4762  ;;  %v5014_v44 = vpop.permute.xlu0 %5013 }
 0x5d9   :  { %4331 = vst [vmem:[%s10700_s12 + $0xd0] sm:$0xff] %v4291_v15  ;;  %4636 = vst [vmem:[%s10700_s12 + $0x1d0] sm:$0xff] %v4596_v23 }
 0x5da   :  { %4332 = vst [vmem:[%s10700_s12 + $0xd8] sm:$0xff] %v4293_v6  ;;  %4637 = vst [vmem:[%s10700_s12 + $0x1d8] sm:$0xff] %v4598_v17 }
 0x5dc   :  { %v4296_v47 = vpop.f32.mrb[60].mxu0  ;;  %v4601_v35 = vpop.f32.mrb[60].mxu1 }
 0x5dd   :  { %v4297_v21 = vadd.f32 %v4296_v47, %v10162_v53  ;;  %v4602_v51 = vadd.f32 %v4601_v35, %v10186_v63  ;;  %v4298_v58 = vpop.f32.mrb[61].mxu0  ;;  %v4603_v5 = vpop.f32.mrb[61].mxu1 }
 0x5de   :  { %v4299_v48 = vadd.f32 %v4298_v58, %v10162_v53  ;;  %v4604_v43 = vadd.f32 %v4603_v5, %v10186_v63  ;;  %v4300_v61 = vpop.f32.mrb[62].mxu0  ;;  %v4605_v55 = vpop.f32.mrb[62].mxu1 }
 0x5df   :  { %4333 = vst [vmem:[%s10700_s12 + $0xe0] sm:$0xff] %v4297_v21  ;;  %4638 = vst [vmem:[%s10700_s12 + $0x1e0] sm:$0xff] %v4602_v51  ;;  %v4301_v40 = vadd.f32 %v4300_v61, %v10160_v24  ;;  %v4606_v37 = vadd.f32 %v4605_v55, %v10184_v60  ;;  %v4302_v3 = vpop.f32.mrb[63].mxu0  ;;  %v4607_v57 = vpop.f32.mrb[63].mxu1 }
 0x5e0   :  { %4334 = vst [vmem:[%s10700_s12 + $0xe8] sm:$0xff] %v4299_v48  ;;  %4639 = vst [vmem:[%s10700_s12 + $0x1e8] sm:$0xff] %v4604_v43  ;;  %v4303_v53 = vadd.f32 %v4302_v3, %v10160_v24  ;;  %v4608_v63 = vadd.f32 %v4607_v57, %v10184_v60  ;;  %v4999_v24 = vpop.permute.xlu1 %4998  ;;  %v5024_v35 = vpop.permute.xlu0 %5023 }
 0x5e1   :  { %4335 = vst [vmem:[%s10700_s12 + $0xf0] sm:$0xff] %v4301_v40  ;;  %4640 = vst [vmem:[%s10700_s12 + $0x1f0] sm:$0xff] %v4606_v37 }
 0x5e2   :  { %4336 = vst [vmem:[%s10700_s12 + $0xf8] sm:$0xff] %v4303_v53  ;;  %4641 = vst [vmem:[%s10700_s12 + $0x1f8] sm:$0xff] %v4608_v63 }
 0x5e4   :  { %v4852_v14 = vpop.f32.mrb[64].mxu0  ;;  %v5158_v60 = vpop.f32.mrb[64].mxu1 }
 0x5e5   :  { %v4853_v49 = vadd.f32 %v4852_v14, %v10190_v32  ;;  %v5159_v39 = vadd.f32 %v5158_v60, %v4999_v24  ;;  %v4854_v27 = vpop.f32.mrb[65].mxu0  ;;  %v5160_v1 = vpop.f32.mrb[65].mxu1 }
 0x5e6   :  { %v4855_v9 = vadd.f32 %v4854_v27, %v10190_v32  ;;  %v5161_v0 = vadd.f32 %v5160_v1, %v4999_v24  ;;  %v4856_v56 = vpop.f32.mrb[66].mxu0  ;;  %v5162_v7 = vpop.f32.mrb[66].mxu1 }
 0x5e7   :  { %5336 = vst [vmem:[%s10700_s12 + $0x200] sm:$0xff] %v4853_v49  ;;  %5376 = vst [vmem:[%s10700_s12 + $0x300] sm:$0xff] %v5159_v39  ;;  %v4857_v8 = vadd.f32 %v4856_v56, %v10188_v2  ;;  %v5163_v45 = vadd.f32 %v5162_v7, %v5004_v33  ;;  %v4858_v36 = vpop.f32.mrb[67].mxu0  ;;  %v5164_v31 = vpop.f32.mrb[67].mxu1 }
 0x5e8   :  { %5337 = vst [vmem:[%s10700_s12 + $0x208] sm:$0xff] %v4855_v9  ;;  %5377 = vst [vmem:[%s10700_s12 + $0x308] sm:$0xff] %v5161_v0  ;;  %v4859_v32 = vadd.f32 %v4858_v36, %v10188_v2  ;;  %v5165_v16 = vadd.f32 %v5164_v31, %v5004_v33  ;;  %v5009_v22 = vpop.permute.xlu1 %5008  ;;  %v5034_v24 = vpop.permute.xlu0 %5033 }
 0x5e9   :  { %5338 = vst [vmem:[%s10700_s12 + $0x210] sm:$0xff] %v4857_v8  ;;  %5378 = vst [vmem:[%s10700_s12 + $0x310] sm:$0xff] %v5163_v45 }
 0x5ea   :  { %5339 = vst [vmem:[%s10700_s12 + $0x218] sm:$0xff] %v4859_v32  ;;  %5379 = vst [vmem:[%s10700_s12 + $0x318] sm:$0xff] %v5165_v16 }
 0x5ec   :  { %v4862_v2 = vpop.f32.mrb[68].mxu0  ;;  %v5168_v59 = vpop.f32.mrb[68].mxu1 }
 0x5ed   :  { %v4863_v50 = vadd.f32 %v4862_v2, %v10218_v41  ;;  %v5169_v25 = vadd.f32 %v5168_v59, %v5009_v22  ;;  %v4864_v26 = vpop.f32.mrb[69].mxu0  ;;  %v5170_v19 = vpop.f32.mrb[69].mxu1 }
 0x5ee   :  { %v4865_v20 = vadd.f32 %v4864_v26, %v10218_v41  ;;  %v5171_v42 = vadd.f32 %v5170_v19, %v5009_v22  ;;  %v4866_v15 = vpop.f32.mrb[70].mxu0  ;;  %v5172_v23 = vpop.f32.mrb[70].mxu1 }
 0x5ef   :  { %5340 = vst [vmem:[%s10700_s12 + $0x220] sm:$0xff] %v4863_v50  ;;  %5380 = vst [vmem:[%s10700_s12 + $0x320] sm:$0xff] %v5169_v25  ;;  %v4867_v62 = vadd.f32 %v4866_v15, %v10216_v38  ;;  %v5173_v34 = vadd.f32 %v5172_v23, %v5014_v44  ;;  %v4868_v6 = vpop.f32.mrb[71].mxu0  ;;  %v5174_v17 = vpop.f32.mrb[71].mxu1 }
 0x5f0   :  { %5341 = vst [vmem:[%s10700_s12 + $0x228] sm:$0xff] %v4865_v20  ;;  %5381 = vst [vmem:[%s10700_s12 + $0x328] sm:$0xff] %v5171_v42  ;;  %v4869_v41 = vadd.f32 %v4868_v6, %v10216_v38  ;;  %v5175_v47 = vadd.f32 %v5174_v17, %v5014_v44  ;;  %v5019_v21 = vpop.permute.xlu1 %5018  ;;  %v5044_v16 = vpop.permute.xlu0 %5043 }
 0x5f1   :  { %5342 = vst [vmem:[%s10700_s12 + $0x230] sm:$0xff] %v4867_v62  ;;  %5382 = vst [vmem:[%s10700_s12 + $0x330] sm:$0xff] %v5173_v34 }
 0x5f2   :  { %5343 = vst [vmem:[%s10700_s12 + $0x238] sm:$0xff] %v4869_v41  ;;  %5383 = vst [vmem:[%s10700_s12 + $0x338] sm:$0xff] %v5175_v47 }
 0x5f4   :  { %v4872_v38 = vpop.f32.mrb[72].mxu0  ;;  %v5178_v51 = vpop.f32.mrb[72].mxu1 }
 0x5f5   :  { %v4873_v58 = vadd.f32 %v4872_v38, %v10250_v29  ;;  %v5179_v5 = vadd.f32 %v5178_v51, %v5019_v21  ;;  %v4874_v48 = vpop.f32.mrb[73].mxu0  ;;  %v5180_v43 = vpop.f32.mrb[73].mxu1 }
 0x5f6   :  { %v4875_v61 = vadd.f32 %v4874_v48, %v10250_v29  ;;  %v5181_v55 = vadd.f32 %v5180_v43, %v5019_v21  ;;  %v4876_v40 = vpop.f32.mrb[74].mxu0  ;;  %v5182_v37 = vpop.f32.mrb[74].mxu1 }
 0x5f7   :  { %5344 = vst [vmem:[%s10700_s12 + $0x240] sm:$0xff] %v4873_v58  ;;  %5384 = vst [vmem:[%s10700_s12 + $0x340] sm:$0xff] %v5179_v5  ;;  %v4877_v3 = vadd.f32 %v4876_v40, %v10248_v28  ;;  %v5183_v57 = vadd.f32 %v5182_v37, %v5024_v35  ;;  %v4878_v53 = vpop.f32.mrb[75].mxu0  ;;  %v5184_v63 = vpop.f32.mrb[75].mxu1 }
 0x5f8   :  { %5345 = vst [vmem:[%s10700_s12 + $0x248] sm:$0xff] %v4875_v61  ;;  %5385 = vst [vmem:[%s10700_s12 + $0x348] sm:$0xff] %v5181_v55  ;;  %v4879_v29 = vadd.f32 %v4878_v53, %v10248_v28  ;;  %v5185_v33 = vadd.f32 %v5184_v63, %v5024_v35  ;;  %v5029_v14 = vpop.permute.xlu1 %5028  ;;  %v5054_v17 = vpop.permute.xlu0 %5053 }
 0x5f9   :  { %5346 = vst [vmem:[%s10700_s12 + $0x250] sm:$0xff] %v4877_v3  ;;  %5386 = vst [vmem:[%s10700_s12 + $0x350] sm:$0xff] %v5183_v57 }
 0x5fa   :  { %5347 = vst [vmem:[%s10700_s12 + $0x258] sm:$0xff] %v4879_v29  ;;  %5387 = vst [vmem:[%s10700_s12 + $0x358] sm:$0xff] %v5185_v33 }
 0x5fc   :  { %v4882_v28 = vpop.f32.mrb[76].mxu0  ;;  %v5188_v60 = vpop.f32.mrb[76].mxu1 }
 0x5fd   :  { %v4883_v49 = vadd.f32 %v4882_v28, %v10286_v52  ;;  %v5189_v39 = vadd.f32 %v5188_v60, %v5029_v14  ;;  %v4884_v27 = vpop.f32.mrb[77].mxu0  ;;  %v5190_v1 = vpop.f32.mrb[77].mxu1 }
 0x5fe   :  { %v4885_v9 = vadd.f32 %v4884_v27, %v10286_v52  ;;  %v5191_v0 = vadd.f32 %v5190_v1, %v5029_v14  ;;  %v4886_v56 = vpop.f32.mrb[78].mxu0  ;;  %v5192_v7 = vpop.f32.mrb[78].mxu1 }
 0x5ff   :  { %5348 = vst [vmem:[%s10700_s12 + $0x260] sm:$0xff] %v4883_v49  ;;  %5388 = vst [vmem:[%s10700_s12 + $0x360] sm:$0xff] %v5189_v39  ;;  %v4887_v8 = vadd.f32 %v4886_v56, %v10284_v30  ;;  %v5193_v45 = vadd.f32 %v5192_v7, %v5034_v24  ;;  %v4888_v36 = vpop.f32.mrb[79].mxu0  ;;  %v5194_v31 = vpop.f32.mrb[79].mxu1 }
 0x600   :  { %5349 = vst [vmem:[%s10700_s12 + $0x268] sm:$0xff] %v4885_v9  ;;  %5389 = vst [vmem:[%s10700_s12 + $0x368] sm:$0xff] %v5191_v0  ;;  %v4889_v52 = vadd.f32 %v4888_v36, %v10284_v30  ;;  %v5195_v32 = vadd.f32 %v5194_v31, %v5034_v24  ;;  %v5039_v44 = vpop.permute.xlu1 %5038  ;;  %v5064_v57 = vpop.permute.xlu0 %5063 }
 0x601   :  { %5350 = vst [vmem:[%s10700_s12 + $0x270] sm:$0xff] %v4887_v8  ;;  %5390 = vst [vmem:[%s10700_s12 + $0x370] sm:$0xff] %v5193_v45 }
 0x602   :  { %5351 = vst [vmem:[%s10700_s12 + $0x278] sm:$0xff] %v4889_v52  ;;  %5391 = vst [vmem:[%s10700_s12 + $0x378] sm:$0xff] %v5195_v32 }
 0x604   :  { %v4892_v30 = vpop.f32.mrb[80].mxu0  ;;  %v5198_v22 = vpop.f32.mrb[80].mxu1 }
 0x605   :  { %v4893_v2 = vadd.f32 %v4892_v30, %v10322_v10  ;;  %v5199_v59 = vadd.f32 %v5198_v22, %v5039_v44  ;;  %v4894_v50 = vpop.f32.mrb[81].mxu0  ;;  %v5200_v25 = vpop.f32.mrb[81].mxu1 }
 0x606   :  { %v4895_v26 = vadd.f32 %v4894_v50, %v10322_v10  ;;  %v5201_v19 = vadd.f32 %v5200_v25, %v5039_v44  ;;  %v4896_v20 = vpop.f32.mrb[82].mxu0  ;;  %v5202_v42 = vpop.f32.mrb[82].mxu1 }
 0x607   :  { %5352 = vst [vmem:[%s10700_s12 + $0x280] sm:$0xff] %v4893_v2  ;;  %5392 = vst [vmem:[%s10700_s12 + $0x380] sm:$0xff] %v5199_v59  ;;  %v4897_v15 = vadd.f32 %v4896_v20, %v10320_v11  ;;  %v5203_v23 = vadd.f32 %v5202_v42, %v5044_v16  ;;  %v4898_v62 = vpop.f32.mrb[83].mxu0  ;;  %v5204_v34 = vpop.f32.mrb[83].mxu1 }
 0x608   :  { %5353 = vst [vmem:[%s10700_s12 + $0x288] sm:$0xff] %v4895_v26  ;;  %5393 = vst [vmem:[%s10700_s12 + $0x388] sm:$0xff] %v5201_v19  ;;  %v4899_v10 = vadd.f32 %v4898_v62, %v10320_v11  ;;  %v5205_v6 = vadd.f32 %v5204_v34, %v5044_v16  ;;  %v5049_v41 = vpop.permute.xlu1 %5048  ;;  %v5074_v7 = vpop.permute.xlu0 %5073 }
 0x609   :  { %5354 = vst [vmem:[%s10700_s12 + $0x290] sm:$0xff] %v4897_v15  ;;  %5394 = vst [vmem:[%s10700_s12 + $0x390] sm:$0xff] %v5203_v23 }
 0x60a   :  { %5355 = vst [vmem:[%s10700_s12 + $0x298] sm:$0xff] %v4899_v10  ;;  %5395 = vst [vmem:[%s10700_s12 + $0x398] sm:$0xff] %v5205_v6 }
 0x60c   :  { %v4902_v11 = vpop.f32.mrb[84].mxu0  ;;  %v5208_v47 = vpop.f32.mrb[84].mxu1 }
 0x60d   :  { %v4903_v35 = vadd.f32 %v4902_v11, %v10358_v54  ;;  %v5209_v21 = vadd.f32 %v5208_v47, %v5049_v41  ;;  %v4904_v38 = vpop.f32.mrb[85].mxu0  ;;  %v5210_v51 = vpop.f32.mrb[85].mxu1 }
 0x60e   :  { %v4905_v58 = vadd.f32 %v4904_v38, %v10358_v54  ;;  %v5211_v5 = vadd.f32 %v5210_v51, %v5049_v41  ;;  %v4906_v48 = vpop.f32.mrb[86].mxu0  ;;  %v5212_v43 = vpop.f32.mrb[86].mxu1 }
 0x60f   :  { %5356 = vst [vmem:[%s10700_s12 + $0x2a0] sm:$0xff] %v4903_v35  ;;  %5396 = vst [vmem:[%s10700_s12 + $0x3a0] sm:$0xff] %v5209_v21  ;;  %v4907_v61 = vadd.f32 %v4906_v48, %v10356_v18  ;;  %v5213_v55 = vadd.f32 %v5212_v43, %v5054_v17  ;;  %v4908_v40 = vpop.f32.mrb[87].mxu0  ;;  %v5214_v37 = vpop.f32.mrb[87].mxu1 }
 0x610   :  { %5357 = vst [vmem:[%s10700_s12 + $0x2a8] sm:$0xff] %v4905_v58  ;;  %5397 = vst [vmem:[%s10700_s12 + $0x3a8] sm:$0xff] %v5211_v5  ;;  %v4909_v54 = vadd.f32 %v4908_v40, %v10356_v18  ;;  %v5215_v3 = vadd.f32 %v5214_v37, %v5054_v17  ;;  %v5059_v53 = vpop.permute.xlu1 %5058 }
 0x611   :  { %5358 = vst [vmem:[%s10700_s12 + $0x2b0] sm:$0xff] %v4907_v61  ;;  %5398 = vst [vmem:[%s10700_s12 + $0x3b0] sm:$0xff] %v5213_v55 }
 0x612   :  { %5359 = vst [vmem:[%s10700_s12 + $0x2b8] sm:$0xff] %v4909_v54  ;;  %5399 = vst [vmem:[%s10700_s12 + $0x3b8] sm:$0xff] %v5215_v3 }
 0x614   :  { %v4912_v18 = vpop.f32.mrb[88].mxu0  ;;  %v5218_v63 = vpop.f32.mrb[88].mxu1 }
 0x615   :  { %v4913_v29 = vadd.f32 %v4912_v18, %v10394_v4  ;;  %v5219_v33 = vadd.f32 %v5218_v63, %v5059_v53  ;;  %v4914_v24 = vpop.f32.mrb[89].mxu0  ;;  %v5220_v14 = vpop.f32.mrb[89].mxu1 }
 0x616   :  { %v4915_v28 = vadd.f32 %v4914_v24, %v10394_v4  ;;  %v5221_v60 = vadd.f32 %v5220_v14, %v5059_v53  ;;  %v4916_v49 = vpop.f32.mrb[90].mxu0  ;;  %v5222_v39 = vpop.f32.mrb[90].mxu1 }
 0x617   :  { %5360 = vst [vmem:[%s10700_s12 + $0x2c0] sm:$0xff] %v4913_v29  ;;  %5400 = vst [vmem:[%s10700_s12 + $0x3c0] sm:$0xff] %v5219_v33  ;;  %v4917_v27 = vadd.f32 %v4916_v49, %v10392_v12  ;;  %v5223_v1 = vadd.f32 %v5222_v39, %v5064_v57  ;;  %v4918_v9 = vpop.f32.mrb[91].mxu0  ;;  %v5224_v0 = vpop.f32.mrb[91].mxu1 }
 0x618   :  { %5361 = vst [vmem:[%s10700_s12 + $0x2c8] sm:$0xff] %v4915_v28  ;;  %5401 = vst [vmem:[%s10700_s12 + $0x3c8] sm:$0xff] %v5221_v60  ;;  %v4919_v4 = vadd.f32 %v4918_v9, %v10392_v12  ;;  %v5225_v56 = vadd.f32 %v5224_v0, %v5064_v57  ;;  %v5069_v8 = vpop.permute.xlu1 %5068 }
 0x619   :  { %5362 = vst [vmem:[%s10700_s12 + $0x2d0] sm:$0xff] %v4917_v27  ;;  %5402 = vst [vmem:[%s10700_s12 + $0x3d0] sm:$0xff] %v5223_v1 }
 0x61a   :  { %5363 = vst [vmem:[%s10700_s12 + $0x2d8] sm:$0xff] %v4919_v4  ;;  %5403 = vst [vmem:[%s10700_s12 + $0x3d8] sm:$0xff] %v5225_v56 }
 0x61c   :  { %v4922_v12 = vpop.f32.mrb[92].mxu0  ;;  %v5228_v45 = vpop.f32.mrb[92].mxu1 }
 0x61d   :  { %v4923_v36 = vadd.f32 %v4922_v12, %v10430_v46  ;;  %v5229_v31 = vadd.f32 %v5228_v45, %v5069_v8  ;;  %v4924_v52 = vpop.f32.mrb[93].mxu0  ;;  %v5230_v32 = vpop.f32.mrb[93].mxu1 }
 0x61e   :  { %v4925_v16 = vadd.f32 %v4924_v52, %v10430_v46  ;;  %v5231_v44 = vadd.f32 %v5230_v32, %v5069_v8  ;;  %v4926_v30 = vpop.f32.mrb[94].mxu0  ;;  %v5232_v22 = vpop.f32.mrb[94].mxu1 }
 0x61f   :  { %5364 = vst [vmem:[%s10700_s12 + $0x2e0] sm:$0xff] %v4923_v36  ;;  %5404 = vst [vmem:[%s10700_s12 + $0x3e0] sm:$0xff] %v5229_v31  ;;  %v4927_v2 = vadd.f32 %v4926_v30, %v10428_v13  ;;  %v5233_v59 = vadd.f32 %v5232_v22, %v5074_v7  ;;  %v4928_v50 = vpop.f32.mrb[95].mxu0  ;;  %v5234_v25 = vpop.f32.mrb[95].mxu1 }
 0x620   :  { %5365 = vst [vmem:[%s10700_s12 + $0x2e8] sm:$0xff] %v4925_v16  ;;  %5405 = vst [vmem:[%s10700_s12 + $0x3e8] sm:$0xff] %v5231_v44  ;;  %v4929_v46 = vadd.f32 %v4928_v50, %v10428_v13  ;;  %v5235_v26 = vadd.f32 %v5234_v25, %v5074_v7 }
 0x621   :  { %5366 = vst [vmem:[%s10700_s12 + $0x2f0] sm:$0xff] %v4927_v2  ;;  %5406 = vst [vmem:[%s10700_s12 + $0x3f0] sm:$0xff] %v5233_v59 }
 0x622   :  { %5367 = vst [vmem:[%s10700_s12 + $0x2f8] sm:$0xff] %v4929_v46  ;;  %5407 = vst [vmem:[%s10700_s12 + $0x3f8] sm:$0xff] %v5235_v26 }
 0x623   :  { %5273 = vsyncpa [#allocation4], 1 }
 0x624   :  { %5274 = vsyncpa [#allocation6], 1 }

</bundles_post_ra>
